<compile_context>
chip_gen: v6e
topology: v6e:2x2x1
jax: 0.10.0
libtpu: 0.0.40
codegen_flags: <defaults>
</compile_context>

<pallas_src>
import functools

import jax
import jax.numpy as jnp
from jax.experimental import pallas as pl
from jax.experimental.pallas import tpu as pltpu  # TPU backend assumed

# ----------------------------------------------------------------------------
# Config (small, consistent with the module: n_inner = 4 * n_hidden)
# ----------------------------------------------------------------------------
CFG = dict(
    x_dim=2,        # per-node feature dim of x graphs (trunk_size = x_dim + u_dim)
    u_dim=2,        # global parameter dim u_p
    branch_size=3,  # = Dz
    space_dim=2,
    output_size=3,
    n_layers=2,     # number of MoECrossAttentionBlocks
    n_hidden=32,    # n_embd
    n_head=1,
    n_experts=2,
    mlp_layers=2,
)

LANE = 128


def _round_up(x, m):
    return (x + m - 1) // m * m


def _gelu(x):
    # NOTE: PyTorch nn.GELU() is erf-exact; tanh approximation used (TPU EUP path).
    return jax.nn.gelu(x, approximate=True)


def _layernorm(x, g, b, eps=1e-5):
    x = x.astype(jnp.float32)
    mean = jnp.mean(x, axis=-1, keepdims=True)
    var = jnp.mean(jnp.square(x - mean), axis=-1, keepdims=True)
    return (x - mean) * jax.lax.rsqrt(var + eps) * g + b


def _mm(a, b):
    """MXU matmul: bf16 operands, f32 accumulation."""
    return jnp.dot(a.astype(jnp.bfloat16), b.astype(jnp.bfloat16),
                   preferred_element_type=jnp.float32)


# ----------------------------------------------------------------------------
# Shared forward core.
# Works both on a pytree of VMEM Refs (inside the Pallas kernel: ref[...] / ref[i]
# loads) and on a pytree of plain arrays (pure-JAX reference: identical indexing).
# ----------------------------------------------------------------------------
def _forward_core(x_in, u_in, z_in, p, dims):
    (B, T1, T2, C, S, H, E, INNER, L, NMLP) = dims
    f32 = jnp.float32
    bf16 = jnp.bfloat16

    x_in = x_in.astype(f32)     # [B*T1, Dx]
    u_in = u_in.astype(f32)     # [B, Du]
    z_in = z_in.astype(f32)     # [B*T2, Dz]
    pos = x_in[:, :S]           # [B*T1, S]

    # ---- generic MLP tail: n residual hidden layers (act) + post linear ----
    def mlp_tail(h, mp):
        for i in range(NMLP):
            h = _gelu(_mm(h, mp["hid_w"][i]) + mp["hid_b"][i]) + h
        return _mm(h, mp["post_w"][...]) + mp["post_b"][...]

    # ---- trunk MLP: u_p contribution folded into the first linear layer ----
    tp = p["trunk"]
    u_term = _mm(u_in, tp["pre_wu"][...])                                  # [B, C]
    u_rows = jnp.concatenate(
        [jnp.broadcast_to(u_term[b:b + 1, :], (T1, C)) for b in range(B)], axis=0)
    x = mlp_tail(_gelu(_mm(x_in, tp["pre_wx"][...]) + u_rows + tp["pre_b"][...]), tp)

    # ---- branch MLP ----
    bp = p["branch"]
    z = mlp_tail(_gelu(_mm(z_in, bp["pre_w"][...]) + bp["pre_b"][...]), bp)

    # ---- 'l1' linear attention (fused for all batch rows; per-batch context) ----
    def attn(xq, ykv, Tk, wq, bq, wk, bk, wv, bv, wp, bpj):
        q_all = _mm(xq, wq) + bq                                           # [B*T1, C]
        k_all = _mm(ykv, wk) + bk                                          # [B*Tk, C]
        v_all = _mm(ykv, wv) + bv
        d = C // H
        heads = []
        for hi in range(H):  # static; n_head == 1 -> full slice, no lane split
            sl = slice(hi * d, (hi + 1) * d)
            q = jax.nn.softmax(q_all[:, sl], axis=-1)
            k = jax.nn.softmax(k_all[:, sl], axis=-1)
            v = v_all[:, sl]
            per_b = []
            for b in range(B):  # static loop; slices are sublane (8) aligned
                qb = q[b * T1:(b + 1) * T1]                                # [T1, d]
                kb = k[b * Tk:(b + 1) * Tk]                                # [Tk, d]
                vb = v[b * Tk:(b + 1) * Tk]
                k_cum = jnp.sum(kb, axis=0, keepdims=True)                 # [1, d]
                denom = jnp.sum(qb * k_cum, axis=-1, keepdims=True)        # [T1, 1]
                ctx = jax.lax.dot_general(                                 # k^T v, no transpose
                    kb.astype(bf16), vb.astype(bf16),
                    dimension_numbers=(((0,), (0,)), ((), ())),
                    preferred_element_type=f32)                            # [d, d]
                per_b.append(_mm(qb, ctx) * (1.0 / denom) + qb)            # q@ctx*Dinv + q
            y = per_b[0] if B == 1 else jnp.concatenate(per_b, axis=0)     # [B*T1, d]
            heads.append(y)
        y = heads[0] if H == 1 else jnp.concatenate(heads, axis=-1)        # 'b h n d -> b n (h d)'
        return _mm(y, wp) + bpj

    blk = p["blocks"]
    for l in range(L):  # static loop over layer-stacked block weights
        lng = blk["ln_g"][l]                                               # [5, C]
        lnb = blk["ln_b"][l]

        def ln(v, i):
            return _layernorm(v, lng[i:i + 1, :], lnb[i:i + 1, :])

        # gate network on pos (per-block weights, shared by both MoE FFNs)
        g = _gelu(_mm(pos, blk["g1_w"][l]) + blk["g1_b"][l])
        g = _gelu(_mm(g, blk["g2_w"][l]) + blk["g2_b"][l])
        gate = jax.nn.softmax(_mm(g, blk["g3_w"][l]) + blk["g3_b"][l], axis=-1)  # [B*T1, E]

        # MoE FFN with batched expert matmuls (W1 packed -> [C, E*inner], W2 vstacked)
        def moe(xm):
            hmoe = _gelu(_mm(xm, blk["moe_w1"][l]) + blk["moe_b1"][l])     # [B*T1, E*inner]
            parts = [gate[:, e:e + 1] * hmoe[:, e * INNER:(e + 1) * INNER]
                     for e in range(E)]                                    # 128-aligned slices
            hg = parts[0] if E == 1 else jnp.concatenate(parts, axis=-1)
            return _mm(hg, blk["moe_w2"][l]) + _mm(gate, blk["moe_b2"][l])

        # cross-attention branch:  x = x + crossattn(ln1(x), ln2(z))
        x = x + attn(ln(x, 0), ln(z, 1), T2,
                     blk["ca_wq"][l], blk["ca_bq"][l], blk["ca_wk"][l], blk["ca_bk"][l],
                     blk["ca_wv"][l], blk["ca_bv"][l], blk["ca_wp"][l], blk["ca_bp"][l])
        # MoE FFN 1:              x = x + ln3(sum_e gate_e * expert_e(x))
        x = x + ln(moe(x), 2)
        # self-attention branch:  x = x + selfattn(ln4(x))
        x4 = ln(x, 3)
        x = x + attn(x4, x4, T1,
                     blk["sa_wq"][l], blk["sa_bq"][l], blk["sa_wk"][l], blk["sa_bk"][l],
                     blk["sa_wv"][l], blk["sa_bv"][l], blk["sa_wp"][l], blk["sa_bp"][l])
        # MoE FFN 2 (reference forward reuses moe_mlp1 weights; preserved)
        x = x + ln(moe(x), 4)

    # ---- out MLP (post layer zero-padded to a lane-dense 128-wide output) ----
    op = p["out"]
    return mlp_tail(_gelu(_mm(x, op["pre_w"][...]) + op["pre_b"][...]), op)  # [B*T1, 128]


# ----------------------------------------------------------------------------
# The single fused Pallas kernel (one invocation, everything VMEM-resident)
# ----------------------------------------------------------------------------
def _fused_forward_kernel(x_ref, u_ref, z_ref, *rest, treedef, dims):
    o_ref = rest[-1]
    p = jax.tree_util.tree_unflatten(treedef, rest[:-1])
    y = _forward_core(x_ref[...], u_ref[...], z_ref[...], p, dims)
    o_ref[...] = y.astype(o_ref.dtype)


def moe_gpt_no_forward(params, x_feats, u_p, z_feats, cfg):
    b, t1, dx = x_feats.shape
    t2, dz = z_feats.shape[1], z_feats.shape[2]
    c = cfg["n_hidden"]
    assert t1 % 8 == 0 and t2 % 8 == 0, "sequence lengths must be sublane (8) aligned"
    assert c % cfg["n_head"] == 0
    dims = (b, t1, t2, c, cfg["space_dim"], cfg["n_head"], cfg["n_experts"],
            4 * c, cfg["n_layers"], cfg["mlp_layers"])

    x2d = x_feats.reshape(b * t1, dx)
    z2d = z_feats.reshape(b * t2, dz)
    leaves, treedef = jax.tree_util.tree_flatten(params)
    out_pad = params["out"]["post_w"].shape[1]

    # coarse cost estimate (advisory, helps XLA schedule around the custom call)
    n1, n2 = b * t1, b * t2
    inner = 4 * c
    mlp_mm = (2 * cfg["mlp_layers"] + 2) * c * c
    attn_mm = 2 * (4 * c * c + 2 * (c // cfg["n_head"]) * c)
    moe_mm = 2 * 2 * c * inner * cfg["n_experts"]
    gate_mm = cfg["space_dim"] * inner + inner * inner + inner * cfg["n_experts"]
    flops = 2 * ((2 * n1 + n2) * mlp_mm
                 + n1 * cfg["n_layers"] * (attn_mm + moe_mm + gate_mm))
    trans = (n1 * cfg["n_layers"] * (2 * inner * cfg["n_experts"] + 2 * inner + 4 * c)
             + (2 * n1 + n2) * c * (cfg["mlp_layers"] + 1))
    bytes_acc = int(sum(w.size * w.dtype.itemsize for w in leaves)
                    + (x2d.size + u_p.size + z2d.size) * 4 + n1 * out_pad * 4)

    kern = functools.partial(_fused_forward_kernel, treedef=treedef, dims=dims)
    out = pl.pallas_call(
        kern,
        out_shape=jax.ShapeDtypeStruct((n1, out_pad), jnp.float32),
        cost_estimate=pl.CostEstimate(flops=int(flops), transcendentals=int(trans),
                                      bytes_accessed=bytes_acc),
    )(x2d, u_p, z2d, *leaves)
    return out[:, :cfg["output_size"]]


def moe_gpt_no_reference(params, x_feats, u_p, z_feats, cfg):
    """Pure-JAX reference running the identical math (same bf16 MXU casts)."""
    b, t1, dx = x_feats.shape
    t2, dz = z_feats.shape[1], z_feats.shape[2]
    c = cfg["n_hidden"]
    dims = (b, t1, t2, c, cfg["space_dim"], cfg["n_head"], cfg["n_experts"],
            4 * c, cfg["n_layers"], cfg["mlp_layers"])
    y = _forward_core(x_feats.reshape(b * t1, dx), u_p,
                      z_feats.reshape(b * t2, dz), params, dims)
    return y[:, :cfg["output_size"]]


# ----------------------------------------------------------------------------
# Deterministic synthetic parameter init (packed / stacked / bf16 layouts)
# ----------------------------------------------------------------------------
def _w(key, shape, scale=0.02, dtype=jnp.bfloat16):
    return (scale * jax.random.normal(key, shape, jnp.float32)).astype(dtype)


def _b(key, shape, scale=0.02):
    return scale * jax.random.normal(key, shape, jnp.float32)


def _init_mlp(key, d_in, d_h, d_out, n_layers, out_pad=None):
    ks = jax.random.split(key, 2 * n_layers + 4)
    post_w = _w(ks[-2], (d_h, d_out))
    post_b = _b(ks[-1], (1, d_out))
    if out_pad is not None and out_pad != d_out:
        post_w = jnp.pad(post_w, ((0, 0), (0, out_pad - d_out)))
        post_b = jnp.pad(post_b, ((0, 0), (0, out_pad - d_out)))
    return {"pre_w": _w(ks[0], (d_in, d_h)), "pre_b": _b(ks[1], (1, d_h)),
            "hid_w": jnp.stack([_w(ks[2 + 2 * i], (d_h, d_h)) for i in range(n_layers)]),
            "hid_b": jnp.stack([_b(ks[3 + 2 * i], (1, d_h)) for i in range(n_layers)]),
            "post_w": post_w, "post_b": post_b}


def _init_trunk(key, x_dim, u_dim, d_h, n_layers):
    m = _init_mlp(key, x_dim + u_dim, d_h, d_h, n_layers)
    pre_w = m.pop("pre_w")
    m["pre_wx"] = pre_w[:x_dim]    # u_p contribution folded into the first layer
    m["pre_wu"] = pre_w[x_dim:]
    return m


def _init_blocks(key, n_layers, c, inner, n_experts, space_dim):
    def one(k):
        ks = iter(jax.random.split(k, 32))
        nk = lambda: next(ks)
        d = {"ln_g": jnp.ones((5, c), jnp.float32),    # ln1..ln5 gammas stacked
             "ln_b": jnp.zeros((5, c), jnp.float32),   # ln1..ln5 betas stacked
             "g1_w": _w(nk(), (space_dim, inner)), "g1_b": _b(nk(), (1, inner)),
             "g2_w": _w(nk(), (inner, inner)),     "g2_b": _b(nk(), (1, inner)),
             "g3_w": _w(nk(), (inner, n_experts)), "g3_b": _b(nk(), (1, n_experts))}
        for pre in ("ca", "sa"):
            for nm in ("q", "k", "v", "p"):
                d[f"{pre}_w{nm}"] = _w(nk(), (c, c))
                d[f"{pre}_b{nm}"] = _b(nk(), (1, c))
        # moe_mlp1 experts packed for batched expert matmuls
        d["moe_w1"] = jnp.concatenate([_w(nk(), (c, inner)) for _ in range(n_experts)], axis=1)
        d["moe_b1"] = jnp.concatenate([_b(nk(), (1, inner)) for _ in range(n_experts)], axis=1)
        d["moe_w2"] = jnp.concatenate([_w(nk(), (inner, c)) for _ in range(n_experts)], axis=0)
        d["moe_b2"] = jnp.concatenate([_b(nk(), (1, c)) for _ in range(n_experts)], axis=0)
        # NOTE: moe_mlp2 exists in the torch module but is unused in forward.
        return d

    per_layer = [one(k) for k in jax.random.split(key, n_layers)]
    return jax.tree_util.tree_map(lambda *xs: jnp.stack(xs, axis=0), *per_layer)


def init_params(key, cfg):
    c = cfg["n_hidden"]
    inner = 4 * c
    k1, k2, k3, k4 = jax.random.split(key, 4)
    out_pad = _round_up(cfg["output_size"], LANE)
    return {"trunk": _init_trunk(k1, cfg["x_dim"], cfg["u_dim"], c, cfg["mlp_layers"]),
            "branch": _init_mlp(k2, cfg["branch_size"], c, c, cfg["mlp_layers"]),
            "blocks": _init_blocks(k3, cfg["n_layers"], c, inner,
                                   cfg["n_experts"], cfg["space_dim"]),
            "out": _init_mlp(k4, c, c, cfg["output_size"], cfg["mlp_layers"],
                             out_pad=out_pad)}


# ----------------------------------------------------------------------------
if __name__ == "__main__":
    key = jax.random.PRNGKey(0)
    kp, kx, ku, kz = jax.random.split(key, 4)

    B, T1, T2 = 2, 8, 8
    params = init_params(kp, CFG)
    x_feats = jax.random.normal(kx, (B, T1, CFG["x_dim"]), jnp.float32)
    u_p = jax.random.normal(ku, (B, CFG["u_dim"]), jnp.float32)
    z_feats = jax.random.normal(kz, (B, T2, CFG["branch_size"]), jnp.float32)

    fwd = jax.jit(functools.partial(moe_gpt_no_forward, cfg=CFG))
    out = jax.block_until_ready(fwd(params, x_feats, u_p, z_feats))

    assert out.shape == (B * T1, CFG["output_size"])
    assert bool(jnp.all(jnp.isfinite(out)))

    # validate the Pallas plumbing against a pure-JAX run of the identical math
    ref = moe_gpt_no_reference(params, x_feats, u_p, z_feats, CFG)
    max_err = float(jnp.max(jnp.abs(out - ref)))
    assert max_err < 5e-3, f"kernel vs reference mismatch: max abs err {max_err}"

    print("KERNEL_OK")
</pallas_src>

<mosaic_0001>
module attributes {stable_mosaic.version = 11 : i64} {
  func.func @_fused_forward_kernel(%arg0: memref<16x2xf32, #tpu.memory_space<vmem>>, %arg1: memref<2x2xf32, #tpu.memory_space<vmem>>, %arg2: memref<16x3xf32, #tpu.memory_space<vmem>>, %arg3: memref<2x1x32xf32, #tpu.memory_space<vmem>>, %arg4: memref<2x1x32xf32, #tpu.memory_space<vmem>>, %arg5: memref<2x1x32xf32, #tpu.memory_space<vmem>>, %arg6: memref<2x1x32xf32, #tpu.memory_space<vmem>>, %arg7: memref<2x32x32xbf16, #tpu.memory_space<vmem>>, %arg8: memref<2x32x32xbf16, #tpu.memory_space<vmem>>, %arg9: memref<2x32x32xbf16, #tpu.memory_space<vmem>>, %arg10: memref<2x32x32xbf16, #tpu.memory_space<vmem>>, %arg11: memref<2x1x128xf32, #tpu.memory_space<vmem>>, %arg12: memref<2x2x128xbf16, #tpu.memory_space<vmem>>, %arg13: memref<2x1x128xf32, #tpu.memory_space<vmem>>, %arg14: memref<2x128x128xbf16, #tpu.memory_space<vmem>>, %arg15: memref<2x1x2xf32, #tpu.memory_space<vmem>>, %arg16: memref<2x128x2xbf16, #tpu.memory_space<vmem>>, %arg17: memref<2x5x32xf32, #tpu.memory_space<vmem>>, %arg18: memref<2x5x32xf32, #tpu.memory_space<vmem>>, %arg19: memref<2x1x256xf32, #tpu.memory_space<vmem>>, %arg20: memref<2x2x32xf32, #tpu.memory_space<vmem>>, %arg21: memref<2x32x256xbf16, #tpu.memory_space<vmem>>, %arg22: memref<2x256x32xbf16, #tpu.memory_space<vmem>>, %arg23: memref<2x1x32xf32, #tpu.memory_space<vmem>>, %arg24: memref<2x1x32xf32, #tpu.memory_space<vmem>>, %arg25: memref<2x1x32xf32, #tpu.memory_space<vmem>>, %arg26: memref<2x1x32xf32, #tpu.memory_space<vmem>>, %arg27: memref<2x32x32xbf16, #tpu.memory_space<vmem>>, %arg28: memref<2x32x32xbf16, #tpu.memory_space<vmem>>, %arg29: memref<2x32x32xbf16, #tpu.memory_space<vmem>>, %arg30: memref<2x32x32xbf16, #tpu.memory_space<vmem>>, %arg31: memref<2x1x32xf32, #tpu.memory_space<vmem>>, %arg32: memref<2x32x32xbf16, #tpu.memory_space<vmem>>, %arg33: memref<1x32xf32, #tpu.memory_space<vmem>>, %arg34: memref<32x32xbf16, #tpu.memory_space<vmem>>, %arg35: memref<1x32xf32, #tpu.memory_space<vmem>>, %arg36: memref<3x32xbf16, #tpu.memory_space<vmem>>, %arg37: memref<2x1x32xf32, #tpu.memory_space<vmem>>, %arg38: memref<2x32x32xbf16, #tpu.memory_space<vmem>>, %arg39: memref<1x128xf32, #tpu.memory_space<vmem>>, %arg40: memref<32x128xbf16, #tpu.memory_space<vmem>>, %arg41: memref<1x32xf32, #tpu.memory_space<vmem>>, %arg42: memref<32x32xbf16, #tpu.memory_space<vmem>>, %arg43: memref<2x1x32xf32, #tpu.memory_space<vmem>>, %arg44: memref<2x32x32xbf16, #tpu.memory_space<vmem>>, %arg45: memref<1x32xf32, #tpu.memory_space<vmem>>, %arg46: memref<32x32xbf16, #tpu.memory_space<vmem>>, %arg47: memref<1x32xf32, #tpu.memory_space<vmem>>, %arg48: memref<2x32xbf16, #tpu.memory_space<vmem>>, %arg49: memref<2x32xbf16, #tpu.memory_space<vmem>>, %arg50: memref<16x128xf32, #tpu.memory_space<vmem>>) attributes {dimension_semantics = [], scalar_prefetch = 0 : i64, scratch_operands = 0 : i64, tpu.core_type = #tpu.core_type<tc>} {
    %c0 = arith.constant 0 : index
    %c0_0 = arith.constant 0 : index
    %0 = vector.load %arg0[%c0, %c0_0] : memref<16x2xf32, #tpu.memory_space<vmem>>, vector<16x2xf32>
    %c0_1 = arith.constant 0 : index
    %c0_2 = arith.constant 0 : index
    %1 = vector.load %arg1[%c0_1, %c0_2] : memref<2x2xf32, #tpu.memory_space<vmem>>, vector<2x2xf32>
    %c0_3 = arith.constant 0 : index
    %c0_4 = arith.constant 0 : index
    %2 = vector.load %arg2[%c0_3, %c0_4] : memref<16x3xf32, #tpu.memory_space<vmem>>, vector<16x3xf32>
    %c0_5 = arith.constant 0 : index
    %c0_6 = arith.constant 0 : index
    %3 = vector.load %arg48[%c0_5, %c0_6] : memref<2x32xbf16, #tpu.memory_space<vmem>>, vector<2x32xbf16>
    %4 = arith.truncf %1 : vector<2x2xf32> to vector<2x2xbf16>
    %cst = arith.constant dense<0.000000e+00> : vector<2x32xf32>
    %5 = tpu.matmul %4, %3, %cst {dimension_numbers = #tpu.dot_dimension_numbers<[1], [0], [0], [1], [0, 0, 1, 1], [], []>} : vector<2x2xbf16>, vector<2x32xbf16>, vector<2x32xf32> -> vector<2x32xf32>
    %6 = vector.extract_strided_slice %5 {offsets = [0, 0], sizes = [1, 32], strides = [1, 1]} : vector<2x32xf32> to vector<1x32xf32>
    %7 = vector.shape_cast %6 : vector<1x32xf32> to vector<1x32xf32>
    %8 = vector.broadcast %7 : vector<1x32xf32> to vector<8x32xf32>
    %9 = vector.extract_strided_slice %5 {offsets = [1, 0], sizes = [1, 32], strides = [1, 1]} : vector<2x32xf32> to vector<1x32xf32>
    %10 = vector.shape_cast %9 : vector<1x32xf32> to vector<1x32xf32>
    %11 = vector.broadcast %10 : vector<1x32xf32> to vector<8x32xf32>
    %12 = tpu.concatenate %8, %11 in 0 : vector<8x32xf32>, vector<8x32xf32> -> vector<16x32xf32>
    %c0_7 = arith.constant 0 : index
    %c0_8 = arith.constant 0 : index
    %13 = vector.load %arg49[%c0_7, %c0_8] : memref<2x32xbf16, #tpu.memory_space<vmem>>, vector<2x32xbf16>
    %14 = arith.truncf %0 : vector<16x2xf32> to vector<16x2xbf16>
    %cst_9 = arith.constant dense<0.000000e+00> : vector<16x32xf32>
    %15 = tpu.matmul %14, %13, %cst_9 {dimension_numbers = #tpu.dot_dimension_numbers<[1], [0], [0], [1], [0, 0, 1, 1], [], []>} : vector<16x2xbf16>, vector<2x32xbf16>, vector<16x32xf32> -> vector<16x32xf32>
    %16 = arith.addf %15, %12 : vector<16x32xf32>
    %c0_10 = arith.constant 0 : index
    %c0_11 = arith.constant 0 : index
    %17 = vector.load %arg47[%c0_10, %c0_11] : memref<1x32xf32, #tpu.memory_space<vmem>>, vector<1x32xf32>
    %18 = vector.broadcast %17 : vector<1x32xf32> to vector<16x32xf32>
    %19 = arith.addf %16, %18 : vector<16x32xf32>
    %20 = arith.mulf %19, %19 : vector<16x32xf32>
    %21 = arith.mulf %19, %20 : vector<16x32xf32>
    %cst_12 = arith.constant 4.471500e-02 : f32
    %22 = vector.broadcast %cst_12 : f32 to vector<16x32xf32>
    %23 = arith.mulf %22, %21 : vector<16x32xf32>
    %24 = arith.addf %19, %23 : vector<16x32xf32>
    %cst_13 = arith.constant 0.797884583 : f32
    %25 = vector.broadcast %cst_13 : f32 to vector<16x32xf32>
    %26 = arith.mulf %25, %24 : vector<16x32xf32>
    %27 = math.tanh %26 : vector<16x32xf32>
    %cst_14 = arith.constant 1.000000e+00 : f32
    %28 = vector.broadcast %cst_14 : f32 to vector<16x32xf32>
    %29 = arith.addf %28, %27 : vector<16x32xf32>
    %cst_15 = arith.constant 5.000000e-01 : f32
    %30 = vector.broadcast %cst_15 : f32 to vector<16x32xf32>
    %31 = arith.mulf %30, %29 : vector<16x32xf32>
    %32 = arith.mulf %19, %31 : vector<16x32xf32>
    %c0_16 = arith.constant 0 : index
    %c0_17 = arith.constant 0 : index
    %c0_18 = arith.constant 0 : index
    %33 = vector.load %arg44[%c0_16, %c0_17, %c0_18] : memref<2x32x32xbf16, #tpu.memory_space<vmem>>, vector<1x32x32xbf16>
    %34 = vector.shape_cast %33 : vector<1x32x32xbf16> to vector<32x32xbf16>
    %35 = arith.truncf %32 : vector<16x32xf32> to vector<16x32xbf16>
    %cst_19 = arith.constant dense<0.000000e+00> : vector<16x32xf32>
    %36 = tpu.matmul %35, %34, %cst_19 {dimension_numbers = #tpu.dot_dimension_numbers<[1], [0], [0], [1], [0, 0, 1, 1], [], []>} : vector<16x32xbf16>, vector<32x32xbf16>, vector<16x32xf32> -> vector<16x32xf32>
    %c0_20 = arith.constant 0 : index
    %c0_21 = arith.constant 0 : index
    %c0_22 = arith.constant 0 : index
    %37 = vector.load %arg43[%c0_20, %c0_21, %c0_22] : memref<2x1x32xf32, #tpu.memory_space<vmem>>, vector<1x1x32xf32>
    %38 = vector.shape_cast %37 : vector<1x1x32xf32> to vector<1x32xf32>
    %39 = vector.broadcast %38 : vector<1x32xf32> to vector<16x32xf32>
    %40 = arith.addf %36, %39 : vector<16x32xf32>
    %41 = arith.mulf %40, %40 : vector<16x32xf32>
    %42 = arith.mulf %40, %41 : vector<16x32xf32>
    %cst_23 = arith.constant 4.471500e-02 : f32
    %43 = vector.broadcast %cst_23 : f32 to vector<16x32xf32>
    %44 = arith.mulf %43, %42 : vector<16x32xf32>
    %45 = arith.addf %40, %44 : vector<16x32xf32>
    %cst_24 = arith.constant 0.797884583 : f32
    %46 = vector.broadcast %cst_24 : f32 to vector<16x32xf32>
    %47 = arith.mulf %46, %45 : vector<16x32xf32>
    %48 = math.tanh %47 : vector<16x32xf32>
    %cst_25 = arith.constant 1.000000e+00 : f32
    %49 = vector.broadcast %cst_25 : f32 to vector<16x32xf32>
    %50 = arith.addf %49, %48 : vector<16x32xf32>
    %cst_26 = arith.constant 5.000000e-01 : f32
    %51 = vector.broadcast %cst_26 : f32 to vector<16x32xf32>
    %52 = arith.mulf %51, %50 : vector<16x32xf32>
    %53 = arith.mulf %40, %52 : vector<16x32xf32>
    %54 = arith.addf %53, %32 : vector<16x32xf32>
    %c1 = arith.constant 1 : index
    %c0_27 = arith.constant 0 : index
    %c0_28 = arith.constant 0 : index
    %55 = vector.load %arg44[%c1, %c0_27, %c0_28] : memref<2x32x32xbf16, #tpu.memory_space<vmem>>, vector<1x32x32xbf16>
    %56 = vector.shape_cast %55 : vector<1x32x32xbf16> to vector<32x32xbf16>
    %57 = arith.truncf %54 : vector<16x32xf32> to vector<16x32xbf16>
    %cst_29 = arith.constant dense<0.000000e+00> : vector<16x32xf32>
    %58 = tpu.matmul %57, %56, %cst_29 {dimension_numbers = #tpu.dot_dimension_numbers<[1], [0], [0], [1], [0, 0, 1, 1], [], []>} : vector<16x32xbf16>, vector<32x32xbf16>, vector<16x32xf32> -> vector<16x32xf32>
    %c1_30 = arith.constant 1 : index
    %c0_31 = arith.constant 0 : index
    %c0_32 = arith.constant 0 : index
    %59 = vector.load %arg43[%c1_30, %c0_31, %c0_32] : memref<2x1x32xf32, #tpu.memory_space<vmem>>, vector<1x1x32xf32>
    %60 = vector.shape_cast %59 : vector<1x1x32xf32> to vector<1x32xf32>
    %61 = vector.broadcast %60 : vector<1x32xf32> to vector<16x32xf32>
    %62 = arith.addf %58, %61 : vector<16x32xf32>
    %63 = arith.mulf %62, %62 : vector<16x32xf32>
    %64 = arith.mulf %62, %63 : vector<16x32xf32>
    %cst_33 = arith.constant 4.471500e-02 : f32
    %65 = vector.broadcast %cst_33 : f32 to vector<16x32xf32>
    %66 = arith.mulf %65, %64 : vector<16x32xf32>
    %67 = arith.addf %62, %66 : vector<16x32xf32>
    %cst_34 = arith.constant 0.797884583 : f32
    %68 = vector.broadcast %cst_34 : f32 to vector<16x32xf32>
    %69 = arith.mulf %68, %67 : vector<16x32xf32>
    %70 = math.tanh %69 : vector<16x32xf32>
    %cst_35 = arith.constant 1.000000e+00 : f32
    %71 = vector.broadcast %cst_35 : f32 to vector<16x32xf32>
    %72 = arith.addf %71, %70 : vector<16x32xf32>
    %cst_36 = arith.constant 5.000000e-01 : f32
    %73 = vector.broadcast %cst_36 : f32 to vector<16x32xf32>
    %74 = arith.mulf %73, %72 : vector<16x32xf32>
    %75 = arith.mulf %62, %74 : vector<16x32xf32>
    %76 = arith.addf %75, %54 : vector<16x32xf32>
    %c0_37 = arith.constant 0 : index
    %c0_38 = arith.constant 0 : index
    %77 = vector.load %arg46[%c0_37, %c0_38] : memref<32x32xbf16, #tpu.memory_space<vmem>>, vector<32x32xbf16>
    %78 = arith.truncf %76 : vector<16x32xf32> to vector<16x32xbf16>
    %cst_39 = arith.constant dense<0.000000e+00> : vector<16x32xf32>
    %79 = tpu.matmul %78, %77, %cst_39 {dimension_numbers = #tpu.dot_dimension_numbers<[1], [0], [0], [1], [0, 0, 1, 1], [], []>} : vector<16x32xbf16>, vector<32x32xbf16>, vector<16x32xf32> -> vector<16x32xf32>
    %c0_40 = arith.constant 0 : index
    %c0_41 = arith.constant 0 : index
    %80 = vector.load %arg45[%c0_40, %c0_41] : memref<1x32xf32, #tpu.memory_space<vmem>>, vector<1x32xf32>
    %81 = vector.broadcast %80 : vector<1x32xf32> to vector<16x32xf32>
    %82 = arith.addf %79, %81 : vector<16x32xf32>
    %c0_42 = arith.constant 0 : index
    %c0_43 = arith.constant 0 : index
    %83 = vector.load %arg36[%c0_42, %c0_43] : memref<3x32xbf16, #tpu.memory_space<vmem>>, vector<3x32xbf16>
    %84 = arith.truncf %2 : vector<16x3xf32> to vector<16x3xbf16>
    %cst_44 = arith.constant dense<0.000000e+00> : vector<16x32xf32>
    %85 = tpu.matmul %84, %83, %cst_44 {dimension_numbers = #tpu.dot_dimension_numbers<[1], [0], [0], [1], [0, 0, 1, 1], [], []>} : vector<16x3xbf16>, vector<3x32xbf16>, vector<16x32xf32> -> vector<16x32xf32>
    %c0_45 = arith.constant 0 : index
    %c0_46 = arith.constant 0 : index
    %86 = vector.load %arg35[%c0_45, %c0_46] : memref<1x32xf32, #tpu.memory_space<vmem>>, vector<1x32xf32>
    %87 = vector.broadcast %86 : vector<1x32xf32> to vector<16x32xf32>
    %88 = arith.addf %85, %87 : vector<16x32xf32>
    %89 = arith.mulf %88, %88 : vector<16x32xf32>
    %90 = arith.mulf %88, %89 : vector<16x32xf32>
    %cst_47 = arith.constant 4.471500e-02 : f32
    %91 = vector.broadcast %cst_47 : f32 to vector<16x32xf32>
    %92 = arith.mulf %91, %90 : vector<16x32xf32>
    %93 = arith.addf %88, %92 : vector<16x32xf32>
    %cst_48 = arith.constant 0.797884583 : f32
    %94 = vector.broadcast %cst_48 : f32 to vector<16x32xf32>
    %95 = arith.mulf %94, %93 : vector<16x32xf32>
    %96 = math.tanh %95 : vector<16x32xf32>
    %cst_49 = arith.constant 1.000000e+00 : f32
    %97 = vector.broadcast %cst_49 : f32 to vector<16x32xf32>
    %98 = arith.addf %97, %96 : vector<16x32xf32>
    %cst_50 = arith.constant 5.000000e-01 : f32
    %99 = vector.broadcast %cst_50 : f32 to vector<16x32xf32>
    %100 = arith.mulf %99, %98 : vector<16x32xf32>
    %101 = arith.mulf %88, %100 : vector<16x32xf32>
    %c0_51 = arith.constant 0 : index
    %c0_52 = arith.constant 0 : index
    %c0_53 = arith.constant 0 : index
    %102 = vector.load %arg32[%c0_51, %c0_52, %c0_53] : memref<2x32x32xbf16, #tpu.memory_space<vmem>>, vector<1x32x32xbf16>
    %103 = vector.shape_cast %102 : vector<1x32x32xbf16> to vector<32x32xbf16>
    %104 = arith.truncf %101 : vector<16x32xf32> to vector<16x32xbf16>
    %cst_54 = arith.constant dense<0.000000e+00> : vector<16x32xf32>
    %105 = tpu.matmul %104, %103, %cst_54 {dimension_numbers = #tpu.dot_dimension_numbers<[1], [0], [0], [1], [0, 0, 1, 1], [], []>} : vector<16x32xbf16>, vector<32x32xbf16>, vector<16x32xf32> -> vector<16x32xf32>
    %c0_55 = arith.constant 0 : index
    %c0_56 = arith.constant 0 : index
    %c0_57 = arith.constant 0 : index
    %106 = vector.load %arg31[%c0_55, %c0_56, %c0_57] : memref<2x1x32xf32, #tpu.memory_space<vmem>>, vector<1x1x32xf32>
    %107 = vector.shape_cast %106 : vector<1x1x32xf32> to vector<1x32xf32>
    %108 = vector.broadcast %107 : vector<1x32xf32> to vector<16x32xf32>
    %109 = arith.addf %105, %108 : vector<16x32xf32>
    %110 = arith.mulf %109, %109 : vector<16x32xf32>
    %111 = arith.mulf %109, %110 : vector<16x32xf32>
    %cst_58 = arith.constant 4.471500e-02 : f32
    %112 = vector.broadcast %cst_58 : f32 to vector<16x32xf32>
    %113 = arith.mulf %112, %111 : vector<16x32xf32>
    %114 = arith.addf %109, %113 : vector<16x32xf32>
    %cst_59 = arith.constant 0.797884583 : f32
    %115 = vector.broadcast %cst_59 : f32 to vector<16x32xf32>
    %116 = arith.mulf %115, %114 : vector<16x32xf32>
    %117 = math.tanh %116 : vector<16x32xf32>
    %cst_60 = arith.constant 1.000000e+00 : f32
    %118 = vector.broadcast %cst_60 : f32 to vector<16x32xf32>
    %119 = arith.addf %118, %117 : vector<16x32xf32>
    %cst_61 = arith.constant 5.000000e-01 : f32
    %120 = vector.broadcast %cst_61 : f32 to vector<16x32xf32>
    %121 = arith.mulf %120, %119 : vector<16x32xf32>
    %122 = arith.mulf %109, %121 : vector<16x32xf32>
    %123 = arith.addf %122, %101 : vector<16x32xf32>
    %c1_62 = arith.constant 1 : index
    %c0_63 = arith.constant 0 : index
    %c0_64 = arith.constant 0 : index
    %124 = vector.load %arg32[%c1_62, %c0_63, %c0_64] : memref<2x32x32xbf16, #tpu.memory_space<vmem>>, vector<1x32x32xbf16>
    %125 = vector.shape_cast %124 : vector<1x32x32xbf16> to vector<32x32xbf16>
    %126 = arith.truncf %123 : vector<16x32xf32> to vector<16x32xbf16>
    %cst_65 = arith.constant dense<0.000000e+00> : vector<16x32xf32>
    %127 = tpu.matmul %126, %125, %cst_65 {dimension_numbers = #tpu.dot_dimension_numbers<[1], [0], [0], [1], [0, 0, 1, 1], [], []>} : vector<16x32xbf16>, vector<32x32xbf16>, vector<16x32xf32> -> vector<16x32xf32>
    %c1_66 = arith.constant 1 : index
    %c0_67 = arith.constant 0 : index
    %c0_68 = arith.constant 0 : index
    %128 = vector.load %arg31[%c1_66, %c0_67, %c0_68] : memref<2x1x32xf32, #tpu.memory_space<vmem>>, vector<1x1x32xf32>
    %129 = vector.shape_cast %128 : vector<1x1x32xf32> to vector<1x32xf32>
    %130 = vector.broadcast %129 : vector<1x32xf32> to vector<16x32xf32>
    %131 = arith.addf %127, %130 : vector<16x32xf32>
    %132 = arith.mulf %131, %131 : vector<16x32xf32>
    %133 = arith.mulf %131, %132 : vector<16x32xf32>
    %cst_69 = arith.constant 4.471500e-02 : f32
    %134 = vector.broadcast %cst_69 : f32 to vector<16x32xf32>
    %135 = arith.mulf %134, %133 : vector<16x32xf32>
    %136 = arith.addf %131, %135 : vector<16x32xf32>
    %cst_70 = arith.constant 0.797884583 : f32
    %137 = vector.broadcast %cst_70 : f32 to vector<16x32xf32>
    %138 = arith.mulf %137, %136 : vector<16x32xf32>
    %139 = math.tanh %138 : vector<16x32xf32>
    %cst_71 = arith.constant 1.000000e+00 : f32
    %140 = vector.broadcast %cst_71 : f32 to vector<16x32xf32>
    %141 = arith.addf %140, %139 : vector<16x32xf32>
    %cst_72 = arith.constant 5.000000e-01 : f32
    %142 = vector.broadcast %cst_72 : f32 to vector<16x32xf32>
    %143 = arith.mulf %142, %141 : vector<16x32xf32>
    %144 = arith.mulf %131, %143 : vector<16x32xf32>
    %145 = arith.addf %144, %123 : vector<16x32xf32>
    %c0_73 = arith.constant 0 : index
    %c0_74 = arith.constant 0 : index
    %146 = vector.load %arg34[%c0_73, %c0_74] : memref<32x32xbf16, #tpu.memory_space<vmem>>, vector<32x32xbf16>
    %147 = arith.truncf %145 : vector<16x32xf32> to vector<16x32xbf16>
    %cst_75 = arith.constant dense<0.000000e+00> : vector<16x32xf32>
    %148 = tpu.matmul %147, %146, %cst_75 {dimension_numbers = #tpu.dot_dimension_numbers<[1], [0], [0], [1], [0, 0, 1, 1], [], []>} : vector<16x32xbf16>, vector<32x32xbf16>, vector<16x32xf32> -> vector<16x32xf32>
    %c0_76 = arith.constant 0 : index
    %c0_77 = arith.constant 0 : index
    %149 = vector.load %arg33[%c0_76, %c0_77] : memref<1x32xf32, #tpu.memory_space<vmem>>, vector<1x32xf32>
    %150 = vector.broadcast %149 : vector<1x32xf32> to vector<16x32xf32>
    %151 = arith.addf %148, %150 : vector<16x32xf32>
    %c0_78 = arith.constant 0 : index
    %c0_79 = arith.constant 0 : index
    %c0_80 = arith.constant 0 : index
    %152 = vector.load %arg18[%c0_78, %c0_79, %c0_80] : memref<2x5x32xf32, #tpu.memory_space<vmem>>, vector<1x5x32xf32>
    %153 = vector.shape_cast %152 : vector<1x5x32xf32> to vector<5x32xf32>
    %c0_81 = arith.constant 0 : index
    %c0_82 = arith.constant 0 : index
    %c0_83 = arith.constant 0 : index
    %154 = vector.load %arg17[%c0_81, %c0_82, %c0_83] : memref<2x5x32xf32, #tpu.memory_space<vmem>>, vector<1x5x32xf32>
    %155 = vector.shape_cast %154 : vector<1x5x32xf32> to vector<5x32xf32>
    %c0_84 = arith.constant 0 : index
    %c0_85 = arith.constant 0 : index
    %c0_86 = arith.constant 0 : index
    %156 = vector.load %arg12[%c0_84, %c0_85, %c0_86] : memref<2x2x128xbf16, #tpu.memory_space<vmem>>, vector<1x2x128xbf16>
    %157 = vector.shape_cast %156 : vector<1x2x128xbf16> to vector<2x128xbf16>
    %158 = arith.truncf %0 : vector<16x2xf32> to vector<16x2xbf16>
    %cst_87 = arith.constant dense<0.000000e+00> : vector<16x128xf32>
    %159 = tpu.matmul %158, %157, %cst_87 {dimension_numbers = #tpu.dot_dimension_numbers<[1], [0], [0], [1], [0, 0, 1, 1], [], []>} : vector<16x2xbf16>, vector<2x128xbf16>, vector<16x128xf32> -> vector<16x128xf32>
    %c0_88 = arith.constant 0 : index
    %c0_89 = arith.constant 0 : index
    %c0_90 = arith.constant 0 : index
    %160 = vector.load %arg11[%c0_88, %c0_89, %c0_90] : memref<2x1x128xf32, #tpu.memory_space<vmem>>, vector<1x1x128xf32>
    %161 = vector.shape_cast %160 : vector<1x1x128xf32> to vector<1x128xf32>
    %162 = vector.broadcast %161 : vector<1x128xf32> to vector<16x128xf32>
    %163 = arith.addf %159, %162 : vector<16x128xf32>
    %164 = arith.mulf %163, %163 : vector<16x128xf32>
    %165 = arith.mulf %163, %164 : vector<16x128xf32>
    %cst_91 = arith.constant 4.471500e-02 : f32
    %166 = vector.broadcast %cst_91 : f32 to vector<16x128xf32>
    %167 = arith.mulf %166, %165 : vector<16x128xf32>
    %168 = arith.addf %163, %167 : vector<16x128xf32>
    %cst_92 = arith.constant 0.797884583 : f32
    %169 = vector.broadcast %cst_92 : f32 to vector<16x128xf32>
    %170 = arith.mulf %169, %168 : vector<16x128xf32>
    %171 = math.tanh %170 : vector<16x128xf32>
    %cst_93 = arith.constant 1.000000e+00 : f32
    %172 = vector.broadcast %cst_93 : f32 to vector<16x128xf32>
    %173 = arith.addf %172, %171 : vector<16x128xf32>
    %cst_94 = arith.constant 5.000000e-01 : f32
    %174 = vector.broadcast %cst_94 : f32 to vector<16x128xf32>
    %175 = arith.mulf %174, %173 : vector<16x128xf32>
    %176 = arith.mulf %163, %175 : vector<16x128xf32>
    %c0_95 = arith.constant 0 : index
    %c0_96 = arith.constant 0 : index
    %c0_97 = arith.constant 0 : index
    %177 = vector.load %arg14[%c0_95, %c0_96, %c0_97] : memref<2x128x128xbf16, #tpu.memory_space<vmem>>, vector<1x128x128xbf16>
    %178 = vector.shape_cast %177 : vector<1x128x128xbf16> to vector<128x128xbf16>
    %179 = arith.truncf %176 : vector<16x128xf32> to vector<16x128xbf16>
    %cst_98 = arith.constant dense<0.000000e+00> : vector<16x128xf32>
    %180 = tpu.matmul %179, %178, %cst_98 {dimension_numbers = #tpu.dot_dimension_numbers<[1], [0], [0], [1], [0, 0, 1, 1], [], []>} : vector<16x128xbf16>, vector<128x128xbf16>, vector<16x128xf32> -> vector<16x128xf32>
    %c0_99 = arith.constant 0 : index
    %c0_100 = arith.constant 0 : index
    %c0_101 = arith.constant 0 : index
    %181 = vector.load %arg13[%c0_99, %c0_100, %c0_101] : memref<2x1x128xf32, #tpu.memory_space<vmem>>, vector<1x1x128xf32>
    %182 = vector.shape_cast %181 : vector<1x1x128xf32> to vector<1x128xf32>
    %183 = vector.broadcast %182 : vector<1x128xf32> to vector<16x128xf32>
    %184 = arith.addf %180, %183 : vector<16x128xf32>
    %185 = arith.mulf %184, %184 : vector<16x128xf32>
    %186 = arith.mulf %184, %185 : vector<16x128xf32>
    %cst_102 = arith.constant 4.471500e-02 : f32
    %187 = vector.broadcast %cst_102 : f32 to vector<16x128xf32>
    %188 = arith.mulf %187, %186 : vector<16x128xf32>
    %189 = arith.addf %184, %188 : vector<16x128xf32>
    %cst_103 = arith.constant 0.797884583 : f32
    %190 = vector.broadcast %cst_103 : f32 to vector<16x128xf32>
    %191 = arith.mulf %190, %189 : vector<16x128xf32>
    %192 = math.tanh %191 : vector<16x128xf32>
    %cst_104 = arith.constant 1.000000e+00 : f32
    %193 = vector.broadcast %cst_104 : f32 to vector<16x128xf32>
    %194 = arith.addf %193, %192 : vector<16x128xf32>
    %cst_105 = arith.constant 5.000000e-01 : f32
    %195 = vector.broadcast %cst_105 : f32 to vector<16x128xf32>
    %196 = arith.mulf %195, %194 : vector<16x128xf32>
    %197 = arith.mulf %184, %196 : vector<16x128xf32>
    %c0_106 = arith.constant 0 : index
    %c0_107 = arith.constant 0 : index
    %c0_108 = arith.constant 0 : index
    %198 = vector.load %arg16[%c0_106, %c0_107, %c0_108] : memref<2x128x2xbf16, #tpu.memory_space<vmem>>, vector<1x128x2xbf16>
    %199 = vector.shape_cast %198 : vector<1x128x2xbf16> to vector<128x2xbf16>
    %200 = arith.truncf %197 : vector<16x128xf32> to vector<16x128xbf16>
    %cst_109 = arith.constant dense<0.000000e+00> : vector<16x2xf32>
    %201 = tpu.matmul %200, %199, %cst_109 {dimension_numbers = #tpu.dot_dimension_numbers<[1], [0], [0], [1], [0, 0, 1, 1], [], []>} : vector<16x128xbf16>, vector<128x2xbf16>, vector<16x2xf32> -> vector<16x2xf32>
    %c0_110 = arith.constant 0 : index
    %c0_111 = arith.constant 0 : index
    %c0_112 = arith.constant 0 : index
    %202 = vector.load %arg15[%c0_110, %c0_111, %c0_112] : memref<2x1x2xf32, #tpu.memory_space<vmem>>, vector<1x1x2xf32>
    %203 = vector.shape_cast %202 : vector<1x1x2xf32> to vector<1x2xf32>
    %204 = vector.broadcast %203 : vector<1x2xf32> to vector<16x2xf32>
    %205 = arith.addf %201, %204 : vector<16x2xf32>
    %cst_113 = arith.constant dense<0xFF800000> : vector<16xf32>
    %206 = vector.multi_reduction <maximumf>, %205, %cst_113 [1] : vector<16x2xf32> to vector<16xf32>
    %cst_114 = arith.constant 0xFF800000 : f32
    %207 = vector.broadcast %cst_114 : f32 to vector<16xf32>
    %208 = arith.maximumf %207, %206 : vector<16xf32>
    %209 = vector.shape_cast %208 : vector<16xf32> to vector<16x1xf32>
    %210 = vector.broadcast %209 : vector<16x1xf32> to vector<16x2xf32>
    %211 = arith.subf %205, %210 : vector<16x2xf32>
    %212 = math.exp %211 : vector<16x2xf32>
    %cst_115 = arith.constant dense<0.000000e+00> : vector<16xf32>
    %213 = vector.multi_reduction <add>, %212, %cst_115 [1] : vector<16x2xf32> to vector<16xf32>
    %214 = vector.shape_cast %213 : vector<16xf32> to vector<16x1xf32>
    %215 = vector.broadcast %214 : vector<16x1xf32> to vector<16x2xf32>
    %216 = arith.divf %212, %215 : vector<16x2xf32>
    %217 = vector.extract_strided_slice %153 {offsets = [0, 0], sizes = [1, 32], strides = [1, 1]} : vector<5x32xf32> to vector<1x32xf32>
    %218 = vector.extract_strided_slice %155 {offsets = [0, 0], sizes = [1, 32], strides = [1, 1]} : vector<5x32xf32> to vector<1x32xf32>
    %cst_116 = arith.constant dense<0.000000e+00> : vector<16xf32>
    %219 = vector.multi_reduction <add>, %82, %cst_116 [1] : vector<16x32xf32> to vector<16xf32>
    %220 = vector.shape_cast %219 : vector<16xf32> to vector<16x1xf32>
    %cst_117 = arith.constant 3.200000e+01 : f32
    %221 = vector.broadcast %cst_117 : f32 to vector<16x1xf32>
    %222 = arith.divf %220, %221 : vector<16x1xf32>
    %223 = vector.broadcast %222 : vector<16x1xf32> to vector<16x32xf32>
    %224 = arith.subf %82, %223 : vector<16x32xf32>
    %225 = arith.mulf %224, %224 : vector<16x32xf32>
    %cst_118 = arith.constant dense<0.000000e+00> : vector<16xf32>
    %226 = vector.multi_reduction <add>, %225, %cst_118 [1] : vector<16x32xf32> to vector<16xf32>
    %227 = vector.shape_cast %226 : vector<16xf32> to vector<16x1xf32>
    %cst_119 = arith.constant 3.200000e+01 : f32
    %228 = vector.broadcast %cst_119 : f32 to vector<16x1xf32>
    %229 = arith.divf %227, %228 : vector<16x1xf32>
    %230 = vector.broadcast %222 : vector<16x1xf32> to vector<16x32xf32>
    %231 = arith.subf %82, %230 : vector<16x32xf32>
    %cst_120 = arith.constant 9.99999974E-6 : f32
    %232 = vector.broadcast %cst_120 : f32 to vector<16x1xf32>
    %233 = arith.addf %229, %232 : vector<16x1xf32>
    %234 = math.rsqrt %233 : vector<16x1xf32>
    %235 = vector.broadcast %234 : vector<16x1xf32> to vector<16x32xf32>
    %236 = arith.mulf %231, %235 : vector<16x32xf32>
    %237 = vector.broadcast %217 : vector<1x32xf32> to vector<16x32xf32>
    %238 = arith.mulf %236, %237 : vector<16x32xf32>
    %239 = vector.broadcast %218 : vector<1x32xf32> to vector<16x32xf32>
    %240 = arith.addf %238, %239 : vector<16x32xf32>
    %241 = vector.extract_strided_slice %153 {offsets = [1, 0], sizes = [1, 32], strides = [1, 1]} : vector<5x32xf32> to vector<1x32xf32>
    %242 = vector.extract_strided_slice %155 {offsets = [1, 0], sizes = [1, 32], strides = [1, 1]} : vector<5x32xf32> to vector<1x32xf32>
    %cst_121 = arith.constant dense<0.000000e+00> : vector<16xf32>
    %243 = vector.multi_reduction <add>, %151, %cst_121 [1] : vector<16x32xf32> to vector<16xf32>
    %244 = vector.shape_cast %243 : vector<16xf32> to vector<16x1xf32>
    %cst_122 = arith.constant 3.200000e+01 : f32
    %245 = vector.broadcast %cst_122 : f32 to vector<16x1xf32>
    %246 = arith.divf %244, %245 : vector<16x1xf32>
    %247 = vector.broadcast %246 : vector<16x1xf32> to vector<16x32xf32>
    %248 = arith.subf %151, %247 : vector<16x32xf32>
    %249 = arith.mulf %248, %248 : vector<16x32xf32>
    %cst_123 = arith.constant dense<0.000000e+00> : vector<16xf32>
    %250 = vector.multi_reduction <add>, %249, %cst_123 [1] : vector<16x32xf32> to vector<16xf32>
    %251 = vector.shape_cast %250 : vector<16xf32> to vector<16x1xf32>
    %cst_124 = arith.constant 3.200000e+01 : f32
    %252 = vector.broadcast %cst_124 : f32 to vector<16x1xf32>
    %253 = arith.divf %251, %252 : vector<16x1xf32>
    %254 = vector.broadcast %246 : vector<16x1xf32> to vector<16x32xf32>
    %255 = arith.subf %151, %254 : vector<16x32xf32>
    %cst_125 = arith.constant 9.99999974E-6 : f32
    %256 = vector.broadcast %cst_125 : f32 to vector<16x1xf32>
    %257 = arith.addf %253, %256 : vector<16x1xf32>
    %258 = math.rsqrt %257 : vector<16x1xf32>
    %259 = vector.broadcast %258 : vector<16x1xf32> to vector<16x32xf32>
    %260 = arith.mulf %255, %259 : vector<16x32xf32>
    %261 = vector.broadcast %241 : vector<1x32xf32> to vector<16x32xf32>
    %262 = arith.mulf %260, %261 : vector<16x32xf32>
    %263 = vector.broadcast %242 : vector<1x32xf32> to vector<16x32xf32>
    %264 = arith.addf %262, %263 : vector<16x32xf32>
    %c0_126 = arith.constant 0 : index
    %c0_127 = arith.constant 0 : index
    %c0_128 = arith.constant 0 : index
    %265 = vector.load %arg9[%c0_126, %c0_127, %c0_128] : memref<2x32x32xbf16, #tpu.memory_space<vmem>>, vector<1x32x32xbf16>
    %266 = vector.shape_cast %265 : vector<1x32x32xbf16> to vector<32x32xbf16>
    %c0_129 = arith.constant 0 : index
    %c0_130 = arith.constant 0 : index
    %c0_131 = arith.constant 0 : index
    %267 = vector.load %arg5[%c0_129, %c0_130, %c0_131] : memref<2x1x32xf32, #tpu.memory_space<vmem>>, vector<1x1x32xf32>
    %268 = vector.shape_cast %267 : vector<1x1x32xf32> to vector<1x32xf32>
    %c0_132 = arith.constant 0 : index
    %c0_133 = arith.constant 0 : index
    %c0_134 = arith.constant 0 : index
    %269 = vector.load %arg7[%c0_132, %c0_133, %c0_134] : memref<2x32x32xbf16, #tpu.memory_space<vmem>>, vector<1x32x32xbf16>
    %270 = vector.shape_cast %269 : vector<1x32x32xbf16> to vector<32x32xbf16>
    %c0_135 = arith.constant 0 : index
    %c0_136 = arith.constant 0 : index
    %c0_137 = arith.constant 0 : index
    %271 = vector.load %arg3[%c0_135, %c0_136, %c0_137] : memref<2x1x32xf32, #tpu.memory_space<vmem>>, vector<1x1x32xf32>
    %272 = vector.shape_cast %271 : vector<1x1x32xf32> to vector<1x32xf32>
    %c0_138 = arith.constant 0 : index
    %c0_139 = arith.constant 0 : index
    %c0_140 = arith.constant 0 : index
    %273 = vector.load %arg10[%c0_138, %c0_139, %c0_140] : memref<2x32x32xbf16, #tpu.memory_space<vmem>>, vector<1x32x32xbf16>
    %274 = vector.shape_cast %273 : vector<1x32x32xbf16> to vector<32x32xbf16>
    %c0_141 = arith.constant 0 : index
    %c0_142 = arith.constant 0 : index
    %c0_143 = arith.constant 0 : index
    %275 = vector.load %arg6[%c0_141, %c0_142, %c0_143] : memref<2x1x32xf32, #tpu.memory_space<vmem>>, vector<1x1x32xf32>
    %276 = vector.shape_cast %275 : vector<1x1x32xf32> to vector<1x32xf32>
    %c0_144 = arith.constant 0 : index
    %c0_145 = arith.constant 0 : index
    %c0_146 = arith.constant 0 : index
    %277 = vector.load %arg8[%c0_144, %c0_145, %c0_146] : memref<2x32x32xbf16, #tpu.memory_space<vmem>>, vector<1x32x32xbf16>
    %278 = vector.shape_cast %277 : vector<1x32x32xbf16> to vector<32x32xbf16>
    %c0_147 = arith.constant 0 : index
    %c0_148 = arith.constant 0 : index
    %c0_149 = arith.constant 0 : index
    %279 = vector.load %arg4[%c0_147, %c0_148, %c0_149] : memref<2x1x32xf32, #tpu.memory_space<vmem>>, vector<1x1x32xf32>
    %280 = vector.shape_cast %279 : vector<1x1x32xf32> to vector<1x32xf32>
    %281 = arith.truncf %240 : vector<16x32xf32> to vector<16x32xbf16>
    %cst_150 = arith.constant dense<0.000000e+00> : vector<16x32xf32>
    %282 = tpu.matmul %281, %266, %cst_150 {dimension_numbers = #tpu.dot_dimension_numbers<[1], [0], [0], [1], [0, 0, 1, 1], [], []>} : vector<16x32xbf16>, vector<32x32xbf16>, vector<16x32xf32> -> vector<16x32xf32>
    %283 = vector.broadcast %268 : vector<1x32xf32> to vector<16x32xf32>
    %284 = arith.addf %282, %283 : vector<16x32xf32>
    %285 = arith.truncf %264 : vector<16x32xf32> to vector<16x32xbf16>
    %cst_151 = arith.constant dense<0.000000e+00> : vector<16x32xf32>
    %286 = tpu.matmul %285, %270, %cst_151 {dimension_numbers = #tpu.dot_dimension_numbers<[1], [0], [0], [1], [0, 0, 1, 1], [], []>} : vector<16x32xbf16>, vector<32x32xbf16>, vector<16x32xf32> -> vector<16x32xf32>
    %287 = vector.broadcast %272 : vector<1x32xf32> to vector<16x32xf32>
    %288 = arith.addf %286, %287 : vector<16x32xf32>
    %289 = arith.truncf %264 : vector<16x32xf32> to vector<16x32xbf16>
    %cst_152 = arith.constant dense<0.000000e+00> : vector<16x32xf32>
    %290 = tpu.matmul %289, %274, %cst_152 {dimension_numbers = #tpu.dot_dimension_numbers<[1], [0], [0], [1], [0, 0, 1, 1], [], []>} : vector<16x32xbf16>, vector<32x32xbf16>, vector<16x32xf32> -> vector<16x32xf32>
    %291 = vector.broadcast %276 : vector<1x32xf32> to vector<16x32xf32>
    %292 = arith.addf %290, %291 : vector<16x32xf32>
    %cst_153 = arith.constant dense<0xFF800000> : vector<16xf32>
    %293 = vector.multi_reduction <maximumf>, %284, %cst_153 [1] : vector<16x32xf32> to vector<16xf32>
    %cst_154 = arith.constant 0xFF800000 : f32
    %294 = vector.broadcast %cst_154 : f32 to vector<16xf32>
    %295 = arith.maximumf %294, %293 : vector<16xf32>
    %296 = vector.shape_cast %295 : vector<16xf32> to vector<16x1xf32>
    %297 = vector.broadcast %296 : vector<16x1xf32> to vector<16x32xf32>
    %298 = arith.subf %284, %297 : vector<16x32xf32>
    %299 = math.exp %298 : vector<16x32xf32>
    %cst_155 = arith.constant dense<0.000000e+00> : vector<16xf32>
    %300 = vector.multi_reduction <add>, %299, %cst_155 [1] : vector<16x32xf32> to vector<16xf32>
    %301 = vector.shape_cast %300 : vector<16xf32> to vector<16x1xf32>
    %302 = vector.broadcast %301 : vector<16x1xf32> to vector<16x32xf32>
    %303 = arith.divf %299, %302 : vector<16x32xf32>
    %cst_156 = arith.constant dense<0xFF800000> : vector<16xf32>
    %304 = vector.multi_reduction <maximumf>, %288, %cst_156 [1] : vector<16x32xf32> to vector<16xf32>
    %cst_157 = arith.constant 0xFF800000 : f32
    %305 = vector.broadcast %cst_157 : f32 to vector<16xf32>
    %306 = arith.maximumf %305, %304 : vector<16xf32>
    %307 = vector.shape_cast %306 : vector<16xf32> to vector<16x1xf32>
    %308 = vector.broadcast %307 : vector<16x1xf32> to vector<16x32xf32>
    %309 = arith.subf %288, %308 : vector<16x32xf32>
    %310 = math.exp %309 : vector<16x32xf32>
    %cst_158 = arith.constant dense<0.000000e+00> : vector<16xf32>
    %311 = vector.multi_reduction <add>, %310, %cst_158 [1] : vector<16x32xf32> to vector<16xf32>
    %312 = vector.shape_cast %311 : vector<16xf32> to vector<16x1xf32>
    %313 = vector.broadcast %312 : vector<16x1xf32> to vector<16x32xf32>
    %314 = arith.divf %310, %313 : vector<16x32xf32>
    %315 = vector.extract_strided_slice %303 {offsets = [0, 0], sizes = [8, 32], strides = [1, 1]} : vector<16x32xf32> to vector<8x32xf32>
    %316 = vector.extract_strided_slice %314 {offsets = [0, 0], sizes = [8, 32], strides = [1, 1]} : vector<16x32xf32> to vector<8x32xf32>
    %317 = vector.extract_strided_slice %292 {offsets = [0, 0], sizes = [8, 32], strides = [1, 1]} : vector<16x32xf32> to vector<8x32xf32>
    %cst_159 = arith.constant dense<0.000000e+00> : vector<32xf32>
    %318 = vector.multi_reduction <add>, %316, %cst_159 [0] : vector<8x32xf32> to vector<32xf32>
    %319 = vector.shape_cast %318 : vector<32xf32> to vector<1x32xf32>
    %320 = vector.broadcast %319 : vector<1x32xf32> to vector<8x32xf32>
    %321 = arith.mulf %315, %320 : vector<8x32xf32>
    %cst_160 = arith.constant dense<0.000000e+00> : vector<8xf32>
    %322 = vector.multi_reduction <add>, %321, %cst_160 [1] : vector<8x32xf32> to vector<8xf32>
    %323 = vector.shape_cast %322 : vector<8xf32> to vector<8x1xf32>
    %324 = arith.truncf %316 : vector<8x32xf32> to vector<8x32xbf16>
    %325 = arith.truncf %317 : vector<8x32xf32> to vector<8x32xbf16>
    %cst_161 = arith.constant dense<0.000000e+00> : vector<32x32xf32>
    %326 = tpu.matmul %324, %325, %cst_161 {dimension_numbers = #tpu.dot_dimension_numbers<[0], [0], [1], [1], [0, 1, 1, 1], [], []>} : vector<8x32xbf16>, vector<8x32xbf16>, vector<32x32xf32> -> vector<32x32xf32>
    %327 = arith.truncf %315 : vector<8x32xf32> to vector<8x32xbf16>
    %328 = arith.truncf %326 : vector<32x32xf32> to vector<32x32xbf16>
    %cst_162 = arith.constant dense<0.000000e+00> : vector<8x32xf32>
    %329 = tpu.matmul %327, %328, %cst_162 {dimension_numbers = #tpu.dot_dimension_numbers<[1], [0], [0], [1], [0, 0, 1, 1], [], []>} : vector<8x32xbf16>, vector<32x32xbf16>, vector<8x32xf32> -> vector<8x32xf32>
    %cst_163 = arith.constant 1.000000e+00 : f32
    %330 = vector.broadcast %cst_163 : f32 to vector<8x1xf32>
    %331 = arith.divf %330, %323 : vector<8x1xf32>
    %332 = vector.broadcast %331 : vector<8x1xf32> to vector<8x32xf32>
    %333 = arith.mulf %329, %332 : vector<8x32xf32>
    %334 = arith.addf %333, %315 : vector<8x32xf32>
    %335 = vector.extract_strided_slice %303 {offsets = [8, 0], sizes = [8, 32], strides = [1, 1]} : vector<16x32xf32> to vector<8x32xf32>
    %336 = vector.extract_strided_slice %314 {offsets = [8, 0], sizes = [8, 32], strides = [1, 1]} : vector<16x32xf32> to vector<8x32xf32>
    %337 = vector.extract_strided_slice %292 {offsets = [8, 0], sizes = [8, 32], strides = [1, 1]} : vector<16x32xf32> to vector<8x32xf32>
    %cst_164 = arith.constant dense<0.000000e+00> : vector<32xf32>
    %338 = vector.multi_reduction <add>, %336, %cst_164 [0] : vector<8x32xf32> to vector<32xf32>
    %339 = vector.shape_cast %338 : vector<32xf32> to vector<1x32xf32>
    %340 = vector.broadcast %339 : vector<1x32xf32> to vector<8x32xf32>
    %341 = arith.mulf %335, %340 : vector<8x32xf32>
    %cst_165 = arith.constant dense<0.000000e+00> : vector<8xf32>
    %342 = vector.multi_reduction <add>, %341, %cst_165 [1] : vector<8x32xf32> to vector<8xf32>
    %343 = vector.shape_cast %342 : vector<8xf32> to vector<8x1xf32>
    %344 = arith.truncf %336 : vector<8x32xf32> to vector<8x32xbf16>
    %345 = arith.truncf %337 : vector<8x32xf32> to vector<8x32xbf16>
    %cst_166 = arith.constant dense<0.000000e+00> : vector<32x32xf32>
    %346 = tpu.matmul %344, %345, %cst_166 {dimension_numbers = #tpu.dot_dimension_numbers<[0], [0], [1], [1], [0, 1, 1, 1], [], []>} : vector<8x32xbf16>, vector<8x32xbf16>, vector<32x32xf32> -> vector<32x32xf32>
    %347 = arith.truncf %335 : vector<8x32xf32> to vector<8x32xbf16>
    %348 = arith.truncf %346 : vector<32x32xf32> to vector<32x32xbf16>
    %cst_167 = arith.constant dense<0.000000e+00> : vector<8x32xf32>
    %349 = tpu.matmul %347, %348, %cst_167 {dimension_numbers = #tpu.dot_dimension_numbers<[1], [0], [0], [1], [0, 0, 1, 1], [], []>} : vector<8x32xbf16>, vector<32x32xbf16>, vector<8x32xf32> -> vector<8x32xf32>
    %cst_168 = arith.constant 1.000000e+00 : f32
    %350 = vector.broadcast %cst_168 : f32 to vector<8x1xf32>
    %351 = arith.divf %350, %343 : vector<8x1xf32>
    %352 = vector.broadcast %351 : vector<8x1xf32> to vector<8x32xf32>
    %353 = arith.mulf %349, %352 : vector<8x32xf32>
    %354 = arith.addf %353, %335 : vector<8x32xf32>
    %355 = tpu.concatenate %334, %354 in 0 : vector<8x32xf32>, vector<8x32xf32> -> vector<16x32xf32>
    %356 = arith.truncf %355 : vector<16x32xf32> to vector<16x32xbf16>
    %cst_169 = arith.constant dense<0.000000e+00> : vector<16x32xf32>
    %357 = tpu.matmul %356, %278, %cst_169 {dimension_numbers = #tpu.dot_dimension_numbers<[1], [0], [0], [1], [0, 0, 1, 1], [], []>} : vector<16x32xbf16>, vector<32x32xbf16>, vector<16x32xf32> -> vector<16x32xf32>
    %358 = vector.broadcast %280 : vector<1x32xf32> to vector<16x32xf32>
    %359 = arith.addf %357, %358 : vector<16x32xf32>
    %360 = arith.addf %82, %359 : vector<16x32xf32>
    %c0_170 = arith.constant 0 : index
    %c0_171 = arith.constant 0 : index
    %c0_172 = arith.constant 0 : index
    %361 = vector.load %arg21[%c0_170, %c0_171, %c0_172] : memref<2x32x256xbf16, #tpu.memory_space<vmem>>, vector<1x32x256xbf16>
    %362 = vector.shape_cast %361 : vector<1x32x256xbf16> to vector<32x256xbf16>
    %363 = arith.truncf %360 : vector<16x32xf32> to vector<16x32xbf16>
    %cst_173 = arith.constant dense<0.000000e+00> : vector<16x256xf32>
    %364 = tpu.matmul %363, %362, %cst_173 {dimension_numbers = #tpu.dot_dimension_numbers<[1], [0], [0], [1], [0, 0, 1, 1], [], []>} : vector<16x32xbf16>, vector<32x256xbf16>, vector<16x256xf32> -> vector<16x256xf32>
    %c0_174 = arith.constant 0 : index
    %c0_175 = arith.constant 0 : index
    %c0_176 = arith.constant 0 : index
    %365 = vector.load %arg19[%c0_174, %c0_175, %c0_176] : memref<2x1x256xf32, #tpu.memory_space<vmem>>, vector<1x1x256xf32>
    %366 = vector.shape_cast %365 : vector<1x1x256xf32> to vector<1x256xf32>
    %367 = vector.broadcast %366 : vector<1x256xf32> to vector<16x256xf32>
    %368 = arith.addf %364, %367 : vector<16x256xf32>
    %369 = arith.mulf %368, %368 : vector<16x256xf32>
    %370 = arith.mulf %368, %369 : vector<16x256xf32>
    %cst_177 = arith.constant 4.471500e-02 : f32
    %371 = vector.broadcast %cst_177 : f32 to vector<16x256xf32>
    %372 = arith.mulf %371, %370 : vector<16x256xf32>
    %373 = arith.addf %368, %372 : vector<16x256xf32>
    %cst_178 = arith.constant 0.797884583 : f32
    %374 = vector.broadcast %cst_178 : f32 to vector<16x256xf32>
    %375 = arith.mulf %374, %373 : vector<16x256xf32>
    %376 = math.tanh %375 : vector<16x256xf32>
    %cst_179 = arith.constant 1.000000e+00 : f32
    %377 = vector.broadcast %cst_179 : f32 to vector<16x256xf32>
    %378 = arith.addf %377, %376 : vector<16x256xf32>
    %cst_180 = arith.constant 5.000000e-01 : f32
    %379 = vector.broadcast %cst_180 : f32 to vector<16x256xf32>
    %380 = arith.mulf %379, %378 : vector<16x256xf32>
    %381 = arith.mulf %368, %380 : vector<16x256xf32>
    %382 = vector.extract_strided_slice %216 {offsets = [0, 0], sizes = [16, 1], strides = [1, 1]} : vector<16x2xf32> to vector<16x1xf32>
    %383 = vector.extract_strided_slice %381 {offsets = [0, 0], sizes = [16, 128], strides = [1, 1]} : vector<16x256xf32> to vector<16x128xf32>
    %384 = vector.broadcast %382 : vector<16x1xf32> to vector<16x128xf32>
    %385 = arith.mulf %384, %383 : vector<16x128xf32>
    %386 = vector.extract_strided_slice %216 {offsets = [0, 1], sizes = [16, 1], strides = [1, 1]} : vector<16x2xf32> to vector<16x1xf32>
    %387 = vector.extract_strided_slice %381 {offsets = [0, 128], sizes = [16, 128], strides = [1, 1]} : vector<16x256xf32> to vector<16x128xf32>
    %388 = vector.broadcast %386 : vector<16x1xf32> to vector<16x128xf32>
    %389 = arith.mulf %388, %387 : vector<16x128xf32>
    %390 = tpu.concatenate %385, %389 in 1 : vector<16x128xf32>, vector<16x128xf32> -> vector<16x256xf32>
    %c0_181 = arith.constant 0 : index
    %c0_182 = arith.constant 0 : index
    %c0_183 = arith.constant 0 : index
    %391 = vector.load %arg22[%c0_181, %c0_182, %c0_183] : memref<2x256x32xbf16, #tpu.memory_space<vmem>>, vector<1x256x32xbf16>
    %392 = vector.shape_cast %391 : vector<1x256x32xbf16> to vector<256x32xbf16>
    %393 = arith.truncf %390 : vector<16x256xf32> to vector<16x256xbf16>
    %cst_184 = arith.constant dense<0.000000e+00> : vector<16x32xf32>
    %394 = tpu.matmul %393, %392, %cst_184 {dimension_numbers = #tpu.dot_dimension_numbers<[1], [0], [0], [1], [0, 0, 1, 1], [], []>} : vector<16x256xbf16>, vector<256x32xbf16>, vector<16x32xf32> -> vector<16x32xf32>
    %c0_185 = arith.constant 0 : index
    %c0_186 = arith.constant 0 : index
    %c0_187 = arith.constant 0 : index
    %395 = vector.load %arg20[%c0_185, %c0_186, %c0_187] : memref<2x2x32xf32, #tpu.memory_space<vmem>>, vector<1x2x32xf32>
    %396 = vector.shape_cast %395 : vector<1x2x32xf32> to vector<2x32xf32>
    %397 = arith.truncf %216 : vector<16x2xf32> to vector<16x2xbf16>
    %398 = arith.truncf %396 : vector<2x32xf32> to vector<2x32xbf16>
    %cst_188 = arith.constant dense<0.000000e+00> : vector<16x32xf32>
    %399 = tpu.matmul %397, %398, %cst_188 {dimension_numbers = #tpu.dot_dimension_numbers<[1], [0], [0], [1], [0, 0, 1, 1], [], []>} : vector<16x2xbf16>, vector<2x32xbf16>, vector<16x32xf32> -> vector<16x32xf32>
    %400 = arith.addf %394, %399 : vector<16x32xf32>
    %401 = vector.extract_strided_slice %153 {offsets = [2, 0], sizes = [1, 32], strides = [1, 1]} : vector<5x32xf32> to vector<1x32xf32>
    %402 = vector.extract_strided_slice %155 {offsets = [2, 0], sizes = [1, 32], strides = [1, 1]} : vector<5x32xf32> to vector<1x32xf32>
    %cst_189 = arith.constant dense<0.000000e+00> : vector<16xf32>
    %403 = vector.multi_reduction <add>, %400, %cst_189 [1] : vector<16x32xf32> to vector<16xf32>
    %404 = vector.shape_cast %403 : vector<16xf32> to vector<16x1xf32>
    %cst_190 = arith.constant 3.200000e+01 : f32
    %405 = vector.broadcast %cst_190 : f32 to vector<16x1xf32>
    %406 = arith.divf %404, %405 : vector<16x1xf32>
    %407 = vector.broadcast %406 : vector<16x1xf32> to vector<16x32xf32>
    %408 = arith.subf %400, %407 : vector<16x32xf32>
    %409 = arith.mulf %408, %408 : vector<16x32xf32>
    %cst_191 = arith.constant dense<0.000000e+00> : vector<16xf32>
    %410 = vector.multi_reduction <add>, %409, %cst_191 [1] : vector<16x32xf32> to vector<16xf32>
    %411 = vector.shape_cast %410 : vector<16xf32> to vector<16x1xf32>
    %cst_192 = arith.constant 3.200000e+01 : f32
    %412 = vector.broadcast %cst_192 : f32 to vector<16x1xf32>
    %413 = arith.divf %411, %412 : vector<16x1xf32>
    %414 = vector.broadcast %406 : vector<16x1xf32> to vector<16x32xf32>
    %415 = arith.subf %400, %414 : vector<16x32xf32>
    %cst_193 = arith.constant 9.99999974E-6 : f32
    %416 = vector.broadcast %cst_193 : f32 to vector<16x1xf32>
    %417 = arith.addf %413, %416 : vector<16x1xf32>
    %418 = math.rsqrt %417 : vector<16x1xf32>
    %419 = vector.broadcast %418 : vector<16x1xf32> to vector<16x32xf32>
    %420 = arith.mulf %415, %419 : vector<16x32xf32>
    %421 = vector.broadcast %401 : vector<1x32xf32> to vector<16x32xf32>
    %422 = arith.mulf %420, %421 : vector<16x32xf32>
    %423 = vector.broadcast %402 : vector<1x32xf32> to vector<16x32xf32>
    %424 = arith.addf %422, %423 : vector<16x32xf32>
    %425 = arith.addf %360, %424 : vector<16x32xf32>
    %426 = vector.extract_strided_slice %153 {offsets = [3, 0], sizes = [1, 32], strides = [1, 1]} : vector<5x32xf32> to vector<1x32xf32>
    %427 = vector.extract_strided_slice %155 {offsets = [3, 0], sizes = [1, 32], strides = [1, 1]} : vector<5x32xf32> to vector<1x32xf32>
    %cst_194 = arith.constant dense<0.000000e+00> : vector<16xf32>
    %428 = vector.multi_reduction <add>, %425, %cst_194 [1] : vector<16x32xf32> to vector<16xf32>
    %429 = vector.shape_cast %428 : vector<16xf32> to vector<16x1xf32>
    %cst_195 = arith.constant 3.200000e+01 : f32
    %430 = vector.broadcast %cst_195 : f32 to vector<16x1xf32>
    %431 = arith.divf %429, %430 : vector<16x1xf32>
    %432 = vector.broadcast %431 : vector<16x1xf32> to vector<16x32xf32>
    %433 = arith.subf %425, %432 : vector<16x32xf32>
    %434 = arith.mulf %433, %433 : vector<16x32xf32>
    %cst_196 = arith.constant dense<0.000000e+00> : vector<16xf32>
    %435 = vector.multi_reduction <add>, %434, %cst_196 [1] : vector<16x32xf32> to vector<16xf32>
    %436 = vector.shape_cast %435 : vector<16xf32> to vector<16x1xf32>
    %cst_197 = arith.constant 3.200000e+01 : f32
    %437 = vector.broadcast %cst_197 : f32 to vector<16x1xf32>
    %438 = arith.divf %436, %437 : vector<16x1xf32>
    %439 = vector.broadcast %431 : vector<16x1xf32> to vector<16x32xf32>
    %440 = arith.subf %425, %439 : vector<16x32xf32>
    %cst_198 = arith.constant 9.99999974E-6 : f32
    %441 = vector.broadcast %cst_198 : f32 to vector<16x1xf32>
    %442 = arith.addf %438, %441 : vector<16x1xf32>
    %443 = math.rsqrt %442 : vector<16x1xf32>
    %444 = vector.broadcast %443 : vector<16x1xf32> to vector<16x32xf32>
    %445 = arith.mulf %440, %444 : vector<16x32xf32>
    %446 = vector.broadcast %426 : vector<1x32xf32> to vector<16x32xf32>
    %447 = arith.mulf %445, %446 : vector<16x32xf32>
    %448 = vector.broadcast %427 : vector<1x32xf32> to vector<16x32xf32>
    %449 = arith.addf %447, %448 : vector<16x32xf32>
    %c0_199 = arith.constant 0 : index
    %c0_200 = arith.constant 0 : index
    %c0_201 = arith.constant 0 : index
    %450 = vector.load %arg29[%c0_199, %c0_200, %c0_201] : memref<2x32x32xbf16, #tpu.memory_space<vmem>>, vector<1x32x32xbf16>
    %451 = vector.shape_cast %450 : vector<1x32x32xbf16> to vector<32x32xbf16>
    %c0_202 = arith.constant 0 : index
    %c0_203 = arith.constant 0 : index
    %c0_204 = arith.constant 0 : index
    %452 = vector.load %arg25[%c0_202, %c0_203, %c0_204] : memref<2x1x32xf32, #tpu.memory_space<vmem>>, vector<1x1x32xf32>
    %453 = vector.shape_cast %452 : vector<1x1x32xf32> to vector<1x32xf32>
    %c0_205 = arith.constant 0 : index
    %c0_206 = arith.constant 0 : index
    %c0_207 = arith.constant 0 : index
    %454 = vector.load %arg27[%c0_205, %c0_206, %c0_207] : memref<2x32x32xbf16, #tpu.memory_space<vmem>>, vector<1x32x32xbf16>
    %455 = vector.shape_cast %454 : vector<1x32x32xbf16> to vector<32x32xbf16>
    %c0_208 = arith.constant 0 : index
    %c0_209 = arith.constant 0 : index
    %c0_210 = arith.constant 0 : index
    %456 = vector.load %arg23[%c0_208, %c0_209, %c0_210] : memref<2x1x32xf32, #tpu.memory_space<vmem>>, vector<1x1x32xf32>
    %457 = vector.shape_cast %456 : vector<1x1x32xf32> to vector<1x32xf32>
    %c0_211 = arith.constant 0 : index
    %c0_212 = arith.constant 0 : index
    %c0_213 = arith.constant 0 : index
    %458 = vector.load %arg30[%c0_211, %c0_212, %c0_213] : memref<2x32x32xbf16, #tpu.memory_space<vmem>>, vector<1x32x32xbf16>
    %459 = vector.shape_cast %458 : vector<1x32x32xbf16> to vector<32x32xbf16>
    %c0_214 = arith.constant 0 : index
    %c0_215 = arith.constant 0 : index
    %c0_216 = arith.constant 0 : index
    %460 = vector.load %arg26[%c0_214, %c0_215, %c0_216] : memref<2x1x32xf32, #tpu.memory_space<vmem>>, vector<1x1x32xf32>
    %461 = vector.shape_cast %460 : vector<1x1x32xf32> to vector<1x32xf32>
    %c0_217 = arith.constant 0 : index
    %c0_218 = arith.constant 0 : index
    %c0_219 = arith.constant 0 : index
    %462 = vector.load %arg28[%c0_217, %c0_218, %c0_219] : memref<2x32x32xbf16, #tpu.memory_space<vmem>>, vector<1x32x32xbf16>
    %463 = vector.shape_cast %462 : vector<1x32x32xbf16> to vector<32x32xbf16>
    %c0_220 = arith.constant 0 : index
    %c0_221 = arith.constant 0 : index
    %c0_222 = arith.constant 0 : index
    %464 = vector.load %arg24[%c0_220, %c0_221, %c0_222] : memref<2x1x32xf32, #tpu.memory_space<vmem>>, vector<1x1x32xf32>
    %465 = vector.shape_cast %464 : vector<1x1x32xf32> to vector<1x32xf32>
    %466 = arith.truncf %449 : vector<16x32xf32> to vector<16x32xbf16>
    %cst_223 = arith.constant dense<0.000000e+00> : vector<16x32xf32>
    %467 = tpu.matmul %466, %451, %cst_223 {dimension_numbers = #tpu.dot_dimension_numbers<[1], [0], [0], [1], [0, 0, 1, 1], [], []>} : vector<16x32xbf16>, vector<32x32xbf16>, vector<16x32xf32> -> vector<16x32xf32>
    %468 = vector.broadcast %453 : vector<1x32xf32> to vector<16x32xf32>
    %469 = arith.addf %467, %468 : vector<16x32xf32>
    %470 = arith.truncf %449 : vector<16x32xf32> to vector<16x32xbf16>
    %cst_224 = arith.constant dense<0.000000e+00> : vector<16x32xf32>
    %471 = tpu.matmul %470, %455, %cst_224 {dimension_numbers = #tpu.dot_dimension_numbers<[1], [0], [0], [1], [0, 0, 1, 1], [], []>} : vector<16x32xbf16>, vector<32x32xbf16>, vector<16x32xf32> -> vector<16x32xf32>
    %472 = vector.broadcast %457 : vector<1x32xf32> to vector<16x32xf32>
    %473 = arith.addf %471, %472 : vector<16x32xf32>
    %474 = arith.truncf %449 : vector<16x32xf32> to vector<16x32xbf16>
    %cst_225 = arith.constant dense<0.000000e+00> : vector<16x32xf32>
    %475 = tpu.matmul %474, %459, %cst_225 {dimension_numbers = #tpu.dot_dimension_numbers<[1], [0], [0], [1], [0, 0, 1, 1], [], []>} : vector<16x32xbf16>, vector<32x32xbf16>, vector<16x32xf32> -> vector<16x32xf32>
    %476 = vector.broadcast %461 : vector<1x32xf32> to vector<16x32xf32>
    %477 = arith.addf %475, %476 : vector<16x32xf32>
    %cst_226 = arith.constant dense<0xFF800000> : vector<16xf32>
    %478 = vector.multi_reduction <maximumf>, %469, %cst_226 [1] : vector<16x32xf32> to vector<16xf32>
    %cst_227 = arith.constant 0xFF800000 : f32
    %479 = vector.broadcast %cst_227 : f32 to vector<16xf32>
    %480 = arith.maximumf %479, %478 : vector<16xf32>
    %481 = vector.shape_cast %480 : vector<16xf32> to vector<16x1xf32>
    %482 = vector.broadcast %481 : vector<16x1xf32> to vector<16x32xf32>
    %483 = arith.subf %469, %482 : vector<16x32xf32>
    %484 = math.exp %483 : vector<16x32xf32>
    %cst_228 = arith.constant dense<0.000000e+00> : vector<16xf32>
    %485 = vector.multi_reduction <add>, %484, %cst_228 [1] : vector<16x32xf32> to vector<16xf32>
    %486 = vector.shape_cast %485 : vector<16xf32> to vector<16x1xf32>
    %487 = vector.broadcast %486 : vector<16x1xf32> to vector<16x32xf32>
    %488 = arith.divf %484, %487 : vector<16x32xf32>
    %cst_229 = arith.constant dense<0xFF800000> : vector<16xf32>
    %489 = vector.multi_reduction <maximumf>, %473, %cst_229 [1] : vector<16x32xf32> to vector<16xf32>
    %cst_230 = arith.constant 0xFF800000 : f32
    %490 = vector.broadcast %cst_230 : f32 to vector<16xf32>
    %491 = arith.maximumf %490, %489 : vector<16xf32>
    %492 = vector.shape_cast %491 : vector<16xf32> to vector<16x1xf32>
    %493 = vector.broadcast %492 : vector<16x1xf32> to vector<16x32xf32>
    %494 = arith.subf %473, %493 : vector<16x32xf32>
    %495 = math.exp %494 : vector<16x32xf32>
    %cst_231 = arith.constant dense<0.000000e+00> : vector<16xf32>
    %496 = vector.multi_reduction <add>, %495, %cst_231 [1] : vector<16x32xf32> to vector<16xf32>
    %497 = vector.shape_cast %496 : vector<16xf32> to vector<16x1xf32>
    %498 = vector.broadcast %497 : vector<16x1xf32> to vector<16x32xf32>
    %499 = arith.divf %495, %498 : vector<16x32xf32>
    %500 = vector.extract_strided_slice %488 {offsets = [0, 0], sizes = [8, 32], strides = [1, 1]} : vector<16x32xf32> to vector<8x32xf32>
    %501 = vector.extract_strided_slice %499 {offsets = [0, 0], sizes = [8, 32], strides = [1, 1]} : vector<16x32xf32> to vector<8x32xf32>
    %502 = vector.extract_strided_slice %477 {offsets = [0, 0], sizes = [8, 32], strides = [1, 1]} : vector<16x32xf32> to vector<8x32xf32>
    %cst_232 = arith.constant dense<0.000000e+00> : vector<32xf32>
    %503 = vector.multi_reduction <add>, %501, %cst_232 [0] : vector<8x32xf32> to vector<32xf32>
    %504 = vector.shape_cast %503 : vector<32xf32> to vector<1x32xf32>
    %505 = vector.broadcast %504 : vector<1x32xf32> to vector<8x32xf32>
    %506 = arith.mulf %500, %505 : vector<8x32xf32>
    %cst_233 = arith.constant dense<0.000000e+00> : vector<8xf32>
    %507 = vector.multi_reduction <add>, %506, %cst_233 [1] : vector<8x32xf32> to vector<8xf32>
    %508 = vector.shape_cast %507 : vector<8xf32> to vector<8x1xf32>
    %509 = arith.truncf %501 : vector<8x32xf32> to vector<8x32xbf16>
    %510 = arith.truncf %502 : vector<8x32xf32> to vector<8x32xbf16>
    %cst_234 = arith.constant dense<0.000000e+00> : vector<32x32xf32>
    %511 = tpu.matmul %509, %510, %cst_234 {dimension_numbers = #tpu.dot_dimension_numbers<[0], [0], [1], [1], [0, 1, 1, 1], [], []>} : vector<8x32xbf16>, vector<8x32xbf16>, vector<32x32xf32> -> vector<32x32xf32>
    %512 = arith.truncf %500 : vector<8x32xf32> to vector<8x32xbf16>
    %513 = arith.truncf %511 : vector<32x32xf32> to vector<32x32xbf16>
    %cst_235 = arith.constant dense<0.000000e+00> : vector<8x32xf32>
    %514 = tpu.matmul %512, %513, %cst_235 {dimension_numbers = #tpu.dot_dimension_numbers<[1], [0], [0], [1], [0, 0, 1, 1], [], []>} : vector<8x32xbf16>, vector<32x32xbf16>, vector<8x32xf32> -> vector<8x32xf32>
    %cst_236 = arith.constant 1.000000e+00 : f32
    %515 = vector.broadcast %cst_236 : f32 to vector<8x1xf32>
    %516 = arith.divf %515, %508 : vector<8x1xf32>
    %517 = vector.broadcast %516 : vector<8x1xf32> to vector<8x32xf32>
    %518 = arith.mulf %514, %517 : vector<8x32xf32>
    %519 = arith.addf %518, %500 : vector<8x32xf32>
    %520 = vector.extract_strided_slice %488 {offsets = [8, 0], sizes = [8, 32], strides = [1, 1]} : vector<16x32xf32> to vector<8x32xf32>
    %521 = vector.extract_strided_slice %499 {offsets = [8, 0], sizes = [8, 32], strides = [1, 1]} : vector<16x32xf32> to vector<8x32xf32>
    %522 = vector.extract_strided_slice %477 {offsets = [8, 0], sizes = [8, 32], strides = [1, 1]} : vector<16x32xf32> to vector<8x32xf32>
    %cst_237 = arith.constant dense<0.000000e+00> : vector<32xf32>
    %523 = vector.multi_reduction <add>, %521, %cst_237 [0] : vector<8x32xf32> to vector<32xf32>
    %524 = vector.shape_cast %523 : vector<32xf32> to vector<1x32xf32>
    %525 = vector.broadcast %524 : vector<1x32xf32> to vector<8x32xf32>
    %526 = arith.mulf %520, %525 : vector<8x32xf32>
    %cst_238 = arith.constant dense<0.000000e+00> : vector<8xf32>
    %527 = vector.multi_reduction <add>, %526, %cst_238 [1] : vector<8x32xf32> to vector<8xf32>
    %528 = vector.shape_cast %527 : vector<8xf32> to vector<8x1xf32>
    %529 = arith.truncf %521 : vector<8x32xf32> to vector<8x32xbf16>
    %530 = arith.truncf %522 : vector<8x32xf32> to vector<8x32xbf16>
    %cst_239 = arith.constant dense<0.000000e+00> : vector<32x32xf32>
    %531 = tpu.matmul %529, %530, %cst_239 {dimension_numbers = #tpu.dot_dimension_numbers<[0], [0], [1], [1], [0, 1, 1, 1], [], []>} : vector<8x32xbf16>, vector<8x32xbf16>, vector<32x32xf32> -> vector<32x32xf32>
    %532 = arith.truncf %520 : vector<8x32xf32> to vector<8x32xbf16>
    %533 = arith.truncf %531 : vector<32x32xf32> to vector<32x32xbf16>
    %cst_240 = arith.constant dense<0.000000e+00> : vector<8x32xf32>
    %534 = tpu.matmul %532, %533, %cst_240 {dimension_numbers = #tpu.dot_dimension_numbers<[1], [0], [0], [1], [0, 0, 1, 1], [], []>} : vector<8x32xbf16>, vector<32x32xbf16>, vector<8x32xf32> -> vector<8x32xf32>
    %cst_241 = arith.constant 1.000000e+00 : f32
    %535 = vector.broadcast %cst_241 : f32 to vector<8x1xf32>
    %536 = arith.divf %535, %528 : vector<8x1xf32>
    %537 = vector.broadcast %536 : vector<8x1xf32> to vector<8x32xf32>
    %538 = arith.mulf %534, %537 : vector<8x32xf32>
    %539 = arith.addf %538, %520 : vector<8x32xf32>
    %540 = tpu.concatenate %519, %539 in 0 : vector<8x32xf32>, vector<8x32xf32> -> vector<16x32xf32>
    %541 = arith.truncf %540 : vector<16x32xf32> to vector<16x32xbf16>
    %cst_242 = arith.constant dense<0.000000e+00> : vector<16x32xf32>
    %542 = tpu.matmul %541, %463, %cst_242 {dimension_numbers = #tpu.dot_dimension_numbers<[1], [0], [0], [1], [0, 0, 1, 1], [], []>} : vector<16x32xbf16>, vector<32x32xbf16>, vector<16x32xf32> -> vector<16x32xf32>
    %543 = vector.broadcast %465 : vector<1x32xf32> to vector<16x32xf32>
    %544 = arith.addf %542, %543 : vector<16x32xf32>
    %545 = arith.addf %425, %544 : vector<16x32xf32>
    %c0_243 = arith.constant 0 : index
    %c0_244 = arith.constant 0 : index
    %c0_245 = arith.constant 0 : index
    %546 = vector.load %arg21[%c0_243, %c0_244, %c0_245] : memref<2x32x256xbf16, #tpu.memory_space<vmem>>, vector<1x32x256xbf16>
    %547 = vector.shape_cast %546 : vector<1x32x256xbf16> to vector<32x256xbf16>
    %548 = arith.truncf %545 : vector<16x32xf32> to vector<16x32xbf16>
    %cst_246 = arith.constant dense<0.000000e+00> : vector<16x256xf32>
    %549 = tpu.matmul %548, %547, %cst_246 {dimension_numbers = #tpu.dot_dimension_numbers<[1], [0], [0], [1], [0, 0, 1, 1], [], []>} : vector<16x32xbf16>, vector<32x256xbf16>, vector<16x256xf32> -> vector<16x256xf32>
    %c0_247 = arith.constant 0 : index
    %c0_248 = arith.constant 0 : index
    %c0_249 = arith.constant 0 : index
    %550 = vector.load %arg19[%c0_247, %c0_248, %c0_249] : memref<2x1x256xf32, #tpu.memory_space<vmem>>, vector<1x1x256xf32>
    %551 = vector.shape_cast %550 : vector<1x1x256xf32> to vector<1x256xf32>
    %552 = vector.broadcast %551 : vector<1x256xf32> to vector<16x256xf32>
    %553 = arith.addf %549, %552 : vector<16x256xf32>
    %554 = arith.mulf %553, %553 : vector<16x256xf32>
    %555 = arith.mulf %553, %554 : vector<16x256xf32>
    %cst_250 = arith.constant 4.471500e-02 : f32
    %556 = vector.broadcast %cst_250 : f32 to vector<16x256xf32>
    %557 = arith.mulf %556, %555 : vector<16x256xf32>
    %558 = arith.addf %553, %557 : vector<16x256xf32>
    %cst_251 = arith.constant 0.797884583 : f32
    %559 = vector.broadcast %cst_251 : f32 to vector<16x256xf32>
    %560 = arith.mulf %559, %558 : vector<16x256xf32>
    %561 = math.tanh %560 : vector<16x256xf32>
    %cst_252 = arith.constant 1.000000e+00 : f32
    %562 = vector.broadcast %cst_252 : f32 to vector<16x256xf32>
    %563 = arith.addf %562, %561 : vector<16x256xf32>
    %cst_253 = arith.constant 5.000000e-01 : f32
    %564 = vector.broadcast %cst_253 : f32 to vector<16x256xf32>
    %565 = arith.mulf %564, %563 : vector<16x256xf32>
    %566 = arith.mulf %553, %565 : vector<16x256xf32>
    %567 = vector.extract_strided_slice %216 {offsets = [0, 0], sizes = [16, 1], strides = [1, 1]} : vector<16x2xf32> to vector<16x1xf32>
    %568 = vector.extract_strided_slice %566 {offsets = [0, 0], sizes = [16, 128], strides = [1, 1]} : vector<16x256xf32> to vector<16x128xf32>
    %569 = vector.broadcast %567 : vector<16x1xf32> to vector<16x128xf32>
    %570 = arith.mulf %569, %568 : vector<16x128xf32>
    %571 = vector.extract_strided_slice %216 {offsets = [0, 1], sizes = [16, 1], strides = [1, 1]} : vector<16x2xf32> to vector<16x1xf32>
    %572 = vector.extract_strided_slice %566 {offsets = [0, 128], sizes = [16, 128], strides = [1, 1]} : vector<16x256xf32> to vector<16x128xf32>
    %573 = vector.broadcast %571 : vector<16x1xf32> to vector<16x128xf32>
    %574 = arith.mulf %573, %572 : vector<16x128xf32>
    %575 = tpu.concatenate %570, %574 in 1 : vector<16x128xf32>, vector<16x128xf32> -> vector<16x256xf32>
    %c0_254 = arith.constant 0 : index
    %c0_255 = arith.constant 0 : index
    %c0_256 = arith.constant 0 : index
    %576 = vector.load %arg22[%c0_254, %c0_255, %c0_256] : memref<2x256x32xbf16, #tpu.memory_space<vmem>>, vector<1x256x32xbf16>
    %577 = vector.shape_cast %576 : vector<1x256x32xbf16> to vector<256x32xbf16>
    %578 = arith.truncf %575 : vector<16x256xf32> to vector<16x256xbf16>
    %cst_257 = arith.constant dense<0.000000e+00> : vector<16x32xf32>
    %579 = tpu.matmul %578, %577, %cst_257 {dimension_numbers = #tpu.dot_dimension_numbers<[1], [0], [0], [1], [0, 0, 1, 1], [], []>} : vector<16x256xbf16>, vector<256x32xbf16>, vector<16x32xf32> -> vector<16x32xf32>
    %c0_258 = arith.constant 0 : index
    %c0_259 = arith.constant 0 : index
    %c0_260 = arith.constant 0 : index
    %580 = vector.load %arg20[%c0_258, %c0_259, %c0_260] : memref<2x2x32xf32, #tpu.memory_space<vmem>>, vector<1x2x32xf32>
    %581 = vector.shape_cast %580 : vector<1x2x32xf32> to vector<2x32xf32>
    %582 = arith.truncf %216 : vector<16x2xf32> to vector<16x2xbf16>
    %583 = arith.truncf %581 : vector<2x32xf32> to vector<2x32xbf16>
    %cst_261 = arith.constant dense<0.000000e+00> : vector<16x32xf32>
    %584 = tpu.matmul %582, %583, %cst_261 {dimension_numbers = #tpu.dot_dimension_numbers<[1], [0], [0], [1], [0, 0, 1, 1], [], []>} : vector<16x2xbf16>, vector<2x32xbf16>, vector<16x32xf32> -> vector<16x32xf32>
    %585 = arith.addf %579, %584 : vector<16x32xf32>
    %586 = vector.extract_strided_slice %153 {offsets = [4, 0], sizes = [1, 32], strides = [1, 1]} : vector<5x32xf32> to vector<1x32xf32>
    %587 = vector.extract_strided_slice %155 {offsets = [4, 0], sizes = [1, 32], strides = [1, 1]} : vector<5x32xf32> to vector<1x32xf32>
    %cst_262 = arith.constant dense<0.000000e+00> : vector<16xf32>
    %588 = vector.multi_reduction <add>, %585, %cst_262 [1] : vector<16x32xf32> to vector<16xf32>
    %589 = vector.shape_cast %588 : vector<16xf32> to vector<16x1xf32>
    %cst_263 = arith.constant 3.200000e+01 : f32
    %590 = vector.broadcast %cst_263 : f32 to vector<16x1xf32>
    %591 = arith.divf %589, %590 : vector<16x1xf32>
    %592 = vector.broadcast %591 : vector<16x1xf32> to vector<16x32xf32>
    %593 = arith.subf %585, %592 : vector<16x32xf32>
    %594 = arith.mulf %593, %593 : vector<16x32xf32>
    %cst_264 = arith.constant dense<0.000000e+00> : vector<16xf32>
    %595 = vector.multi_reduction <add>, %594, %cst_264 [1] : vector<16x32xf32> to vector<16xf32>
    %596 = vector.shape_cast %595 : vector<16xf32> to vector<16x1xf32>
    %cst_265 = arith.constant 3.200000e+01 : f32
    %597 = vector.broadcast %cst_265 : f32 to vector<16x1xf32>
    %598 = arith.divf %596, %597 : vector<16x1xf32>
    %599 = vector.broadcast %591 : vector<16x1xf32> to vector<16x32xf32>
    %600 = arith.subf %585, %599 : vector<16x32xf32>
    %cst_266 = arith.constant 9.99999974E-6 : f32
    %601 = vector.broadcast %cst_266 : f32 to vector<16x1xf32>
    %602 = arith.addf %598, %601 : vector<16x1xf32>
    %603 = math.rsqrt %602 : vector<16x1xf32>
    %604 = vector.broadcast %603 : vector<16x1xf32> to vector<16x32xf32>
    %605 = arith.mulf %600, %604 : vector<16x32xf32>
    %606 = vector.broadcast %586 : vector<1x32xf32> to vector<16x32xf32>
    %607 = arith.mulf %605, %606 : vector<16x32xf32>
    %608 = vector.broadcast %587 : vector<1x32xf32> to vector<16x32xf32>
    %609 = arith.addf %607, %608 : vector<16x32xf32>
    %610 = arith.addf %545, %609 : vector<16x32xf32>
    %c1_267 = arith.constant 1 : index
    %c0_268 = arith.constant 0 : index
    %c0_269 = arith.constant 0 : index
    %611 = vector.load %arg18[%c1_267, %c0_268, %c0_269] : memref<2x5x32xf32, #tpu.memory_space<vmem>>, vector<1x5x32xf32>
    %612 = vector.shape_cast %611 : vector<1x5x32xf32> to vector<5x32xf32>
    %c1_270 = arith.constant 1 : index
    %c0_271 = arith.constant 0 : index
    %c0_272 = arith.constant 0 : index
    %613 = vector.load %arg17[%c1_270, %c0_271, %c0_272] : memref<2x5x32xf32, #tpu.memory_space<vmem>>, vector<1x5x32xf32>
    %614 = vector.shape_cast %613 : vector<1x5x32xf32> to vector<5x32xf32>
    %c1_273 = arith.constant 1 : index
    %c0_274 = arith.constant 0 : index
    %c0_275 = arith.constant 0 : index
    %615 = vector.load %arg12[%c1_273, %c0_274, %c0_275] : memref<2x2x128xbf16, #tpu.memory_space<vmem>>, vector<1x2x128xbf16>
    %616 = vector.shape_cast %615 : vector<1x2x128xbf16> to vector<2x128xbf16>
    %617 = arith.truncf %0 : vector<16x2xf32> to vector<16x2xbf16>
    %cst_276 = arith.constant dense<0.000000e+00> : vector<16x128xf32>
    %618 = tpu.matmul %617, %616, %cst_276 {dimension_numbers = #tpu.dot_dimension_numbers<[1], [0], [0], [1], [0, 0, 1, 1], [], []>} : vector<16x2xbf16>, vector<2x128xbf16>, vector<16x128xf32> -> vector<16x128xf32>
    %c1_277 = arith.constant 1 : index
    %c0_278 = arith.constant 0 : index
    %c0_279 = arith.constant 0 : index
    %619 = vector.load %arg11[%c1_277, %c0_278, %c0_279] : memref<2x1x128xf32, #tpu.memory_space<vmem>>, vector<1x1x128xf32>
    %620 = vector.shape_cast %619 : vector<1x1x128xf32> to vector<1x128xf32>
    %621 = vector.broadcast %620 : vector<1x128xf32> to vector<16x128xf32>
    %622 = arith.addf %618, %621 : vector<16x128xf32>
    %623 = arith.mulf %622, %622 : vector<16x128xf32>
    %624 = arith.mulf %622, %623 : vector<16x128xf32>
    %cst_280 = arith.constant 4.471500e-02 : f32
    %625 = vector.broadcast %cst_280 : f32 to vector<16x128xf32>
    %626 = arith.mulf %625, %624 : vector<16x128xf32>
    %627 = arith.addf %622, %626 : vector<16x128xf32>
    %cst_281 = arith.constant 0.797884583 : f32
    %628 = vector.broadcast %cst_281 : f32 to vector<16x128xf32>
    %629 = arith.mulf %628, %627 : vector<16x128xf32>
    %630 = math.tanh %629 : vector<16x128xf32>
    %cst_282 = arith.constant 1.000000e+00 : f32
    %631 = vector.broadcast %cst_282 : f32 to vector<16x128xf32>
    %632 = arith.addf %631, %630 : vector<16x128xf32>
    %cst_283 = arith.constant 5.000000e-01 : f32
    %633 = vector.broadcast %cst_283 : f32 to vector<16x128xf32>
    %634 = arith.mulf %633, %632 : vector<16x128xf32>
    %635 = arith.mulf %622, %634 : vector<16x128xf32>
    %c1_284 = arith.constant 1 : index
    %c0_285 = arith.constant 0 : index
    %c0_286 = arith.constant 0 : index
    %636 = vector.load %arg14[%c1_284, %c0_285, %c0_286] : memref<2x128x128xbf16, #tpu.memory_space<vmem>>, vector<1x128x128xbf16>
    %637 = vector.shape_cast %636 : vector<1x128x128xbf16> to vector<128x128xbf16>
    %638 = arith.truncf %635 : vector<16x128xf32> to vector<16x128xbf16>
    %cst_287 = arith.constant dense<0.000000e+00> : vector<16x128xf32>
    %639 = tpu.matmul %638, %637, %cst_287 {dimension_numbers = #tpu.dot_dimension_numbers<[1], [0], [0], [1], [0, 0, 1, 1], [], []>} : vector<16x128xbf16>, vector<128x128xbf16>, vector<16x128xf32> -> vector<16x128xf32>
    %c1_288 = arith.constant 1 : index
    %c0_289 = arith.constant 0 : index
    %c0_290 = arith.constant 0 : index
    %640 = vector.load %arg13[%c1_288, %c0_289, %c0_290] : memref<2x1x128xf32, #tpu.memory_space<vmem>>, vector<1x1x128xf32>
    %641 = vector.shape_cast %640 : vector<1x1x128xf32> to vector<1x128xf32>
    %642 = vector.broadcast %641 : vector<1x128xf32> to vector<16x128xf32>
    %643 = arith.addf %639, %642 : vector<16x128xf32>
    %644 = arith.mulf %643, %643 : vector<16x128xf32>
    %645 = arith.mulf %643, %644 : vector<16x128xf32>
    %cst_291 = arith.constant 4.471500e-02 : f32
    %646 = vector.broadcast %cst_291 : f32 to vector<16x128xf32>
    %647 = arith.mulf %646, %645 : vector<16x128xf32>
    %648 = arith.addf %643, %647 : vector<16x128xf32>
    %cst_292 = arith.constant 0.797884583 : f32
    %649 = vector.broadcast %cst_292 : f32 to vector<16x128xf32>
    %650 = arith.mulf %649, %648 : vector<16x128xf32>
    %651 = math.tanh %650 : vector<16x128xf32>
    %cst_293 = arith.constant 1.000000e+00 : f32
    %652 = vector.broadcast %cst_293 : f32 to vector<16x128xf32>
    %653 = arith.addf %652, %651 : vector<16x128xf32>
    %cst_294 = arith.constant 5.000000e-01 : f32
    %654 = vector.broadcast %cst_294 : f32 to vector<16x128xf32>
    %655 = arith.mulf %654, %653 : vector<16x128xf32>
    %656 = arith.mulf %643, %655 : vector<16x128xf32>
    %c1_295 = arith.constant 1 : index
    %c0_296 = arith.constant 0 : index
    %c0_297 = arith.constant 0 : index
    %657 = vector.load %arg16[%c1_295, %c0_296, %c0_297] : memref<2x128x2xbf16, #tpu.memory_space<vmem>>, vector<1x128x2xbf16>
    %658 = vector.shape_cast %657 : vector<1x128x2xbf16> to vector<128x2xbf16>
    %659 = arith.truncf %656 : vector<16x128xf32> to vector<16x128xbf16>
    %cst_298 = arith.constant dense<0.000000e+00> : vector<16x2xf32>
    %660 = tpu.matmul %659, %658, %cst_298 {dimension_numbers = #tpu.dot_dimension_numbers<[1], [0], [0], [1], [0, 0, 1, 1], [], []>} : vector<16x128xbf16>, vector<128x2xbf16>, vector<16x2xf32> -> vector<16x2xf32>
    %c1_299 = arith.constant 1 : index
    %c0_300 = arith.constant 0 : index
    %c0_301 = arith.constant 0 : index
    %661 = vector.load %arg15[%c1_299, %c0_300, %c0_301] : memref<2x1x2xf32, #tpu.memory_space<vmem>>, vector<1x1x2xf32>
    %662 = vector.shape_cast %661 : vector<1x1x2xf32> to vector<1x2xf32>
    %663 = vector.broadcast %662 : vector<1x2xf32> to vector<16x2xf32>
    %664 = arith.addf %660, %663 : vector<16x2xf32>
    %cst_302 = arith.constant dense<0xFF800000> : vector<16xf32>
    %665 = vector.multi_reduction <maximumf>, %664, %cst_302 [1] : vector<16x2xf32> to vector<16xf32>
    %cst_303 = arith.constant 0xFF800000 : f32
    %666 = vector.broadcast %cst_303 : f32 to vector<16xf32>
    %667 = arith.maximumf %666, %665 : vector<16xf32>
    %668 = vector.shape_cast %667 : vector<16xf32> to vector<16x1xf32>
    %669 = vector.broadcast %668 : vector<16x1xf32> to vector<16x2xf32>
    %670 = arith.subf %664, %669 : vector<16x2xf32>
    %671 = math.exp %670 : vector<16x2xf32>
    %cst_304 = arith.constant dense<0.000000e+00> : vector<16xf32>
    %672 = vector.multi_reduction <add>, %671, %cst_304 [1] : vector<16x2xf32> to vector<16xf32>
    %673 = vector.shape_cast %672 : vector<16xf32> to vector<16x1xf32>
    %674 = vector.broadcast %673 : vector<16x1xf32> to vector<16x2xf32>
    %675 = arith.divf %671, %674 : vector<16x2xf32>
    %676 = vector.extract_strided_slice %612 {offsets = [0, 0], sizes = [1, 32], strides = [1, 1]} : vector<5x32xf32> to vector<1x32xf32>
    %677 = vector.extract_strided_slice %614 {offsets = [0, 0], sizes = [1, 32], strides = [1, 1]} : vector<5x32xf32> to vector<1x32xf32>
    %cst_305 = arith.constant dense<0.000000e+00> : vector<16xf32>
    %678 = vector.multi_reduction <add>, %610, %cst_305 [1] : vector<16x32xf32> to vector<16xf32>
    %679 = vector.shape_cast %678 : vector<16xf32> to vector<16x1xf32>
    %cst_306 = arith.constant 3.200000e+01 : f32
    %680 = vector.broadcast %cst_306 : f32 to vector<16x1xf32>
    %681 = arith.divf %679, %680 : vector<16x1xf32>
    %682 = vector.broadcast %681 : vector<16x1xf32> to vector<16x32xf32>
    %683 = arith.subf %610, %682 : vector<16x32xf32>
    %684 = arith.mulf %683, %683 : vector<16x32xf32>
    %cst_307 = arith.constant dense<0.000000e+00> : vector<16xf32>
    %685 = vector.multi_reduction <add>, %684, %cst_307 [1] : vector<16x32xf32> to vector<16xf32>
    %686 = vector.shape_cast %685 : vector<16xf32> to vector<16x1xf32>
    %cst_308 = arith.constant 3.200000e+01 : f32
    %687 = vector.broadcast %cst_308 : f32 to vector<16x1xf32>
    %688 = arith.divf %686, %687 : vector<16x1xf32>
    %689 = vector.broadcast %681 : vector<16x1xf32> to vector<16x32xf32>
    %690 = arith.subf %610, %689 : vector<16x32xf32>
    %cst_309 = arith.constant 9.99999974E-6 : f32
    %691 = vector.broadcast %cst_309 : f32 to vector<16x1xf32>
    %692 = arith.addf %688, %691 : vector<16x1xf32>
    %693 = math.rsqrt %692 : vector<16x1xf32>
    %694 = vector.broadcast %693 : vector<16x1xf32> to vector<16x32xf32>
    %695 = arith.mulf %690, %694 : vector<16x32xf32>
    %696 = vector.broadcast %676 : vector<1x32xf32> to vector<16x32xf32>
    %697 = arith.mulf %695, %696 : vector<16x32xf32>
    %698 = vector.broadcast %677 : vector<1x32xf32> to vector<16x32xf32>
    %699 = arith.addf %697, %698 : vector<16x32xf32>
    %700 = vector.extract_strided_slice %612 {offsets = [1, 0], sizes = [1, 32], strides = [1, 1]} : vector<5x32xf32> to vector<1x32xf32>
    %701 = vector.extract_strided_slice %614 {offsets = [1, 0], sizes = [1, 32], strides = [1, 1]} : vector<5x32xf32> to vector<1x32xf32>
    %cst_310 = arith.constant dense<0.000000e+00> : vector<16xf32>
    %702 = vector.multi_reduction <add>, %151, %cst_310 [1] : vector<16x32xf32> to vector<16xf32>
    %703 = vector.shape_cast %702 : vector<16xf32> to vector<16x1xf32>
    %cst_311 = arith.constant 3.200000e+01 : f32
    %704 = vector.broadcast %cst_311 : f32 to vector<16x1xf32>
    %705 = arith.divf %703, %704 : vector<16x1xf32>
    %706 = vector.broadcast %705 : vector<16x1xf32> to vector<16x32xf32>
    %707 = arith.subf %151, %706 : vector<16x32xf32>
    %708 = arith.mulf %707, %707 : vector<16x32xf32>
    %cst_312 = arith.constant dense<0.000000e+00> : vector<16xf32>
    %709 = vector.multi_reduction <add>, %708, %cst_312 [1] : vector<16x32xf32> to vector<16xf32>
    %710 = vector.shape_cast %709 : vector<16xf32> to vector<16x1xf32>
    %cst_313 = arith.constant 3.200000e+01 : f32
    %711 = vector.broadcast %cst_313 : f32 to vector<16x1xf32>
    %712 = arith.divf %710, %711 : vector<16x1xf32>
    %713 = vector.broadcast %705 : vector<16x1xf32> to vector<16x32xf32>
    %714 = arith.subf %151, %713 : vector<16x32xf32>
    %cst_314 = arith.constant 9.99999974E-6 : f32
    %715 = vector.broadcast %cst_314 : f32 to vector<16x1xf32>
    %716 = arith.addf %712, %715 : vector<16x1xf32>
    %717 = math.rsqrt %716 : vector<16x1xf32>
    %718 = vector.broadcast %717 : vector<16x1xf32> to vector<16x32xf32>
    %719 = arith.mulf %714, %718 : vector<16x32xf32>
    %720 = vector.broadcast %700 : vector<1x32xf32> to vector<16x32xf32>
    %721 = arith.mulf %719, %720 : vector<16x32xf32>
    %722 = vector.broadcast %701 : vector<1x32xf32> to vector<16x32xf32>
    %723 = arith.addf %721, %722 : vector<16x32xf32>
    %c1_315 = arith.constant 1 : index
    %c0_316 = arith.constant 0 : index
    %c0_317 = arith.constant 0 : index
    %724 = vector.load %arg9[%c1_315, %c0_316, %c0_317] : memref<2x32x32xbf16, #tpu.memory_space<vmem>>, vector<1x32x32xbf16>
    %725 = vector.shape_cast %724 : vector<1x32x32xbf16> to vector<32x32xbf16>
    %c1_318 = arith.constant 1 : index
    %c0_319 = arith.constant 0 : index
    %c0_320 = arith.constant 0 : index
    %726 = vector.load %arg5[%c1_318, %c0_319, %c0_320] : memref<2x1x32xf32, #tpu.memory_space<vmem>>, vector<1x1x32xf32>
    %727 = vector.shape_cast %726 : vector<1x1x32xf32> to vector<1x32xf32>
    %c1_321 = arith.constant 1 : index
    %c0_322 = arith.constant 0 : index
    %c0_323 = arith.constant 0 : index
    %728 = vector.load %arg7[%c1_321, %c0_322, %c0_323] : memref<2x32x32xbf16, #tpu.memory_space<vmem>>, vector<1x32x32xbf16>
    %729 = vector.shape_cast %728 : vector<1x32x32xbf16> to vector<32x32xbf16>
    %c1_324 = arith.constant 1 : index
    %c0_325 = arith.constant 0 : index
    %c0_326 = arith.constant 0 : index
    %730 = vector.load %arg3[%c1_324, %c0_325, %c0_326] : memref<2x1x32xf32, #tpu.memory_space<vmem>>, vector<1x1x32xf32>
    %731 = vector.shape_cast %730 : vector<1x1x32xf32> to vector<1x32xf32>
    %c1_327 = arith.constant 1 : index
    %c0_328 = arith.constant 0 : index
    %c0_329 = arith.constant 0 : index
    %732 = vector.load %arg10[%c1_327, %c0_328, %c0_329] : memref<2x32x32xbf16, #tpu.memory_space<vmem>>, vector<1x32x32xbf16>
    %733 = vector.shape_cast %732 : vector<1x32x32xbf16> to vector<32x32xbf16>
    %c1_330 = arith.constant 1 : index
    %c0_331 = arith.constant 0 : index
    %c0_332 = arith.constant 0 : index
    %734 = vector.load %arg6[%c1_330, %c0_331, %c0_332] : memref<2x1x32xf32, #tpu.memory_space<vmem>>, vector<1x1x32xf32>
    %735 = vector.shape_cast %734 : vector<1x1x32xf32> to vector<1x32xf32>
    %c1_333 = arith.constant 1 : index
    %c0_334 = arith.constant 0 : index
    %c0_335 = arith.constant 0 : index
    %736 = vector.load %arg8[%c1_333, %c0_334, %c0_335] : memref<2x32x32xbf16, #tpu.memory_space<vmem>>, vector<1x32x32xbf16>
    %737 = vector.shape_cast %736 : vector<1x32x32xbf16> to vector<32x32xbf16>
    %c1_336 = arith.constant 1 : index
    %c0_337 = arith.constant 0 : index
    %c0_338 = arith.constant 0 : index
    %738 = vector.load %arg4[%c1_336, %c0_337, %c0_338] : memref<2x1x32xf32, #tpu.memory_space<vmem>>, vector<1x1x32xf32>
    %739 = vector.shape_cast %738 : vector<1x1x32xf32> to vector<1x32xf32>
    %740 = arith.truncf %699 : vector<16x32xf32> to vector<16x32xbf16>
    %cst_339 = arith.constant dense<0.000000e+00> : vector<16x32xf32>
    %741 = tpu.matmul %740, %725, %cst_339 {dimension_numbers = #tpu.dot_dimension_numbers<[1], [0], [0], [1], [0, 0, 1, 1], [], []>} : vector<16x32xbf16>, vector<32x32xbf16>, vector<16x32xf32> -> vector<16x32xf32>
    %742 = vector.broadcast %727 : vector<1x32xf32> to vector<16x32xf32>
    %743 = arith.addf %741, %742 : vector<16x32xf32>
    %744 = arith.truncf %723 : vector<16x32xf32> to vector<16x32xbf16>
    %cst_340 = arith.constant dense<0.000000e+00> : vector<16x32xf32>
    %745 = tpu.matmul %744, %729, %cst_340 {dimension_numbers = #tpu.dot_dimension_numbers<[1], [0], [0], [1], [0, 0, 1, 1], [], []>} : vector<16x32xbf16>, vector<32x32xbf16>, vector<16x32xf32> -> vector<16x32xf32>
    %746 = vector.broadcast %731 : vector<1x32xf32> to vector<16x32xf32>
    %747 = arith.addf %745, %746 : vector<16x32xf32>
    %748 = arith.truncf %723 : vector<16x32xf32> to vector<16x32xbf16>
    %cst_341 = arith.constant dense<0.000000e+00> : vector<16x32xf32>
    %749 = tpu.matmul %748, %733, %cst_341 {dimension_numbers = #tpu.dot_dimension_numbers<[1], [0], [0], [1], [0, 0, 1, 1], [], []>} : vector<16x32xbf16>, vector<32x32xbf16>, vector<16x32xf32> -> vector<16x32xf32>
    %750 = vector.broadcast %735 : vector<1x32xf32> to vector<16x32xf32>
    %751 = arith.addf %749, %750 : vector<16x32xf32>
    %cst_342 = arith.constant dense<0xFF800000> : vector<16xf32>
    %752 = vector.multi_reduction <maximumf>, %743, %cst_342 [1] : vector<16x32xf32> to vector<16xf32>
    %cst_343 = arith.constant 0xFF800000 : f32
    %753 = vector.broadcast %cst_343 : f32 to vector<16xf32>
    %754 = arith.maximumf %753, %752 : vector<16xf32>
    %755 = vector.shape_cast %754 : vector<16xf32> to vector<16x1xf32>
    %756 = vector.broadcast %755 : vector<16x1xf32> to vector<16x32xf32>
    %757 = arith.subf %743, %756 : vector<16x32xf32>
    %758 = math.exp %757 : vector<16x32xf32>
    %cst_344 = arith.constant dense<0.000000e+00> : vector<16xf32>
    %759 = vector.multi_reduction <add>, %758, %cst_344 [1] : vector<16x32xf32> to vector<16xf32>
    %760 = vector.shape_cast %759 : vector<16xf32> to vector<16x1xf32>
    %761 = vector.broadcast %760 : vector<16x1xf32> to vector<16x32xf32>
    %762 = arith.divf %758, %761 : vector<16x32xf32>
    %cst_345 = arith.constant dense<0xFF800000> : vector<16xf32>
    %763 = vector.multi_reduction <maximumf>, %747, %cst_345 [1] : vector<16x32xf32> to vector<16xf32>
    %cst_346 = arith.constant 0xFF800000 : f32
    %764 = vector.broadcast %cst_346 : f32 to vector<16xf32>
    %765 = arith.maximumf %764, %763 : vector<16xf32>
    %766 = vector.shape_cast %765 : vector<16xf32> to vector<16x1xf32>
    %767 = vector.broadcast %766 : vector<16x1xf32> to vector<16x32xf32>
    %768 = arith.subf %747, %767 : vector<16x32xf32>
    %769 = math.exp %768 : vector<16x32xf32>
    %cst_347 = arith.constant dense<0.000000e+00> : vector<16xf32>
    %770 = vector.multi_reduction <add>, %769, %cst_347 [1] : vector<16x32xf32> to vector<16xf32>
    %771 = vector.shape_cast %770 : vector<16xf32> to vector<16x1xf32>
    %772 = vector.broadcast %771 : vector<16x1xf32> to vector<16x32xf32>
    %773 = arith.divf %769, %772 : vector<16x32xf32>
    %774 = vector.extract_strided_slice %762 {offsets = [0, 0], sizes = [8, 32], strides = [1, 1]} : vector<16x32xf32> to vector<8x32xf32>
    %775 = vector.extract_strided_slice %773 {offsets = [0, 0], sizes = [8, 32], strides = [1, 1]} : vector<16x32xf32> to vector<8x32xf32>
    %776 = vector.extract_strided_slice %751 {offsets = [0, 0], sizes = [8, 32], strides = [1, 1]} : vector<16x32xf32> to vector<8x32xf32>
    %cst_348 = arith.constant dense<0.000000e+00> : vector<32xf32>
    %777 = vector.multi_reduction <add>, %775, %cst_348 [0] : vector<8x32xf32> to vector<32xf32>
    %778 = vector.shape_cast %777 : vector<32xf32> to vector<1x32xf32>
    %779 = vector.broadcast %778 : vector<1x32xf32> to vector<8x32xf32>
    %780 = arith.mulf %774, %779 : vector<8x32xf32>
    %cst_349 = arith.constant dense<0.000000e+00> : vector<8xf32>
    %781 = vector.multi_reduction <add>, %780, %cst_349 [1] : vector<8x32xf32> to vector<8xf32>
    %782 = vector.shape_cast %781 : vector<8xf32> to vector<8x1xf32>
    %783 = arith.truncf %775 : vector<8x32xf32> to vector<8x32xbf16>
    %784 = arith.truncf %776 : vector<8x32xf32> to vector<8x32xbf16>
    %cst_350 = arith.constant dense<0.000000e+00> : vector<32x32xf32>
    %785 = tpu.matmul %783, %784, %cst_350 {dimension_numbers = #tpu.dot_dimension_numbers<[0], [0], [1], [1], [0, 1, 1, 1], [], []>} : vector<8x32xbf16>, vector<8x32xbf16>, vector<32x32xf32> -> vector<32x32xf32>
    %786 = arith.truncf %774 : vector<8x32xf32> to vector<8x32xbf16>
    %787 = arith.truncf %785 : vector<32x32xf32> to vector<32x32xbf16>
    %cst_351 = arith.constant dense<0.000000e+00> : vector<8x32xf32>
    %788 = tpu.matmul %786, %787, %cst_351 {dimension_numbers = #tpu.dot_dimension_numbers<[1], [0], [0], [1], [0, 0, 1, 1], [], []>} : vector<8x32xbf16>, vector<32x32xbf16>, vector<8x32xf32> -> vector<8x32xf32>
    %cst_352 = arith.constant 1.000000e+00 : f32
    %789 = vector.broadcast %cst_352 : f32 to vector<8x1xf32>
    %790 = arith.divf %789, %782 : vector<8x1xf32>
    %791 = vector.broadcast %790 : vector<8x1xf32> to vector<8x32xf32>
    %792 = arith.mulf %788, %791 : vector<8x32xf32>
    %793 = arith.addf %792, %774 : vector<8x32xf32>
    %794 = vector.extract_strided_slice %762 {offsets = [8, 0], sizes = [8, 32], strides = [1, 1]} : vector<16x32xf32> to vector<8x32xf32>
    %795 = vector.extract_strided_slice %773 {offsets = [8, 0], sizes = [8, 32], strides = [1, 1]} : vector<16x32xf32> to vector<8x32xf32>
    %796 = vector.extract_strided_slice %751 {offsets = [8, 0], sizes = [8, 32], strides = [1, 1]} : vector<16x32xf32> to vector<8x32xf32>
    %cst_353 = arith.constant dense<0.000000e+00> : vector<32xf32>
    %797 = vector.multi_reduction <add>, %795, %cst_353 [0] : vector<8x32xf32> to vector<32xf32>
    %798 = vector.shape_cast %797 : vector<32xf32> to vector<1x32xf32>
    %799 = vector.broadcast %798 : vector<1x32xf32> to vector<8x32xf32>
    %800 = arith.mulf %794, %799 : vector<8x32xf32>
    %cst_354 = arith.constant dense<0.000000e+00> : vector<8xf32>
    %801 = vector.multi_reduction <add>, %800, %cst_354 [1] : vector<8x32xf32> to vector<8xf32>
    %802 = vector.shape_cast %801 : vector<8xf32> to vector<8x1xf32>
    %803 = arith.truncf %795 : vector<8x32xf32> to vector<8x32xbf16>
    %804 = arith.truncf %796 : vector<8x32xf32> to vector<8x32xbf16>
    %cst_355 = arith.constant dense<0.000000e+00> : vector<32x32xf32>
    %805 = tpu.matmul %803, %804, %cst_355 {dimension_numbers = #tpu.dot_dimension_numbers<[0], [0], [1], [1], [0, 1, 1, 1], [], []>} : vector<8x32xbf16>, vector<8x32xbf16>, vector<32x32xf32> -> vector<32x32xf32>
    %806 = arith.truncf %794 : vector<8x32xf32> to vector<8x32xbf16>
    %807 = arith.truncf %805 : vector<32x32xf32> to vector<32x32xbf16>
    %cst_356 = arith.constant dense<0.000000e+00> : vector<8x32xf32>
    %808 = tpu.matmul %806, %807, %cst_356 {dimension_numbers = #tpu.dot_dimension_numbers<[1], [0], [0], [1], [0, 0, 1, 1], [], []>} : vector<8x32xbf16>, vector<32x32xbf16>, vector<8x32xf32> -> vector<8x32xf32>
    %cst_357 = arith.constant 1.000000e+00 : f32
    %809 = vector.broadcast %cst_357 : f32 to vector<8x1xf32>
    %810 = arith.divf %809, %802 : vector<8x1xf32>
    %811 = vector.broadcast %810 : vector<8x1xf32> to vector<8x32xf32>
    %812 = arith.mulf %808, %811 : vector<8x32xf32>
    %813 = arith.addf %812, %794 : vector<8x32xf32>
    %814 = tpu.concatenate %793, %813 in 0 : vector<8x32xf32>, vector<8x32xf32> -> vector<16x32xf32>
    %815 = arith.truncf %814 : vector<16x32xf32> to vector<16x32xbf16>
    %cst_358 = arith.constant dense<0.000000e+00> : vector<16x32xf32>
    %816 = tpu.matmul %815, %737, %cst_358 {dimension_numbers = #tpu.dot_dimension_numbers<[1], [0], [0], [1], [0, 0, 1, 1], [], []>} : vector<16x32xbf16>, vector<32x32xbf16>, vector<16x32xf32> -> vector<16x32xf32>
    %817 = vector.broadcast %739 : vector<1x32xf32> to vector<16x32xf32>
    %818 = arith.addf %816, %817 : vector<16x32xf32>
    %819 = arith.addf %610, %818 : vector<16x32xf32>
    %c1_359 = arith.constant 1 : index
    %c0_360 = arith.constant 0 : index
    %c0_361 = arith.constant 0 : index
    %820 = vector.load %arg21[%c1_359, %c0_360, %c0_361] : memref<2x32x256xbf16, #tpu.memory_space<vmem>>, vector<1x32x256xbf16>
    %821 = vector.shape_cast %820 : vector<1x32x256xbf16> to vector<32x256xbf16>
    %822 = arith.truncf %819 : vector<16x32xf32> to vector<16x32xbf16>
    %cst_362 = arith.constant dense<0.000000e+00> : vector<16x256xf32>
    %823 = tpu.matmul %822, %821, %cst_362 {dimension_numbers = #tpu.dot_dimension_numbers<[1], [0], [0], [1], [0, 0, 1, 1], [], []>} : vector<16x32xbf16>, vector<32x256xbf16>, vector<16x256xf32> -> vector<16x256xf32>
    %c1_363 = arith.constant 1 : index
    %c0_364 = arith.constant 0 : index
    %c0_365 = arith.constant 0 : index
    %824 = vector.load %arg19[%c1_363, %c0_364, %c0_365] : memref<2x1x256xf32, #tpu.memory_space<vmem>>, vector<1x1x256xf32>
    %825 = vector.shape_cast %824 : vector<1x1x256xf32> to vector<1x256xf32>
    %826 = vector.broadcast %825 : vector<1x256xf32> to vector<16x256xf32>
    %827 = arith.addf %823, %826 : vector<16x256xf32>
    %828 = arith.mulf %827, %827 : vector<16x256xf32>
    %829 = arith.mulf %827, %828 : vector<16x256xf32>
    %cst_366 = arith.constant 4.471500e-02 : f32
    %830 = vector.broadcast %cst_366 : f32 to vector<16x256xf32>
    %831 = arith.mulf %830, %829 : vector<16x256xf32>
    %832 = arith.addf %827, %831 : vector<16x256xf32>
    %cst_367 = arith.constant 0.797884583 : f32
    %833 = vector.broadcast %cst_367 : f32 to vector<16x256xf32>
    %834 = arith.mulf %833, %832 : vector<16x256xf32>
    %835 = math.tanh %834 : vector<16x256xf32>
    %cst_368 = arith.constant 1.000000e+00 : f32
    %836 = vector.broadcast %cst_368 : f32 to vector<16x256xf32>
    %837 = arith.addf %836, %835 : vector<16x256xf32>
    %cst_369 = arith.constant 5.000000e-01 : f32
    %838 = vector.broadcast %cst_369 : f32 to vector<16x256xf32>
    %839 = arith.mulf %838, %837 : vector<16x256xf32>
    %840 = arith.mulf %827, %839 : vector<16x256xf32>
    %841 = vector.extract_strided_slice %675 {offsets = [0, 0], sizes = [16, 1], strides = [1, 1]} : vector<16x2xf32> to vector<16x1xf32>
    %842 = vector.extract_strided_slice %840 {offsets = [0, 0], sizes = [16, 128], strides = [1, 1]} : vector<16x256xf32> to vector<16x128xf32>
    %843 = vector.broadcast %841 : vector<16x1xf32> to vector<16x128xf32>
    %844 = arith.mulf %843, %842 : vector<16x128xf32>
    %845 = vector.extract_strided_slice %675 {offsets = [0, 1], sizes = [16, 1], strides = [1, 1]} : vector<16x2xf32> to vector<16x1xf32>
    %846 = vector.extract_strided_slice %840 {offsets = [0, 128], sizes = [16, 128], strides = [1, 1]} : vector<16x256xf32> to vector<16x128xf32>
    %847 = vector.broadcast %845 : vector<16x1xf32> to vector<16x128xf32>
    %848 = arith.mulf %847, %846 : vector<16x128xf32>
    %849 = tpu.concatenate %844, %848 in 1 : vector<16x128xf32>, vector<16x128xf32> -> vector<16x256xf32>
    %c1_370 = arith.constant 1 : index
    %c0_371 = arith.constant 0 : index
    %c0_372 = arith.constant 0 : index
    %850 = vector.load %arg22[%c1_370, %c0_371, %c0_372] : memref<2x256x32xbf16, #tpu.memory_space<vmem>>, vector<1x256x32xbf16>
    %851 = vector.shape_cast %850 : vector<1x256x32xbf16> to vector<256x32xbf16>
    %852 = arith.truncf %849 : vector<16x256xf32> to vector<16x256xbf16>
    %cst_373 = arith.constant dense<0.000000e+00> : vector<16x32xf32>
    %853 = tpu.matmul %852, %851, %cst_373 {dimension_numbers = #tpu.dot_dimension_numbers<[1], [0], [0], [1], [0, 0, 1, 1], [], []>} : vector<16x256xbf16>, vector<256x32xbf16>, vector<16x32xf32> -> vector<16x32xf32>
    %c1_374 = arith.constant 1 : index
    %c0_375 = arith.constant 0 : index
    %c0_376 = arith.constant 0 : index
    %854 = vector.load %arg20[%c1_374, %c0_375, %c0_376] : memref<2x2x32xf32, #tpu.memory_space<vmem>>, vector<1x2x32xf32>
    %855 = vector.shape_cast %854 : vector<1x2x32xf32> to vector<2x32xf32>
    %856 = arith.truncf %675 : vector<16x2xf32> to vector<16x2xbf16>
    %857 = arith.truncf %855 : vector<2x32xf32> to vector<2x32xbf16>
    %cst_377 = arith.constant dense<0.000000e+00> : vector<16x32xf32>
    %858 = tpu.matmul %856, %857, %cst_377 {dimension_numbers = #tpu.dot_dimension_numbers<[1], [0], [0], [1], [0, 0, 1, 1], [], []>} : vector<16x2xbf16>, vector<2x32xbf16>, vector<16x32xf32> -> vector<16x32xf32>
    %859 = arith.addf %853, %858 : vector<16x32xf32>
    %860 = vector.extract_strided_slice %612 {offsets = [2, 0], sizes = [1, 32], strides = [1, 1]} : vector<5x32xf32> to vector<1x32xf32>
    %861 = vector.extract_strided_slice %614 {offsets = [2, 0], sizes = [1, 32], strides = [1, 1]} : vector<5x32xf32> to vector<1x32xf32>
    %cst_378 = arith.constant dense<0.000000e+00> : vector<16xf32>
    %862 = vector.multi_reduction <add>, %859, %cst_378 [1] : vector<16x32xf32> to vector<16xf32>
    %863 = vector.shape_cast %862 : vector<16xf32> to vector<16x1xf32>
    %cst_379 = arith.constant 3.200000e+01 : f32
    %864 = vector.broadcast %cst_379 : f32 to vector<16x1xf32>
    %865 = arith.divf %863, %864 : vector<16x1xf32>
    %866 = vector.broadcast %865 : vector<16x1xf32> to vector<16x32xf32>
    %867 = arith.subf %859, %866 : vector<16x32xf32>
    %868 = arith.mulf %867, %867 : vector<16x32xf32>
    %cst_380 = arith.constant dense<0.000000e+00> : vector<16xf32>
    %869 = vector.multi_reduction <add>, %868, %cst_380 [1] : vector<16x32xf32> to vector<16xf32>
    %870 = vector.shape_cast %869 : vector<16xf32> to vector<16x1xf32>
    %cst_381 = arith.constant 3.200000e+01 : f32
    %871 = vector.broadcast %cst_381 : f32 to vector<16x1xf32>
    %872 = arith.divf %870, %871 : vector<16x1xf32>
    %873 = vector.broadcast %865 : vector<16x1xf32> to vector<16x32xf32>
    %874 = arith.subf %859, %873 : vector<16x32xf32>
    %cst_382 = arith.constant 9.99999974E-6 : f32
    %875 = vector.broadcast %cst_382 : f32 to vector<16x1xf32>
    %876 = arith.addf %872, %875 : vector<16x1xf32>
    %877 = math.rsqrt %876 : vector<16x1xf32>
    %878 = vector.broadcast %877 : vector<16x1xf32> to vector<16x32xf32>
    %879 = arith.mulf %874, %878 : vector<16x32xf32>
    %880 = vector.broadcast %860 : vector<1x32xf32> to vector<16x32xf32>
    %881 = arith.mulf %879, %880 : vector<16x32xf32>
    %882 = vector.broadcast %861 : vector<1x32xf32> to vector<16x32xf32>
    %883 = arith.addf %881, %882 : vector<16x32xf32>
    %884 = arith.addf %819, %883 : vector<16x32xf32>
    %885 = vector.extract_strided_slice %612 {offsets = [3, 0], sizes = [1, 32], strides = [1, 1]} : vector<5x32xf32> to vector<1x32xf32>
    %886 = vector.extract_strided_slice %614 {offsets = [3, 0], sizes = [1, 32], strides = [1, 1]} : vector<5x32xf32> to vector<1x32xf32>
    %cst_383 = arith.constant dense<0.000000e+00> : vector<16xf32>
    %887 = vector.multi_reduction <add>, %884, %cst_383 [1] : vector<16x32xf32> to vector<16xf32>
    %888 = vector.shape_cast %887 : vector<16xf32> to vector<16x1xf32>
    %cst_384 = arith.constant 3.200000e+01 : f32
    %889 = vector.broadcast %cst_384 : f32 to vector<16x1xf32>
    %890 = arith.divf %888, %889 : vector<16x1xf32>
    %891 = vector.broadcast %890 : vector<16x1xf32> to vector<16x32xf32>
    %892 = arith.subf %884, %891 : vector<16x32xf32>
    %893 = arith.mulf %892, %892 : vector<16x32xf32>
    %cst_385 = arith.constant dense<0.000000e+00> : vector<16xf32>
    %894 = vector.multi_reduction <add>, %893, %cst_385 [1] : vector<16x32xf32> to vector<16xf32>
    %895 = vector.shape_cast %894 : vector<16xf32> to vector<16x1xf32>
    %cst_386 = arith.constant 3.200000e+01 : f32
    %896 = vector.broadcast %cst_386 : f32 to vector<16x1xf32>
    %897 = arith.divf %895, %896 : vector<16x1xf32>
    %898 = vector.broadcast %890 : vector<16x1xf32> to vector<16x32xf32>
    %899 = arith.subf %884, %898 : vector<16x32xf32>
    %cst_387 = arith.constant 9.99999974E-6 : f32
    %900 = vector.broadcast %cst_387 : f32 to vector<16x1xf32>
    %901 = arith.addf %897, %900 : vector<16x1xf32>
    %902 = math.rsqrt %901 : vector<16x1xf32>
    %903 = vector.broadcast %902 : vector<16x1xf32> to vector<16x32xf32>
    %904 = arith.mulf %899, %903 : vector<16x32xf32>
    %905 = vector.broadcast %885 : vector<1x32xf32> to vector<16x32xf32>
    %906 = arith.mulf %904, %905 : vector<16x32xf32>
    %907 = vector.broadcast %886 : vector<1x32xf32> to vector<16x32xf32>
    %908 = arith.addf %906, %907 : vector<16x32xf32>
    %c1_388 = arith.constant 1 : index
    %c0_389 = arith.constant 0 : index
    %c0_390 = arith.constant 0 : index
    %909 = vector.load %arg29[%c1_388, %c0_389, %c0_390] : memref<2x32x32xbf16, #tpu.memory_space<vmem>>, vector<1x32x32xbf16>
    %910 = vector.shape_cast %909 : vector<1x32x32xbf16> to vector<32x32xbf16>
    %c1_391 = arith.constant 1 : index
    %c0_392 = arith.constant 0 : index
    %c0_393 = arith.constant 0 : index
    %911 = vector.load %arg25[%c1_391, %c0_392, %c0_393] : memref<2x1x32xf32, #tpu.memory_space<vmem>>, vector<1x1x32xf32>
    %912 = vector.shape_cast %911 : vector<1x1x32xf32> to vector<1x32xf32>
    %c1_394 = arith.constant 1 : index
    %c0_395 = arith.constant 0 : index
    %c0_396 = arith.constant 0 : index
    %913 = vector.load %arg27[%c1_394, %c0_395, %c0_396] : memref<2x32x32xbf16, #tpu.memory_space<vmem>>, vector<1x32x32xbf16>
    %914 = vector.shape_cast %913 : vector<1x32x32xbf16> to vector<32x32xbf16>
    %c1_397 = arith.constant 1 : index
    %c0_398 = arith.constant 0 : index
    %c0_399 = arith.constant 0 : index
    %915 = vector.load %arg23[%c1_397, %c0_398, %c0_399] : memref<2x1x32xf32, #tpu.memory_space<vmem>>, vector<1x1x32xf32>
    %916 = vector.shape_cast %915 : vector<1x1x32xf32> to vector<1x32xf32>
    %c1_400 = arith.constant 1 : index
    %c0_401 = arith.constant 0 : index
    %c0_402 = arith.constant 0 : index
    %917 = vector.load %arg30[%c1_400, %c0_401, %c0_402] : memref<2x32x32xbf16, #tpu.memory_space<vmem>>, vector<1x32x32xbf16>
    %918 = vector.shape_cast %917 : vector<1x32x32xbf16> to vector<32x32xbf16>
    %c1_403 = arith.constant 1 : index
    %c0_404 = arith.constant 0 : index
    %c0_405 = arith.constant 0 : index
    %919 = vector.load %arg26[%c1_403, %c0_404, %c0_405] : memref<2x1x32xf32, #tpu.memory_space<vmem>>, vector<1x1x32xf32>
    %920 = vector.shape_cast %919 : vector<1x1x32xf32> to vector<1x32xf32>
    %c1_406 = arith.constant 1 : index
    %c0_407 = arith.constant 0 : index
    %c0_408 = arith.constant 0 : index
    %921 = vector.load %arg28[%c1_406, %c0_407, %c0_408] : memref<2x32x32xbf16, #tpu.memory_space<vmem>>, vector<1x32x32xbf16>
    %922 = vector.shape_cast %921 : vector<1x32x32xbf16> to vector<32x32xbf16>
    %c1_409 = arith.constant 1 : index
    %c0_410 = arith.constant 0 : index
    %c0_411 = arith.constant 0 : index
    %923 = vector.load %arg24[%c1_409, %c0_410, %c0_411] : memref<2x1x32xf32, #tpu.memory_space<vmem>>, vector<1x1x32xf32>
    %924 = vector.shape_cast %923 : vector<1x1x32xf32> to vector<1x32xf32>
    %925 = arith.truncf %908 : vector<16x32xf32> to vector<16x32xbf16>
    %cst_412 = arith.constant dense<0.000000e+00> : vector<16x32xf32>
    %926 = tpu.matmul %925, %910, %cst_412 {dimension_numbers = #tpu.dot_dimension_numbers<[1], [0], [0], [1], [0, 0, 1, 1], [], []>} : vector<16x32xbf16>, vector<32x32xbf16>, vector<16x32xf32> -> vector<16x32xf32>
    %927 = vector.broadcast %912 : vector<1x32xf32> to vector<16x32xf32>
    %928 = arith.addf %926, %927 : vector<16x32xf32>
    %929 = arith.truncf %908 : vector<16x32xf32> to vector<16x32xbf16>
    %cst_413 = arith.constant dense<0.000000e+00> : vector<16x32xf32>
    %930 = tpu.matmul %929, %914, %cst_413 {dimension_numbers = #tpu.dot_dimension_numbers<[1], [0], [0], [1], [0, 0, 1, 1], [], []>} : vector<16x32xbf16>, vector<32x32xbf16>, vector<16x32xf32> -> vector<16x32xf32>
    %931 = vector.broadcast %916 : vector<1x32xf32> to vector<16x32xf32>
    %932 = arith.addf %930, %931 : vector<16x32xf32>
    %933 = arith.truncf %908 : vector<16x32xf32> to vector<16x32xbf16>
    %cst_414 = arith.constant dense<0.000000e+00> : vector<16x32xf32>
    %934 = tpu.matmul %933, %918, %cst_414 {dimension_numbers = #tpu.dot_dimension_numbers<[1], [0], [0], [1], [0, 0, 1, 1], [], []>} : vector<16x32xbf16>, vector<32x32xbf16>, vector<16x32xf32> -> vector<16x32xf32>
    %935 = vector.broadcast %920 : vector<1x32xf32> to vector<16x32xf32>
    %936 = arith.addf %934, %935 : vector<16x32xf32>
    %cst_415 = arith.constant dense<0xFF800000> : vector<16xf32>
    %937 = vector.multi_reduction <maximumf>, %928, %cst_415 [1] : vector<16x32xf32> to vector<16xf32>
    %cst_416 = arith.constant 0xFF800000 : f32
    %938 = vector.broadcast %cst_416 : f32 to vector<16xf32>
    %939 = arith.maximumf %938, %937 : vector<16xf32>
    %940 = vector.shape_cast %939 : vector<16xf32> to vector<16x1xf32>
    %941 = vector.broadcast %940 : vector<16x1xf32> to vector<16x32xf32>
    %942 = arith.subf %928, %941 : vector<16x32xf32>
    %943 = math.exp %942 : vector<16x32xf32>
    %cst_417 = arith.constant dense<0.000000e+00> : vector<16xf32>
    %944 = vector.multi_reduction <add>, %943, %cst_417 [1] : vector<16x32xf32> to vector<16xf32>
    %945 = vector.shape_cast %944 : vector<16xf32> to vector<16x1xf32>
    %946 = vector.broadcast %945 : vector<16x1xf32> to vector<16x32xf32>
    %947 = arith.divf %943, %946 : vector<16x32xf32>
    %cst_418 = arith.constant dense<0xFF800000> : vector<16xf32>
    %948 = vector.multi_reduction <maximumf>, %932, %cst_418 [1] : vector<16x32xf32> to vector<16xf32>
    %cst_419 = arith.constant 0xFF800000 : f32
    %949 = vector.broadcast %cst_419 : f32 to vector<16xf32>
    %950 = arith.maximumf %949, %948 : vector<16xf32>
    %951 = vector.shape_cast %950 : vector<16xf32> to vector<16x1xf32>
    %952 = vector.broadcast %951 : vector<16x1xf32> to vector<16x32xf32>
    %953 = arith.subf %932, %952 : vector<16x32xf32>
    %954 = math.exp %953 : vector<16x32xf32>
    %cst_420 = arith.constant dense<0.000000e+00> : vector<16xf32>
    %955 = vector.multi_reduction <add>, %954, %cst_420 [1] : vector<16x32xf32> to vector<16xf32>
    %956 = vector.shape_cast %955 : vector<16xf32> to vector<16x1xf32>
    %957 = vector.broadcast %956 : vector<16x1xf32> to vector<16x32xf32>
    %958 = arith.divf %954, %957 : vector<16x32xf32>
    %959 = vector.extract_strided_slice %947 {offsets = [0, 0], sizes = [8, 32], strides = [1, 1]} : vector<16x32xf32> to vector<8x32xf32>
    %960 = vector.extract_strided_slice %958 {offsets = [0, 0], sizes = [8, 32], strides = [1, 1]} : vector<16x32xf32> to vector<8x32xf32>
    %961 = vector.extract_strided_slice %936 {offsets = [0, 0], sizes = [8, 32], strides = [1, 1]} : vector<16x32xf32> to vector<8x32xf32>
    %cst_421 = arith.constant dense<0.000000e+00> : vector<32xf32>
    %962 = vector.multi_reduction <add>, %960, %cst_421 [0] : vector<8x32xf32> to vector<32xf32>
    %963 = vector.shape_cast %962 : vector<32xf32> to vector<1x32xf32>
    %964 = vector.broadcast %963 : vector<1x32xf32> to vector<8x32xf32>
    %965 = arith.mulf %959, %964 : vector<8x32xf32>
    %cst_422 = arith.constant dense<0.000000e+00> : vector<8xf32>
    %966 = vector.multi_reduction <add>, %965, %cst_422 [1] : vector<8x32xf32> to vector<8xf32>
    %967 = vector.shape_cast %966 : vector<8xf32> to vector<8x1xf32>
    %968 = arith.truncf %960 : vector<8x32xf32> to vector<8x32xbf16>
    %969 = arith.truncf %961 : vector<8x32xf32> to vector<8x32xbf16>
    %cst_423 = arith.constant dense<0.000000e+00> : vector<32x32xf32>
    %970 = tpu.matmul %968, %969, %cst_423 {dimension_numbers = #tpu.dot_dimension_numbers<[0], [0], [1], [1], [0, 1, 1, 1], [], []>} : vector<8x32xbf16>, vector<8x32xbf16>, vector<32x32xf32> -> vector<32x32xf32>
    %971 = arith.truncf %959 : vector<8x32xf32> to vector<8x32xbf16>
    %972 = arith.truncf %970 : vector<32x32xf32> to vector<32x32xbf16>
    %cst_424 = arith.constant dense<0.000000e+00> : vector<8x32xf32>
    %973 = tpu.matmul %971, %972, %cst_424 {dimension_numbers = #tpu.dot_dimension_numbers<[1], [0], [0], [1], [0, 0, 1, 1], [], []>} : vector<8x32xbf16>, vector<32x32xbf16>, vector<8x32xf32> -> vector<8x32xf32>
    %cst_425 = arith.constant 1.000000e+00 : f32
    %974 = vector.broadcast %cst_425 : f32 to vector<8x1xf32>
    %975 = arith.divf %974, %967 : vector<8x1xf32>
    %976 = vector.broadcast %975 : vector<8x1xf32> to vector<8x32xf32>
    %977 = arith.mulf %973, %976 : vector<8x32xf32>
    %978 = arith.addf %977, %959 : vector<8x32xf32>
    %979 = vector.extract_strided_slice %947 {offsets = [8, 0], sizes = [8, 32], strides = [1, 1]} : vector<16x32xf32> to vector<8x32xf32>
    %980 = vector.extract_strided_slice %958 {offsets = [8, 0], sizes = [8, 32], strides = [1, 1]} : vector<16x32xf32> to vector<8x32xf32>
    %981 = vector.extract_strided_slice %936 {offsets = [8, 0], sizes = [8, 32], strides = [1, 1]} : vector<16x32xf32> to vector<8x32xf32>
    %cst_426 = arith.constant dense<0.000000e+00> : vector<32xf32>
    %982 = vector.multi_reduction <add>, %980, %cst_426 [0] : vector<8x32xf32> to vector<32xf32>
    %983 = vector.shape_cast %982 : vector<32xf32> to vector<1x32xf32>
    %984 = vector.broadcast %983 : vector<1x32xf32> to vector<8x32xf32>
    %985 = arith.mulf %979, %984 : vector<8x32xf32>
    %cst_427 = arith.constant dense<0.000000e+00> : vector<8xf32>
    %986 = vector.multi_reduction <add>, %985, %cst_427 [1] : vector<8x32xf32> to vector<8xf32>
    %987 = vector.shape_cast %986 : vector<8xf32> to vector<8x1xf32>
    %988 = arith.truncf %980 : vector<8x32xf32> to vector<8x32xbf16>
    %989 = arith.truncf %981 : vector<8x32xf32> to vector<8x32xbf16>
    %cst_428 = arith.constant dense<0.000000e+00> : vector<32x32xf32>
    %990 = tpu.matmul %988, %989, %cst_428 {dimension_numbers = #tpu.dot_dimension_numbers<[0], [0], [1], [1], [0, 1, 1, 1], [], []>} : vector<8x32xbf16>, vector<8x32xbf16>, vector<32x32xf32> -> vector<32x32xf32>
    %991 = arith.truncf %979 : vector<8x32xf32> to vector<8x32xbf16>
    %992 = arith.truncf %990 : vector<32x32xf32> to vector<32x32xbf16>
    %cst_429 = arith.constant dense<0.000000e+00> : vector<8x32xf32>
    %993 = tpu.matmul %991, %992, %cst_429 {dimension_numbers = #tpu.dot_dimension_numbers<[1], [0], [0], [1], [0, 0, 1, 1], [], []>} : vector<8x32xbf16>, vector<32x32xbf16>, vector<8x32xf32> -> vector<8x32xf32>
    %cst_430 = arith.constant 1.000000e+00 : f32
    %994 = vector.broadcast %cst_430 : f32 to vector<8x1xf32>
    %995 = arith.divf %994, %987 : vector<8x1xf32>
    %996 = vector.broadcast %995 : vector<8x1xf32> to vector<8x32xf32>
    %997 = arith.mulf %993, %996 : vector<8x32xf32>
    %998 = arith.addf %997, %979 : vector<8x32xf32>
    %999 = tpu.concatenate %978, %998 in 0 : vector<8x32xf32>, vector<8x32xf32> -> vector<16x32xf32>
    %1000 = arith.truncf %999 : vector<16x32xf32> to vector<16x32xbf16>
    %cst_431 = arith.constant dense<0.000000e+00> : vector<16x32xf32>
    %1001 = tpu.matmul %1000, %922, %cst_431 {dimension_numbers = #tpu.dot_dimension_numbers<[1], [0], [0], [1], [0, 0, 1, 1], [], []>} : vector<16x32xbf16>, vector<32x32xbf16>, vector<16x32xf32> -> vector<16x32xf32>
    %1002 = vector.broadcast %924 : vector<1x32xf32> to vector<16x32xf32>
    %1003 = arith.addf %1001, %1002 : vector<16x32xf32>
    %1004 = arith.addf %884, %1003 : vector<16x32xf32>
    %c1_432 = arith.constant 1 : index
    %c0_433 = arith.constant 0 : index
    %c0_434 = arith.constant 0 : index
    %1005 = vector.load %arg21[%c1_432, %c0_433, %c0_434] : memref<2x32x256xbf16, #tpu.memory_space<vmem>>, vector<1x32x256xbf16>
    %1006 = vector.shape_cast %1005 : vector<1x32x256xbf16> to vector<32x256xbf16>
    %1007 = arith.truncf %1004 : vector<16x32xf32> to vector<16x32xbf16>
    %cst_435 = arith.constant dense<0.000000e+00> : vector<16x256xf32>
    %1008 = tpu.matmul %1007, %1006, %cst_435 {dimension_numbers = #tpu.dot_dimension_numbers<[1], [0], [0], [1], [0, 0, 1, 1], [], []>} : vector<16x32xbf16>, vector<32x256xbf16>, vector<16x256xf32> -> vector<16x256xf32>
    %c1_436 = arith.constant 1 : index
    %c0_437 = arith.constant 0 : index
    %c0_438 = arith.constant 0 : index
    %1009 = vector.load %arg19[%c1_436, %c0_437, %c0_438] : memref<2x1x256xf32, #tpu.memory_space<vmem>>, vector<1x1x256xf32>
    %1010 = vector.shape_cast %1009 : vector<1x1x256xf32> to vector<1x256xf32>
    %1011 = vector.broadcast %1010 : vector<1x256xf32> to vector<16x256xf32>
    %1012 = arith.addf %1008, %1011 : vector<16x256xf32>
    %1013 = arith.mulf %1012, %1012 : vector<16x256xf32>
    %1014 = arith.mulf %1012, %1013 : vector<16x256xf32>
    %cst_439 = arith.constant 4.471500e-02 : f32
    %1015 = vector.broadcast %cst_439 : f32 to vector<16x256xf32>
    %1016 = arith.mulf %1015, %1014 : vector<16x256xf32>
    %1017 = arith.addf %1012, %1016 : vector<16x256xf32>
    %cst_440 = arith.constant 0.797884583 : f32
    %1018 = vector.broadcast %cst_440 : f32 to vector<16x256xf32>
    %1019 = arith.mulf %1018, %1017 : vector<16x256xf32>
    %1020 = math.tanh %1019 : vector<16x256xf32>
    %cst_441 = arith.constant 1.000000e+00 : f32
    %1021 = vector.broadcast %cst_441 : f32 to vector<16x256xf32>
    %1022 = arith.addf %1021, %1020 : vector<16x256xf32>
    %cst_442 = arith.constant 5.000000e-01 : f32
    %1023 = vector.broadcast %cst_442 : f32 to vector<16x256xf32>
    %1024 = arith.mulf %1023, %1022 : vector<16x256xf32>
    %1025 = arith.mulf %1012, %1024 : vector<16x256xf32>
    %1026 = vector.extract_strided_slice %675 {offsets = [0, 0], sizes = [16, 1], strides = [1, 1]} : vector<16x2xf32> to vector<16x1xf32>
    %1027 = vector.extract_strided_slice %1025 {offsets = [0, 0], sizes = [16, 128], strides = [1, 1]} : vector<16x256xf32> to vector<16x128xf32>
    %1028 = vector.broadcast %1026 : vector<16x1xf32> to vector<16x128xf32>
    %1029 = arith.mulf %1028, %1027 : vector<16x128xf32>
    %1030 = vector.extract_strided_slice %675 {offsets = [0, 1], sizes = [16, 1], strides = [1, 1]} : vector<16x2xf32> to vector<16x1xf32>
    %1031 = vector.extract_strided_slice %1025 {offsets = [0, 128], sizes = [16, 128], strides = [1, 1]} : vector<16x256xf32> to vector<16x128xf32>
    %1032 = vector.broadcast %1030 : vector<16x1xf32> to vector<16x128xf32>
    %1033 = arith.mulf %1032, %1031 : vector<16x128xf32>
    %1034 = tpu.concatenate %1029, %1033 in 1 : vector<16x128xf32>, vector<16x128xf32> -> vector<16x256xf32>
    %c1_443 = arith.constant 1 : index
    %c0_444 = arith.constant 0 : index
    %c0_445 = arith.constant 0 : index
    %1035 = vector.load %arg22[%c1_443, %c0_444, %c0_445] : memref<2x256x32xbf16, #tpu.memory_space<vmem>>, vector<1x256x32xbf16>
    %1036 = vector.shape_cast %1035 : vector<1x256x32xbf16> to vector<256x32xbf16>
    %1037 = arith.truncf %1034 : vector<16x256xf32> to vector<16x256xbf16>
    %cst_446 = arith.constant dense<0.000000e+00> : vector<16x32xf32>
    %1038 = tpu.matmul %1037, %1036, %cst_446 {dimension_numbers = #tpu.dot_dimension_numbers<[1], [0], [0], [1], [0, 0, 1, 1], [], []>} : vector<16x256xbf16>, vector<256x32xbf16>, vector<16x32xf32> -> vector<16x32xf32>
    %c1_447 = arith.constant 1 : index
    %c0_448 = arith.constant 0 : index
    %c0_449 = arith.constant 0 : index
    %1039 = vector.load %arg20[%c1_447, %c0_448, %c0_449] : memref<2x2x32xf32, #tpu.memory_space<vmem>>, vector<1x2x32xf32>
    %1040 = vector.shape_cast %1039 : vector<1x2x32xf32> to vector<2x32xf32>
    %1041 = arith.truncf %675 : vector<16x2xf32> to vector<16x2xbf16>
    %1042 = arith.truncf %1040 : vector<2x32xf32> to vector<2x32xbf16>
    %cst_450 = arith.constant dense<0.000000e+00> : vector<16x32xf32>
    %1043 = tpu.matmul %1041, %1042, %cst_450 {dimension_numbers = #tpu.dot_dimension_numbers<[1], [0], [0], [1], [0, 0, 1, 1], [], []>} : vector<16x2xbf16>, vector<2x32xbf16>, vector<16x32xf32> -> vector<16x32xf32>
    %1044 = arith.addf %1038, %1043 : vector<16x32xf32>
    %1045 = vector.extract_strided_slice %612 {offsets = [4, 0], sizes = [1, 32], strides = [1, 1]} : vector<5x32xf32> to vector<1x32xf32>
    %1046 = vector.extract_strided_slice %614 {offsets = [4, 0], sizes = [1, 32], strides = [1, 1]} : vector<5x32xf32> to vector<1x32xf32>
    %cst_451 = arith.constant dense<0.000000e+00> : vector<16xf32>
    %1047 = vector.multi_reduction <add>, %1044, %cst_451 [1] : vector<16x32xf32> to vector<16xf32>
    %1048 = vector.shape_cast %1047 : vector<16xf32> to vector<16x1xf32>
    %cst_452 = arith.constant 3.200000e+01 : f32
    %1049 = vector.broadcast %cst_452 : f32 to vector<16x1xf32>
    %1050 = arith.divf %1048, %1049 : vector<16x1xf32>
    %1051 = vector.broadcast %1050 : vector<16x1xf32> to vector<16x32xf32>
    %1052 = arith.subf %1044, %1051 : vector<16x32xf32>
    %1053 = arith.mulf %1052, %1052 : vector<16x32xf32>
    %cst_453 = arith.constant dense<0.000000e+00> : vector<16xf32>
    %1054 = vector.multi_reduction <add>, %1053, %cst_453 [1] : vector<16x32xf32> to vector<16xf32>
    %1055 = vector.shape_cast %1054 : vector<16xf32> to vector<16x1xf32>
    %cst_454 = arith.constant 3.200000e+01 : f32
    %1056 = vector.broadcast %cst_454 : f32 to vector<16x1xf32>
    %1057 = arith.divf %1055, %1056 : vector<16x1xf32>
    %1058 = vector.broadcast %1050 : vector<16x1xf32> to vector<16x32xf32>
    %1059 = arith.subf %1044, %1058 : vector<16x32xf32>
    %cst_455 = arith.constant 9.99999974E-6 : f32
    %1060 = vector.broadcast %cst_455 : f32 to vector<16x1xf32>
    %1061 = arith.addf %1057, %1060 : vector<16x1xf32>
    %1062 = math.rsqrt %1061 : vector<16x1xf32>
    %1063 = vector.broadcast %1062 : vector<16x1xf32> to vector<16x32xf32>
    %1064 = arith.mulf %1059, %1063 : vector<16x32xf32>
    %1065 = vector.broadcast %1045 : vector<1x32xf32> to vector<16x32xf32>
    %1066 = arith.mulf %1064, %1065 : vector<16x32xf32>
    %1067 = vector.broadcast %1046 : vector<1x32xf32> to vector<16x32xf32>
    %1068 = arith.addf %1066, %1067 : vector<16x32xf32>
    %1069 = arith.addf %1004, %1068 : vector<16x32xf32>
    %c0_456 = arith.constant 0 : index
    %c0_457 = arith.constant 0 : index
    %1070 = vector.load %arg42[%c0_456, %c0_457] : memref<32x32xbf16, #tpu.memory_space<vmem>>, vector<32x32xbf16>
    %1071 = arith.truncf %1069 : vector<16x32xf32> to vector<16x32xbf16>
    %cst_458 = arith.constant dense<0.000000e+00> : vector<16x32xf32>
    %1072 = tpu.matmul %1071, %1070, %cst_458 {dimension_numbers = #tpu.dot_dimension_numbers<[1], [0], [0], [1], [0, 0, 1, 1], [], []>} : vector<16x32xbf16>, vector<32x32xbf16>, vector<16x32xf32> -> vector<16x32xf32>
    %c0_459 = arith.constant 0 : index
    %c0_460 = arith.constant 0 : index
    %1073 = vector.load %arg41[%c0_459, %c0_460] : memref<1x32xf32, #tpu.memory_space<vmem>>, vector<1x32xf32>
    %1074 = vector.broadcast %1073 : vector<1x32xf32> to vector<16x32xf32>
    %1075 = arith.addf %1072, %1074 : vector<16x32xf32>
    %1076 = arith.mulf %1075, %1075 : vector<16x32xf32>
    %1077 = arith.mulf %1075, %1076 : vector<16x32xf32>
    %cst_461 = arith.constant 4.471500e-02 : f32
    %1078 = vector.broadcast %cst_461 : f32 to vector<16x32xf32>
    %1079 = arith.mulf %1078, %1077 : vector<16x32xf32>
    %1080 = arith.addf %1075, %1079 : vector<16x32xf32>
    %cst_462 = arith.constant 0.797884583 : f32
    %1081 = vector.broadcast %cst_462 : f32 to vector<16x32xf32>
    %1082 = arith.mulf %1081, %1080 : vector<16x32xf32>
    %1083 = math.tanh %1082 : vector<16x32xf32>
    %cst_463 = arith.constant 1.000000e+00 : f32
    %1084 = vector.broadcast %cst_463 : f32 to vector<16x32xf32>
    %1085 = arith.addf %1084, %1083 : vector<16x32xf32>
    %cst_464 = arith.constant 5.000000e-01 : f32
    %1086 = vector.broadcast %cst_464 : f32 to vector<16x32xf32>
    %1087 = arith.mulf %1086, %1085 : vector<16x32xf32>
    %1088 = arith.mulf %1075, %1087 : vector<16x32xf32>
    %c0_465 = arith.constant 0 : index
    %c0_466 = arith.constant 0 : index
    %c0_467 = arith.constant 0 : index
    %1089 = vector.load %arg38[%c0_465, %c0_466, %c0_467] : memref<2x32x32xbf16, #tpu.memory_space<vmem>>, vector<1x32x32xbf16>
    %1090 = vector.shape_cast %1089 : vector<1x32x32xbf16> to vector<32x32xbf16>
    %1091 = arith.truncf %1088 : vector<16x32xf32> to vector<16x32xbf16>
    %cst_468 = arith.constant dense<0.000000e+00> : vector<16x32xf32>
    %1092 = tpu.matmul %1091, %1090, %cst_468 {dimension_numbers = #tpu.dot_dimension_numbers<[1], [0], [0], [1], [0, 0, 1, 1], [], []>} : vector<16x32xbf16>, vector<32x32xbf16>, vector<16x32xf32> -> vector<16x32xf32>
    %c0_469 = arith.constant 0 : index
    %c0_470 = arith.constant 0 : index
    %c0_471 = arith.constant 0 : index
    %1093 = vector.load %arg37[%c0_469, %c0_470, %c0_471] : memref<2x1x32xf32, #tpu.memory_space<vmem>>, vector<1x1x32xf32>
    %1094 = vector.shape_cast %1093 : vector<1x1x32xf32> to vector<1x32xf32>
    %1095 = vector.broadcast %1094 : vector<1x32xf32> to vector<16x32xf32>
    %1096 = arith.addf %1092, %1095 : vector<16x32xf32>
    %1097 = arith.mulf %1096, %1096 : vector<16x32xf32>
    %1098 = arith.mulf %1096, %1097 : vector<16x32xf32>
    %cst_472 = arith.constant 4.471500e-02 : f32
    %1099 = vector.broadcast %cst_472 : f32 to vector<16x32xf32>
    %1100 = arith.mulf %1099, %1098 : vector<16x32xf32>
    %1101 = arith.addf %1096, %1100 : vector<16x32xf32>
    %cst_473 = arith.constant 0.797884583 : f32
    %1102 = vector.broadcast %cst_473 : f32 to vector<16x32xf32>
    %1103 = arith.mulf %1102, %1101 : vector<16x32xf32>
    %1104 = math.tanh %1103 : vector<16x32xf32>
    %cst_474 = arith.constant 1.000000e+00 : f32
    %1105 = vector.broadcast %cst_474 : f32 to vector<16x32xf32>
    %1106 = arith.addf %1105, %1104 : vector<16x32xf32>
    %cst_475 = arith.constant 5.000000e-01 : f32
    %1107 = vector.broadcast %cst_475 : f32 to vector<16x32xf32>
    %1108 = arith.mulf %1107, %1106 : vector<16x32xf32>
    %1109 = arith.mulf %1096, %1108 : vector<16x32xf32>
    %1110 = arith.addf %1109, %1088 : vector<16x32xf32>
    %c1_476 = arith.constant 1 : index
    %c0_477 = arith.constant 0 : index
    %c0_478 = arith.constant 0 : index
    %1111 = vector.load %arg38[%c1_476, %c0_477, %c0_478] : memref<2x32x32xbf16, #tpu.memory_space<vmem>>, vector<1x32x32xbf16>
    %1112 = vector.shape_cast %1111 : vector<1x32x32xbf16> to vector<32x32xbf16>
    %1113 = arith.truncf %1110 : vector<16x32xf32> to vector<16x32xbf16>
    %cst_479 = arith.constant dense<0.000000e+00> : vector<16x32xf32>
    %1114 = tpu.matmul %1113, %1112, %cst_479 {dimension_numbers = #tpu.dot_dimension_numbers<[1], [0], [0], [1], [0, 0, 1, 1], [], []>} : vector<16x32xbf16>, vector<32x32xbf16>, vector<16x32xf32> -> vector<16x32xf32>
    %c1_480 = arith.constant 1 : index
    %c0_481 = arith.constant 0 : index
    %c0_482 = arith.constant 0 : index
    %1115 = vector.load %arg37[%c1_480, %c0_481, %c0_482] : memref<2x1x32xf32, #tpu.memory_space<vmem>>, vector<1x1x32xf32>
    %1116 = vector.shape_cast %1115 : vector<1x1x32xf32> to vector<1x32xf32>
    %1117 = vector.broadcast %1116 : vector<1x32xf32> to vector<16x32xf32>
    %1118 = arith.addf %1114, %1117 : vector<16x32xf32>
    %1119 = arith.mulf %1118, %1118 : vector<16x32xf32>
    %1120 = arith.mulf %1118, %1119 : vector<16x32xf32>
    %cst_483 = arith.constant 4.471500e-02 : f32
    %1121 = vector.broadcast %cst_483 : f32 to vector<16x32xf32>
    %1122 = arith.mulf %1121, %1120 : vector<16x32xf32>
    %1123 = arith.addf %1118, %1122 : vector<16x32xf32>
    %cst_484 = arith.constant 0.797884583 : f32
    %1124 = vector.broadcast %cst_484 : f32 to vector<16x32xf32>
    %1125 = arith.mulf %1124, %1123 : vector<16x32xf32>
    %1126 = math.tanh %1125 : vector<16x32xf32>
    %cst_485 = arith.constant 1.000000e+00 : f32
    %1127 = vector.broadcast %cst_485 : f32 to vector<16x32xf32>
    %1128 = arith.addf %1127, %1126 : vector<16x32xf32>
    %cst_486 = arith.constant 5.000000e-01 : f32
    %1129 = vector.broadcast %cst_486 : f32 to vector<16x32xf32>
    %1130 = arith.mulf %1129, %1128 : vector<16x32xf32>
    %1131 = arith.mulf %1118, %1130 : vector<16x32xf32>
    %1132 = arith.addf %1131, %1110 : vector<16x32xf32>
    %c0_487 = arith.constant 0 : index
    %c0_488 = arith.constant 0 : index
    %1133 = vector.load %arg40[%c0_487, %c0_488] : memref<32x128xbf16, #tpu.memory_space<vmem>>, vector<32x128xbf16>
    %1134 = arith.truncf %1132 : vector<16x32xf32> to vector<16x32xbf16>
    %cst_489 = arith.constant dense<0.000000e+00> : vector<16x128xf32>
    %1135 = tpu.matmul %1134, %1133, %cst_489 {dimension_numbers = #tpu.dot_dimension_numbers<[1], [0], [0], [1], [0, 0, 1, 1], [], []>} : vector<16x32xbf16>, vector<32x128xbf16>, vector<16x128xf32> -> vector<16x128xf32>
    %c0_490 = arith.constant 0 : index
    %c0_491 = arith.constant 0 : index
    %1136 = vector.load %arg39[%c0_490, %c0_491] : memref<1x128xf32, #tpu.memory_space<vmem>>, vector<1x128xf32>
    %1137 = vector.broadcast %1136 : vector<1x128xf32> to vector<16x128xf32>
    %1138 = arith.addf %1135, %1137 : vector<16x128xf32>
    %c0_492 = arith.constant 0 : index
    %c0_493 = arith.constant 0 : index
    %1139 = vector.load %arg50[%c0_492, %c0_493] : memref<16x128xf32, #tpu.memory_space<vmem>>, vector<16x128xf32>
    tpu.vector_store %arg50[%c0_492, %c0_493], %1138 {strides = array<i32>} : memref<16x128xf32, #tpu.memory_space<vmem>>, vector<16x128xf32>,
    return
  }
}

</mosaic_0001>

<bundles_post_ra>
// kernel: moe_gpt_no_forward.1
= control target key start
LH: loop header
LB: loop body
LE: loop exit
PB: predicated region body
PF: predicated region fallthrough
CT: control target
= control target key end

     0   :  { %s8129_s6 = smov 1   ;;  %s8130_s10 = smov 2   ;;  %s9516_s0 = inlined_call_operand.smem [shape: u32[51], index: -1, kind: input, shape index: {}] }
   0x1   :  { %s8225_s5 = sld [smem:[%s9516_s0]]   ;;  %s8131_s14 = smov 3  }
   0x2   :  { %s8230_s9 = sld [smem:[%s9516_s0 + %s8129_s6]]   ;;  %s8132_s18 = smov 4  }
   0x3   :  { %s8235_s13 = sld [smem:[%s9516_s0 + %s8130_s10]]   ;;  %s8133_s22 = smov 5  }
   0x4   :  { %s8240_s17 = sld [smem:[%s9516_s0 + %s8131_s14]]   ;;  %s8134_s26 = smov 6  }
   0x5   :  { %s8245_s21 = sld [smem:[%s9516_s0 + %s8132_s18]]   ;;  %s8135_s30 = smov 7  }
   0x6   :  { %s8250_s25 = sld [smem:[%s9516_s0 + %s8133_s22]]   ;;  %s8136_s4 = smov 8  }
   0x7   :  { %9536 = sst [smem:[#allocation57_spill]] %s8225_s5  ;;  %s8137_s10 = smov 9  }
   0x8   :  { %9537 = sst [smem:[#allocation58_spill]] %s8230_s9  ;;  %s8138_s15 = smov 10  }
   0x9   :  { %9538 = sst [smem:[#allocation59_spill]] %s8235_s13  ;;  %s8139_s20 = smov 11  }
   0xa   :  { %s8255_s29 = sld [smem:[%s9516_s0 + %s8134_s26]]   ;;  %s8140_s26 = smov 12  }
   0xb   :  { %s8260_s3 = sld [smem:[%s9516_s0 + %s8135_s30]]   ;;  %s8141_s1 = smov 13  }
   0xc   :  { %9539 = sst [smem:[#allocation60_spill]] %s8250_s25  ;;  %s8142_s7 = smov 14  }
   0xd   :  { %s8265_s8 = sld [smem:[%s9516_s0 + %s8136_s4]]   ;;  %s8144_s22 = smov 16  }
   0xe   :  { %s8270_s14 = sld [smem:[%s9516_s0 + %s8137_s10]]   ;;  %s8145_s28 = smov 17  }
   0xf   :  { %s8275_s19 = sld [smem:[%s9516_s0 + %s8138_s15]]   ;;  %s8143_s15 = smov 15  }
  0x10   :  { %s8280_s24 = sld [smem:[%s9516_s0 + %s8139_s20]]  }
  0x11   :  { %9540 = sst [smem:[#allocation61_spill]] %s8260_s3 }
  0x12   :  { %s8285_s30 = sld [smem:[%s9516_s0 + %s8140_s26]]  }
  0x13   :  { %9541 = sst [smem:[#allocation62_spill]] %s8265_s8 }
  0x14   :  { %9542 = sst [smem:[#allocation63_spill]] %s8270_s14 }
  0x15   :  { %9543 = sst [smem:[#allocation64_spill]] %s8275_s19 }
  0x16   :  { %9544 = sst [smem:[#allocation65_spill]] %s8280_s24 }
  0x17   :  { %s8290_s6 = sld [smem:[%s9516_s0 + %s8141_s1]]  }
  0x18   :  { %s8295_s12 = sld [smem:[%s9516_s0 + %s8142_s7]]   ;;  %s8146_s7 = smov 18  }
  0x19   :  { %s8300_s20 = sld [smem:[%s9516_s0 + %s8143_s15]]   ;;  %s8147_s15 = smov 19  }
  0x1a   :  { %s8305_s27 = sld [smem:[%s9516_s0 + %s8144_s22]]   ;;  %s8148_s22 = smov 20  }
  0x1b   :  { %s8310_s4 = sld [smem:[%s9516_s0 + %s8145_s28]]   ;;  %s8149_s28 = smov 21  }
  0x1c   :  { %s8315_s8 = sld [smem:[%s9516_s0 + %s8146_s7]]   ;;  %s8150_s7 = smov 22  }
  0x1d   :  { %9545 = sst [smem:[#allocation66_spill]] %s8290_s6 }
  0x1e   :  { %9546 = sst [smem:[#allocation67_spill]] %s8295_s12 }
  0x1f   :  { %s8320_s19 = sld [smem:[%s9516_s0 + %s8147_s15]]   ;;  %s8151_s15 = smov 23  }
  0x20   :  { %9547 = sst [smem:[#allocation68_spill]] %s8305_s27 }
  0x21   :  { %9548 = sst [smem:[#allocation69_spill]] %s8310_s4 }
  0x22   :  { %9549 = sst [smem:[#allocation70_spill]] %s8315_s8 }
  0x23   :  { %s8325_s14 = sld [smem:[%s9516_s0 + %s8148_s22]]   ;;  %s8152_s22 = smov 24  }
  0x24   :  { %s8330_s4 = sld [smem:[%s9516_s0 + %s8149_s28]]   ;;  %s8153_s28 = smov 25  }
  0x25   :  { %9550 = sst [smem:[#allocation71_spill]] %s8320_s19 }
  0x26   :  { %s8335_s8 = sld [smem:[%s9516_s0 + %s8150_s7]]   ;;  %s8154_s7 = smov 26  }
  0x27   :  { %s8340_s3 = sld [smem:[%s9516_s0 + %s8151_s15]]   ;;  %s8155_s15 = smov 27  }
  0x28   :  { %s8345_s27 = sld [smem:[%s9516_s0 + %s8152_s22]]   ;;  %s8156_s22 = smov 28  }
  0x29   :  { %s8360_s12 = sld [smem:[%s9516_s0 + %s8155_s15]]   ;;  %s8159_s15 = smov 31  }
  0x2a   :  { %9551 = sst [smem:[#allocation72_spill]] %s8330_s4 }
  0x2b   :  { %s8350_s4 = sld [smem:[%s9516_s0 + %s8153_s28]]   ;;  %s8157_s28 = smov 29  }
  0x2c   :  { %9552 = sst [smem:[#allocation73_spill]] %s8335_s8 }
  0x2d   :  { %9553 = sst [smem:[#allocation74_spill]] %s8340_s3 }
  0x2e   :  { %s8355_s8 = sld [smem:[%s9516_s0 + %s8154_s7]]   ;;  %s8158_s7 = smov 30  }
  0x2f   :  { %9555 = sst [smem:[#allocation76_spill]] %s8360_s12 }
  0x30   :  { %s8365_s13 = sld [smem:[%s9516_s0 + %s8156_s22]]   ;;  %s8160_s22 = smov 32  }
  0x31   :  { %9554 = sst [smem:[#allocation75_spill]] %s8350_s4 }
  0x32   :  { %s8370_s5 = sld [smem:[%s9516_s0 + %s8157_s28]]   ;;  %s8161_s28 = smov 33  }
  0x33   :  { %s8375_s9 = sld [smem:[%s9516_s0 + %s8158_s7]]   ;;  %s8162_s7 = smov 34  }
  0x34   :  { %s8380_s12 = sld [smem:[%s9516_s0 + %s8159_s15]]   ;;  %s8163_s15 = smov 35  }
  0x36   :  { %9556 = sst [smem:[#allocation77_spill]] %s8365_s13 }
  0x37   :  { %s8385_s13 = sld [smem:[%s9516_s0 + %s8160_s22]]   ;;  %s8164_s22 = smov 36  }
  0x38   :  { %9557 = sst [smem:[#allocation78_spill]] %s8370_s5 }
  0x39   :  { %9558 = sst [smem:[#allocation79_spill]] %s8375_s9 }
  0x3a   :  { %9559 = sst [smem:[#allocation80_spill]] %s8380_s12 }
  0x3b   :  { %s8390_s5 = sld [smem:[%s9516_s0 + %s8161_s28]]   ;;  %s8165_s28 = smov 37  }
  0x3c   :  { %s8395_s9 = sld [smem:[%s9516_s0 + %s8162_s7]]   ;;  %s8166_s7 = smov 38  }
  0x3d   :  { %9560 = sst [smem:[#allocation81_spill]] %s8385_s13 }
  0x3e   :  { %s8400_s12 = sld [smem:[%s9516_s0 + %s8163_s15]]   ;;  %s8167_s15 = smov 39  }
  0x3f   :  { %s8405_s13 = sld [smem:[%s9516_s0 + %s8164_s22]]   ;;  %s8168_s22 = smov 40  }
  0x40   :  { %s8410_s4 = sld [smem:[%s9516_s0 + %s8165_s28]]   ;;  %s8169_s28 = smov 41  }
  0x41   :  { %s8420_s3 = sld [smem:[%s9516_s0 + %s8167_s15]]   ;;  %s8171_s15 = smov 43  }
  0x42   :  { %9561 = sst [smem:[#allocation82_spill]] %s8395_s9 }
  0x43   :  { %s8415_s9 = sld [smem:[%s9516_s0 + %s8166_s7]]   ;;  %s8170_s7 = smov 42  }
  0x44   :  { %s8430_s19 = sld [smem:[%s9516_s0 + %s8169_s28]]   ;;  %s8173_s28 = smov 45  }
  0x45   :  { %9562 = sst [smem:[#allocation83_spill]] %s8405_s13 }
  0x46   :  { %s8425_s13 = sld [smem:[%s9516_s0 + %s8168_s22]]   ;;  %s8172_s22 = smov 44  }
  0x47   :  { %9564 = sst [smem:[#allocation85_spill]] %s8420_s3 }
  0x48   :  { %s8440_s3 = sld [smem:[%s9516_s0 + %s8171_s15]]   ;;  %s8175_s15 = smov 47  }
  0x49   :  { %9563 = sst [smem:[#allocation84_spill]] %s8415_s9 }
  0x4a   :  { %9565 = sst [smem:[#allocation86_spill]] %s8430_s19 }
  0x4b   :  { %s8435_s9 = sld [smem:[%s9516_s0 + %s8170_s7]]   ;;  %s8174_s7 = smov 46  }
  0x4c   :  { %s8445_s6 = sld [smem:[%s9516_s0 + %s8172_s22]]   ;;  %s8176_s22 = smov 48  }
  0x4d   :  { %s8450_s19 = sld [smem:[%s9516_s0 + %s8173_s28]]   ;;  %s8177_s28 = smov 49  }
  0x4e   :  { %9566 = sst [smem:[#allocation87_spill]] %s8440_s3 }
  0x4f   :  { %s8455_s24 = sld [smem:[%s9516_s0 + %s8174_s7]]   ;;  %s8178_s7 = smov 50  }
  0x50   :  { %s8460_s3 = sld [smem:[%s9516_s0 + %s8175_s15]]  }
  0x51   :  { %s8470_s25 = sld [smem:[%s9516_s0 + %s8177_s28]]  }
  0x52   :  { %9567 = sst [smem:[#allocation88_spill]] %s8445_s6 }
  0x53   :  { %s8465_s6 = sld [smem:[%s9516_s0 + %s8176_s22]]  }
  0x55   :  { %9568 = sst [smem:[#allocation89_spill]] %s8455_s24 }
  0x56   :  { %s8475_s24 = sld [smem:[%s9516_s0 + %s8178_s7]]  }
  0x57   :  { %106 = vsyncpa [#allocation3], 0 }
  0x58   :  { %107 = vsyncpa [#allocation5], 0 }
  0x59   :  { %108 = vsyncpa [#allocation8], 0 }
  0x5a   :  { %109 = vsyncpa [#allocation11], 0 }
  0x5b   :  { %110 = vsyncpa [#allocation14], 0 }
  0x5c   :  { %111 = vsyncpa [#allocation17], 0 }
  0x5d   :  { %112 = vsyncpa [#allocation20], 0 }
  0x5e   :  { %113 = vsyncpa [#allocation23], 0 }
  0x5f   :  { %114 = vsyncpa [#allocation26], 0 }
  0x60   :  { %115 = vsyncpa [#allocation29], 0 }
  0x61   :  { %116 = vsyncpa [#allocation32], 0 }
  0x62   :  { %117 = vsyncpa [#allocation35], 0 }
  0x63   :  { %118 = vsyncpa [#allocation38], 0 }
  0x64   :  { %119 = vsyncpa [#allocation41], 0  ;;  %s8179_s15 = smov [#allocation4]   ;;  %s8180_s18 = smov [#allocation7]  }
  0x65   :  { %s143_s16 = sshll.u32 %s8179_s15, 4  ;;  %s167_s22 = sshll.u32 %s8180_s18, 4  ;;  %s144_s16 = int_to_ptr.vmem [resolvable:$true] %s143_s16  ;;  %s168_s22 = int_to_ptr.vmem [resolvable:$true] %s167_s22 }
  0x66   :  { %s7569_s0 = scalar_lea.vmem %s144_s16, 32  ;;  %p7574_p1 = scmp.lt.s32.totalorder %s144_s16, %s144_s16 }
  0x67   :  { %p7570_p0 = scmp.ne.s32.totalorder %s144_s16, %s7569_s0  ;;  %p7575_p2 = scmp.lt.s32.totalorder %s7569_s0, %s7569_s0 }
  0x69   :  { %p7576_p3 = por %p7575_p2, %p7574_p1 }
  0x6b   :  { %p7577_p4 = pnand %p7576_p3, %p7570_p0 }
  0x6d   :  { %7580 = shalt.err (!%p7577_p4)
}
  0x6e   :  { %s8181_s23 = smov 16   ;;  %s8182_s26 = smov 1  }
  0x6f   :  { %149 = dma.hbm_to_vmem [thread:$0]  %s8245_s21, 32, %s144_s16, [#allocation5], %s8181_s23, %s8181_s23, %s8182_s26  }
  0x70   :  { %s7589_s28 = scalar_lea.vmem %s168_s22, 32  ;;  %p7594_p6 = scmp.lt.s32.totalorder %s168_s22, %s168_s22 }
  0x71   :  { %p7590_p5 = scmp.ne.s32.totalorder %s168_s22, %s7589_s28  ;;  %p7595_p7 = scmp.lt.s32.totalorder %s7589_s28, %s7589_s28 }
  0x73   :  { %p7596_p8 = por %p7595_p7, %p7594_p6 }
  0x75   :  { %p7597_p9 = pnand %p7596_p8, %p7590_p5 }
  0x77   :  { %7600 = shalt.err (!%p7597_p9)
}
  0x78   :  { %173 = dma.hbm_to_vmem [thread:$0]  %s8255_s29, 32, %s168_s22, [#allocation8], %s8181_s23, %s8181_s23, %s8182_s26  }
  0x79   :  { %s8183_s1 = smov [#allocation10]   ;;  %s8184_s7 = smov [#allocation13]  }
  0x7a   :  { %s199_s2 = sshll.u32 %s8183_s1, 4  ;;  %s225_s10 = sshll.u32 %s8184_s7, 4  ;;  %s200_s2 = int_to_ptr.vmem [resolvable:$true] %s199_s2  ;;  %s226_s10 = int_to_ptr.vmem [resolvable:$true] %s225_s10 }
  0x7b   :  { %s7609_s11 = scalar_lea.vmem %s200_s2, 32  ;;  %p7614_p11 = scmp.lt.s32.totalorder %s200_s2, %s200_s2 }
  0x7c   :  { %p7610_p10 = scmp.ne.s32.totalorder %s200_s2, %s7609_s11  ;;  %p7615_p12 = scmp.lt.s32.totalorder %s7609_s11, %s7609_s11 }
  0x7e   :  { %p7616_p13 = por %p7615_p12, %p7614_p11 }
  0x80   :  { %p7617_p0 = pnand %p7616_p13, %p7610_p10 }
  0x82   :  { %7620 = shalt.err (!%p7617_p0)
}
  0x83   :  { %205 = dma.hbm_to_vmem [thread:$0]  %s8285_s30, 32, %s200_s2, [#allocation11], %s8181_s23, %s8181_s23, %s8182_s26  }
  0x84   :  { %s7629_s21 = scalar_lea.vmem %s226_s10, 32  ;;  %p7634_p2 = scmp.lt.s32.totalorder %s226_s10, %s226_s10 }
  0x85   :  { %p7630_p1 = scmp.ne.s32.totalorder %s226_s10, %s7629_s21  ;;  %p7635_p3 = scmp.lt.s32.totalorder %s7629_s21, %s7629_s21 }
  0x87   :  { %p7636_p4 = por %p7635_p3, %p7634_p2 }
  0x89   :  { %p7637_p5 = pnand %p7636_p4, %p7630_p1 }
  0x8b   :  { %7640 = shalt.err (!%p7637_p5)
}
  0x8c   :  { %231 = dma.hbm_to_vmem [thread:$0]  %s8300_s20, 32, %s226_s10, [#allocation14], %s8181_s23, %s8181_s23, %s8182_s26  }
  0x8d   :  { %s8185_s29 = smov [#allocation16]   ;;  %s8186_s16 = smov [#allocation19]  }
  0x8e   :  { %s255_s15 = sshll.u32 %s8185_s29, 4  ;;  %s283_s18 = sshll.u32 %s8186_s16, 4  ;;  %s256_s15 = int_to_ptr.vmem [resolvable:$true] %s255_s15  ;;  %s284_s18 = int_to_ptr.vmem [resolvable:$true] %s283_s18 }
  0x8f   :  { %s7649_s22 = scalar_lea.vmem %s256_s15, 64  ;;  %p7654_p7 = scmp.lt.s32.totalorder %s256_s15, %s256_s15 }
  0x90   :  { %p7650_p6 = scmp.ne.s32.totalorder %s256_s15, %s7649_s22  ;;  %p7655_p8 = scmp.lt.s32.totalorder %s7649_s22, %s7649_s22 }
  0x92   :  { %p7656_p9 = por %p7655_p8, %p7654_p7 }
  0x94   :  { %p7657_p10 = pnand %p7656_p9, %p7650_p6 }
  0x96   :  { %7660 = shalt.err (!%p7657_p10)
}
  0x97   :  { %s8187_s30 = smov 32   ;;  %s8188_s0 = smov 2  }
  0x98   :  { %261 = dma.hbm_to_vmem [thread:$0]  %s8325_s14, 64, %s256_s15, [#allocation17], %s8187_s30, %s8187_s30, %s8188_s0  }
  0x99   :  { %s7669_s20 = scalar_lea.vmem %s284_s18, 32  ;;  %p7674_p12 = scmp.lt.s32.totalorder %s284_s18, %s284_s18 }
  0x9a   :  { %p7670_p11 = scmp.ne.s32.totalorder %s284_s18, %s7669_s20  ;;  %p7675_p13 = scmp.lt.s32.totalorder %s7669_s20, %s7669_s20 }
  0x9c   :  { %p7676_p0 = por %p7675_p13, %p7674_p12 }
  0x9e   :  { %p7677_p1 = pnand %p7676_p0, %p7670_p11 }
  0xa0   :  { %7680 = shalt.err (!%p7677_p1)
}
  0xa1   :  { %289 = dma.hbm_to_vmem [thread:$0]  %s8345_s27, 32, %s284_s18, [#allocation20], %s8181_s23, %s8181_s23, %s8182_s26  }
  0xa2   :  { %s8189_s28 = smov [#allocation22]   ;;  %s8190_s2 = smov [#allocation25]  }
  0xa3   :  { %s307_s1 = sshll.u32 %s8189_s28, 4  ;;  %s342_s7 = sshll.u32 %s8190_s2, 4  ;;  %s308_s1 = int_to_ptr.vmem [resolvable:$true] %s307_s1  ;;  %s343_s7 = int_to_ptr.vmem [resolvable:$true] %s342_s7 }
  0xa4   :  { %s7689_s10 = scalar_lea.vmem %s308_s1, 32  ;;  %p7694_p3 = scmp.lt.s32.totalorder %s308_s1, %s308_s1 }
  0xa5   :  { %p7690_p2 = scmp.ne.s32.totalorder %s308_s1, %s7689_s10  ;;  %p7695_p4 = scmp.lt.s32.totalorder %s7689_s10, %s7689_s10 }
  0xa7   :  { %p7696_p5 = por %p7695_p4, %p7694_p3 }
  0xa9   :  { %p7697_p6 = pnand %p7696_p5, %p7690_p2 }
  0xab   :  { %7700 = shalt.err (!%p7697_p6)
}
  0xac   :  { %313 = dma.hbm_to_vmem [thread:$0]  %s8355_s8, 32, %s308_s1, [#allocation23], %s8181_s23, %s8181_s23, %s8182_s26  }
  0xad   :  { %s7709_s14 = scalar_lea.vmem %s343_s7, 16  ;;  %s7713_s27 = scalar_lea.vmem %s343_s7, 32 }
  0xae   :  { %p7710_p7 = scmp.ne.s32.totalorder %s343_s7, %s7709_s14  ;;  %p7714_p8 = scmp.lt.s32.totalorder %s343_s7, %s343_s7 }
  0xaf   :  { %p7715_p9 = scmp.lt.s32.totalorder %s7713_s27, %s7709_s14 }
  0xb1   :  { %p7716_p10 = por %p7715_p9, %p7714_p8 }
  0xb3   :  { %p7717_p11 = pnand %p7716_p10, %p7710_p7 }
  0xb5   :  { %7720 = shalt.err (!%p7717_p11)
}
  0xb6   :  { %345 = dma.hbm_to_vmem [thread:$0]  %s8390_s5, 16, %s343_s7, [#allocation26]  }
  0xb7   :  { %s8191_s11 = smov [#allocation28]   ;;  %s8192_s29 = smov [#allocation31]  }
  0xb8   :  { %s364_s21 = sshll.u32 %s8191_s11, 4  ;;  %s383_s15 = sshll.u32 %s8192_s29, 4  ;;  %s365_s21 = int_to_ptr.vmem [resolvable:$true] %s364_s21  ;;  %s384_s15 = int_to_ptr.vmem [resolvable:$true] %s383_s15 }
  0xb9   :  { %s7729_s16 = scalar_lea.vmem %s365_s21, 16  ;;  %s7733_s18 = scalar_lea.vmem %s365_s21, 32 }
  0xba   :  { %p7730_p12 = scmp.ne.s32.totalorder %s365_s21, %s7729_s16  ;;  %p7734_p13 = scmp.lt.s32.totalorder %s365_s21, %s365_s21 }
  0xbb   :  { %p7735_p0 = scmp.lt.s32.totalorder %s7733_s18, %s7729_s16 }
  0xbd   :  { %p7736_p1 = por %p7735_p0, %p7734_p13 }
  0xbf   :  { %p7737_p2 = pnand %p7736_p1, %p7730_p12 }
  0xc1   :  { %7740 = shalt.err (!%p7737_p2)
}
  0xc2   :  { %367 = dma.hbm_to_vmem [thread:$0]  %s8400_s12, 16, %s365_s21, [#allocation29]  }
  0xc3   :  { %s7749_s8 = scalar_lea.vmem %s384_s15, 32  ;;  %p7754_p4 = scmp.lt.s32.totalorder %s384_s15, %s384_s15 }
  0xc4   :  { %p7750_p3 = scmp.ne.s32.totalorder %s384_s15, %s7749_s8  ;;  %p7755_p5 = scmp.lt.s32.totalorder %s7749_s8, %s7749_s8 }
  0xc6   :  { %p7756_p6 = por %p7755_p5, %p7754_p4 }
  0xc8   :  { %p7757_p7 = pnand %p7756_p6, %p7750_p3 }
  0xca   :  { %7760 = shalt.err (!%p7757_p7)
}
  0xcb   :  { %389 = dma.hbm_to_vmem [thread:$0]  %s8410_s4, 32, %s384_s15, [#allocation32], %s8181_s23, %s8181_s23, %s8182_s26  }
  0xcc   :  { %s8193_s5 = smov [#allocation34]   ;;  %s8194_s20 = smov [#allocation37]  }
  0xcd   :  { %s407_s22 = sshll.u32 %s8193_s5, 4  ;;  %s429_s28 = sshll.u32 %s8194_s20, 4  ;;  %s408_s22 = int_to_ptr.vmem [resolvable:$true] %s407_s22  ;;  %s430_s28 = int_to_ptr.vmem [resolvable:$true] %s429_s28 }
  0xce   :  { %s7769_s1 = scalar_lea.vmem %s408_s22, 256  ;;  %p7774_p9 = scmp.lt.s32.totalorder %s408_s22, %s408_s22 }
  0xcf   :  { %p7770_p8 = scmp.ne.s32.totalorder %s408_s22, %s7769_s1  ;;  %p7775_p10 = scmp.lt.s32.totalorder %s7769_s1, %s7769_s1 }
  0xd1   :  { %p7776_p11 = por %p7775_p10, %p7774_p9 }
  0xd3   :  { %p7777_p12 = pnand %p7776_p11, %p7770_p8 }
  0xd5   :  { %7780 = shalt.err (!%p7777_p12)
}
  0xd6   :  { %s8195_s12 = smov 64   ;;  %s8196_s2 = smov 4  }
  0xd7   :  { %413 = dma.hbm_to_vmem [thread:$0]  %s8425_s13, 256, %s408_s22, [#allocation35], %s8195_s12, %s8195_s12, %s8196_s2  }
  0xd8   :  { %s7789_s4 = scalar_lea.vmem %s430_s28, 256  ;;  %p7794_p0 = scmp.lt.s32.totalorder %s430_s28, %s430_s28 }
  0xd9   :  { %p7790_p13 = scmp.ne.s32.totalorder %s430_s28, %s7789_s4  ;;  %p7795_p1 = scmp.lt.s32.totalorder %s7789_s4, %s7789_s4 }
  0xdb   :  { %p7796_p2 = por %p7795_p1, %p7794_p0 }
  0xdd   :  { %p7797_p3 = pnand %p7796_p2, %p7790_p13 }
  0xdf   :  { %7800 = shalt.err (!%p7797_p3)
}
  0xe0   :  { %435 = dma.hbm_to_vmem [thread:$0]  %s8435_s9, 256, %s430_s28, [#allocation38], %s8195_s12, %s8195_s12, %s8196_s2  }
  0xe1   :  { %s8197_s7 = smov [#allocation40]   ;;  %s8198_s14 = smov [#allocation2]  }
  0xe2   :  { %s456_s10 = sshll.u32 %s8197_s7, 4  ;;  %s131_s27 = sshll.u32 %s8198_s14, 4  ;;  %s457_s10 = int_to_ptr.vmem [resolvable:$true] %s456_s10  ;;  %s132_s27 = int_to_ptr.vmem [resolvable:$true] %s131_s27 }
  0xe3   :  { %s7809_s11 = scalar_lea.vmem %s457_s10, 16  ;;  %s7813_s13 = scalar_lea.vmem %s457_s10, 32 }
  0xe4   :  { %p7810_p4 = scmp.ne.s32.totalorder %s457_s10, %s7809_s11  ;;  %p7814_p5 = scmp.lt.s32.totalorder %s457_s10, %s457_s10 }
  0xe5   :  { %p7815_p6 = scmp.lt.s32.totalorder %s7813_s13, %s7809_s11 }
  0xe7   :  { %p7816_p7 = por %p7815_p6, %p7814_p5 }
  0xe9   :  { %p7817_p8 = pnand %p7816_p7, %p7810_p4 }
  0xeb   :  { %7820 = shalt.err (!%p7817_p8)
}
  0xec   :  { %459 = dma.hbm_to_vmem [thread:$0]  %s8450_s19, 16, %s457_s10, [#allocation41]  }
  0xed   :  { %s7829_s21 = scalar_lea.vmem %s132_s27, 32  ;;  %p7834_p10 = scmp.lt.s32.totalorder %s132_s27, %s132_s27 }
  0xee   :  { %p7830_p9 = scmp.ne.s32.totalorder %s132_s27, %s7829_s21  ;;  %p7835_p11 = scmp.lt.s32.totalorder %s7829_s21, %s7829_s21 }
  0xf0   :  { %p7836_p12 = por %p7835_p11, %p7834_p10 }
  0xf2   :  { %p7837_p13 = pnand %p7836_p12, %p7830_p9 }
  0xf4   :  { %7840 = shalt.err (!%p7837_p13)
}
  0xf5   :  { %137 = dma.hbm_to_vmem [thread:$0]  %s8240_s17, 32, %s132_s27, [#allocation3], %s8181_s23, %s8181_s23, %s8182_s26  }
  0xf6   :  { %s8199_s9 = smov [#allocation6]   ;;  %s8200_s15 = smov [#allocation9]  }
  0xf7   :  { %s155_s29 = sshll.u32 %s8199_s9, 4  ;;  %s187_s16 = sshll.u32 %s8200_s15, 4  ;;  %s156_s29 = int_to_ptr.vmem [resolvable:$true] %s155_s29  ;;  %s188_s16 = int_to_ptr.vmem [resolvable:$true] %s187_s16 }
  0xf8   :  { %s7849_s18 = scalar_lea.vmem %s156_s29, 32  ;;  %p7854_p1 = scmp.lt.s32.totalorder %s156_s29, %s156_s29 }
  0xf9   :  { %p7850_p0 = scmp.ne.s32.totalorder %s156_s29, %s7849_s18  ;;  %p7855_p2 = scmp.lt.s32.totalorder %s7849_s18, %s7849_s18 }
  0xfb   :  { %p7856_p3 = por %p7855_p2, %p7854_p1 }
  0xfd   :  { %p7857_p4 = pnand %p7856_p3, %p7850_p0 }
  0xff   :  { %7860 = shalt.err (!%p7857_p4)
}
 0x100   :  { %s9569_s19 = sld [smem:[#allocation60_spill]]  ;;  %s7869_s8 = scalar_lea.vmem %s188_s16, 32 }
 0x101   :  { %p7870_p5 = scmp.ne.s32.totalorder %s188_s16, %s7869_s8  ;;  %p7874_p6 = scmp.lt.s32.totalorder %s188_s16, %s188_s16 }
 0x102   :  { %p7875_p7 = scmp.lt.s32.totalorder %s7869_s8, %s7869_s8 }
 0x104   :  { %p7876_p8 = por %p7875_p7, %p7874_p6 }
 0x106   :  { %161 = dma.hbm_to_vmem [thread:$0]  %s9569_s19, 32, %s156_s29, [#allocation5], %s8181_s23, %s8181_s23, %s8182_s26  }
 0x107   :  { %p7877_p9 = pnand %p7876_p8, %p7870_p5 }
 0x109   :  { %7880 = shalt.err (!%p7877_p9)
}
 0x10a   :  { %s9570_s17 = sld [smem:[#allocation65_spill]]  ;;  %s8201_s5 = smov [#allocation12]  }
 0x10b   :  { %s211_s22 = sshll.u32 %s8201_s5, 4  ;;  %s8202_s20 = smov [#allocation15]   ;;  %s212_s22 = int_to_ptr.vmem [resolvable:$true] %s211_s22 }
 0x10c   :  { %s243_s28 = sshll.u32 %s8202_s20, 4  ;;  %s7889_s1 = scalar_lea.vmem %s212_s22, 32  ;;  %s244_s28 = int_to_ptr.vmem [resolvable:$true] %s243_s28 }
 0x10d   :  { %p7890_p10 = scmp.ne.s32.totalorder %s212_s22, %s7889_s1  ;;  %p7894_p11 = scmp.lt.s32.totalorder %s212_s22, %s212_s22 }
 0x10e   :  { %p7895_p12 = scmp.lt.s32.totalorder %s7889_s1, %s7889_s1 }
 0x110   :  { %193 = dma.hbm_to_vmem [thread:$0]  %s9570_s17, 32, %s188_s16, [#allocation8], %s8181_s23, %s8181_s23, %s8182_s26  }
 0x111   :  { %p7896_p13 = por %p7895_p12, %p7894_p11 }
 0x113   :  { %p7897_p0 = pnand %p7896_p13, %p7890_p10 }
 0x115   :  { %7900 = shalt.err (!%p7897_p0)
}
 0x116   :  { %s9571_s4 = sld [smem:[#allocation66_spill]]  ;;  %s7909_s7 = scalar_lea.vmem %s244_s28, 64 }
 0x117   :  { %p7910_p1 = scmp.ne.s32.totalorder %s244_s28, %s7909_s7  ;;  %p7914_p2 = scmp.lt.s32.totalorder %s244_s28, %s244_s28 }
 0x118   :  { %p7915_p3 = scmp.lt.s32.totalorder %s7909_s7, %s7909_s7 }
 0x11a   :  { %p7916_p4 = por %p7915_p3, %p7914_p2 }
 0x11c   :  { %217 = dma.hbm_to_vmem [thread:$0]  %s9571_s4, 32, %s212_s22, [#allocation11], %s8181_s23, %s8181_s23, %s8182_s26  }
 0x11d   :  { %p7917_p5 = pnand %p7916_p4, %p7910_p1 }
 0x11f   :  { %7920 = shalt.err (!%p7917_p5)
}
 0x120   :  { %s9572_s10 = sld [smem:[#allocation71_spill]]  ;;  %s8203_s14 = smov [#allocation18]  }
 0x121   :  { %s271_s27 = sshll.u32 %s8203_s14, 4  ;;  %s8204_s11 = smov [#allocation21]   ;;  %s272_s27 = int_to_ptr.vmem [resolvable:$true] %s271_s27 }
 0x122   :  { %s295_s13 = sshll.u32 %s8204_s11, 4  ;;  %s7929_s21 = scalar_lea.vmem %s272_s27, 32  ;;  %s296_s13 = int_to_ptr.vmem [resolvable:$true] %s295_s13 }
 0x123   :  { %p7930_p6 = scmp.ne.s32.totalorder %s272_s27, %s7929_s21  ;;  %p7934_p7 = scmp.lt.s32.totalorder %s272_s27, %s272_s27 }
 0x124   :  { %p7935_p8 = scmp.lt.s32.totalorder %s7929_s21, %s7929_s21 }
 0x126   :  { %249 = dma.hbm_to_vmem [thread:$0]  %s9572_s10, 64, %s244_s28, [#allocation14], %s8187_s30, %s8187_s30, %s8188_s0  }
 0x127   :  { %p7936_p9 = por %p7935_p8, %p7934_p7 }
 0x129   :  { %p7937_p10 = pnand %p7936_p9, %p7930_p6 }
 0x12b   :  { %7940 = shalt.err (!%p7937_p10)
}
 0x12c   :  { %s9573_s9 = sld [smem:[#allocation74_spill]]  ;;  %s7949_s29 = scalar_lea.vmem %s296_s13, 32 }
 0x12d   :  { %p7950_p11 = scmp.ne.s32.totalorder %s296_s13, %s7949_s29  ;;  %p7954_p12 = scmp.lt.s32.totalorder %s296_s13, %s296_s13 }
 0x12e   :  { %p7955_p13 = scmp.lt.s32.totalorder %s7949_s29, %s7949_s29 }
 0x130   :  { %p7956_p0 = por %p7955_p13, %p7954_p12 }
 0x132   :  { %277 = dma.hbm_to_vmem [thread:$0]  %s9573_s9, 32, %s272_s27, [#allocation17], %s8181_s23, %s8181_s23, %s8182_s26  }
 0x133   :  { %p7957_p1 = pnand %p7956_p0, %p7950_p11 }
 0x135   :  { %7960 = shalt.err (!%p7957_p1)
}
 0x136   :  { %s9574_s30 = sld [smem:[#allocation75_spill]]  ;;  %s8205_s0 = smov [#allocation24]  }
 0x137   :  { %s327_s15 = sshll.u32 %s8205_s0, 4  ;;  %s8206_s16 = smov [#allocation27]   ;;  %s328_s15 = int_to_ptr.vmem [resolvable:$true] %s327_s15 }
 0x138   :  { %s351_s18 = sshll.u32 %s8206_s16, 4  ;;  %s7969_s19 = scalar_lea.vmem %s328_s15, 32  ;;  %s352_s18 = int_to_ptr.vmem [resolvable:$true] %s351_s18 }
 0x139   :  { %p7970_p2 = scmp.ne.s32.totalorder %s328_s15, %s7969_s19  ;;  %p7974_p3 = scmp.lt.s32.totalorder %s328_s15, %s328_s15 }
 0x13a   :  { %p7975_p4 = scmp.lt.s32.totalorder %s7969_s19, %s7969_s19 }
 0x13c   :  { %301 = dma.hbm_to_vmem [thread:$0]  %s9574_s30, 32, %s296_s13, [#allocation20], %s8181_s23, %s8181_s23, %s8182_s26  }
 0x13d   :  { %p7976_p5 = por %p7975_p4, %p7974_p3 }
 0x13f   :  { %p7977_p6 = pnand %p7976_p5, %p7970_p2 }
 0x141   :  { %7980 = shalt.err (!%p7977_p6)
}
 0x142   :  { %s9575_s8 = sld [smem:[#allocation80_spill]]  ;;  %s7989_s17 = scalar_lea.vmem %s352_s18, 256 }
 0x143   :  { %p7990_p7 = scmp.ne.s32.totalorder %s352_s18, %s7989_s17  ;;  %p7994_p8 = scmp.lt.s32.totalorder %s352_s18, %s352_s18 }
 0x144   :  { %p7995_p9 = scmp.lt.s32.totalorder %s7989_s17, %s7989_s17 }
 0x146   :  { %p7996_p10 = por %p7995_p9, %p7994_p8 }
 0x148   :  { %333 = dma.hbm_to_vmem [thread:$0]  %s9575_s8, 32, %s328_s15, [#allocation23], %s8181_s23, %s8181_s23, %s8182_s26  }
 0x149   :  { %p7997_p11 = pnand %p7996_p10, %p7990_p7 }
 0x14b   :  { %8000 = shalt.err (!%p7997_p11)
}
 0x14c   :  { %s9576_s5 = sld [smem:[#allocation82_spill]]  ;;  %s8207_s22 = smov [#allocation30]  }
 0x14d   :  { %s374_s20 = sshll.u32 %s8207_s22, 4  ;;  %s8208_s28 = smov [#allocation33]   ;;  %s375_s20 = int_to_ptr.vmem [resolvable:$true] %s374_s20 }
 0x14e   :  { %s398_s1 = sshll.u32 %s8208_s28, 4  ;;  %s8009_s4 = scalar_lea.vmem %s375_s20, 32  ;;  %s399_s1 = int_to_ptr.vmem [resolvable:$true] %s398_s1 }
 0x14f   :  { %p8010_p12 = scmp.ne.s32.totalorder %s375_s20, %s8009_s4  ;;  %p8014_p13 = scmp.lt.s32.totalorder %s375_s20, %s375_s20 }
 0x150   :  { %p8015_p0 = scmp.lt.s32.totalorder %s8009_s4, %s8009_s4 }
 0x152   :  { %357 = dma.hbm_to_vmem [thread:$0]  %s9576_s5, 256, %s352_s18, [#allocation26], %s8195_s12, %s8195_s12, %s8196_s2  }
 0x153   :  { %p8016_p1 = por %p8015_p0, %p8014_p13 }
 0x155   :  { %p8017_p2 = pnand %p8016_p1, %p8010_p12 }
 0x157   :  { %8020 = shalt.err (!%p8017_p2)
}
 0x158   :  { %s9577_s7 = sld [smem:[#allocation83_spill]]  ;;  %s8029_s10 = scalar_lea.vmem %s399_s1, 16 }
 0x159   :  { %p8030_p3 = scmp.ne.s32.totalorder %s399_s1, %s8029_s10  ;;  %s8033_s14 = scalar_lea.vmem %s399_s1, 32 }
 0x15a   :  { %p8034_p4 = scmp.lt.s32.totalorder %s399_s1, %s399_s1  ;;  %p8035_p5 = scmp.lt.s32.totalorder %s8033_s14, %s8029_s10 }
 0x15c   :  { %p8036_p6 = por %p8035_p5, %p8034_p4 }
 0x15e   :  { %377 = dma.hbm_to_vmem [thread:$0]  %s9577_s7, 32, %s375_s20, [#allocation29]  }
 0x15f   :  { %p8037_p7 = pnand %p8036_p6, %p8030_p3 }
 0x161   :  { %8040 = shalt.err (!%p8037_p7)
}
 0x162   :  { %s9578_s27 = sld [smem:[#allocation85_spill]]  ;;  %s8209_s11 = smov [#allocation36]  }
 0x163   :  { %s420_s13 = sshll.u32 %s8209_s11, 4  ;;  %s8210_s21 = smov [#allocation39]   ;;  %s421_s13 = int_to_ptr.vmem [resolvable:$true] %s420_s13 }
 0x164   :  { %s441_s9 = sshll.u32 %s8210_s21, 4  ;;  %s8049_s29 = scalar_lea.vmem %s421_s13, 16  ;;  %s442_s9 = int_to_ptr.vmem [resolvable:$true] %s441_s9 }
 0x165   :  { %p8050_p8 = scmp.ne.s32.totalorder %s421_s13, %s8049_s29  ;;  %s8053_s30 = scalar_lea.vmem %s421_s13, 32 }
 0x166   :  { %p8054_p9 = scmp.lt.s32.totalorder %s421_s13, %s421_s13  ;;  %p8055_p10 = scmp.lt.s32.totalorder %s8053_s30, %s8049_s29 }
 0x168   :  { %401 = dma.hbm_to_vmem [thread:$0]  %s9578_s27, 16, %s399_s1, [#allocation32]  }
 0x169   :  { %p8056_p11 = por %p8055_p10, %p8054_p9 }
 0x16b   :  { %p8057_p12 = pnand %p8056_p11, %p8050_p8 }
 0x16d   :  { %8060 = shalt.err (!%p8057_p12)
}
 0x16e   :  { %s9579_s0 = sld [smem:[#allocation86_spill]]  ;;  %s8069_s15 = scalar_lea.vmem %s442_s9, 32 }
 0x16f   :  { %p8070_p13 = scmp.ne.s32.totalorder %s442_s9, %s8069_s15  ;;  %p8074_p0 = scmp.lt.s32.totalorder %s442_s9, %s442_s9 }
 0x170   :  { %p8075_p1 = scmp.lt.s32.totalorder %s8069_s15, %s8069_s15 }
 0x172   :  { %p8076_p2 = por %p8075_p1, %p8074_p0 }
 0x174   :  { %423 = dma.hbm_to_vmem [thread:$0]  %s9579_s0, 16, %s421_s13, [#allocation35]  }
 0x175   :  { %p8077_p3 = pnand %p8076_p2, %p8070_p13 }
 0x177   :  { %8080 = shalt.err (!%p8077_p3)
}
 0x178   :  { %s9580_s16 = sld [smem:[#allocation87_spill]]  ;;  %s8211_s18 = smov [#allocation42]  }
 0x179   :  { %s465_s19 = sshll.u32 %s8211_s18, 4  ;;  %s466_s19 = int_to_ptr.vmem [resolvable:$true] %s465_s19 }
 0x17a   :  { %s8089_s8 = scalar_lea.vmem %s466_s19, 256  ;;  %p8094_p5 = scmp.lt.s32.totalorder %s466_s19, %s466_s19 }
 0x17b   :  { %p8090_p4 = scmp.ne.s32.totalorder %s466_s19, %s8089_s8  ;;  %p8095_p6 = scmp.lt.s32.totalorder %s8089_s8, %s8089_s8 }
 0x17d   :  { %p8096_p7 = por %p8095_p6, %p8094_p5 }
 0x17e   :  { %447 = dma.hbm_to_vmem [thread:$0]  %s9580_s16, 32, %s442_s9, [#allocation38], %s8181_s23, %s8181_s23, %s8182_s26  }
 0x17f   :  { %p8097_p8 = pnand %p8096_p7, %p8090_p4 }
 0x181   :  { %8100 = shalt.err (!%p8097_p8)
}
 0x182   :  { %s9581_s17 = sld [smem:[#allocation89_spill]] }
 0x188   :  { %471 = dma.hbm_to_vmem [thread:$0]  %s9581_s17, 256, %s466_s19, [#allocation41], %s8195_s12, %s8195_s12, %s8196_s2  }
 0x189   :  { %8101 = dma.done.wait [#allocation3], 32  }
 0x18a   :  { %8102 = vsyncadd [#allocation3], 4294967264 }
 0x18b   :  { %8103 = dma.done.wait [#allocation5], 64  }
 0x18c   :  { %8104 = vsyncadd [#allocation5], 4294967232 }
 0x18d   :  { %8105 = dma.done.wait [#allocation8], 64  }
 0x18e   :  { %8106 = vsyncadd [#allocation8], 4294967232 }
 0x18f   :  { %8107 = dma.done.wait [#allocation11], 64  }
 0x190   :  { %8108 = vsyncadd [#allocation11], 4294967232 }
 0x191   :  { %8109 = dma.done.wait [#allocation14], 96  }
 0x192   :  { %8110 = vsyncadd [#allocation14], 4294967200 }
 0x193   :  { %8111 = dma.done.wait [#allocation17], 96  }
 0x194   :  { %8112 = vsyncadd [#allocation17], 4294967200 }
 0x195   :  { %8113 = dma.done.wait [#allocation20], 64  }
 0x196   :  { %8114 = vsyncadd [#allocation20], 4294967232 }
 0x197   :  { %8115 = dma.done.wait [#allocation23], 64  }
 0x198   :  { %8116 = vsyncadd [#allocation23], 4294967232 }
 0x199   :  { %8117 = dma.done.wait [#allocation26], 272  }
 0x19a   :  { %8118 = vsyncadd [#allocation26], 4294967024 }
 0x19b   :  { %8119 = dma.done.wait [#allocation29], 48  }
 0x19c   :  { %8120 = vsyncadd [#allocation29], 4294967248 }
 0x19d   :  { %8121 = dma.done.wait [#allocation32], 48  }
 0x19e   :  { %8122 = vsyncadd [#allocation32], 4294967248 }
 0x19f   :  { %8123 = dma.done.wait [#allocation35], 272  }
 0x1a0   :  { %8124 = vsyncadd [#allocation35], 4294967024 }
 0x1a1   :  { %8125 = dma.done.wait [#allocation38], 288  }
 0x1a2   :  { %8126 = vsyncadd [#allocation38], 4294967008 }
 0x1a3   :  { %8127 = dma.done.wait [#allocation41], 272  }
 0x1a4   :  { %8128 = vsyncadd [#allocation41], 4294967024  ;;  %s9582_s23 = sld [smem:[#allocation58_spill]]  ;;  %v8212_v0 = vmov 0.0   ;;  %vm8213_vm0 = vmmov 0   ;;  %vm571_vm1 = vcmask 1040384   ;;  %v615_v12 = vlaneseq }
 0x1a5   :  { %s9583_s26 = sld [smem:[#allocation57_spill]]  ;;  %6666 = vmatprep.subr.bf16.mxu0 %v8212_v0  ;;  %6672 = vmatprep.subr.bf16.mxu1 %v8212_v0  ;;  %vm567_vm2 = vcmask 15360   ;;  %v565_v1 = vld [vmem:[%s8465_s6] sm:$0x1]  ;;  %vm723_vm3 = vcmask 261120   ;;  %vm959_vm4 = vcmask 1041408  }
 0x1a6   :  { %6668 = vmatprep.mubr.msk.bf16.mxu0 %vm8213_vm0, %v8212_v0  ;;  %6674 = vmatprep.mubr.msk.bf16.mxu1 %vm8213_vm0, %v8212_v0  ;;  %v623_v2 = vld [vmem:[%s8470_s25] sm:$0x1]  ;;  %s9584_s12 = sld [smem:[#allocation88_spill]]  ;;  %v573_v4 = vsel %vm571_vm1, %v565_v1, 0  ;;  %v8595_v13 = vshrl.u32 %v615_v12, 7  ;;  %v8214_v12 = vmov 65535  }
 0x1a7   :  { %v629_v5 = vsel %vm571_vm1, %v623_v2, 0  ;;  %6667 = vmatpush3.bf16.msra.mxu0 %v573_v4  ;;  %v6071_v20 = vld [vmem:[%s8460_s3] ss:$0 sm:$0xff]  ;;  %v6072_v52 = vld [vmem:[#allocation39] ss:$0 sm:$0xff]  ;;  %s9585_s25 = sld [smem:[#allocation59_spill]] }
 0x1a8   :  { %6673 = vmatpush3.bf16.msra.mxu1 %v629_v5  ;;  %6678 = vmatprep.subr.bf16.mxu0 %v8212_v0  ;;  %v8598_v14 = vsub.s32 0, %v8595_v13  ;;  %v8601_v15 = vsub.s32 1, %v8595_v13  ;;  %vm955_vm5 = vcmask 23552   ;;  %s9586_s3 = sld [smem:[#allocation81_spill]]  ;;  %vm1970_vm6 = vcmask 1043456  }
 0x1a9   :  { %6686 = vmatprep.subr.bf16.mxu1 %v8212_v0  ;;  %s9587_s6 = sld [smem:[#allocation67_spill]]  ;;  %vm1963_vm7 = vcmask 64512  }
 0x1aa   :  { %v562_v3 = vld [vmem:[%s9582_s23] sm:$0x3]  ;;  %s9588_s2 = sld [smem:[#allocation68_spill]] }
 0x1ab   :  { %v566_v6 = vpack.c.bf16 %v562_v3, %v562_v3  ;;  %v560_v7 = vld [vmem:[%s9583_s26] sm:$0xff]  ;;  %v561_v8 = vld [vmem:[%s9583_s26 + $0x8] sm:$0xff]  ;;  %s9589_s5 = sld [smem:[#allocation61_spill]] }
 0x1ac   :  { %v8580_v9 = vpack.c.bf16 %v561_v8, %v560_v7  ;;  %v7211_v10 = vld [vmem:[%s9584_s12 + $0x8] sm:$0xff]   ;;  %v7212_v11 = vld [vmem:[%s9584_s12] sm:$0xff]   ;;  %v7213_v50 = vld [vmem:[%s9584_s12 + $0x18] sm:$0xff]   ;;  %s9590_s22 = sld [smem:[#allocation70_spill]] }
 0x1ad   :  { %6669 = vmatmul.mubr.msk.bf16.vlgmr.msra.gmra.mxu0 %vm567_vm2, %v566_v6  ;;  %v7214_v51 = vld [vmem:[%s9584_s12 + $0x10] sm:$0xff]   ;;  %s9591_s20 = sld [smem:[#allocation69_spill]] }
 0x1ae   :  { %6675 = vmatmul.mubr.msk.bf16.vlgmr.msra.gmra.mxu1 %vm567_vm2, %v8580_v9  ;;  %6682 = vmatprep.mubr.msk.bf16.mxu0 %vm8213_vm0, %v8212_v0  ;;  %s9592_s28 = sld [smem:[#allocation63_spill]] }
 0x1af   :  { %6690 = vmatprep.mubr.msk.bf16.mxu1 %vm8213_vm0, %v8212_v0  ;;  %6679 = vmatpush3.bf16.msra.mxu0 %v7211_v10  ;;  %s9593_s1 = sld [smem:[#allocation64_spill]] }
 0x1b0   :  { %6680 = vmatprep.subr.bf16.mxu0 %v8212_v0  ;;  %6687 = vmatpush3.bf16.msra.mxu1 %v7213_v50  ;;  %s9594_s4 = sld [smem:[#allocation62_spill]] }
 0x1b1   :  { %6688 = vmatprep.subr.bf16.mxu1 %v8212_v0  ;;  %s9595_s7 = sld [smem:[#allocation72_spill]] }
 0x1b2   :  { %s9596_s10 = sld [smem:[#allocation73_spill]] }
 0x1b3   :  { %6681 = vmatpush3.bf16.msra.mxu0 %v7212_v11  ;;  %s9597_s14 = sld [smem:[#allocation78_spill]] }
 0x1b4   :  { %6694 = vmatprep.subr.bf16.mxu0 %v8212_v0  ;;  %6689 = vmatpush3.bf16.msra.mxu1 %v7214_v51  ;;  %s9598_s27 = sld [smem:[#allocation76_spill]] }
 0x1b5   :  { %6702 = vmatprep.subr.bf16.mxu1 %v8212_v0  ;;  %s9599_s11 = sld [smem:[#allocation79_spill]] }
 0x1b6   :  { %s9600_s13 = sld [smem:[#allocation77_spill]] }
 0x1b7   :  { %s9601_s21 = sld [smem:[#allocation84_spill]] }
 0x26d   :  { %v609_v16 = vpop.f32.mrf.mxu0 }
 0x26e   :  { %v665_v17 = vpop.f32.mrf.mxu1  ;;  %v618_v18 = vrot.slane %v609_v16, %v8598_v14  ;;  %v622_v19 = vrot.slane %v609_v16, %v8601_v15  ;;  %v960_v16 = vsel %vm571_vm1, 4294967295, %v8214_v12 }
 0x26f   :  { %v6670_v21 = vpop.f32.mrf.mxu0 }
 0x270   :  { %v6676_v22 = vpop.f32.mrf.mxu1  ;;  %v666_v23 = vadd.f32 %v665_v17, %v618_v18  ;;  %v961_v21 = vsel %vm959_vm4, %v960_v16, 0 }
 0x271   :  { %v612_v24 = vpop.f32.mrf.mxu0 }
 0x272   :  { %v668_v25 = vpop.f32.mrf.mxu1  ;;  %v679_v26 = vadd.f32 %v6071_v20, %v666_v23 }
 0x273   :  { %v669_v27 = vadd.f32 %v668_v25, %v622_v19  ;;  %v6671_v28 = vpop.f32.mrf.mxu0 }
 0x274   :  { %v6677_v29 = vpop.f32.mrf.mxu1  ;;  %v681_v30 = vmul.f32 %v679_v26, %v679_v26 }
 0x275   :  { %v680_v31 = vadd.f32 %v6071_v20, %v669_v27  ;;  %v946_v20 = vld [vmem:[#allocation30] sm:$0x3]  ;;  %v564_v27 = vld [vmem:[%s9585_s25 + $0x8] sm:$0xff] }
 0x276   :  { %v683_v32 = vmul.f32 %v681_v30, %v679_v26  ;;  %v963_v24 = vand.u32 %v961_v21, %v946_v20  ;;  %v7215_v29 = vld [vmem:[#allocation42 + $0x8] sm:$0xff]   ;;  %v7216_v30 = vld [vmem:[#allocation42] sm:$0xff]  }
 0x277   :  { %v682_v33 = vmul.f32 %v680_v31, %v680_v31 }
 0x278   :  { %v685_v34 = vmul.f32 0.044715, %v683_v32 }
 0x279   :  { %v684_v35 = vmul.f32 %v682_v33, %v680_v31 }
 0x27a   :  { %v687_v36 = vadd.f32 %v685_v34, %v679_v26 }
 0x27b   :  { %v686_v37 = vmul.f32 0.044715, %v684_v35 }
 0x27c   :  { %v689_v38 = vmul.f32 0.7978846, %v687_v36 }
 0x27d   :  { %v688_v39 = vadd.f32 %v686_v37, %v680_v31 }
 0x27e   :  { %7339 = vtanh.f32 %v689_v38 }
 0x27f   :  { %v690_v40 = vmul.f32 0.7978846, %v688_v39 }
 0x281   :  { %7341 = vtanh.f32 %v690_v40  ;;  %v6088_v40 = vld [vmem:[#allocation28] ss:$0 sm:$0xff] }
 0x28b   :  { %v7340_v41 = vpop.eup %7339 }
 0x28c   :  { %v693_v42 = vadd.f32 1.0, %v7340_v41 }
 0x28e   :  { %v7342_v43 = vpop.eup %7341  ;;  %v695_v44 = vmul.f32 0.5, %v693_v42 }
 0x28f   :  { %v694_v45 = vadd.f32 1.0, %v7342_v43 }
 0x290   :  { %v697_v47 = vmul.f32 %v695_v44, %v679_v26  ;;  %v563_v26 = vld [vmem:[%s9585_s25] sm:$0xff] }
 0x291   :  { %v696_v46 = vmul.f32 0.5, %v694_v45  ;;  %v947_v28 = vpack.c.bf16 %v564_v27, %v563_v26  ;;  %v7218_v26 = vld [vmem:[%s9586_s3] sm:$0xff]  }
 0x293   :  { %v698_v48 = vmul.f32 %v696_v46, %v680_v31  ;;  %v6080_v31 = vld [vmem:[#allocation39 + $0x1] ss:$0 sm:$0xff] }
 0x295   :  { %v703_v49 = vpack.c.bf16 %v698_v48, %v697_v47 }
 0x297   :  { %6683 = vmatmul.mubr.msk.bf16.vlgmr.msra.gmra.mxu0 %vm723_vm3, %v703_v49 }
 0x298   :  { %6698 = vmatprep.mubr.msk.bf16.mxu0 %vm8213_vm0, %v8212_v0  ;;  %6695 = vmatpush3.bf16.msra.mxu0 %v7215_v29  ;;  %v7220_v29 = vld [vmem:[%s9586_s3 + $0x10] sm:$0xff]  }
 0x299   :  { %6696 = vmatprep.subr.bf16.mxu0 %v8212_v0 }
 0x29c   :  { %6697 = vmatpush3.bf16.msra.mxu0 %v7216_v30 }
 0x29d   :  { %6708 = vmatprep.subr.bf16.mxu0 %v8212_v0 }
 0x357   :  { %v761_v53 = vpop.f32.mrf.mxu0 }
 0x358   :  { %v762_v54 = vadd.f32 %v6072_v52, %v761_v53 }
 0x359   :  { %v6684_v55 = vpop.f32.mrf.mxu0 }
 0x35a   :  { %v768_v56 = vmul.f32 %v762_v54, %v762_v54 }
 0x35b   :  { %v764_v57 = vpop.f32.mrf.mxu0 }
 0x35c   :  { %v770_v58 = vmul.f32 %v768_v56, %v762_v54  ;;  %v765_v59 = vadd.f32 %v6072_v52, %v764_v57 }
 0x35d   :  { %v6685_v60 = vpop.f32.mrf.mxu0 }
 0x35e   :  { %v772_v61 = vmul.f32 0.044715, %v770_v58  ;;  %v769_v62 = vmul.f32 %v765_v59, %v765_v59 }
 0x360   :  { %v774_v63 = vadd.f32 %v772_v61, %v762_v54  ;;  %v771_v1 = vmul.f32 %v769_v62, %v765_v59 }
 0x362   :  { %v776_v2 = vmul.f32 0.7978846, %v774_v63  ;;  %v773_v3 = vmul.f32 0.044715, %v771_v1 }
 0x364   :  { %7343 = vtanh.f32 %v776_v2  ;;  %v775_v4 = vadd.f32 %v773_v3, %v765_v59 }
 0x366   :  { %v777_v5 = vmul.f32 0.7978846, %v775_v4 }
 0x368   :  { %7345 = vtanh.f32 %v777_v5 }
 0x371   :  { %v7344_v6 = vpop.eup %7343 }
 0x372   :  { %v780_v7 = vadd.f32 1.0, %v7344_v6 }
 0x374   :  { %v782_v8 = vmul.f32 0.5, %v780_v7 }
 0x375   :  { %v7346_v10 = vpop.eup %7345 }
 0x376   :  { %v781_v11 = vadd.f32 1.0, %v7346_v10  ;;  %v784_v17 = vmul.f32 %v782_v8, %v762_v54 }
 0x378   :  { %v783_v18 = vmul.f32 0.5, %v781_v11  ;;  %v8614_v22 = vadd.f32 %v784_v17, %v697_v47 }
 0x37a   :  { %v785_v19 = vmul.f32 %v783_v18, %v765_v59 }
 0x37c   :  { %v8616_v23 = vadd.f32 %v785_v19, %v698_v48  ;;  %v7217_v19 = vld [vmem:[%s9586_s3 + $0x8] sm:$0xff]  }
 0x37e   :  { %v793_v25 = vpack.c.bf16 %v8616_v23, %v8614_v22 }
 0x380   :  { %6691 = vmatmul.mubr.msk.bf16.vlgmr.msra.gmra.mxu1 %vm723_vm3, %v793_v25 }
 0x381   :  { %6703 = vmatpush3.bf16.msra.mxu1 %v963_v24  ;;  %6704 = vmatprep.mubr.msk.bf16.mxu1 %vm8213_vm0, %v8212_v0 }
 0x382   :  { %6716 = vmatprep.subr.bf16.mxu1 %v8212_v0 }
 0x388   :  { %6705 = vmatmul.mubr.msk.bf16.vlgmr.msra.gmra.mxu1 %vm955_vm5, %v947_v28  ;;  %v7219_v28 = vld [vmem:[%s9586_s3 + $0x18] sm:$0xff]  }
 0x389   :  { %6720 = vmatprep.mubr.msk.bf16.mxu1 %vm8213_vm0, %v8212_v0  ;;  %6717 = vmatpush3.bf16.msra.mxu1 %v7219_v28 }
 0x38a   :  { %6718 = vmatprep.subr.bf16.mxu1 %v8212_v0 }
 0x38d   :  { %6719 = vmatpush3.bf16.msra.mxu1 %v7220_v29 }
 0x38e   :  { %6732 = vmatprep.subr.bf16.mxu1 %v8212_v0 }
 0x440   :  { %v851_v32 = vpop.f32.mrf.mxu1 }
 0x441   :  { %v852_v33 = vadd.f32 %v6080_v31, %v851_v32  ;;  %v8648_v32 = vld [vmem:[#allocation40] ss:$0 sm:$0xff] }
 0x442   :  { %v6692_v34 = vpop.f32.mrf.mxu1 }
 0x443   :  { %v858_v35 = vmul.f32 %v852_v33, %v852_v33 }
 0x444   :  { %v854_v36 = vpop.f32.mrf.mxu1 }
 0x445   :  { %v860_v37 = vmul.f32 %v858_v35, %v852_v33  ;;  %v855_v38 = vadd.f32 %v6080_v31, %v854_v36  ;;  %v6090_v36 = vld [vmem:[#allocation24] ss:$0 sm:$0xff] }
 0x446   :  { %v6693_v39 = vpop.f32.mrf.mxu1 }
 0x447   :  { %v862_v41 = vmul.f32 0.044715, %v860_v37  ;;  %v859_v42 = vmul.f32 %v855_v38, %v855_v38 }
 0x448   :  { %v999_v43 = vpop.f32.mrf.mxu1 }
 0x449   :  { %v864_v44 = vadd.f32 %v862_v41, %v852_v33  ;;  %v861_v45 = vmul.f32 %v859_v42, %v855_v38  ;;  %v1000_v46 = vadd.f32 %v6088_v40, %v999_v43 }
 0x44a   :  { %v6706_v47 = vpop.f32.mrf.mxu1 }
 0x44b   :  { %v866_v48 = vmul.f32 0.7978846, %v864_v44  ;;  %v863_v49 = vmul.f32 0.044715, %v861_v45  ;;  %v1006_v50 = vmul.f32 %v1000_v46, %v1000_v46 }
 0x44c   :  { %v1002_v51 = vpop.f32.mrf.mxu1 }
 0x44d   :  { %7347 = vtanh.f32 %v866_v48  ;;  %v865_v52 = vadd.f32 %v863_v49, %v855_v38  ;;  %v1008_v53 = vmul.f32 %v1006_v50, %v1000_v46  ;;  %v1003_v54 = vadd.f32 %v6088_v40, %v1002_v51 }
 0x44e   :  { %v6707_v55 = vpop.f32.mrf.mxu1 }
 0x44f   :  { %v867_v56 = vmul.f32 0.7978846, %v865_v52  ;;  %v1010_v57 = vmul.f32 0.044715, %v1008_v53  ;;  %v1007_v58 = vmul.f32 %v1003_v54, %v1003_v54 }
 0x451   :  { %7349 = vtanh.f32 %v867_v56  ;;  %v1012_v59 = vadd.f32 %v1010_v57, %v1000_v46  ;;  %v1009_v60 = vmul.f32 %v1007_v58, %v1003_v54 }
 0x453   :  { %v1014_v61 = vmul.f32 0.7978846, %v1012_v59  ;;  %v1011_v62 = vmul.f32 0.044715, %v1009_v60 }
 0x455   :  { %7351 = vtanh.f32 %v1014_v61  ;;  %v1013_v63 = vadd.f32 %v1011_v62, %v1003_v54 }
 0x457   :  { %v1015_v1 = vmul.f32 0.7978846, %v1013_v63 }
 0x459   :  { %7353 = vtanh.f32 %v1015_v1  ;;  %v1272_v1 = vld [vmem:[#allocation10] sm:$0x1] }
 0x45a   :  { %v7348_v2 = vpop.eup %7347 }
 0x45b   :  { %v870_v3 = vadd.f32 1.0, %v7348_v2  ;;  %v1281_v2 = vsel %vm571_vm1, %v1272_v1, 0 }
 0x45d   :  { %v872_v4 = vmul.f32 0.5, %v870_v3  ;;  %v7221_v3 = vld [vmem:[#allocation27 + $0x8] sm:$0xff]  }
 0x45e   :  { %v7350_v5 = vpop.eup %7349 }
 0x45f   :  { %v871_v6 = vadd.f32 1.0, %v7350_v5  ;;  %v874_v7 = vmul.f32 %v872_v4, %v852_v33  ;;  %v7222_v4 = vld [vmem:[#allocation27] sm:$0xff]   ;;  %v6098_v5 = vld [vmem:[#allocation24 + $0x1] ss:$0 sm:$0xff] }
 0x461   :  { %v873_v8 = vmul.f32 0.5, %v871_v6  ;;  %v876_v12 = vadd.f32 %v874_v7, %v8614_v22 }
 0x462   :  { %v7352_v10 = vpop.eup %7351 }
 0x463   :  { %v875_v11 = vmul.f32 %v873_v8, %v855_v38  ;;  %v1018_v17 = vadd.f32 1.0, %v7352_v10 }
 0x465   :  { %v877_v16 = vadd.f32 %v875_v11, %v8616_v23  ;;  %v1020_v24 = vmul.f32 0.5, %v1018_v17 }
 0x466   :  { %v7354_v18 = vpop.eup %7353 }
 0x467   :  { %v1019_v20 = vadd.f32 1.0, %v7354_v18  ;;  %v882_v21 = vpack.c.bf16 %v877_v16, %v876_v12  ;;  %v1022_v22 = vmul.f32 %v1020_v24, %v1000_v46 }
 0x469   :  { %v1021_v25 = vmul.f32 0.5, %v1019_v20  ;;  %6699 = vmatmul.mubr.msk.bf16.vlgmr.msra.gmra.mxu0 %vm723_vm3, %v882_v21 }
 0x46a   :  { %6709 = vmatpush3.bf16.msra.mxu0 %v7217_v19  ;;  %6712 = vmatprep.mubr.msk.bf16.mxu0 %vm8213_vm0, %v8212_v0 }
 0x46b   :  { %v1023_v27 = vmul.f32 %v1021_v25, %v1003_v54  ;;  %6710 = vmatprep.subr.bf16.mxu0 %v8212_v0 }
 0x46d   :  { %v1028_v23 = vpack.c.bf16 %v1023_v27, %v1022_v22 }
 0x46e   :  { %6711 = vmatpush3.bf16.msra.mxu0 %v7218_v26 }
 0x46f   :  { %6724 = vmatprep.subr.bf16.mxu0 %v8212_v0 }
 0x471   :  { %6713 = vmatmul.mubr.msk.bf16.vlgmr.msra.gmra.mxu0 %vm723_vm3, %v1028_v23 }
 0x472   :  { %6728 = vmatprep.mubr.msk.bf16.mxu0 %vm8213_vm0, %v8212_v0  ;;  %6725 = vmatpush3.bf16.msra.mxu0 %v7221_v3 }
 0x473   :  { %6726 = vmatprep.subr.bf16.mxu0 %v8212_v0 }
 0x476   :  { %6727 = vmatpush3.bf16.msra.mxu0 %v7222_v4  ;;  %v7229_v4 = vld [vmem:[%s9587_s6 + $0x8] sm:$0xff]  }
 0x477   :  { %6738 = vmatprep.subr.bf16.mxu0 %v8212_v0 }
 0x529   :  { %v8646_v30 = vpop.f32.mrf.mxu0 }
 0x52b   :  { %v6700_v31 = vpop.f32.mrf.mxu0 }
 0x52d   :  { %v942_v33 = vpop.f32.mrf.mxu0 }
 0x52e   :  { %v8651_v34 = vadd.f32 %v8648_v32, %v942_v33 }
 0x52f   :  { %v6701_v35 = vpop.f32.mrf.mxu0 }
 0x531   :  { %v1085_v37 = vpop.f32.mrf.mxu0 }
 0x532   :  { %v1086_v38 = vadd.f32 %v6090_v36, %v1085_v37 }
 0x533   :  { %v6714_v39 = vpop.f32.mrf.mxu0 }
 0x534   :  { %v1092_v40 = vmul.f32 %v1086_v38, %v1086_v38  ;;  %v7223_v39 = vld [vmem:[%s9587_s6 + $0x38] sm:$0xff]  }
 0x535   :  { %v1088_v41 = vpop.f32.mrf.mxu0 }
 0x536   :  { %v1094_v42 = vmul.f32 %v1092_v40, %v1086_v38  ;;  %v1089_v43 = vadd.f32 %v6090_v36, %v1088_v41  ;;  %v7224_v41 = vld [vmem:[%s9587_s6 + $0x30] sm:$0xff]  }
 0x537   :  { %v6715_v44 = vpop.f32.mrf.mxu0 }
 0x538   :  { %v1096_v45 = vmul.f32 0.044715, %v1094_v42  ;;  %v1093_v46 = vmul.f32 %v1089_v43, %v1089_v43  ;;  %v7225_v42 = vld [vmem:[%s9587_s6 + $0x28] sm:$0xff]   ;;  %v7227_v44 = vld [vmem:[%s9587_s6 + $0x18] sm:$0xff]  }
 0x53a   :  { %v1098_v47 = vadd.f32 %v1096_v45, %v1086_v38  ;;  %v1095_v48 = vmul.f32 %v1093_v46, %v1089_v43  ;;  %v7228_v45 = vld [vmem:[%s9587_s6 + $0x10] sm:$0xff]   ;;  %v6106_v46 = vld [vmem:[#allocation9] ss:$0 sm:$0xff] }
 0x53c   :  { %v1100_v49 = vmul.f32 0.7978846, %v1098_v47  ;;  %v1097_v50 = vmul.f32 0.044715, %v1095_v48 }
 0x53e   :  { %7355 = vtanh.f32 %v1100_v49  ;;  %v1099_v51 = vadd.f32 %v1097_v50, %v1089_v43 }
 0x540   :  { %v1101_v52 = vmul.f32 0.7978846, %v1099_v51 }
 0x542   :  { %7357 = vtanh.f32 %v1101_v52 }
 0x54b   :  { %v7356_v53 = vpop.eup %7355 }
 0x54c   :  { %v1104_v54 = vadd.f32 1.0, %v7356_v53 }
 0x54e   :  { %v1106_v55 = vmul.f32 0.5, %v1104_v54 }
 0x54f   :  { %v7358_v56 = vpop.eup %7357 }
 0x550   :  { %v1105_v57 = vadd.f32 1.0, %v7358_v56  ;;  %v1108_v58 = vmul.f32 %v1106_v55, %v1086_v38 }
 0x552   :  { %v1107_v59 = vmul.f32 0.5, %v1105_v57  ;;  %v1110_v61 = vadd.f32 %v1108_v58, %v1022_v22 }
 0x554   :  { %v1109_v60 = vmul.f32 %v1107_v59, %v1089_v43  ;;  %v7226_v43 = vld [vmem:[%s9587_s6 + $0x20] sm:$0xff]  }
 0x556   :  { %v1111_v62 = vadd.f32 %v1109_v60, %v1023_v27 }
 0x558   :  { %v1117_v63 = vpack.c.bf16 %v1111_v62, %v1110_v61 }
 0x55a   :  { %6721 = vmatmul.mubr.msk.bf16.vlgmr.msra.gmra.mxu1 %vm723_vm3, %v1117_v63 }
 0x55b   :  { %6734 = vmatprep.mubr.msk.bf16.mxu1 %vm8213_vm0, %v8212_v0  ;;  %6733 = vmatpush3.bf16.msra.mxu1 %v1281_v2 }
 0x55c   :  { %6758 = vmatprep.subr.bf16.mxu1 %v8212_v0 }
 0x562   :  { %6735 = vmatmul.mubr.msk.bf16.vlgmr.msra.gmra.mxu1 %vm567_vm2, %v8580_v9 }
 0x563   :  { %6774 = vmatprep.mubr.msk.bf16.mxu1 %vm8213_vm0, %v8212_v0 }
 0x61a   :  { %v1175_v6 = vpop.f32.mrf.mxu1 }
 0x61b   :  { %v1176_v7 = vadd.f32 %v6098_v5, %v1175_v6 }
 0x61c   :  { %v6722_v8 = vpop.f32.mrf.mxu1 }
 0x61d   :  { %v1182_v10 = vmul.f32 %v1176_v7, %v1176_v7  ;;  %v7230_v8 = vld [vmem:[%s9587_s6] sm:$0xff]  }
 0x61e   :  { %v1178_v11 = vpop.f32.mrf.mxu1 }
 0x61f   :  { %v1184_v12 = vmul.f32 %v1182_v10, %v1176_v7  ;;  %v1179_v16 = vadd.f32 %v6098_v5, %v1178_v11 }
 0x620   :  { %v6723_v17 = vpop.f32.mrf.mxu1 }
 0x621   :  { %v1186_v18 = vmul.f32 0.044715, %v1184_v12  ;;  %v1183_v19 = vmul.f32 %v1179_v16, %v1179_v16  ;;  %v6102_v12 = vld [vmem:[#allocation25] ss:$0 sm:$0xff] }
 0x622   :  { %v1317_v47 = vpop.f32.mrf.mxu1 }
 0x623   :  { %v1188_v20 = vadd.f32 %v1186_v18, %v1176_v7  ;;  %v1185_v21 = vmul.f32 %v1183_v19, %v1179_v16  ;;  %v1318_v48 = vadd.f32 %v6106_v46, %v1317_v47 }
 0x624   :  { %v6736_v49 = vpop.f32.mrf.mxu1 }
 0x625   :  { %v1190_v24 = vmul.f32 0.7978846, %v1188_v20  ;;  %v1187_v25 = vmul.f32 0.044715, %v1185_v21  ;;  %v1324_v50 = vmul.f32 %v1318_v48, %v1318_v48 }
 0x626   :  { %v1320_v51 = vpop.f32.mrf.mxu1 }
 0x627   :  { %7359 = vtanh.f32 %v1190_v24  ;;  %v1189_v26 = vadd.f32 %v1187_v25, %v1179_v16  ;;  %v1326_v52 = vmul.f32 %v1324_v50, %v1318_v48  ;;  %v1321_v53 = vadd.f32 %v6106_v46, %v1320_v51 }
 0x628   :  { %v6737_v54 = vpop.f32.mrf.mxu1  ;;  %v8693_v25 = vadd.f32 %v8648_v32, %v8646_v30  ;;  %v7233_v30 = vld [vmem:[%s9588_s2 + $0x28] sm:$0xff]   ;;  %v7234_v32 = vld [vmem:[%s9588_s2 + $0x20] sm:$0xff]  }
 0x629   :  { %v1191_v27 = vmul.f32 0.7978846, %v1189_v26  ;;  %v1328_v55 = vmul.f32 0.044715, %v1326_v52  ;;  %v1325_v56 = vmul.f32 %v1321_v53, %v1321_v53 }
 0x62b   :  { %7361 = vtanh.f32 %v1191_v27  ;;  %v1330_v57 = vadd.f32 %v1328_v55, %v1318_v48  ;;  %v1327_v58 = vmul.f32 %v1325_v56, %v1321_v53  ;;  %v1608_v27 = vsel %vm723_vm3, %v8693_v25, 0.0 }
 0x62d   :  { %v1332_v59 = vmul.f32 0.7978846, %v1330_v57  ;;  %v1329_v60 = vmul.f32 0.044715, %v1327_v58 }
 0x62f   :  { %7363 = vtanh.f32 %v1332_v59 }
 0x634   :  { %v7360_v22 = vpop.eup %7359 }
 0x635   :  { %v1194_v23 = vadd.f32 1.0, %v7360_v22  ;;  %v7231_v22 = vld [vmem:[%s9588_s2 + $0x38] sm:$0xff]  }
 0x636   :  { %6759 = vmatpush3.bf16.msra.mxu1 %v7231_v22 }
 0x637   :  { %v1196_v28 = vmul.f32 0.5, %v1194_v23  ;;  %v7232_v23 = vld [vmem:[%s9588_s2 + $0x30] sm:$0xff]   ;;  %6760 = vmatprep.subr.bf16.mxu1 %v8212_v0 }
 0x638   :  { %v7362_v29 = vpop.eup %7361 }
 0x639   :  { %v1195_v31 = vadd.f32 1.0, %v7362_v29  ;;  %v1198_v33 = vmul.f32 %v1196_v28, %v1176_v7  ;;  %v7235_v28 = vld [vmem:[%s9588_s2 + $0x18] sm:$0xff]   ;;  %v7236_v29 = vld [vmem:[%s9588_s2 + $0x10] sm:$0xff]  }
 0x63a   :  { %6761 = vmatpush3.bf16.msra.mxu1 %v7232_v23 }
 0x63b   :  { %v1197_v35 = vmul.f32 0.5, %v1195_v31  ;;  %v1200_v37 = vadd.f32 %v1198_v33, %v1110_v61  ;;  %v1331_v61 = vadd.f32 %v1329_v60, %v1321_v53  ;;  %6762 = vmatprep.subr.bf16.mxu1 %v8212_v0  ;;  %v7237_v31 = vld [vmem:[%s9588_s2 + $0x8] sm:$0xff]   ;;  %v7238_v33 = vld [vmem:[%s9588_s2] sm:$0xff]  }
 0x63c   :  { %v7364_v63 = vpop.eup %7363 }
 0x63d   :  { %v1199_v36 = vmul.f32 %v1197_v35, %v1179_v16  ;;  %v1336_v1 = vadd.f32 1.0, %v7364_v63  ;;  %v6108_v35 = vld [vmem:[#allocation12] ss:$0 sm:$0xff] }
 0x63e   :  { %6763 = vmatpush3.bf16.msra.mxu1 %v7233_v30 }
 0x63f   :  { %v1201_v38 = vadd.f32 %v1199_v36, %v1111_v62  ;;  %v1333_v62 = vmul.f32 0.7978846, %v1331_v61  ;;  %v1338_v2 = vmul.f32 0.5, %v1336_v1  ;;  %6764 = vmatprep.subr.bf16.mxu1 %v8212_v0 }
 0x641   :  { %v1206_v40 = vpack.c.bf16 %v1201_v38, %v1200_v37  ;;  %7365 = vtanh.f32 %v1333_v62  ;;  %v1340_v6 = vmul.f32 %v1338_v2, %v1318_v48 }
 0x642   :  { %6765 = vmatpush3.bf16.msra.mxu1 %v7234_v32 }
 0x643   :  { %6729 = vmatmul.mubr.msk.bf16.vlgmr.msra.gmra.mxu0 %vm723_vm3, %v1206_v40  ;;  %6766 = vmatprep.subr.bf16.mxu1 %v8212_v0 }
 0x644   :  { %6739 = vmatpush3.bf16.msra.mxu0 %v7223_v39  ;;  %6754 = vmatprep.mubr.msk.bf16.mxu0 %vm8213_vm0, %v8212_v0 }
 0x645   :  { %6740 = vmatprep.subr.bf16.mxu0 %v8212_v0 }
 0x646   :  { %6767 = vmatpush3.bf16.msra.mxu1 %v7235_v28 }
 0x647   :  { %6768 = vmatprep.subr.bf16.mxu1 %v8212_v0 }
 0x648   :  { %6741 = vmatpush3.bf16.msra.mxu0 %v7224_v41 }
 0x649   :  { %6742 = vmatprep.subr.bf16.mxu0 %v8212_v0 }
 0x64a   :  { %6769 = vmatpush3.bf16.msra.mxu1 %v7236_v29 }
 0x64b   :  { %6770 = vmatprep.subr.bf16.mxu1 %v8212_v0 }
 0x64c   :  { %6743 = vmatpush3.bf16.msra.mxu0 %v7225_v42 }
 0x64d   :  { %6744 = vmatprep.subr.bf16.mxu0 %v8212_v0 }
 0x64e   :  { %v7366_v3 = vpop.eup %7365  ;;  %6771 = vmatpush3.bf16.msra.mxu1 %v7237_v31  ;;  %v8735_v31 = vld [vmem:[%s9590_s22] sm:$0x1f] }
 0x64f   :  { %v1337_v5 = vadd.f32 1.0, %v7366_v3  ;;  %6772 = vmatprep.subr.bf16.mxu1 %v8212_v0 }
 0x650   :  { %6745 = vmatpush3.bf16.msra.mxu0 %v7226_v43 }
 0x651   :  { %6746 = vmatprep.subr.bf16.mxu0 %v8212_v0  ;;  %v1339_v7 = vmul.f32 0.5, %v1337_v5 }
 0x652   :  { %6773 = vmatpush3.bf16.msra.mxu1 %v7238_v33 }
 0x653   :  { %v1341_v10 = vmul.f32 %v1339_v7, %v1321_v53  ;;  %6786 = vmatprep.subr.bf16.mxu1 %v8212_v0 }
 0x654   :  { %6747 = vmatpush3.bf16.msra.mxu0 %v7227_v44 }
 0x655   :  { %6748 = vmatprep.subr.bf16.mxu0 %v8212_v0  ;;  %v1358_v11 = vpack.c.bf16 %v1341_v10, %v1340_v6 }
 0x658   :  { %6749 = vmatpush3.bf16.msra.mxu0 %v7228_v45 }
 0x659   :  { %6750 = vmatprep.subr.bf16.mxu0 %v8212_v0 }
 0x65c   :  { %6751 = vmatpush3.bf16.msra.mxu0 %v7229_v4 }
 0x65d   :  { %6752 = vmatprep.subr.bf16.mxu0 %v8212_v0 }
 0x660   :  { %6753 = vmatpush3.bf16.msra.mxu0 %v7230_v8 }
 0x661   :  { %6778 = vmatprep.subr.bf16.mxu0 %v8212_v0 }
 0x663   :  { %6755 = vmatmul.mubr.bf16.vlgmr.msra.gmra.mxu0 %v1358_v11 }
 0x664   :  { %6782 = vmatprep.mubr.msk.bf16.mxu0 %vm8213_vm0, %v8212_v0 }
 0x703   :  { %v1263_v16 = vpop.f32.mrf.mxu0 }
 0x704   :  { %v8685_v17 = vadd.f32 %v6102_v12, %v1263_v16  ;;  %v1611_v16 = vsel %vm723_vm3, %v8651_v34, 0.0 }
 0x705   :  { %v6730_v18 = vpop.f32.mrf.mxu0 }
 0x706   :  { %v1647_v19 = vsel %vm723_vm3, %v8685_v17, 0.0  ;;  %v7239_v18 = vld [vmem:[%s9589_s5 + $0x8] sm:$0xff]  }
 0x707   :  { %1648 = vadd.xlane.f32.xlu0 %v1647_v19  ;;  %v1266_v20 = vpop.f32.mrf.mxu0  ;;  %v7240_v19 = vld [vmem:[%s9589_s5] sm:$0xff]  }
 0x708   :  { %v8689_v21 = vadd.f32 %v6102_v12, %v1266_v20 }
 0x709   :  { %v6731_v24 = vpop.f32.mrf.mxu0 }
 0x70a   :  { %v1650_v26 = vsel %vm723_vm3, %v8689_v21, 0.0 }
 0x70b   :  { %1651 = vadd.xlane.f32.xlu0 %v1650_v26 }
 0x70f   :  { %1609 = vadd.xlane.f32.xlu0 %v1608_v27 }
 0x723   :  { %v1448_v36 = vpop.f32.mrf.mxu0 }
 0x724   :  { %v1449_v37 = vadd.f32 %v6108_v35, %v1448_v36 }
 0x725   :  { %v6756_v38 = vpop.f32.mrf.mxu0 }
 0x726   :  { %v1455_v39 = vmul.f32 %v1449_v37, %v1449_v37  ;;  %v1676_v38 = vrot.slane %v8735_v31, %v8601_v15 }
 0x727   :  { %v1451_v40 = vpop.f32.mrf.mxu0 }
 0x728   :  { %v1457_v41 = vmul.f32 %v1455_v39, %v1449_v37  ;;  %v1452_v42 = vadd.f32 %v6108_v35, %v1451_v40  ;;  %v6193_v35 = vld [vmem:[%s9590_s22 + $0x8] sm:$0x1f]  ;;  %v8743_v40 = vld [vmem:[%s9591_s20] sm:$0x1f] }
 0x729   :  { %v6757_v43 = vpop.f32.mrf.mxu0 }
 0x72a   :  { %v1459_v44 = vmul.f32 0.044715, %v1457_v41  ;;  %v1456_v45 = vmul.f32 %v1452_v42, %v1452_v42  ;;  %v3856_v41 = vrot.slane %v6193_v35, %v8601_v15  ;;  %v6194_v43 = vld [vmem:[%s9591_s20 + $0x8] sm:$0x1f] }
 0x72c   :  { %v1461_v46 = vadd.f32 %v1459_v44, %v1449_v37  ;;  %v1458_v47 = vmul.f32 %v1456_v45, %v1452_v42 }
 0x72e   :  { %v1463_v48 = vmul.f32 0.7978846, %v1461_v46  ;;  %v1460_v49 = vmul.f32 0.044715, %v1458_v47  ;;  %v1682_v47 = vrot.slane %v8743_v40, %v8601_v15 }
 0x730   :  { %7367 = vtanh.f32 %v1463_v48  ;;  %v1462_v50 = vadd.f32 %v1460_v49, %v1452_v42 }
 0x732   :  { %v1464_v51 = vmul.f32 0.7978846, %v1462_v50  ;;  %v3862_v50 = vrot.slane %v6194_v43, %v8601_v15 }
 0x734   :  { %7369 = vtanh.f32 %v1464_v51 }
 0x73d   :  { %v7368_v52 = vpop.eup %7367 }
 0x73e   :  { %v1467_v53 = vadd.f32 1.0, %v7368_v52 }
 0x740   :  { %v1469_v54 = vmul.f32 0.5, %v1467_v53 }
 0x741   :  { %v7370_v55 = vpop.eup %7369 }
 0x742   :  { %v1468_v56 = vadd.f32 1.0, %v7370_v55  ;;  %v1471_v57 = vmul.f32 %v1469_v54, %v1449_v37 }
 0x744   :  { %v1470_v58 = vmul.f32 0.5, %v1468_v56 }
 0x746   :  { %v1472_v59 = vmul.f32 %v1470_v58, %v1452_v42 }
 0x748   :  { %v1489_v60 = vpack.c.bf16 %v1472_v59, %v1471_v57  ;;  %v7241_v59 = vld [vmem:[%s9592_s28 + $0x8] sm:$0xff]  }
 0x749   :  { %6779 = vmatpush3.bf16.msra.mxu0 %v7241_v59 }
 0x74a   :  { %6775 = vmatmul.mubr.bf16.vlgmr.msra.gmra.mxu1 %v1489_v60  ;;  %v7242_v60 = vld [vmem:[%s9592_s28] sm:$0xff]   ;;  %6780 = vmatprep.subr.bf16.mxu0 %v8212_v0 }
 0x74b   :  { %6790 = vmatprep.mubr.msk.bf16.mxu1 %vm8213_vm0, %v8212_v0  ;;  %6787 = vmatpush3.bf16.msra.mxu1 %v7239_v18 }
 0x74c   :  { %6788 = vmatprep.subr.bf16.mxu1 %v8212_v0 }
 0x74d   :  { %6781 = vmatpush3.bf16.msra.mxu0 %v7242_v60 }
 0x74e   :  { %6794 = vmatprep.subr.bf16.mxu0 %v8212_v0 }
 0x74f   :  { %6789 = vmatpush3.bf16.msra.mxu1 %v7240_v19  ;;  %v7243_v19 = vld [vmem:[%s9593_s1 + $0x8] sm:$0xff]  }
 0x790   :  { %v1649_v61 = vpop.xlane.xlu0 %1648 }
 0x791   :  { %v1653_v62 = vmul.f32 0.03125, %v1649_v61 }
 0x793   :  { %v1655_v63 = vsub.f32 %v8685_v17, %v1653_v62 }
 0x794   :  { %v1652_v1 = vpop.xlane.xlu0 %1651 }
 0x795   :  { %v1654_v2 = vmul.f32 0.03125, %v1652_v1  ;;  %v1657_v3 = vmul.f32 %v1655_v63, %v1655_v63 }
 0x797   :  { %v1656_v4 = vsub.f32 %v8689_v21, %v1654_v2  ;;  %v1659_v5 = vsel %vm723_vm3, %v1657_v3, 0.0 }
 0x798   :  { %1660 = vadd.xlane.f32.xlu1 %v1659_v5  ;;  %v1610_v6 = vpop.xlane.xlu0 %1609 }
 0x799   :  { %v1615_v7 = vmul.f32 0.03125, %v1610_v6  ;;  %v1658_v8 = vmul.f32 %v1656_v4, %v1656_v4  ;;  %v1638_v6 = vrot.slane %v8735_v31, %v8598_v14 }
 0x79b   :  { %v8721_v10 = vsub.f32 %v8693_v25, %v1615_v7  ;;  %v1662_v11 = vsel %vm723_vm3, %v1658_v8, 0.0 }
 0x79c   :  { %1663 = vadd.xlane.f32.xlu1 %v1662_v11 }
 0x79d   :  { %v1619_v12 = vmul.f32 %v8721_v10, %v8721_v10 }
 0x79f   :  { %v1621_v17 = vsel %vm723_vm3, %v1619_v12, 0.0  ;;  %v1644_v12 = vrot.slane %v8743_v40, %v8598_v14 }
 0x7a0   :  { %1612 = vadd.xlane.f32.xlu1 %v1611_v16  ;;  %1622 = vadd.xlane.f32.xlu0 %v1621_v17 }
 0x80a   :  { %v8737_v33 = vpop.f32.mrf.mxu1 }
 0x80c   :  { %v6776_v39 = vpop.f32.mrf.mxu1 }
 0x80e   :  { %v8746_v42 = vpop.f32.mrf.mxu1 }
 0x810   :  { %v6777_v48 = vpop.f32.mrf.mxu1 }
 0x821   :  { %v1661_v20 = vpop.xlane.xlu1 %1660 }
 0x822   :  { %v1665_v21 = vmul.f32 0.03125, %v1661_v20 }
 0x824   :  { %v1667_v24 = vadd.f32 1e-05, %v1665_v21  ;;  %v7244_v21 = vld [vmem:[%s9593_s1] sm:$0xff]  }
 0x825   :  { %v1664_v26 = vpop.xlane.xlu1 %1663 }
 0x826   :  { %7371 = vrsqrt.f32 %v1667_v24  ;;  %v1666_v27 = vmul.f32 0.03125, %v1664_v26 }
 0x828   :  { %v1668_v22 = vadd.f32 1e-05, %v1666_v27 }
 0x829   :  { %v1613_v23 = vpop.xlane.xlu1 %1612  ;;  %v1623_v61 = vpop.xlane.xlu0 %1622 }
 0x82a   :  { %7373 = vrsqrt.f32 %v1668_v22  ;;  %v1616_v30 = vmul.f32 0.03125, %v1613_v23  ;;  %v1627_v62 = vmul.f32 0.03125, %v1623_v61 }
 0x82c   :  { %v1618_v32 = vsub.f32 %v8651_v34, %v1616_v30 }
 0x82e   :  { %v1620_v28 = vmul.f32 %v1618_v32, %v1618_v32 }
 0x830   :  { %v1624_v29 = vsel %vm723_vm3, %v1620_v28, 0.0 }
 0x831   :  { %1625 = vadd.xlane.f32.xlu1 %v1624_v29 }
 0x833   :  { %v7372_v36 = vpop.eup %7371 }
 0x834   :  { %v1671_v37 = vmul.f32 %v7372_v36, %v1655_v63  ;;  %v1629_v63 = vadd.f32 1e-05, %v1627_v62 }
 0x836   :  { %v1677_v46 = vmul.f32 %v1676_v38, %v1671_v37  ;;  %v3857_v49 = vmul.f32 %v3856_v41, %v1671_v37  ;;  %7375 = vrsqrt.f32 %v1629_v63 }
 0x837   :  { %v7374_v44 = vpop.eup %7373 }
 0x838   :  { %v1672_v45 = vmul.f32 %v7374_v44, %v1656_v4  ;;  %v1683_v53 = vadd.f32 %v1682_v47, %v1677_v46  ;;  %v3863_v55 = vadd.f32 %v3862_v50, %v3857_v49  ;;  %v6134_v46 = vld [vmem:[#allocation7] ss:$0 sm:$0xff] }
 0x83a   :  { %v1678_v51 = vmul.f32 %v1676_v38, %v1672_v45  ;;  %v3858_v52 = vmul.f32 %v3856_v41, %v1672_v45 }
 0x83c   :  { %v1684_v54 = vadd.f32 %v1682_v47, %v1678_v51  ;;  %v3864_v56 = vadd.f32 %v3862_v50, %v3858_v52 }
 0x83e   :  { %v1768_v57 = vpack.c.bf16 %v1684_v54, %v1683_v53  ;;  %v8752_v58 = vpack.c.bf16 %v3864_v56, %v3863_v55 }
 0x840   :  { %6791 = vmatmul.mubr.msk.bf16.vlgmr.msra.gmra.mxu1 %vm723_vm3, %v1768_v57 }
 0x843   :  { %v7376_v4 = vpop.eup %7375 }
 0x844   :  { %v1633_v5 = vmul.f32 %v7376_v4, %v8721_v10  ;;  %v6130_v10 = vld [vmem:[#allocation2] ss:$0 sm:$0xff] }
 0x846   :  { %v1639_v11 = vmul.f32 %v1638_v6, %v1633_v5 }
 0x848   :  { %v1645_v17 = vadd.f32 %v1644_v12, %v1639_v11 }
 0x8ba   :  { %v1626_v1 = vpop.xlane.xlu1 %1625 }
 0x8bb   :  { %v1628_v2 = vmul.f32 0.03125, %v1626_v1 }
 0x8bd   :  { %v1630_v3 = vadd.f32 1e-05, %v1628_v2 }
 0x8bf   :  { %7377 = vrsqrt.f32 %v1630_v3 }
 0x8cc   :  { %v7378_v7 = vpop.eup %7377 }
 0x8cd   :  { %v1634_v8 = vmul.f32 %v7378_v7, %v1618_v32 }
 0x8cf   :  { %v1640_v16 = vmul.f32 %v1638_v6, %v1634_v8  ;;  %v6126_v6 = vld [vmem:[#allocation6] ss:$0 sm:$0xff] }
 0x8d1   :  { %v1646_v18 = vadd.f32 %v1644_v12, %v1640_v16 }
 0x8d3   :  { %v1705_v20 = vpack.c.bf16 %v1646_v18, %v1645_v17 }
 0x8d5   :  { %6783 = vmatmul.mubr.msk.bf16.vlgmr.msra.gmra.mxu0 %vm723_vm3, %v1705_v20 }
 0x8d6   :  { %6795 = vmatpush3.bf16.msra.mxu0 %v7243_v19  ;;  %6798 = vmatprep.mubr.msk.bf16.mxu0 %vm8213_vm0, %v8212_v0 }
 0x8d7   :  { %6796 = vmatprep.subr.bf16.mxu0 %v8212_v0 }
 0x8da   :  { %6797 = vmatpush3.bf16.msra.mxu0 %v7244_v21 }
 0x8db   :  { %6808 = vmatprep.subr.bf16.mxu0 %v8212_v0 }
 0x8dd   :  { %6799 = vmatmul.mubr.msk.bf16.vlgmr.msra.gmra.mxu0 %vm723_vm3, %v1768_v57 }
 0x8de   :  { %6812 = vmatprep.mubr.msk.bf16.mxu0 %vm8213_vm0, %v8212_v0 }
 0x900   :  { %v1824_v24 = vpop.f32.mrf.mxu1 }
 0x901   :  { %v1825_v26 = vadd.f32 %v6130_v10, %v1824_v24 }
 0x902   :  { %v6792_v27 = vpop.f32.mrf.mxu1 }
 0x903   :  { %v1912_v22 = vsel %vm723_vm3, %v1825_v26, -inf }
 0x904   :  { %1913 = vmax.xlane.f32.xlu0 %v1912_v22  ;;  %v1827_v23 = vpop.f32.mrf.mxu1 }
 0x905   :  { %v1828_v30 = vadd.f32 %v6130_v10, %v1827_v23 }
 0x906   :  { %v6793_v32 = vpop.f32.mrf.mxu1 }
 0x907   :  { %v1915_v28 = vsel %vm723_vm3, %v1828_v30, -inf }
 0x908   :  { %1916 = vmax.xlane.f32.xlu1 %v1915_v28 }
 0x98d   :  { %v1914_v29 = vpop.xlane.xlu0 %1913 }
 0x98e   :  { %v1918_v35 = vsub.f32 %v1825_v26, %v1914_v29 }
 0x990   :  { %v1920_v36 = vmul.f32 1.442695, %v1918_v35 }
 0x991   :  { %v1917_v37 = vpop.xlane.xlu1 %1916 }
 0x992   :  { %7379 = vpow2.f32 %v1920_v36  ;;  %v1919_v38 = vsub.f32 %v1828_v30, %v1917_v37 }
 0x994   :  { %v1922_v39 = vmul.f32 1.442695, %v1919_v38 }
 0x995   :  { %v1761_v41 = vpop.f32.mrf.mxu0 }
 0x996   :  { %7381 = vpow2.f32 %v1922_v39  ;;  %v1762_v7 = vadd.f32 %v6126_v6, %v1761_v41 }
 0x997   :  { %v6784_v43 = vpop.f32.mrf.mxu0 }
 0x998   :  { %v1890_v11 = vsel %vm723_vm3, %v1762_v7, -inf }
 0x999   :  { %v1764_v44 = vpop.f32.mrf.mxu0 }
 0x99a   :  { %v1765_v8 = vadd.f32 %v6126_v6, %v1764_v44 }
 0x99b   :  { %v6785_v45 = vpop.f32.mrf.mxu0 }
 0x99c   :  { %v1893_v12 = vsel %vm723_vm3, %v1765_v8, -inf }
 0x99d   :  { %v1883_v47 = vpop.f32.mrf.mxu0 }
 0x99e   :  { %v1884_v48 = vadd.f32 %v6134_v46, %v1883_v47 }
 0x99f   :  { %v7380_v49 = vpop.eup %7379  ;;  %v6800_v50 = vpop.f32.mrf.mxu0 }
 0x9a0   :  { %v1946_v51 = vpack.c.bf16 %v1884_v48, %v1884_v48  ;;  %v1924_v52 = vsel %vm723_vm3, %v7380_v49, 0.0 }
 0x9a1   :  { %v1886_v53 = vpop.f32.mrf.mxu0  ;;  %1925 = vadd.xlane.f32.xlu0 %v1924_v52 }
 0x9a2   :  { %v1972_v54 = vsel %vm1970_vm6, %v1946_v51, 0  ;;  %v1887_v55 = vadd.f32 %v6134_v46, %v1886_v53  ;;  %7108 = vmatprep.subr.msk.bf16.mxu1 %vm1970_vm6, %v1946_v51 }
 0x9a3   :  { %v7382_v56 = vpop.eup %7381  ;;  %v6801_v57 = vpop.f32.mrf.mxu0  ;;  %6803 = vmatpush3.bf16.msra.mxu1 %v1972_v54 }
 0x9a4   :  { %v2085_v59 = vpack.c.bf16 %v1887_v55, %v1887_v55  ;;  %v1927_v60 = vsel %vm723_vm3, %v7382_v56, 0.0 }
 0x9a5   :  { %1928 = vadd.xlane.f32.xlu1 %v1927_v60 }
 0x9a6   :  { %7109 = vmatprep.subr.msk.bf16.mxu1 %vm1970_vm6, %v2085_v59  ;;  %v2109_v19 = vsel %vm1970_vm6, %v2085_v59, 0 }
 0xa2a   :  { %v1926_v61 = vpop.xlane.xlu0 %1925 }
 0xa2b   :  { %7383 = vrcp.f32 %v1926_v61 }
 0xa2e   :  { %v1929_v62 = vpop.xlane.xlu1 %1928 }
 0xa2f   :  { %7385 = vrcp.f32 %v1929_v62 }
 0xa38   :  { %v7384_v63 = vpop.eup %7383 }
 0xa39   :  { %v1931_v1 = vmul.f32 %v7384_v63, %v7380_v49  ;;  %v6117_v63 = vld [vmem:[#allocation13] ss:$0 sm:$0xff] }
 0xa3b   :  { %v1945_v2 = vpack.c.bf16 %v1931_v1, %v1931_v1  ;;  %v1934_v41 = vsel %vm723_vm3, %v1931_v1, 0.0 }
 0xa3c   :  { %v7386_v3 = vpop.eup %7385  ;;  %v1935_v43 = vrot.slane %v1934_v41, 4 }
 0xa3d   :  { %1947 = vxpose.xlu0.c.b16.start.end [1/1] (short) (narrow) %v1945_v2, 32  ;;  %v1933_v4 = vmul.f32 %v7386_v3, %v7382_v56 }
 0xa3e   :  { %v1936_v45 = vadd.f32 %v1935_v43, %v1934_v41  ;;  %v8216_v43 = vmov 0  }
 0xa3f   :  { %v2084_v5 = vpack.c.bf16 %v1933_v4, %v1933_v4  ;;  %v2073_v44 = vsel %vm723_vm3, %v1933_v4, 0.0 }
 0xa40   :  { %v2074_v46 = vrot.slane %v2073_v44, 4  ;;  %v1937_v49 = vrot.slane %v1936_v45, 2 }
 0xa41   :  { %2086 = vxpose.xlu1.c.b16.start.end [1/1] (short) (narrow) %v2084_v5, 32  ;;  %v1580_v5 = vadd.f32 %v6117_v63, %v8737_v33 }
 0xa42   :  { %v2075_v48 = vadd.f32 %v2074_v46, %v2073_v44  ;;  %v1938_v52 = vadd.f32 %v1937_v49, %v1936_v45  ;;  %v2450_v46 = vld [vmem:[#allocation16] sm:$0x3] }
 0xa43   :  { %v1586_v33 = vsel %vm567_vm2, %v1580_v5, -inf }
 0xa44   :  { %v2076_v53 = vrot.slane %v2075_v48, 2  ;;  %v1939_v55 = vrot.slane %v1938_v52, 1 }
 0xa46   :  { %v2077_v56 = vadd.f32 %v2076_v53, %v2075_v48  ;;  %v1940_v61 = vadd.f32 %v1939_v55, %v1938_v52 }
 0xa48   :  { %v2078_v62 = vrot.slane %v2077_v56, 1 }
 0xa4e   :  { %1891 = vmax.xlane.f32.xlu0 %v1890_v11  ;;  %v2079_v11 = vadd.f32 %v2078_v62, %v2077_v56  ;;  %v8832_v62 = vld [vmem:[%s9595_s7 + $0x10] ss:$8 sps:$4 sm:$0xff]  }
 0xa52   :  { %1894 = vmax.xlane.f32.xlu1 %v1893_v12 }
 0xa9f   :  { %v1955_v16 = vpop.trf.xlu0 }
 0xaa0   :  { %6804 = vmatprep.mubr.msk.bf16.mxu1 %vm1963_vm7, %v1955_v16 }
 0xaa3   :  { %v1956_v17 = vpop.trf.xlu0  ;;  %v2094_v18 = vpop.trf.xlu1 }
 0xaa4   :  { %6805 = vmatmul.mubr.msk.bf16.vlgmr.msra.gmra.mxu1 %vm1963_vm7, %v1956_v17 }
 0xaa5   :  { %6817 = vmatpush3.bf16.msra.mxu1 %v2109_v19  ;;  %6818 = vmatprep.mubr.msk.bf16.mxu1 %vm1963_vm7, %v2094_v18  ;;  %v1583_v18 = vadd.f32 %v6117_v63, %v8746_v42  ;;  %v8840_v63 = vld [vmem:[%s9595_s7] ss:$8 sps:$4 sm:$0xff]  }
 0xaa6   :  { %6830 = vmatprep.subr.bf16.mxu1 %v8212_v0 }
 0xaa7   :  { %v2095_v20 = vpop.trf.xlu1 }
 0xaac   :  { %6819 = vmatmul.mubr.msk.bf16.vlgmr.msra.gmra.mxu1 %vm1963_vm7, %v2095_v20  ;;  %v1589_v20 = vsel %vm567_vm2, %v1583_v18, -inf }
 0xaad   :  { %6834 = vmatprep.mubr.msk.bf16.mxu1 %vm8213_vm0, %v8212_v0 }
 0xad7   :  { %v1892_v21 = vpop.xlane.xlu0 %1891 }
 0xad8   :  { %v1896_v10 = vsub.f32 %v1762_v7, %v1892_v21  ;;  %v7245_v21 = vld [vmem:[%s9594_s4 + $0x8] sm:$0xff]  }
 0xad9   :  { %6831 = vmatpush3.bf16.msra.mxu1 %v7245_v21 }
 0xada   :  { %v1898_v24 = vmul.f32 1.442695, %v1896_v10  ;;  %6832 = vmatprep.subr.bf16.mxu1 %v8212_v0  ;;  %v7246_v10 = vld [vmem:[%s9594_s4] sm:$0xff]  }
 0xadb   :  { %v1895_v26 = vpop.xlane.xlu1 %1894 }
 0xadc   :  { %7387 = vpow2.f32 %v1898_v24  ;;  %v1897_v27 = vsub.f32 %v1765_v8, %v1895_v26 }
 0xadd   :  { %6833 = vmatpush3.bf16.msra.mxu1 %v7246_v10  ;;  %v8858_v10 = vld [vmem:[%s9596_s10 + $0x78] sm:$0xff]  }
 0xade   :  { %v1900_v22 = vmul.f32 1.442695, %v1897_v27  ;;  %6838 = vmatprep.subr.bf16.mxu1 %v8212_v0 }
 0xae0   :  { %7389 = vpow2.f32 %v1900_v22 }
 0xae9   :  { %v7388_v23 = vpop.eup %7387 }
 0xaea   :  { %v1902_v30 = vsel %vm723_vm3, %v7388_v23, 0.0 }
 0xaeb   :  { %1903 = vadd.xlane.f32.xlu0 %v1902_v30 }
 0xaed   :  { %v7390_v32 = vpop.eup %7389 }
 0xaee   :  { %v1905_v28 = vsel %vm723_vm3, %v7390_v32, 0.0 }
 0xaef   :  { %1906 = vadd.xlane.f32.xlu1 %v1905_v28 }
 0xb64   :  { %v6806_v29 = vpop.f32.mrf.mxu1 }
 0xb66   :  { %v2008_v35 = vpop.f32.mrf.mxu1 }
 0xb68   :  { %v6807_v36 = vpop.f32.mrf.mxu1 }
 0xb69   :  { %v2025_v37 = vpack.c.bf16 %v6807_v36, %v6806_v29 }
 0xb6a   :  { %v2011_v38 = vpop.f32.mrf.mxu1 }
 0xb6b   :  { %6809 = vmatpush3.bf16.msra.mxu0 %v2025_v37  ;;  %v2024_v39 = vpack.c.bf16 %v2011_v38, %v2008_v35  ;;  %v8215_v37 = vmov 1  }
 0xb6c   :  { %6810 = vmatprep.subr.bf16.mxu0 %v8212_v0  ;;  %v6820_v51 = vpop.f32.mrf.mxu1  ;;  %7204 = vset.pattern.permute.xlu0 %v8215_v37 }
 0xb6d   :  { %7205 = vset.pattern.permute.xlu1 %v8215_v37 }
 0xb6e   :  { %v2145_v54 = vpop.f32.mrf.mxu1 }
 0xb6f   :  { %6811 = vmatpush3.bf16.msra.mxu0 %v2024_v39 }
 0xb70   :  { %6822 = vmatprep.subr.bf16.mxu0 %v8212_v0  ;;  %v6821_v60 = vpop.f32.mrf.mxu1 }
 0xb71   :  { %v2162_v4 = vpack.c.bf16 %v6821_v60, %v6820_v51  ;;  %v2452_v51 = vpack.c.bf16 %v2450_v46, %v2450_v46  ;;  %v2280_v46 = vld [vmem:[#allocation15] sm:$0x3] }
 0xb72   :  { %v2148_v6 = vpop.f32.mrf.mxu1 }
 0xb73   :  { %v2161_v16 = vpack.c.bf16 %v2148_v6, %v2145_v54 }
 0xb74   :  { %v1904_v47 = vpop.xlane.xlu0 %1903 }
 0xb75   :  { %7391 = vrcp.f32 %v1904_v47 }
 0xb78   :  { %v1907_v50 = vpop.xlane.xlu1 %1906 }
 0xb79   :  { %7393 = vrcp.f32 %v1907_v50 }
 0xb82   :  { %v7392_v57 = vpop.eup %7391 }
 0xb83   :  { %v8797_v59 = vmul.f32 %v7392_v57, %v7388_v23  ;;  %v2457_v57 = vsel %vm571_vm1, %v2452_v51, 0 }
 0xb85   :  { %v2023_v1 = vpack.c.bf16 %v8797_v59, %v8797_v59  ;;  %v1941_v2 = vmul.f32 %v1940_v61, %v8797_v59  ;;  %v8829_v61 = vld [vmem:[%s9595_s7 + $0x14] ss:$8 sps:$4 sm:$0xff]  }
 0xb86   :  { %v7394_v3 = vpop.eup %7393 }
 0xb87   :  { %6813 = vmatmul.mubr.msk.bf16.vlgmr.msra.gmra.mxu0 %vm723_vm3, %v2023_v1  ;;  %v1942_v7 = vsel %vm723_vm3, %v1941_v2, 0.0  ;;  %v1911_v8 = vmul.f32 %v7394_v3, %v7390_v32 }
 0xb88   :  { %6823 = vmatpush3.bf16.msra.mxu0 %v2162_v4  ;;  %1943 = vadd.xlane.f32.xlu0 %v1942_v7 }
 0xb89   :  { %6824 = vmatprep.subr.bf16.mxu0 %v8212_v0  ;;  %v2080_v12 = vmul.f32 %v2079_v11, %v1911_v8  ;;  %6826 = vmatprep.mubr.msk.bf16.mxu0 %vm8213_vm0, %v8212_v0  ;;  %v2160_v19 = vpack.c.bf16 %v1911_v8, %v1911_v8 }
 0xb8b   :  { %v2081_v17 = vsel %vm723_vm3, %v2080_v12, 0.0 }
 0xb8c   :  { %6825 = vmatpush3.bf16.msra.mxu0 %v2161_v16  ;;  %1587 = vmax.xlane.f32.xlu0 %v1586_v33 }
 0xb8d   :  { %2082 = vadd.xlane.f32.xlu1 %v2081_v17  ;;  %2327 = vmatprep.subr.bf16.mxu0 %v8829_v61 }
 0xb8f   :  { %6827 = vmatmul.mubr.msk.bf16.vlgmr.msra.gmra.mxu0 %vm723_vm3, %v2160_v19 }
 0xb90   :  { %2347 = vmatprep.mubr.bf16.mxu0 %v8216_v43  ;;  %2328 = vmatpush1.bf16.msra.mxu0 %v8832_v62 }
 0xb91   :  { %1590 = vmax.xlane.f32.xlu1 %v1589_v20 }
 0xc11   :  { %v1944_v24 = vpop.xlane.xlu0 %1943 }
 0xc15   :  { %v1588_v26 = vpop.xlane.xlu0 %1587 }
 0xc16   :  { %v1592_v42 = vsub.f32 %v1580_v5, %v1588_v26  ;;  %v2083_v27 = vpop.xlane.xlu1 %2082  ;;  %v8874_v26 = vld [vmem:[%s9596_s10 + $0x68] sm:$0xff]  }
 0xc18   :  { %v1594_v22 = vmul.f32 1.442695, %v1592_v42  ;;  %v8877_v42 = vld [vmem:[%s9596_s10 + $0x28] sm:$0xff]  }
 0xc1a   :  { %7395 = vpow2.f32 %v1594_v22  ;;  %v1591_v23 = vpop.xlane.xlu1 %1590  ;;  %v8885_v22 = vld [vmem:[%s9596_s10 + $0x20] sm:$0xff]  }
 0xc1b   :  { %v1593_v30 = vsub.f32 %v1583_v18, %v1591_v23  ;;  %v8890_v23 = vld [vmem:[%s9596_s10 + $0x58] sm:$0xff]  }
 0xc1d   :  { %v1596_v32 = vmul.f32 1.442695, %v1593_v30  ;;  %v8893_v30 = vld [vmem:[%s9596_s10 + $0x18] sm:$0xff]  }
 0xc1f   :  { %7397 = vpow2.f32 %v1596_v32  ;;  %v8898_v32 = vld [vmem:[%s9596_s10 + $0x50] sm:$0xff]  }
 0xc20   :  { %7399 = vrcp.f32 %v1944_v24  ;;  %v8861_v24 = vld [vmem:[%s9596_s10 + $0x38] sm:$0xff]  }
 0xc21   :  { %7401 = vrcp.f32 %v2083_v27  ;;  %v8882_v27 = vld [vmem:[%s9596_s10 + $0x60] sm:$0xff]  }
 0xc27   :  { %v7396_v28 = vpop.eup %7395 }
 0xc28   :  { %v1598_v29 = vsel %vm567_vm2, %v7396_v28, 0.0 }
 0xc29   :  { %1599 = vadd.xlane.f32.xlu0 %v1598_v29  ;;  %v8906_v29 = vld [vmem:[%s9596_s10 + $0x48] sm:$0xff]  }
 0xc2c   :  { %v7398_v35 = vpop.eup %7397 }
 0xc2d   :  { %v1601_v36 = vsel %vm567_vm2, %v7398_v35, 0.0  ;;  %v7400_v44 = vpop.eup %7399 }
 0xc2e   :  { %1602 = vadd.xlane.f32.xlu1 %v1601_v36  ;;  %v7402_v48 = vpop.eup %7401  ;;  %v8912_v36 = vld [vmem:[%s9596_s10 + $0x40] sm:$0xff]  }
 0xc47   :  { %v2063_v38 = vpop.f32.mrf.mxu0 }
 0xc48   :  { %v2071_v47 = vmul.f32 %v7400_v44, %v2063_v38  ;;  %v8917_v38 = vld [vmem:[%s9596_s10] sm:$0xff]  }
 0xc49   :  { %v6814_v39 = vpop.f32.mrf.mxu0 }
 0xc4a   :  { %v2072_v53 = vadd.f32 %v2071_v47, %v8797_v59  ;;  %v8837_v59 = vld [vmem:[%s9595_s7 + $0x4] ss:$8 sps:$4 sm:$0xff]   ;;  %v8927_v47 = vrot.slane %v2280_v46, %v8598_v14 }
 0xc4b   :  { %v2066_v41 = vpop.f32.mrf.mxu0  ;;  %2329 = vmatprep.subr.bf16.mxu0 %v8837_v59 }
 0xc4c   :  { %2330 = vmatpush1.bf16.msra.mxu0 %v8840_v63 }
 0xc4d   :  { %v6815_v45 = vpop.f32.mrf.mxu0  ;;  %6472 = vmatprep.subr.bf16.mxu0 %v8858_v10 }
 0xc4f   :  { %v2200_v49 = vpop.f32.mrf.mxu0 }
 0xc50   :  { %v2208_v50 = vmul.f32 %v7402_v48, %v2200_v49  ;;  %v8930_v48 = vrot.slane %v2280_v46, %v8601_v15 }
 0xc51   :  { %v6828_v52 = vpop.f32.mrf.mxu0 }
 0xc52   :  { %v2209_v54 = vadd.f32 %v2208_v50, %v1911_v8  ;;  %v6144_v8 = vld [vmem:[#allocation4] ss:$0 sm:$0xff] }
 0xc53   :  { %v2203_v55 = vpop.f32.mrf.mxu0 }
 0xc54   :  { %v2210_v56 = vpack.c.bf16 %v2209_v54, %v2072_v53 }
 0xc55   :  { %v6829_v60 = vpop.f32.mrf.mxu0 }
 0xc56   :  { %6835 = vmatmul.mubr.msk.bf16.vlgmr.msra.gmra.mxu1 %vm723_vm3, %v2210_v56 }
 0xc57   :  { %6839 = vmatpush3.bf16.msra.mxu1 %v2457_v57  ;;  %6840 = vmatprep.mubr.msk.bf16.mxu1 %vm8213_vm0, %v8212_v0 }
 0xc58   :  { %6844 = vmatprep.subr.bf16.mxu1 %v8212_v0 }
 0xcb2   :  { %v1600_v1 = vpop.xlane.xlu0 %1599 }
 0xcb3   :  { %7403 = vrcp.f32 %v1600_v1 }
 0xcb7   :  { %v1603_v2 = vpop.xlane.xlu1 %1602 }
 0xcb8   :  { %7405 = vrcp.f32 %v1603_v2 }
 0xcc0   :  { %v7404_v3 = vpop.eup %7403 }
 0xcc1   :  { %v1605_v4 = vmul.f32 %v7404_v3, %v7396_v28  ;;  %v8901_v28 = vld [vmem:[%s9596_s10 + $0x10] sm:$0xff]  }
 0xcc3   :  { %2407 = vperm.xlu0 %7204, %v1605_v4  }
 0xcc5   :  { %v7406_v5 = vpop.eup %7405 }
 0xcc6   :  { %v1607_v6 = vmul.f32 %v7406_v5, %v7398_v35  ;;  %v8909_v35 = vld [vmem:[%s9596_s10 + $0x8] sm:$0xff]  }
 0xcc8   :  { %2411 = vperm.xlu1 %7205, %v1607_v6   ;;  %v2451_v7 = vpack.c.bf16 %v1607_v6, %v1605_v4 }
 0xcca   :  { %6841 = vmatmul.mubr.msk.bf16.vlgmr.msra.gmra.mxu1 %vm567_vm2, %v2451_v7 }
 0xccb   :  { %6848 = vmatprep.mubr.msk.bf16.mxu1 %vm8213_vm0, %v8212_v0 }
 0xccc   :  { %7206 = vset.pattern.permute.xlu1 %v8216_v43 }
 0xccd   :  { %2396 = vperm.xlu1 %7206, %v1605_v4  }
 0xcd1   :  { %2401 = vperm.xlu1 %7206, %v1607_v6  }
 0xd16   :  { %v2266_v11 = vpop.f32.mrf.mxu1 }
 0xd17   :  { %v2267_v16 = vadd.f32 %v6144_v8, %v2266_v11 }
 0xd18   :  { %v6836_v12 = vpop.f32.mrf.mxu1 }
 0xd19   :  { %v8849_v19 = vadd.f32 %v2267_v16, %v8693_v25  ;;  %v8866_v25 = vld [vmem:[%s9596_s10 + $0x70] sm:$0xff]  }
 0xd1a   :  { %v2269_v33 = vpop.f32.mrf.mxu1 }
 0xd1b   :  { %v2270_v17 = vadd.f32 %v6144_v8, %v2269_v33 }
 0xd1c   :  { %v6837_v18 = vpop.f32.mrf.mxu1 }
 0xd1d   :  { %v8852_v20 = vadd.f32 %v2270_v17, %v8651_v34  ;;  %v8869_v34 = vld [vmem:[%s9596_s10 + $0x30] sm:$0xff]  }
 0xd1f   :  { %v2279_v21 = vpack.c.bf16 %v8852_v20, %v8849_v19 }
 0xd21   :  { %6152 = vmatmul.mubr.msk.bf16.vlgmr.msra.gmra.mxu0 %vm723_vm3, %v2279_v21 }
 0xd22   :  { %6473 = vmatpush3.bf16.msra.mxu0 %v8861_v24 }
 0xd23   :  { %6474 = vmatprep.subr.bf16.mxu0 %v8866_v25 }
 0xd26   :  { %6475 = vmatpush3.bf16.msra.mxu0 %v8869_v34 }
 0xd27   :  { %6476 = vmatprep.subr.bf16.mxu0 %v8874_v26 }
 0xd2a   :  { %6477 = vmatpush3.bf16.msra.mxu0 %v8877_v42 }
 0xd2b   :  { %6478 = vmatprep.subr.bf16.mxu0 %v8882_v27 }
 0xd2e   :  { %6479 = vmatpush3.bf16.msra.mxu0 %v8885_v22 }
 0xd2f   :  { %6480 = vmatprep.subr.bf16.mxu0 %v8890_v23 }
 0xd32   :  { %6481 = vmatpush3.bf16.msra.mxu0 %v8893_v30 }
 0xd33   :  { %6482 = vmatprep.subr.bf16.mxu0 %v8898_v32 }
 0xd36   :  { %6483 = vmatpush3.bf16.msra.mxu0 %v8901_v28 }
 0xd37   :  { %6484 = vmatprep.subr.bf16.mxu0 %v8906_v29 }
 0xd3a   :  { %6485 = vmatpush3.bf16.msra.mxu0 %v8909_v35 }
 0xd3b   :  { %6486 = vmatprep.subr.bf16.mxu0 %v8912_v36 }
 0xd3e   :  { %6487 = vmatpush3.bf16.msra.mxu0 %v8917_v38 }
 0xd3f   :  { %6874 = vmatprep.subr.bf16.mxu0 %v8212_v0 }
 0xd8a   :  { %v8920_v39 = vpop.f32.mrf.mxu1 }
 0xd8c   :  { %v6842_v41 = vpop.f32.mrf.mxu1 }
 0xd8e   :  { %v8924_v44 = vpop.f32.mrf.mxu1 }
 0xd90   :  { %v6843_v45 = vpop.f32.mrf.mxu1 }
 0xde1   :  { %v2349_v49 = vpop.f32.mrf.mxu0 }
 0xde2   :  { %v2350_v50 = vadd.f32 %v2349_v49, %v8927_v47  ;;  %v8936_v49 = vpop.permute.xlu1 %2411 }
 0xde3   :  { %v2351_v51 = vpop.f32.mrf.mxu0 }
 0xde4   :  { %v2358_v52 = vmul.f32 %v2350_v50, %v2350_v50  ;;  %v2352_v53 = vadd.f32 %v2351_v51, %v8930_v48 }
 0xde5   :  { %v2353_v54 = vpop.f32.mrf.mxu0 }
 0xde6   :  { %v2362_v55 = vmul.f32 %v2358_v52, %v2350_v50  ;;  %v2359_v56 = vmul.f32 %v2352_v53, %v2352_v53  ;;  %v2354_v57 = vadd.f32 %v2353_v54, %v8927_v47 }
 0xde7   :  { %v2355_v60 = vpop.f32.mrf.mxu0 }
 0xde8   :  { %v2366_v1 = vmul.f32 0.044715, %v2362_v55  ;;  %v2363_v2 = vmul.f32 %v2359_v56, %v2352_v53  ;;  %v2360_v3 = vmul.f32 %v2354_v57, %v2354_v57  ;;  %v2356_v4 = vadd.f32 %v2355_v60, %v8930_v48  ;;  %v8938_v60 = vpop.permute.xlu1 %2396 }
 0xdea   :  { %v2370_v5 = vadd.f32 %v2366_v1, %v2350_v50  ;;  %v2367_v6 = vmul.f32 0.044715, %v2363_v2  ;;  %v2364_v7 = vmul.f32 %v2360_v3, %v2354_v57  ;;  %v2361_v8 = vmul.f32 %v2356_v4, %v2356_v4 }
 0xdec   :  { %v2374_v11 = vmul.f32 0.7978846, %v2370_v5  ;;  %v2371_v12 = vadd.f32 %v2367_v6, %v2352_v53  ;;  %v2368_v16 = vmul.f32 0.044715, %v2364_v7  ;;  %v2365_v33 = vmul.f32 %v2361_v8, %v2356_v4 }
 0xdee   :  { %7407 = vtanh.f32 %v2374_v11  ;;  %v2375_v17 = vmul.f32 0.7978846, %v2371_v12  ;;  %v2372_v18 = vadd.f32 %v2368_v16, %v2354_v57  ;;  %v2369_v21 = vmul.f32 0.044715, %v2365_v33  ;;  %v8940_v33 = vpop.permute.xlu1 %2401 }
 0xdf0   :  { %7409 = vtanh.f32 %v2375_v17  ;;  %v2376_v41 = vmul.f32 0.7978846, %v2372_v18  ;;  %v2373_v45 = vadd.f32 %v2369_v21, %v2356_v4  ;;  %v8942_v18 = vpop.permute.xlu0 %2407 }
 0xdf2   :  { %7411 = vtanh.f32 %v2376_v41  ;;  %v2377_v46 = vmul.f32 0.7978846, %v2373_v45 }
 0xdf4   :  { %7413 = vtanh.f32 %v2377_v46 }
 0xdfb   :  { %v7408_v51 = vpop.eup %7407 }
 0xdfc   :  { %v2382_v54 = vadd.f32 1.0, %v7408_v51 }
 0xdfd   :  { %v7410_v52 = vpop.eup %7409 }
 0xdfe   :  { %v2383_v55 = vadd.f32 1.0, %v7410_v52  ;;  %v2386_v5 = vmul.f32 0.5, %v2382_v54 }
 0xdff   :  { %v7412_v56 = vpop.eup %7411 }
 0xe00   :  { %v2384_v1 = vadd.f32 1.0, %v7412_v56  ;;  %v2387_v2 = vmul.f32 0.5, %v2383_v55  ;;  %v2390_v16 = vmul.f32 %v2386_v5, %v2350_v50 }
 0xe01   :  { %v7414_v3 = vpop.eup %7413 }
 0xe02   :  { %v2388_v6 = vmul.f32 0.5, %v2384_v1  ;;  %v2385_v7 = vadd.f32 1.0, %v7414_v3  ;;  %v2391_v12 = vmul.f32 %v2387_v2, %v2352_v53  ;;  %v2404_v46 = vmul.f32 %v8938_v60, %v2390_v16 }
 0xe04   :  { %v2392_v8 = vmul.f32 %v2388_v6, %v2354_v57  ;;  %v2389_v11 = vmul.f32 0.5, %v2385_v7  ;;  %v2414_v41 = vmul.f32 %v8942_v18, %v2391_v12 }
 0xe06   :  { %v2393_v17 = vmul.f32 %v2389_v11, %v2356_v4  ;;  %v2405_v21 = vmul.f32 %v8940_v33, %v2392_v8 }
 0xe08   :  { %v2415_v45 = vmul.f32 %v8936_v49, %v2393_v17  ;;  %v2448_v52 = vpack.c.bf16 %v2405_v21, %v2404_v46 }
 0xe0a   :  { %v2449_v51 = vpack.c.bf16 %v2415_v45, %v2414_v41 }
 0xe0c   :  { %2628 = vmatprep.mubr.bf16.mxu0 %v2449_v51 }
 0xe0d   :  { %2629 = vmatmul.mubr.bf16.vlgmr.msra.gmra.mxu0 %v2448_v52 }
 0xe0e   :  { %6878 = vmatprep.mubr.msk.bf16.mxu0 %vm8213_vm0, %v8212_v0 }
 0xecd   :  { %v6488_v50 = vpop.f32.mrf.mxu0 }
 0xecf   :  { %v6489_v53 = vpop.f32.mrf.mxu0 }
 0xed0   :  { %v6490_v57 = vadd.f32 %v6489_v53, %v6488_v50 }
 0xed1   :  { %v6491_v4 = vpop.f32.mrf.mxu0 }
 0xed2   :  { %v2631_v54 = vadd.f32 %v6490_v57, %v8920_v39  ;;  %v8957_v57 = vsub.s32 2, %v8595_v13 }
 0xed3   :  { %v6492_v55 = vpop.f32.mrf.mxu0 }
 0xed4   :  { %v6493_v56 = vadd.f32 %v6492_v55, %v6491_v4  ;;  %v2637_v1 = vsel %vm723_vm3, %v2631_v54, 0.0  ;;  %v2666_v4 = vrot.slane %v8735_v31, %v8957_v57 }
 0xed5   :  { %2638 = vadd.xlane.f32.xlu1 %v2637_v1 }
 0xed6   :  { %v2634_v2 = vadd.f32 %v6493_v56, %v8924_v44  ;;  %v2672_v56 = vrot.slane %v8743_v40, %v8957_v57 }
 0xed8   :  { %v2640_v3 = vsel %vm723_vm3, %v2634_v2, 0.0 }
 0xed9   :  { %2641 = vadd.xlane.f32.xlu0 %v2640_v3 }
 0xf5e   :  { %v2639_v5 = vpop.xlane.xlu1 %2638 }
 0xf5f   :  { %v2643_v6 = vmul.f32 0.03125, %v2639_v5 }
 0xf61   :  { %v2645_v7 = vsub.f32 %v2631_v54, %v2643_v6 }
 0xf62   :  { %v2642_v8 = vpop.xlane.xlu0 %2641 }
 0xf63   :  { %v2644_v11 = vmul.f32 0.03125, %v2642_v8  ;;  %v2647_v12 = vmul.f32 %v2645_v7, %v2645_v7 }
 0xf65   :  { %v2646_v16 = vsub.f32 %v2634_v2, %v2644_v11  ;;  %v2649_v17 = vsel %vm723_vm3, %v2647_v12, 0.0 }
 0xf66   :  { %2650 = vadd.xlane.f32.xlu1 %v2649_v17 }
 0xf67   :  { %v2648_v21 = vmul.f32 %v2646_v16, %v2646_v16 }
 0xf69   :  { %v2652_v41 = vsel %vm723_vm3, %v2648_v21, 0.0 }
 0xf6a   :  { %2653 = vadd.xlane.f32.xlu1 %v2652_v41 }
 0xfef   :  { %v2651_v45 = vpop.xlane.xlu1 %2650 }
 0xff0   :  { %v2655_v46 = vmul.f32 0.03125, %v2651_v45 }
 0xff2   :  { %v2657_v51 = vadd.f32 1e-05, %v2655_v46 }
 0xff3   :  { %v2654_v52 = vpop.xlane.xlu1 %2653 }
 0xff4   :  { %7415 = vrsqrt.f32 %v2657_v51  ;;  %v2656_v50 = vmul.f32 0.03125, %v2654_v52 }
 0xff6   :  { %v2658_v53 = vadd.f32 1e-05, %v2656_v50 }
 0xff8   :  { %7417 = vrsqrt.f32 %v2658_v53  ;;  %v7269_v53 = vld [vmem:[%s9597_s14 + $0x8] sm:$0xff]  }
 0xff9   :  { %6845 = vmatpush3.bf16.msra.mxu1 %v7269_v53 }
 0xffa   :  { %6846 = vmatprep.subr.bf16.mxu1 %v8212_v0 }
0x1001   :  { %v7416_v54 = vpop.eup %7415 }
0x1002   :  { %v2661_v55 = vmul.f32 %v7416_v54, %v2645_v7 }
0x1004   :  { %v2667_v1 = vmul.f32 %v2666_v4, %v2661_v55 }
0x1005   :  { %v7418_v2 = vpop.eup %7417 }
0x1006   :  { %v2673_v3 = vadd.f32 %v2672_v56, %v2667_v1  ;;  %v2662_v5 = vmul.f32 %v7418_v2, %v2646_v16 }
0x1008   :  { %v8964_v6 = vadd.f32 %v2673_v3, %v8849_v19  ;;  %v2668_v8 = vmul.f32 %v2666_v4, %v2662_v5  ;;  %v7270_v4 = vld [vmem:[%s9597_s14] sm:$0xff]   ;;  %v8982_v5 = vsub.s32 3, %v8595_v13 }
0x1009   :  { %6847 = vmatpush3.bf16.msra.mxu1 %v7270_v4 }
0x100a   :  { %v2677_v11 = vsel %vm723_vm3, %v8964_v6, 0.0  ;;  %v2674_v12 = vadd.f32 %v2672_v56, %v2668_v8  ;;  %6852 = vmatprep.subr.bf16.mxu1 %v8212_v0 }
0x100b   :  { %2678 = vadd.xlane.f32.xlu1 %v2677_v11 }
0x100c   :  { %v8969_v17 = vadd.f32 %v2674_v12, %v8852_v20  ;;  %v2706_v12 = vrot.slane %v8735_v31, %v8982_v5  ;;  %v7273_v31 = vld [vmem:[%s9599_s11 + $0x8] sm:$0xff]  }
0x100e   :  { %v2680_v7 = vsel %vm723_vm3, %v8969_v17, 0.0 }
0x100f   :  { %2681 = vadd.xlane.f32.xlu1 %v2680_v7 }
0x1094   :  { %v2679_v21 = vpop.xlane.xlu1 %2678 }
0x1095   :  { %v2683_v16 = vmul.f32 0.03125, %v2679_v21 }
0x1097   :  { %v2685_v19 = vsub.f32 %v8964_v6, %v2683_v16 }
0x1098   :  { %v2682_v41 = vpop.xlane.xlu1 %2681 }
0x1099   :  { %v2684_v45 = vmul.f32 0.03125, %v2682_v41  ;;  %v2687_v46 = vmul.f32 %v2685_v19, %v2685_v19  ;;  %v2712_v41 = vrot.slane %v8743_v40, %v8982_v5  ;;  %v7274_v40 = vld [vmem:[%s9599_s11] sm:$0xff]  }
0x109b   :  { %v2686_v51 = vsub.f32 %v8969_v17, %v2684_v45  ;;  %v2689_v52 = vsel %vm723_vm3, %v2687_v46, 0.0 }
0x109c   :  { %2690 = vadd.xlane.f32.xlu0 %v2689_v52 }
0x109d   :  { %v2688_v50 = vmul.f32 %v2686_v51, %v2686_v51 }
0x109f   :  { %v2692_v20 = vsel %vm723_vm3, %v2688_v50, 0.0  ;;  %v7271_v50 = vld [vmem:[%s9598_s27 + $0x8] sm:$0xff]  }
0x10a0   :  { %2693 = vadd.xlane.f32.xlu1 %v2692_v20 }
0x1125   :  { %v2691_v54 = vpop.xlane.xlu0 %2690 }
0x1126   :  { %v2695_v55 = vmul.f32 0.03125, %v2691_v54 }
0x1128   :  { %v2697_v56 = vadd.f32 1e-05, %v2695_v55  ;;  %v6174_v55 = vld [vmem:[#allocation18] ss:$0 sm:$0xff] }
0x1129   :  { %v2694_v1 = vpop.xlane.xlu1 %2693 }
0x112a   :  { %7419 = vrsqrt.f32 %v2697_v56  ;;  %v2696_v2 = vmul.f32 0.03125, %v2694_v1 }
0x112c   :  { %v2698_v3 = vadd.f32 1e-05, %v2696_v2 }
0x112e   :  { %7421 = vrsqrt.f32 %v2698_v3 }
0x1137   :  { %v7420_v8 = vpop.eup %7419 }
0x1138   :  { %v2701_v11 = vmul.f32 %v7420_v8, %v2685_v19  ;;  %v7272_v19 = vld [vmem:[%s9598_s27] sm:$0xff]  }
0x113a   :  { %v2707_v16 = vmul.f32 %v2706_v12, %v2701_v11 }
0x113b   :  { %v7422_v7 = vpop.eup %7421 }
0x113c   :  { %v2702_v21 = vmul.f32 %v7422_v7, %v2686_v51  ;;  %v2713_v46 = vadd.f32 %v2712_v41, %v2707_v16  ;;  %v6178_v7 = vld [vmem:[#allocation22] ss:$0 sm:$0xff] }
0x113e   :  { %v2708_v45 = vmul.f32 %v2706_v12, %v2702_v21 }
0x1140   :  { %v2714_v52 = vadd.f32 %v2712_v41, %v2708_v45 }
0x1142   :  { %v2735_v20 = vpack.c.bf16 %v2714_v52, %v2713_v46 }
0x1144   :  { %6849 = vmatmul.mubr.msk.bf16.vlgmr.msra.gmra.mxu1 %vm723_vm3, %v2735_v20 }
0x1145   :  { %6853 = vmatpush3.bf16.msra.mxu1 %v7271_v50  ;;  %6856 = vmatprep.mubr.msk.bf16.mxu1 %vm8213_vm0, %v8212_v0 }
0x1146   :  { %6854 = vmatprep.subr.bf16.mxu1 %v8212_v0 }
0x1149   :  { %6855 = vmatpush3.bf16.msra.mxu1 %v7272_v19 }
0x114a   :  { %6860 = vmatprep.subr.bf16.mxu1 %v8212_v0 }
0x114c   :  { %6857 = vmatmul.mubr.msk.bf16.vlgmr.msra.gmra.mxu1 %vm723_vm3, %v2735_v20 }
0x114d   :  { %6861 = vmatpush3.bf16.msra.mxu1 %v7273_v31  ;;  %6864 = vmatprep.mubr.msk.bf16.mxu1 %vm8213_vm0, %v8212_v0 }
0x114e   :  { %6862 = vmatprep.subr.bf16.mxu1 %v8212_v0 }
0x1151   :  { %6863 = vmatpush3.bf16.msra.mxu1 %v7274_v40 }
0x1154   :  { %6865 = vmatmul.mubr.msk.bf16.vlgmr.msra.gmra.mxu1 %vm723_vm3, %v2735_v20 }
0x1204   :  { %v2791_v51 = vpop.f32.mrf.mxu1 }
0x1206   :  { %v6850_v53 = vpop.f32.mrf.mxu1 }
0x1208   :  { %v2794_v4 = vpop.f32.mrf.mxu1 }
0x120a   :  { %v6851_v54 = vpop.f32.mrf.mxu1 }
0x120c   :  { %v2850_v56 = vpop.f32.mrf.mxu1 }
0x120d   :  { %v2851_v1 = vadd.f32 %v6174_v55, %v2850_v56 }
0x120e   :  { %v6858_v2 = vpop.f32.mrf.mxu1 }
0x120f   :  { %v2938_v3 = vsel %vm723_vm3, %v2851_v1, -inf }
0x1210   :  { %2939 = vmax.xlane.f32.xlu0 %v2938_v3  ;;  %v2853_v8 = vpop.f32.mrf.mxu1 }
0x1211   :  { %v2854_v11 = vadd.f32 %v6174_v55, %v2853_v8 }
0x1212   :  { %v6859_v12 = vpop.f32.mrf.mxu1 }
0x1213   :  { %v2941_v21 = vsel %vm723_vm3, %v2854_v11, -inf }
0x1214   :  { %2942 = vmax.xlane.f32.xlu1 %v2941_v21  ;;  %v2909_v16 = vpop.f32.mrf.mxu1 }
0x1215   :  { %v2910_v41 = vadd.f32 %v6178_v7, %v2909_v16 }
0x1216   :  { %v6866_v45 = vpop.f32.mrf.mxu1 }
0x1217   :  { %v2972_v46 = vpack.c.bf16 %v2910_v41, %v2910_v41 }
0x1218   :  { %v2912_v52 = vpop.f32.mrf.mxu1 }
0x1219   :  { %v2996_v50 = vsel %vm1970_vm6, %v2972_v46, 0  ;;  %v2913_v20 = vadd.f32 %v6178_v7, %v2912_v52  ;;  %7110 = vmatprep.subr.msk.bf16.mxu1 %vm1970_vm6, %v2972_v46 }
0x121a   :  { %v6867_v19 = vpop.f32.mrf.mxu1  ;;  %6869 = vmatpush3.bf16.msra.mxu1 %v2996_v50  ;;  %v6170_v50 = vld [vmem:[#allocation21] ss:$0 sm:$0xff] }
0x121b   :  { %v3109_v31 = vpack.c.bf16 %v2913_v20, %v2913_v20  ;;  %v2792_v20 = vadd.f32 %v6170_v50, %v2791_v51  ;;  %v2795_v19 = vadd.f32 %v6170_v50, %v2794_v4 }
0x121d   :  { %7111 = vmatprep.subr.msk.bf16.mxu1 %vm1970_vm6, %v3109_v31 }
0x1299   :  { %v2940_v40 = vpop.xlane.xlu0 %2939 }
0x129a   :  { %v2944_v53 = vsub.f32 %v2851_v1, %v2940_v40  ;;  %v2916_v40 = vsel %vm723_vm3, %v2792_v20, -inf }
0x129c   :  { %v2946_v54 = vmul.f32 1.442695, %v2944_v53  ;;  %v2919_v53 = vsel %vm723_vm3, %v2795_v19, -inf }
0x129d   :  { %v2943_v55 = vpop.xlane.xlu1 %2942 }
0x129e   :  { %7423 = vpow2.f32 %v2946_v54  ;;  %v2945_v56 = vsub.f32 %v2854_v11, %v2943_v55 }
0x12a0   :  { %v2948_v2 = vmul.f32 1.442695, %v2945_v56 }
0x12a2   :  { %7425 = vpow2.f32 %v2948_v2  ;;  %v3133_v2 = vsel %vm1970_vm6, %v3109_v31, 0 }
0x12ab   :  { %v7424_v3 = vpop.eup %7423 }
0x12ac   :  { %v2950_v8 = vsel %vm723_vm3, %v7424_v3, 0.0 }
0x12ad   :  { %2951 = vadd.xlane.f32.xlu0 %v2950_v8 }
0x12af   :  { %v7426_v12 = vpop.eup %7425 }
0x12b0   :  { %v2953_v7 = vsel %vm723_vm3, %v7426_v12, 0.0 }
0x12b1   :  { %2954 = vadd.xlane.f32.xlu1 %v2953_v7 }
0x1336   :  { %v2952_v21 = vpop.xlane.xlu0 %2951 }
0x1337   :  { %7427 = vrcp.f32 %v2952_v21 }
0x133a   :  { %v2955_v16 = vpop.xlane.xlu1 %2954 }
0x133b   :  { %7429 = vrcp.f32 %v2955_v16 }
0x1344   :  { %v7428_v41 = vpop.eup %7427 }
0x1345   :  { %v2957_v1 = vmul.f32 %v7428_v41, %v7424_v3 }
0x1347   :  { %v2971_v45 = vpack.c.bf16 %v2957_v1, %v2957_v1 }
0x1348   :  { %v7430_v46 = vpop.eup %7429 }
0x1349   :  { %2973 = vxpose.xlu0.c.b16.start.end [1/1] (short) (narrow) %v2971_v45, 32  ;;  %v2959_v11 = vmul.f32 %v7430_v46, %v7426_v12 }
0x134b   :  { %v3108_v52 = vpack.c.bf16 %v2959_v11, %v2959_v11 }
0x134d   :  { %3110 = vxpose.xlu1.c.b16.start.end [1/1] (short) (narrow) %v3108_v52, 32 }
0x135a   :  { %2917 = vmax.xlane.f32.xlu0 %v2916_v40 }
0x135e   :  { %2920 = vmax.xlane.f32.xlu1 %v2919_v53 }
0x13ab   :  { %v2981_v54 = vpop.trf.xlu0 }
0x13ac   :  { %6870 = vmatprep.mubr.msk.bf16.mxu1 %vm1963_vm7, %v2981_v54 }
0x13af   :  { %v2982_v55 = vpop.trf.xlu0  ;;  %v3118_v56 = vpop.trf.xlu1 }
0x13b0   :  { %6871 = vmatmul.mubr.msk.bf16.vlgmr.msra.gmra.mxu1 %vm1963_vm7, %v2982_v55  ;;  %v3097_v55 = vsel %vm723_vm3, %v2959_v11, 0.0 }
0x13b1   :  { %6883 = vmatpush3.bf16.msra.mxu1 %v3133_v2  ;;  %6884 = vmatprep.mubr.msk.bf16.mxu1 %vm1963_vm7, %v3118_v56  ;;  %v3098_v2 = vrot.slane %v3097_v55, 4 }
0x13b2   :  { %6896 = vmatprep.subr.bf16.mxu1 %v8212_v0 }
0x13b3   :  { %v3119_v51 = vpop.trf.xlu1 }
0x13b8   :  { %6885 = vmatmul.mubr.msk.bf16.vlgmr.msra.gmra.mxu1 %vm1963_vm7, %v3119_v51 }
0x13b9   :  { %6900 = vmatprep.mubr.msk.bf16.mxu1 %vm8213_vm0, %v8212_v0 }
0x13e3   :  { %v2918_v4 = vpop.xlane.xlu0 %2917 }
0x13e4   :  { %v2922_v3 = vsub.f32 %v2792_v20, %v2918_v4 }
0x13e6   :  { %v2924_v8 = vmul.f32 1.442695, %v2922_v3  ;;  %v3099_v3 = vadd.f32 %v3098_v2, %v3097_v55 }
0x13e7   :  { %v2921_v12 = vpop.xlane.xlu1 %2920 }
0x13e8   :  { %7431 = vpow2.f32 %v2924_v8  ;;  %v2923_v7 = vsub.f32 %v2795_v19, %v2921_v12  ;;  %v2960_v19 = vsel %vm723_vm3, %v2957_v1, 0.0 }
0x13e9   :  { %v2961_v54 = vrot.slane %v2960_v19, 4 }
0x13ea   :  { %v2926_v31 = vmul.f32 1.442695, %v2923_v7 }
0x13eb   :  { %v2962_v56 = vadd.f32 %v2961_v54, %v2960_v19 }
0x13ec   :  { %7433 = vpow2.f32 %v2926_v31  ;;  %v3100_v31 = vrot.slane %v3099_v3, 2 }
0x13ed   :  { %v2963_v4 = vrot.slane %v2962_v56, 2 }
0x13ee   :  { %v3101_v1 = vadd.f32 %v3100_v31, %v3099_v3 }
0x13ef   :  { %v2964_v7 = vadd.f32 %v2963_v4, %v2962_v56 }
0x13f5   :  { %v7432_v21 = vpop.eup %7431 }
0x13f6   :  { %v2928_v16 = vsel %vm723_vm3, %v7432_v21, 0.0 }
0x13f7   :  { %2929 = vadd.xlane.f32.xlu0 %v2928_v16 }
0x13f9   :  { %v7434_v41 = vpop.eup %7433 }
0x13fa   :  { %v2931_v45 = vsel %vm723_vm3, %v7434_v41, 0.0 }
0x13fb   :  { %2932 = vadd.xlane.f32.xlu1 %v2931_v45  ;;  %v2965_v45 = vrot.slane %v2964_v7, 1 }
0x1470   :  { %v6872_v46 = vpop.f32.mrf.mxu1 }
0x1472   :  { %v3032_v52 = vpop.f32.mrf.mxu1 }
0x1474   :  { %v6873_v50 = vpop.f32.mrf.mxu1 }
0x1475   :  { %v3049_v40 = vpack.c.bf16 %v6873_v50, %v6872_v46 }
0x1476   :  { %v3035_v53 = vpop.f32.mrf.mxu1 }
0x1477   :  { %6875 = vmatpush3.bf16.msra.mxu0 %v3049_v40  ;;  %v3048_v20 = vpack.c.bf16 %v3035_v53, %v3032_v52  ;;  %v2966_v40 = vadd.f32 %v2965_v45, %v2964_v7  ;;  %v3102_v53 = vrot.slane %v3101_v1, 1 }
0x1478   :  { %6876 = vmatprep.subr.bf16.mxu0 %v8212_v0  ;;  %v6886_v12 = vpop.f32.mrf.mxu1 }
0x1479   :  { %v3103_v56 = vadd.f32 %v3102_v53, %v3101_v1 }
0x147a   :  { %v3169_v16 = vpop.f32.mrf.mxu1 }
0x147b   :  { %6877 = vmatpush3.bf16.msra.mxu0 %v3048_v20 }
0x147c   :  { %6888 = vmatprep.subr.bf16.mxu0 %v8212_v0  ;;  %v6887_v50 = vpop.f32.mrf.mxu1 }
0x147d   :  { %v3186_v54 = vpack.c.bf16 %v6887_v50, %v6886_v12  ;;  %v7276_v12 = vld [vmem:[%s9600_s13] sm:$0xff]  }
0x1480   :  { %v2930_v51 = vpop.xlane.xlu0 %2929 }
0x1481   :  { %7435 = vrcp.f32 %v2930_v51  ;;  %v3172_v51 = vpop.f32.mrf.mxu1 }
0x1482   :  { %v3185_v4 = vpack.c.bf16 %v3172_v51, %v3169_v16 }
0x1484   :  { %v2933_v8 = vpop.xlane.xlu1 %2932 }
0x1485   :  { %7437 = vrcp.f32 %v2933_v8 }
0x148e   :  { %v7436_v46 = vpop.eup %7435 }
0x148f   :  { %v2935_v52 = vmul.f32 %v7436_v46, %v7432_v21 }
0x1491   :  { %v3047_v11 = vpack.c.bf16 %v2935_v52, %v2935_v52  ;;  %v2967_v20 = vmul.f32 %v2966_v40, %v2935_v52 }
0x1492   :  { %v7438_v19 = vpop.eup %7437 }
0x1493   :  { %6879 = vmatmul.mubr.msk.bf16.vlgmr.msra.gmra.mxu0 %vm723_vm3, %v3047_v11  ;;  %v2968_v55 = vsel %vm723_vm3, %v2967_v20, 0.0  ;;  %v2937_v2 = vmul.f32 %v7438_v19, %v7434_v41  ;;  %v7275_v41 = vld [vmem:[%s9600_s13 + $0x8] sm:$0xff]  }
0x1494   :  { %6889 = vmatpush3.bf16.msra.mxu0 %v3186_v54  ;;  %2969 = vadd.xlane.f32.xlu0 %v2968_v55 }
0x1495   :  { %6890 = vmatprep.subr.bf16.mxu0 %v8212_v0  ;;  %v3104_v21 = vmul.f32 %v3103_v56, %v2937_v2  ;;  %6892 = vmatprep.mubr.msk.bf16.mxu0 %vm8213_vm0, %v8212_v0  ;;  %v3184_v8 = vpack.c.bf16 %v2937_v2, %v2937_v2 }
0x1496   :  { %6897 = vmatpush3.bf16.msra.mxu1 %v7275_v41 }
0x1497   :  { %v3105_v3 = vsel %vm723_vm3, %v3104_v21, 0.0  ;;  %6898 = vmatprep.subr.bf16.mxu1 %v8212_v0 }
0x1498   :  { %6891 = vmatpush3.bf16.msra.mxu0 %v3185_v4  ;;  %3106 = vadd.xlane.f32.xlu1 %v3105_v3 }
0x1499   :  { %3315 = vmatprep.subr.bf16.mxu0 %v8829_v61 }
0x149a   :  { %6899 = vmatpush3.bf16.msra.mxu1 %v7276_v12 }
0x149b   :  { %6893 = vmatmul.mubr.msk.bf16.vlgmr.msra.gmra.mxu0 %vm723_vm3, %v3184_v8  ;;  %6518 = vmatprep.subr.bf16.mxu1 %v8858_v10  ;;  %v6188_v10 = vld [vmem:[#allocation19] ss:$0 sm:$0xff] }
0x149c   :  { %3316 = vmatpush1.bf16.msra.mxu0 %v8832_v62  ;;  %3335 = vmatprep.mubr.bf16.mxu0 %v8216_v43 }
0x149d   :  { %3317 = vmatprep.subr.bf16.mxu0 %v8837_v59 }
0x14a0   :  { %3318 = vmatpush1.bf16.msra.mxu0 %v8840_v63 }
0x14a1   :  { %6904 = vmatprep.subr.bf16.mxu0 %v8212_v0 }
0x151d   :  { %v2970_v61 = vpop.xlane.xlu0 %2969 }
0x151e   :  { %7439 = vrcp.f32 %v2970_v61 }
0x1521   :  { %v3107_v7 = vpop.xlane.xlu1 %3106 }
0x1522   :  { %7441 = vrcp.f32 %v3107_v7 }
0x152b   :  { %v7440_v59 = vpop.eup %7439 }
0x152f   :  { %v7442_v1 = vpop.eup %7441 }
0x1553   :  { %v3087_v62 = vpop.f32.mrf.mxu0 }
0x1554   :  { %v3095_v63 = vmul.f32 %v7440_v59, %v3087_v62 }
0x1555   :  { %v6880_v31 = vpop.f32.mrf.mxu0 }
0x1556   :  { %v3096_v53 = vadd.f32 %v3095_v63, %v2935_v52 }
0x1557   :  { %v3090_v16 = vpop.f32.mrf.mxu0 }
0x1559   :  { %v6881_v45 = vpop.f32.mrf.mxu0 }
0x155b   :  { %v3224_v46 = vpop.f32.mrf.mxu0 }
0x155c   :  { %v3232_v50 = vmul.f32 %v7442_v1, %v3224_v46 }
0x155d   :  { %v6894_v40 = vpop.f32.mrf.mxu0 }
0x155e   :  { %v3233_v11 = vadd.f32 %v3232_v50, %v2937_v2 }
0x155f   :  { %v3227_v20 = vpop.f32.mrf.mxu0 }
0x1560   :  { %v3234_v19 = vpack.c.bf16 %v3233_v11, %v3096_v53 }
0x1561   :  { %v6895_v54 = vpop.f32.mrf.mxu0 }
0x1562   :  { %6901 = vmatmul.mubr.msk.bf16.vlgmr.msra.gmra.mxu1 %vm723_vm3, %v3234_v19 }
0x1563   :  { %6519 = vmatpush3.bf16.msra.mxu1 %v8861_v24 }
0x1564   :  { %6520 = vmatprep.subr.bf16.mxu1 %v8866_v25 }
0x1567   :  { %6521 = vmatpush3.bf16.msra.mxu1 %v8869_v34 }
0x1568   :  { %6522 = vmatprep.subr.bf16.mxu1 %v8874_v26 }
0x156b   :  { %6523 = vmatpush3.bf16.msra.mxu1 %v8877_v42 }
0x156c   :  { %6524 = vmatprep.subr.bf16.mxu1 %v8882_v27 }
0x156f   :  { %6525 = vmatpush3.bf16.msra.mxu1 %v8885_v22 }
0x1570   :  { %6526 = vmatprep.subr.bf16.mxu1 %v8890_v23 }
0x1573   :  { %6527 = vmatpush3.bf16.msra.mxu1 %v8893_v30 }
0x1574   :  { %6528 = vmatprep.subr.bf16.mxu1 %v8898_v32 }
0x1577   :  { %6529 = vmatpush3.bf16.msra.mxu1 %v8901_v28 }
0x1578   :  { %6530 = vmatprep.subr.bf16.mxu1 %v8906_v29 }
0x157b   :  { %6531 = vmatpush3.bf16.msra.mxu1 %v8909_v35 }
0x157c   :  { %6532 = vmatprep.subr.bf16.mxu1 %v8912_v36 }
0x157f   :  { %6533 = vmatpush3.bf16.msra.mxu1 %v8917_v38 }
0x1580   :  { %6930 = vmatprep.subr.bf16.mxu1 %v8212_v0 }
0x1622   :  { %v3290_v24 = vpop.f32.mrf.mxu1 }
0x1623   :  { %v3291_v34 = vadd.f32 %v6188_v10, %v3290_v24 }
0x1624   :  { %v6902_v25 = vpop.f32.mrf.mxu1 }
0x1625   :  { %v9060_v22 = vadd.f32 %v3291_v34, %v8964_v6 }
0x1626   :  { %v3293_v26 = vpop.f32.mrf.mxu1 }
0x1627   :  { %v3294_v42 = vadd.f32 %v6188_v10, %v3293_v26 }
0x1628   :  { %v6903_v27 = vpop.f32.mrf.mxu1 }
0x1629   :  { %v9063_v23 = vadd.f32 %v3294_v42, %v8969_v17 }
0x162b   :  { %v3299_v30 = vpack.c.bf16 %v9063_v23, %v9060_v22 }
0x162d   :  { %6192 = vmatmul.mubr.msk.bf16.vlgmr.msra.gmra.mxu0 %vm723_vm3, %v3299_v30 }
0x162e   :  { %6906 = vmatprep.mubr.msk.bf16.mxu0 %vm8213_vm0, %v8212_v0 }
0x16ed   :  { %v3337_v32 = vpop.f32.mrf.mxu0 }
0x16ee   :  { %v3338_v28 = vadd.f32 %v3337_v32, %v8927_v47 }
0x16ef   :  { %v3339_v29 = vpop.f32.mrf.mxu0 }
0x16f0   :  { %v3346_v35 = vmul.f32 %v3338_v28, %v3338_v28  ;;  %v3340_v36 = vadd.f32 %v3339_v29, %v8930_v48 }
0x16f1   :  { %v3341_v38 = vpop.f32.mrf.mxu0 }
0x16f2   :  { %v3350_v6 = vmul.f32 %v3346_v35, %v3338_v28  ;;  %v3347_v52 = vmul.f32 %v3340_v36, %v3340_v36  ;;  %v3342_v17 = vadd.f32 %v3341_v38, %v8927_v47 }
0x16f3   :  { %v3343_v51 = vpop.f32.mrf.mxu0 }
0x16f4   :  { %v3354_v55 = vmul.f32 0.044715, %v3350_v6  ;;  %v3351_v2 = vmul.f32 %v3347_v52, %v3340_v36  ;;  %v3348_v56 = vmul.f32 %v3342_v17, %v3342_v17  ;;  %v3344_v21 = vadd.f32 %v3343_v51, %v8930_v48 }
0x16f6   :  { %v3358_v4 = vadd.f32 %v3354_v55, %v3338_v28  ;;  %v3355_v3 = vmul.f32 0.044715, %v3351_v2  ;;  %v3352_v8 = vmul.f32 %v3348_v56, %v3342_v17  ;;  %v3349_v41 = vmul.f32 %v3344_v21, %v3344_v21 }
0x16f8   :  { %v3362_v12 = vmul.f32 0.7978846, %v3358_v4  ;;  %v3359_v61 = vadd.f32 %v3355_v3, %v3340_v36  ;;  %v3356_v7 = vmul.f32 0.044715, %v3352_v8  ;;  %v3353_v62 = vmul.f32 %v3349_v41, %v3344_v21 }
0x16fa   :  { %7443 = vtanh.f32 %v3362_v12  ;;  %v3363_v31 = vmul.f32 0.7978846, %v3359_v61  ;;  %v3360_v16 = vadd.f32 %v3356_v7, %v3342_v17  ;;  %v3357_v59 = vmul.f32 0.044715, %v3353_v62  ;;  %v3474_v61 = vld [vmem:[#allocation10 + $0x1] sm:$0x1] }
0x16fc   :  { %7445 = vtanh.f32 %v3363_v31  ;;  %v3364_v47 = vmul.f32 0.7978846, %v3360_v16  ;;  %v3361_v45 = vadd.f32 %v3357_v59, %v3344_v21 }
0x16fe   :  { %7447 = vtanh.f32 %v3364_v47  ;;  %v3365_v63 = vmul.f32 0.7978846, %v3361_v45  ;;  %v9093_v45 = vsub.s32 4, %v8595_v13 }
0x1700   :  { %7449 = vtanh.f32 %v3365_v63  ;;  %v7555_v63 = vld [vmem:[%s9590_s22] sm:$0x1f] }
0x1707   :  { %v7444_v1 = vpop.eup %7443 }
0x1708   :  { %v3370_v46 = vadd.f32 1.0, %v7444_v1  ;;  %v3458_v1 = vrot.slane %v7555_v63, %v9093_v45 }
0x1709   :  { %v7446_v48 = vpop.eup %7445 }
0x170a   :  { %v3371_v50 = vadd.f32 1.0, %v7446_v48  ;;  %v3374_v19 = vmul.f32 0.5, %v3370_v46  ;;  %v7556_v46 = vld [vmem:[%s9591_s20] sm:$0x1f] }
0x170b   :  { %v7448_v40 = vpop.eup %7447 }
0x170c   :  { %v3372_v53 = vadd.f32 1.0, %v7448_v40  ;;  %v3375_v11 = vmul.f32 0.5, %v3371_v50  ;;  %v3378_v26 = vmul.f32 %v3374_v19, %v3338_v28  ;;  %v3464_v50 = vrot.slane %v7556_v46, %v9093_v45 }
0x170d   :  { %v7450_v20 = vpop.eup %7449 }
0x170e   :  { %v3376_v54 = vmul.f32 0.5, %v3372_v53  ;;  %v3373_v10 = vadd.f32 1.0, %v7450_v20  ;;  %v3379_v34 = vmul.f32 %v3375_v11, %v3340_v36  ;;  %v3382_v29 = vmul.f32 %v3378_v26, %v8938_v60  ;;  %v7279_v26 = vld [vmem:[%s9587_s6 + $0x68] sm:$0xff]  }
0x1710   :  { %v3380_v24 = vmul.f32 %v3376_v54, %v3342_v17  ;;  %v3377_v25 = vmul.f32 0.5, %v3373_v10  ;;  %v3384_v30 = vmul.f32 %v3379_v34, %v8942_v18  ;;  %v7277_v34 = vld [vmem:[%s9587_s6 + $0x78] sm:$0xff]  }
0x1712   :  { %v3381_v42 = vmul.f32 %v3377_v25, %v3344_v21  ;;  %v3383_v27 = vmul.f32 %v3380_v24, %v8940_v33 }
0x1714   :  { %v3385_v32 = vmul.f32 %v3381_v42, %v8936_v49  ;;  %v3386_v38 = vpack.c.bf16 %v3383_v27, %v3382_v29  ;;  %v7280_v42 = vld [vmem:[%s9587_s6 + $0x60] sm:$0xff]   ;;  %v7282_v27 = vld [vmem:[%s9587_s6 + $0x50] sm:$0xff]   ;;  %v6195_v29 = vld [vmem:[#allocation9 + $0x1] ss:$0 sm:$0xff] }
0x1716   :  { %v3387_v35 = vpack.c.bf16 %v3385_v32, %v3384_v30  ;;  %v7283_v30 = vld [vmem:[%s9587_s6 + $0x48] sm:$0xff]   ;;  %v7284_v32 = vld [vmem:[%s9587_s6 + $0x40] sm:$0xff]  }
0x1718   :  { %3420 = vmatprep.mubr.bf16.mxu1 %v3387_v35 }
0x1719   :  { %3421 = vmatmul.mubr.bf16.vlgmr.msra.gmra.mxu1 %v3386_v38 }
0x171a   :  { %6946 = vmatprep.mubr.msk.bf16.mxu1 %vm8213_vm0, %v8212_v0 }
0x17d9   :  { %v6534_v6 = vpop.f32.mrf.mxu1 }
0x17db   :  { %v6535_v52 = vpop.f32.mrf.mxu1 }
0x17dc   :  { %v6536_v36 = vadd.f32 %v6535_v52, %v6534_v6 }
0x17dd   :  { %v6537_v28 = vpop.f32.mrf.mxu1 }
0x17de   :  { %v3423_v17 = vadd.f32 %v6536_v36, %v8920_v39 }
0x17df   :  { %v6538_v33 = vpop.f32.mrf.mxu1 }
0x17e0   :  { %v6539_v51 = vadd.f32 %v6538_v33, %v6537_v28  ;;  %v3429_v18 = vsel %vm723_vm3, %v3423_v17, 0.0 }
0x17e1   :  { %3430 = vadd.xlane.f32.xlu0 %v3429_v18 }
0x17e2   :  { %v3426_v49 = vadd.f32 %v6539_v51, %v8924_v44  ;;  %v3484_v44 = vsel %vm571_vm1, %v3474_v61, 0 }
0x17e3   :  { %6905 = vmatpush3.bf16.msra.mxu0 %v3484_v44 }
0x17e4   :  { %v3432_v60 = vsel %vm723_vm3, %v3426_v49, 0.0  ;;  %6910 = vmatprep.subr.bf16.mxu0 %v8212_v0 }
0x17e5   :  { %3433 = vadd.xlane.f32.xlu1 %v3432_v60 }
0x17e6   :  { %6907 = vmatmul.mubr.msk.bf16.vlgmr.msra.gmra.mxu0 %vm567_vm2, %v8580_v9 }
0x17e7   :  { %6926 = vmatprep.mubr.msk.bf16.mxu0 %vm8213_vm0, %v8212_v0  ;;  %6911 = vmatpush3.bf16.msra.mxu0 %v7277_v34  ;;  %v7298_v34 = vld [vmem:[%s9588_s2 + $0x40] sm:$0xff]  }
0x17e8   :  { %6912 = vmatprep.subr.bf16.mxu0 %v8212_v0 }
0x186a   :  { %v3431_v55 = vpop.xlane.xlu0 %3430 }
0x186b   :  { %v3435_v2 = vmul.f32 0.03125, %v3431_v55 }
0x186d   :  { %v3437_v56 = vsub.f32 %v3423_v17, %v3435_v2 }
0x186e   :  { %v3434_v21 = vpop.xlane.xlu1 %3433 }
0x186f   :  { %v3436_v4 = vmul.f32 0.03125, %v3434_v21  ;;  %v3439_v3 = vmul.f32 %v3437_v56, %v3437_v56 }
0x1871   :  { %v3438_v8 = vsub.f32 %v3426_v49, %v3436_v4  ;;  %v3441_v41 = vsel %vm723_vm3, %v3439_v3, 0.0 }
0x1872   :  { %3442 = vadd.xlane.f32.xlu0 %v3441_v41 }
0x1873   :  { %v3440_v39 = vmul.f32 %v3438_v8, %v3438_v8 }
0x1875   :  { %v3444_v12 = vsel %vm723_vm3, %v3440_v39, 0.0 }
0x1876   :  { %3445 = vadd.xlane.f32.xlu1 %v3444_v12 }
0x18a6   :  { %v3520_v35 = vpop.f32.mrf.mxu0 }
0x18a7   :  { %v3521_v38 = vadd.f32 %v6195_v29, %v3520_v35 }
0x18a8   :  { %v6908_v6 = vpop.f32.mrf.mxu0 }
0x18a9   :  { %v3527_v52 = vmul.f32 %v3521_v38, %v3521_v38  ;;  %v9151_v6 = vld [vmem:[%s9590_s22 + $0x8] sm:$0x1f] }
0x18aa   :  { %v3523_v36 = vpop.f32.mrf.mxu0 }
0x18ab   :  { %v3529_v28 = vmul.f32 %v3527_v52, %v3521_v38  ;;  %v3524_v17 = vadd.f32 %v6195_v29, %v3523_v36  ;;  %v3844_v52 = vrot.slane %v9151_v6, %v8598_v14 }
0x18ac   :  { %v6909_v33 = vpop.f32.mrf.mxu0 }
0x18ad   :  { %v3531_v51 = vmul.f32 0.044715, %v3529_v28  ;;  %v3528_v18 = vmul.f32 %v3524_v17, %v3524_v17 }
0x18af   :  { %v3533_v49 = vadd.f32 %v3531_v51, %v3521_v38  ;;  %v3530_v60 = vmul.f32 %v3528_v18, %v3524_v17  ;;  %v9156_v51 = vld [vmem:[%s9591_s20 + $0x8] sm:$0x1f] }
0x18b0   :  { %v3850_v18 = vrot.slane %v9156_v51, %v8598_v14 }
0x18b1   :  { %v3535_v55 = vmul.f32 0.7978846, %v3533_v49  ;;  %v3532_v2 = vmul.f32 0.044715, %v3530_v60 }
0x18fb   :  { %v3443_v7 = vpop.xlane.xlu0 %3442 }
0x18fc   :  { %v3447_v62 = vmul.f32 0.03125, %v3443_v7 }
0x18fe   :  { %v3449_v31 = vadd.f32 1e-05, %v3447_v62 }
0x18ff   :  { %v3446_v16 = vpop.xlane.xlu1 %3445 }
0x1900   :  { %7451 = vrsqrt.f32 %v3449_v31  ;;  %v3448_v59 = vmul.f32 0.03125, %v3446_v16 }
0x1902   :  { %v3450_v47 = vadd.f32 1e-05, %v3448_v59 }
0x1904   :  { %7453 = vrsqrt.f32 %v3450_v47 }
0x1905   :  { %7455 = vtanh.f32 %v3535_v55 }
0x190d   :  { %v7452_v48 = vpop.eup %7451 }
0x190e   :  { %v3453_v9 = vmul.f32 %v7452_v48, %v3437_v56  ;;  %v3534_v56 = vadd.f32 %v3532_v2, %v3524_v17 }
0x1910   :  { %v3459_v40 = vmul.f32 %v3458_v1, %v3453_v9  ;;  %v3536_v21 = vmul.f32 0.7978846, %v3534_v56 }
0x1911   :  { %v7454_v53 = vpop.eup %7453 }
0x1912   :  { %v3465_v11 = vadd.f32 %v3464_v50, %v3459_v40  ;;  %v3454_v20 = vmul.f32 %v7454_v53, %v3438_v8  ;;  %7457 = vtanh.f32 %v3536_v21  ;;  %v7456_v4 = vpop.eup %7455  ;;  %v7286_v40 = vld [vmem:[%s9592_s28 + $0x10] sm:$0xff]   ;;  %v7291_v53 = vld [vmem:[%s9588_s2 + $0x78] sm:$0xff]  }
0x1913   :  { %v3539_v3 = vadd.f32 1.0, %v7456_v4  ;;  %6931 = vmatpush3.bf16.msra.mxu1 %v7291_v53 }
0x1914   :  { %v9100_v19 = vadd.f32 %v3465_v11, %v9060_v22  ;;  %v3460_v13 = vmul.f32 %v3458_v1, %v3454_v20  ;;  %v7278_v22 = vld [vmem:[%s9587_s6 + $0x70] sm:$0xff]   ;;  %6932 = vmatprep.subr.bf16.mxu1 %v8212_v0  ;;  %v7293_v20 = vld [vmem:[%s9588_s2 + $0x68] sm:$0xff]  }
0x1915   :  { %6913 = vmatpush3.bf16.msra.mxu0 %v7278_v22  ;;  %v3541_v8 = vmul.f32 0.5, %v3539_v3  ;;  %v7292_v11 = vld [vmem:[%s9588_s2 + $0x70] sm:$0xff]  }
0x1916   :  { %v3815_v54 = vsel %vm723_vm3, %v9100_v19, 0.0  ;;  %v3466_v10 = vadd.f32 %v3464_v50, %v3460_v13  ;;  %6914 = vmatprep.subr.bf16.mxu0 %v8212_v0  ;;  %v7285_v50 = vld [vmem:[%s9592_s28 + $0x18] sm:$0xff]   ;;  %v7294_v13 = vld [vmem:[%s9588_s2 + $0x60] sm:$0xff]  }
0x1917   :  { %3816 = vadd.xlane.f32.xlu0 %v3815_v54  ;;  %v3543_v12 = vmul.f32 %v3541_v8, %v3521_v38  ;;  %6933 = vmatpush3.bf16.msra.mxu1 %v7292_v11  ;;  %v7295_v54 = vld [vmem:[%s9588_s2 + $0x58] sm:$0xff]  }
0x1918   :  { %v9105_v24 = vadd.f32 %v3466_v10, %v9063_v23  ;;  %v7281_v23 = vld [vmem:[%s9587_s6 + $0x58] sm:$0xff]   ;;  %6934 = vmatprep.subr.bf16.mxu1 %v8212_v0  ;;  %v7296_v10 = vld [vmem:[%s9588_s2 + $0x50] sm:$0xff]  }
0x1919   :  { %6915 = vmatpush3.bf16.msra.mxu0 %v7279_v26 }
0x191a   :  { %v3818_v25 = vsel %vm723_vm3, %v9105_v24, 0.0  ;;  %6916 = vmatprep.subr.bf16.mxu0 %v8212_v0 }
0x191b   :  { %3819 = vadd.xlane.f32.xlu1 %v3818_v25  ;;  %6935 = vmatpush3.bf16.msra.mxu1 %v7293_v20  ;;  %v7297_v25 = vld [vmem:[%s9588_s2 + $0x48] sm:$0xff]  }
0x191c   :  { %6936 = vmatprep.subr.bf16.mxu1 %v8212_v0 }
0x191d   :  { %6917 = vmatpush3.bf16.msra.mxu0 %v7280_v42 }
0x191e   :  { %6918 = vmatprep.subr.bf16.mxu0 %v8212_v0 }
0x191f   :  { %v7458_v41 = vpop.eup %7457  ;;  %6937 = vmatpush3.bf16.msra.mxu1 %v7294_v13 }
0x1920   :  { %v3540_v39 = vadd.f32 1.0, %v7458_v41  ;;  %6938 = vmatprep.subr.bf16.mxu1 %v8212_v0 }
0x1921   :  { %6919 = vmatpush3.bf16.msra.mxu0 %v7281_v23 }
0x1922   :  { %6920 = vmatprep.subr.bf16.mxu0 %v8212_v0  ;;  %v3542_v61 = vmul.f32 0.5, %v3540_v39 }
0x1923   :  { %6939 = vmatpush3.bf16.msra.mxu1 %v7295_v54 }
0x1924   :  { %v3544_v44 = vmul.f32 %v3542_v61, %v3524_v17  ;;  %6940 = vmatprep.subr.bf16.mxu1 %v8212_v0 }
0x1925   :  { %6921 = vmatpush3.bf16.msra.mxu0 %v7282_v27 }
0x1926   :  { %6922 = vmatprep.subr.bf16.mxu0 %v8212_v0  ;;  %v3562_v7 = vpack.c.bf16 %v3544_v44, %v3543_v12  ;;  %v7287_v44 = vld [vmem:[%s9589_s5 + $0x18] sm:$0xff]  }
0x1927   :  { %6941 = vmatpush3.bf16.msra.mxu1 %v7296_v10 }
0x1928   :  { %6942 = vmatprep.subr.bf16.mxu1 %v8212_v0 }
0x1929   :  { %6923 = vmatpush3.bf16.msra.mxu0 %v7283_v30 }
0x192a   :  { %6924 = vmatprep.subr.bf16.mxu0 %v8212_v0 }
0x192b   :  { %6943 = vmatpush3.bf16.msra.mxu1 %v7297_v25 }
0x192c   :  { %6944 = vmatprep.subr.bf16.mxu1 %v8212_v0 }
0x192d   :  { %6925 = vmatpush3.bf16.msra.mxu0 %v7284_v32  ;;  %v6213_v32 = vld [vmem:[#allocation12 + $0x1] ss:$0 sm:$0xff] }
0x192e   :  { %6950 = vmatprep.subr.bf16.mxu0 %v8212_v0 }
0x192f   :  { %6945 = vmatpush3.bf16.msra.mxu1 %v7298_v34 }
0x1930   :  { %6927 = vmatmul.mubr.bf16.vlgmr.msra.gmra.mxu0 %v3562_v7 }
0x1931   :  { %6954 = vmatprep.mubr.msk.bf16.mxu0 %vm8213_vm0, %v8212_v0  ;;  %6951 = vmatpush3.bf16.msra.mxu0 %v7285_v50 }
0x1932   :  { %6952 = vmatprep.subr.bf16.mxu0 %v8212_v0 }
0x1935   :  { %6953 = vmatpush3.bf16.msra.mxu0 %v7286_v40 }
0x1936   :  { %6958 = vmatprep.subr.bf16.mxu0 %v8212_v0 }
0x19a0   :  { %v3817_v62 = vpop.xlane.xlu0 %3816 }
0x19a1   :  { %v3821_v31 = vmul.f32 0.03125, %v3817_v62 }
0x19a3   :  { %v3823_v16 = vsub.f32 %v9100_v19, %v3821_v31 }
0x19a4   :  { %v3820_v59 = vpop.xlane.xlu1 %3819 }
0x19a5   :  { %v3822_v47 = vmul.f32 0.03125, %v3820_v59  ;;  %v3825_v63 = vmul.f32 %v3823_v16, %v3823_v16  ;;  %v7288_v59 = vld [vmem:[%s9589_s5 + $0x10] sm:$0xff]  }
0x19a7   :  { %v3824_v1 = vsub.f32 %v9105_v24, %v3822_v47  ;;  %v3827_v48 = vsel %vm723_vm3, %v3825_v63, 0.0  ;;  %v7289_v63 = vld [vmem:[%s9593_s1 + $0x18] sm:$0xff]  }
0x19a8   :  { %3828 = vadd.xlane.f32.xlu0 %v3827_v48 }
0x19a9   :  { %v3826_v9 = vmul.f32 %v3824_v1, %v3824_v1 }
0x19ab   :  { %v3830_v46 = vsel %vm723_vm3, %v3826_v9, 0.0 }
0x19ac   :  { %3831 = vadd.xlane.f32.xlu1 %v3830_v46 }
0x19f0   :  { %v3653_v35 = vpop.f32.mrf.mxu0 }
0x19f1   :  { %v3654_v36 = vadd.f32 %v6213_v32, %v3653_v35 }
0x19f2   :  { %v6928_v28 = vpop.f32.mrf.mxu0 }
0x19f3   :  { %v3660_v17 = vmul.f32 %v3654_v36, %v3654_v36 }
0x19f4   :  { %v3656_v49 = vpop.f32.mrf.mxu0 }
0x19f5   :  { %v3662_v2 = vmul.f32 %v3660_v17, %v3654_v36  ;;  %v3657_v56 = vadd.f32 %v6213_v32, %v3656_v49 }
0x19f6   :  { %v6929_v21 = vpop.f32.mrf.mxu0 }
0x19f7   :  { %v3664_v3 = vmul.f32 0.044715, %v3662_v2  ;;  %v3661_v8 = vmul.f32 %v3657_v56, %v3657_v56 }
0x19f9   :  { %v3666_v12 = vadd.f32 %v3664_v3, %v3654_v36  ;;  %v3663_v61 = vmul.f32 %v3661_v8, %v3657_v56 }
0x19fb   :  { %v3668_v62 = vmul.f32 0.7978846, %v3666_v12  ;;  %v3665_v31 = vmul.f32 0.044715, %v3663_v61 }
0x1a31   :  { %v3829_v22 = vpop.xlane.xlu0 %3828 }
0x1a32   :  { %v3833_v26 = vmul.f32 0.03125, %v3829_v22  ;;  %v6267_v22 = vld [vmem:[#allocation2 + $0x1] ss:$0 sm:$0xff] }
0x1a34   :  { %v3835_v42 = vadd.f32 1e-05, %v3833_v26 }
0x1a35   :  { %v3832_v23 = vpop.xlane.xlu1 %3831 }
0x1a36   :  { %7459 = vrsqrt.f32 %v3835_v42  ;;  %v3834_v27 = vmul.f32 0.03125, %v3832_v23 }
0x1a38   :  { %v3836_v30 = vadd.f32 1e-05, %v3834_v27 }
0x1a3a   :  { %7461 = vrsqrt.f32 %v3836_v30 }
0x1a3b   :  { %7463 = vtanh.f32 %v3668_v62 }
0x1a43   :  { %v7460_v29 = vpop.eup %7459 }
0x1a44   :  { %v3839_v38 = vmul.f32 %v7460_v29, %v3823_v16  ;;  %v3667_v16 = vadd.f32 %v3665_v31, %v3657_v56  ;;  %v6271_v29 = vld [vmem:[#allocation7 + $0x1] ss:$0 sm:$0xff] }
0x1a46   :  { %v3845_v55 = vmul.f32 %v3844_v52, %v3839_v38  ;;  %v3669_v47 = vmul.f32 0.7978846, %v3667_v16 }
0x1a47   :  { %v7462_v33 = vpop.eup %7461 }
0x1a48   :  { %v3840_v60 = vmul.f32 %v7462_v33, %v3824_v1  ;;  %v3851_v41 = vadd.f32 %v3850_v18, %v3845_v55  ;;  %7465 = vtanh.f32 %v3669_v47  ;;  %v7290_v1 = vld [vmem:[%s9593_s1 + $0x10] sm:$0xff]   ;;  %v7464_v48 = vpop.eup %7463 }
0x1a49   :  { %v3672_v9 = vadd.f32 1.0, %v7464_v48 }
0x1a4a   :  { %v3846_v4 = vmul.f32 %v3844_v52, %v3840_v60 }
0x1a4b   :  { %v3674_v46 = vmul.f32 0.5, %v3672_v9 }
0x1a4c   :  { %v3852_v39 = vadd.f32 %v3850_v18, %v3846_v4 }
0x1a4d   :  { %v3676_v53 = vmul.f32 %v3674_v46, %v3654_v36  ;;  %v6263_v46 = vld [vmem:[#allocation6 + $0x1] ss:$0 sm:$0xff] }
0x1a4e   :  { %v3893_v7 = vpack.c.bf16 %v3852_v39, %v3851_v41 }
0x1a50   :  { %6955 = vmatmul.mubr.msk.bf16.vlgmr.msra.gmra.mxu0 %vm723_vm3, %v3893_v7 }
0x1a51   :  { %6959 = vmatpush3.bf16.msra.mxu0 %v7287_v44  ;;  %6962 = vmatprep.mubr.msk.bf16.mxu0 %vm8213_vm0, %v8212_v0 }
0x1a52   :  { %6960 = vmatprep.subr.bf16.mxu0 %v8212_v0 }
0x1a55   :  { %6961 = vmatpush3.bf16.msra.mxu0 %v7288_v59  ;;  %v7466_v50 = vpop.eup %7465 }
0x1a56   :  { %6966 = vmatprep.subr.bf16.mxu0 %v8212_v0  ;;  %v3673_v40 = vadd.f32 1.0, %v7466_v50 }
0x1a58   :  { %6963 = vmatmul.mubr.msk.bf16.vlgmr.msra.gmra.mxu0 %vm723_vm3, %v8752_v58  ;;  %v3675_v11 = vmul.f32 0.5, %v3673_v40 }
0x1a59   :  { %6967 = vmatpush3.bf16.msra.mxu0 %v7289_v63  ;;  %6970 = vmatprep.mubr.msk.bf16.mxu0 %vm8213_vm0, %v8212_v0 }
0x1a5a   :  { %6968 = vmatprep.subr.bf16.mxu0 %v8212_v0  ;;  %v3677_v20 = vmul.f32 %v3675_v11, %v3657_v56 }
0x1a5c   :  { %v3695_v13 = vpack.c.bf16 %v3677_v20, %v3676_v53 }
0x1a5d   :  { %6969 = vmatpush3.bf16.msra.mxu0 %v7290_v1 }
0x1a5e   :  { %6980 = vmatprep.subr.bf16.mxu0 %v8212_v0  ;;  %6947 = vmatmul.mubr.bf16.vlgmr.msra.gmra.mxu1 %v3695_v13 }
0x1a60   :  { %6971 = vmatmul.mubr.msk.bf16.vlgmr.msra.gmra.mxu0 %vm723_vm3, %v8752_v58 }
0x1a61   :  { %6984 = vmatprep.mubr.msk.bf16.mxu0 %vm8213_vm0, %v8212_v0 }
0x1b10   :  { %v3949_v54 = vpop.f32.mrf.mxu0 }
0x1b11   :  { %v3950_v50 = vadd.f32 %v6263_v46, %v3949_v54 }
0x1b12   :  { %v6956_v10 = vpop.f32.mrf.mxu0 }
0x1b13   :  { %v4078_v53 = vsel %vm723_vm3, %v3950_v50, -inf }
0x1b14   :  { %v3952_v25 = vpop.f32.mrf.mxu0 }
0x1b15   :  { %v3953_v40 = vadd.f32 %v6263_v46, %v3952_v25 }
0x1b16   :  { %v6957_v34 = vpop.f32.mrf.mxu0 }
0x1b17   :  { %v4081_v11 = vsel %vm723_vm3, %v3953_v40, -inf }
0x1b18   :  { %v4012_v26 = vpop.f32.mrf.mxu0 }
0x1b19   :  { %v4013_v42 = vadd.f32 %v6267_v22, %v4012_v26 }
0x1b1a   :  { %v6964_v23 = vpop.f32.mrf.mxu0 }
0x1b1b   :  { %v4100_v58 = vsel %vm723_vm3, %v4013_v42, -inf }
0x1b1c   :  { %4101 = vmax.xlane.f32.xlu0 %v4100_v58  ;;  %v4015_v27 = vpop.f32.mrf.mxu0 }
0x1b1d   :  { %v4016_v30 = vadd.f32 %v6267_v22, %v4015_v27 }
0x1b1e   :  { %v6965_v32 = vpop.f32.mrf.mxu0  ;;  %v9184_v55 = vpop.f32.mrf.mxu1 }
0x1b1f   :  { %v4103_v35 = vsel %vm723_vm3, %v4016_v30, -inf }
0x1b20   :  { %4104 = vmax.xlane.f32.xlu1 %v4103_v35  ;;  %v4071_v38 = vpop.f32.mrf.mxu0  ;;  %v6948_v2 = vpop.f32.mrf.mxu1 }
0x1b21   :  { %v4072_v52 = vadd.f32 %v6271_v29, %v4071_v38 }
0x1b22   :  { %v6972_v36 = vpop.f32.mrf.mxu0  ;;  %v9186_v56 = vpop.f32.mrf.mxu1 }
0x1b23   :  { %v4134_v28 = vpack.c.bf16 %v4072_v52, %v4072_v52 }
0x1b24   :  { %v4074_v17 = vpop.f32.mrf.mxu0  ;;  %v6949_v21 = vpop.f32.mrf.mxu1 }
0x1b25   :  { %v4158_v33 = vsel %vm1970_vm6, %v4134_v28, 0  ;;  %v4075_v18 = vadd.f32 %v6271_v29, %v4074_v17  ;;  %7112 = vmatprep.subr.msk.bf16.mxu1 %vm1970_vm6, %v4134_v28 }
0x1b26   :  { %v6973_v49 = vpop.f32.mrf.mxu0  ;;  %6975 = vmatpush3.bf16.msra.mxu1 %v4158_v33 }
0x1b27   :  { %v4271_v60 = vpack.c.bf16 %v4075_v18, %v4075_v18 }
0x1b29   :  { %7113 = vmatprep.subr.msk.bf16.mxu1 %vm1970_vm6, %v4271_v60  ;;  %v4295_v34 = vsel %vm1970_vm6, %v4271_v60, 0 }
0x1ba5   :  { %v4102_v4 = vpop.xlane.xlu0 %4101 }
0x1ba6   :  { %v4106_v3 = vsub.f32 %v4013_v42, %v4102_v4 }
0x1ba8   :  { %v4108_v8 = vmul.f32 1.442695, %v4106_v3 }
0x1ba9   :  { %v4105_v41 = vpop.xlane.xlu1 %4104 }
0x1baa   :  { %7467 = vpow2.f32 %v4108_v8  ;;  %v4107_v39 = vsub.f32 %v4016_v30, %v4105_v41 }
0x1bac   :  { %v4110_v12 = vmul.f32 1.442695, %v4107_v39 }
0x1bae   :  { %7469 = vpow2.f32 %v4110_v12 }
0x1bb7   :  { %v7468_v61 = vpop.eup %7467 }
0x1bb8   :  { %v4112_v44 = vsel %vm723_vm3, %v7468_v61, 0.0 }
0x1bb9   :  { %4113 = vadd.xlane.f32.xlu0 %v4112_v44 }
0x1bbb   :  { %v7470_v7 = vpop.eup %7469 }
0x1bbc   :  { %v4115_v62 = vsel %vm723_vm3, %v7470_v7, 0.0 }
0x1bbd   :  { %4116 = vadd.xlane.f32.xlu1 %v4115_v62 }
0x1c42   :  { %v4114_v31 = vpop.xlane.xlu0 %4113 }
0x1c43   :  { %7471 = vrcp.f32 %v4114_v31 }
0x1c46   :  { %v4117_v16 = vpop.xlane.xlu1 %4116 }
0x1c47   :  { %7473 = vrcp.f32 %v4117_v16 }
0x1c50   :  { %v7472_v59 = vpop.eup %7471 }
0x1c51   :  { %v4119_v47 = vmul.f32 %v7472_v59, %v7468_v61 }
0x1c53   :  { %v4133_v63 = vpack.c.bf16 %v4119_v47, %v4119_v47  ;;  %v4122_v33 = vsel %vm723_vm3, %v4119_v47, 0.0 }
0x1c54   :  { %v7474_v1 = vpop.eup %7473  ;;  %v4123_v18 = vrot.slane %v4122_v33, 4 }
0x1c55   :  { %4135 = vxpose.xlu0.c.b16.start.end [1/1] (short) (narrow) %v4133_v63, 32  ;;  %v4121_v48 = vmul.f32 %v7474_v1, %v7470_v7  ;;  %v6238_v63 = vld [vmem:[#allocation13 + $0x1] ss:$0 sm:$0xff] }
0x1c56   :  { %v4124_v60 = vadd.f32 %v4123_v18, %v4122_v33 }
0x1c57   :  { %v4270_v9 = vpack.c.bf16 %v4121_v48, %v4121_v48  ;;  %v4259_v49 = vsel %vm723_vm3, %v4121_v48, 0.0 }
0x1c58   :  { %v4260_v2 = vrot.slane %v4259_v49, 4  ;;  %v4125_v4 = vrot.slane %v4124_v60, 2 }
0x1c59   :  { %4272 = vxpose.xlu1.c.b16.start.end [1/1] (short) (narrow) %v4270_v9, 32 }
0x1c5a   :  { %v4261_v3 = vadd.f32 %v4260_v2, %v4259_v49  ;;  %v4126_v39 = vadd.f32 %v4125_v4, %v4124_v60  ;;  %v4640_v2 = vld [vmem:[#allocation16 + $0x2] sm:$0x3] }
0x1c5c   :  { %v4262_v12 = vrot.slane %v4261_v3, 2  ;;  %v4127_v44 = vrot.slane %v4126_v39, 1 }
0x1c5d   :  { %7207 = vset.pattern.permute.xlu1 %v8215_v37 }
0x1c5e   :  { %v4263_v7 = vadd.f32 %v4262_v12, %v4261_v3  ;;  %v4128_v59 = vadd.f32 %v4127_v44, %v4126_v39 }
0x1c60   :  { %v4264_v47 = vrot.slane %v4263_v7, 1 }
0x1c66   :  { %4079 = vmax.xlane.f32.xlu0 %v4078_v53 }
0x1c6a   :  { %4082 = vmax.xlane.f32.xlu1 %v4081_v11 }
0x1cb7   :  { %v4143_v20 = vpop.trf.xlu0 }
0x1cb8   :  { %6976 = vmatprep.mubr.msk.bf16.mxu1 %vm1963_vm7, %v4143_v20  ;;  %v4265_v20 = vadd.f32 %v4264_v47, %v4263_v7  ;;  %v9240_v47 = vld [vmem:[%s9595_s7 + $0x30] ss:$8 sps:$4 sm:$0xff]  }
0x1cbb   :  { %v4144_v13 = vpop.trf.xlu0  ;;  %v4280_v10 = vpop.trf.xlu1 }
0x1cbc   :  { %6977 = vmatmul.mubr.msk.bf16.vlgmr.msra.gmra.mxu1 %vm1963_vm7, %v4144_v13 }
0x1cbd   :  { %6989 = vmatpush3.bf16.msra.mxu1 %v4295_v34  ;;  %6990 = vmatprep.mubr.msk.bf16.mxu1 %vm1963_vm7, %v4280_v10 }
0x1cbe   :  { %7002 = vmatprep.subr.bf16.mxu1 %v8212_v0 }
0x1cbf   :  { %v4281_v54 = vpop.trf.xlu1 }
0x1cc4   :  { %6991 = vmatmul.mubr.msk.bf16.vlgmr.msra.gmra.mxu1 %vm1963_vm7, %v4281_v54  ;;  %v3790_v54 = vadd.f32 %v6238_v63, %v9186_v56 }
0x1cc5   :  { %7006 = vmatprep.mubr.msk.bf16.mxu1 %vm8213_vm0, %v8212_v0 }
0x1cef   :  { %v4080_v25 = vpop.xlane.xlu0 %4079 }
0x1cf0   :  { %v4084_v22 = vsub.f32 %v3950_v50, %v4080_v25  ;;  %v3787_v50 = vadd.f32 %v6238_v63, %v9184_v55  ;;  %v9248_v63 = vld [vmem:[%s9595_s7 + $0x20] ss:$8 sps:$4 sm:$0xff]  }
0x1cf2   :  { %v4086_v26 = vmul.f32 1.442695, %v4084_v22  ;;  %v3793_v55 = vsel %vm567_vm2, %v3787_v50, -inf  ;;  %v3796_v22 = vsel %vm567_vm2, %v3790_v54, -inf }
0x1cf3   :  { %v4083_v42 = vpop.xlane.xlu1 %4082 }
0x1cf4   :  { %7475 = vpow2.f32 %v4086_v26  ;;  %v4085_v23 = vsub.f32 %v3953_v40, %v4083_v42  ;;  %v7299_v26 = vld [vmem:[%s9594_s4 + $0x18] sm:$0xff]   ;;  %v7300_v42 = vld [vmem:[%s9594_s4 + $0x10] sm:$0xff]  }
0x1cf5   :  { %7003 = vmatpush3.bf16.msra.mxu1 %v7299_v26 }
0x1cf6   :  { %v4088_v58 = vmul.f32 1.442695, %v4085_v23  ;;  %7004 = vmatprep.subr.bf16.mxu1 %v8212_v0 }
0x1cf8   :  { %7477 = vpow2.f32 %v4088_v58 }
0x1cf9   :  { %7005 = vmatpush3.bf16.msra.mxu1 %v7300_v42  ;;  %v9267_v42 = vld [vmem:[%s9596_s10 + $0xf8] sm:$0xff]  }
0x1cfa   :  { %7010 = vmatprep.subr.bf16.mxu1 %v8212_v0 }
0x1d01   :  { %v7476_v27 = vpop.eup %7475 }
0x1d02   :  { %v4090_v30 = vsel %vm723_vm3, %v7476_v27, 0.0 }
0x1d03   :  { %4091 = vadd.xlane.f32.xlu0 %v4090_v30 }
0x1d05   :  { %v7478_v32 = vpop.eup %7477 }
0x1d06   :  { %v4093_v29 = vsel %vm723_vm3, %v7478_v32, 0.0 }
0x1d07   :  { %4094 = vadd.xlane.f32.xlu1 %v4093_v29 }
0x1d7c   :  { %v6978_v35 = vpop.f32.mrf.mxu1 }
0x1d7e   :  { %v4194_v38 = vpop.f32.mrf.mxu1 }
0x1d80   :  { %v6979_v52 = vpop.f32.mrf.mxu1 }
0x1d81   :  { %v4211_v36 = vpack.c.bf16 %v6979_v52, %v6978_v35 }
0x1d82   :  { %v4197_v28 = vpop.f32.mrf.mxu1 }
0x1d83   :  { %6981 = vmatpush3.bf16.msra.mxu0 %v4211_v36  ;;  %v4210_v17 = vpack.c.bf16 %v4197_v28, %v4194_v38 }
0x1d84   :  { %6982 = vmatprep.subr.bf16.mxu0 %v8212_v0  ;;  %v6992_v41 = vpop.f32.mrf.mxu1 }
0x1d86   :  { %v4331_v61 = vpop.f32.mrf.mxu1 }
0x1d87   :  { %6983 = vmatpush3.bf16.msra.mxu0 %v4210_v17 }
0x1d88   :  { %6994 = vmatprep.subr.bf16.mxu0 %v8212_v0  ;;  %v6993_v16 = vpop.f32.mrf.mxu1 }
0x1d89   :  { %v4348_v46 = vpack.c.bf16 %v6993_v16, %v6992_v41  ;;  %v4642_v41 = vpack.c.bf16 %v4640_v2, %v4640_v2  ;;  %v4468_v2 = vld [vmem:[#allocation15 + $0x2] sm:$0x3] }
0x1d8a   :  { %v4334_v40 = vpop.f32.mrf.mxu1 }
0x1d8b   :  { %v4347_v10 = vpack.c.bf16 %v4334_v40, %v4331_v61 }
0x1d8c   :  { %v4092_v21 = vpop.xlane.xlu0 %4091 }
0x1d8d   :  { %7479 = vrcp.f32 %v4092_v21 }
0x1d90   :  { %v4095_v8 = vpop.xlane.xlu1 %4094 }
0x1d91   :  { %7481 = vrcp.f32 %v4095_v8 }
0x1d9a   :  { %v7480_v62 = vpop.eup %7479 }
0x1d9b   :  { %v9207_v31 = vmul.f32 %v7480_v62, %v7476_v27  ;;  %v4647_v62 = vsel %vm571_vm1, %v4642_v41, 0 }
0x1d9d   :  { %v4209_v1 = vpack.c.bf16 %v9207_v31, %v9207_v31  ;;  %v4129_v48 = vmul.f32 %v4128_v59, %v9207_v31  ;;  %v9237_v59 = vld [vmem:[%s9595_s7 + $0x34] ss:$8 sps:$4 sm:$0xff]  }
0x1d9e   :  { %v7482_v9 = vpop.eup %7481 }
0x1d9f   :  { %6985 = vmatmul.mubr.msk.bf16.vlgmr.msra.gmra.mxu0 %vm723_vm3, %v4209_v1  ;;  %v4130_v53 = vsel %vm723_vm3, %v4129_v48, 0.0  ;;  %v4099_v11 = vmul.f32 %v7482_v9, %v7478_v32 }
0x1da0   :  { %6995 = vmatpush3.bf16.msra.mxu0 %v4348_v46  ;;  %4131 = vadd.xlane.f32.xlu0 %v4130_v53 }
0x1da1   :  { %6996 = vmatprep.subr.bf16.mxu0 %v8212_v0  ;;  %v4266_v13 = vmul.f32 %v4265_v20, %v4099_v11  ;;  %6998 = vmatprep.mubr.msk.bf16.mxu0 %vm8213_vm0, %v8212_v0  ;;  %v4346_v25 = vpack.c.bf16 %v4099_v11, %v4099_v11 }
0x1da3   :  { %v4267_v34 = vsel %vm723_vm3, %v4266_v13, 0.0 }
0x1da4   :  { %6997 = vmatpush3.bf16.msra.mxu0 %v4347_v10  ;;  %3794 = vmax.xlane.f32.xlu0 %v3793_v55 }
0x1da5   :  { %4268 = vadd.xlane.f32.xlu1 %v4267_v34  ;;  %4515 = vmatprep.subr.bf16.mxu0 %v9237_v59 }
0x1da7   :  { %6999 = vmatmul.mubr.msk.bf16.vlgmr.msra.gmra.mxu0 %vm723_vm3, %v4346_v25 }
0x1da8   :  { %4535 = vmatprep.mubr.bf16.mxu0 %v8216_v43  ;;  %4516 = vmatpush1.bf16.msra.mxu0 %v9240_v47 }
0x1da9   :  { %3797 = vmax.xlane.f32.xlu1 %v3796_v22 }
0x1e29   :  { %v4132_v56 = vpop.xlane.xlu0 %4131 }
0x1e2d   :  { %v3795_v23 = vpop.xlane.xlu0 %3794 }
0x1e2e   :  { %v3799_v58 = vsub.f32 %v3787_v50, %v3795_v23  ;;  %v4269_v27 = vpop.xlane.xlu1 %4268  ;;  %v9283_v23 = vld [vmem:[%s9596_s10 + $0xe8] sm:$0xff]  }
0x1e30   :  { %v3801_v30 = vmul.f32 1.442695, %v3799_v58  ;;  %v9286_v58 = vld [vmem:[%s9596_s10 + $0xa8] sm:$0xff]  }
0x1e32   :  { %7483 = vpow2.f32 %v3801_v30  ;;  %v3798_v32 = vpop.xlane.xlu1 %3797  ;;  %v9294_v30 = vld [vmem:[%s9596_s10 + $0xa0] sm:$0xff]  }
0x1e33   :  { %v3800_v29 = vsub.f32 %v3790_v54, %v3798_v32  ;;  %v9299_v32 = vld [vmem:[%s9596_s10 + $0xd8] sm:$0xff]  }
0x1e35   :  { %v3803_v35 = vmul.f32 1.442695, %v3800_v29  ;;  %v9302_v29 = vld [vmem:[%s9596_s10 + $0x98] sm:$0xff]  }
0x1e37   :  { %7485 = vpow2.f32 %v3803_v35  ;;  %v9307_v35 = vld [vmem:[%s9596_s10 + $0xd0] sm:$0xff]  }
0x1e38   :  { %7487 = vrcp.f32 %v4132_v56  ;;  %v9270_v56 = vld [vmem:[%s9596_s10 + $0xb8] sm:$0xff]  }
0x1e39   :  { %7489 = vrcp.f32 %v4269_v27  ;;  %v9291_v27 = vld [vmem:[%s9596_s10 + $0xe0] sm:$0xff]  }
0x1e3f   :  { %v7484_v38 = vpop.eup %7483 }
0x1e40   :  { %v3805_v52 = vsel %vm567_vm2, %v7484_v38, 0.0 }
0x1e41   :  { %3806 = vadd.xlane.f32.xlu0 %v3805_v52  ;;  %v9315_v52 = vld [vmem:[%s9596_s10 + $0xc8] sm:$0xff]  }
0x1e44   :  { %v7486_v36 = vpop.eup %7485 }
0x1e45   :  { %v3808_v28 = vsel %vm567_vm2, %v7486_v36, 0.0  ;;  %v7488_v49 = vpop.eup %7487 }
0x1e46   :  { %3809 = vadd.xlane.f32.xlu1 %v3808_v28  ;;  %v7490_v4 = vpop.eup %7489  ;;  %v9321_v28 = vld [vmem:[%s9596_s10 + $0xc0] sm:$0xff]  }
0x1e5f   :  { %v4249_v17 = vpop.f32.mrf.mxu0 }
0x1e60   :  { %v4257_v21 = vmul.f32 %v7488_v49, %v4249_v17  ;;  %v9326_v17 = vld [vmem:[%s9596_s10 + $0x80] sm:$0xff]  }
0x1e61   :  { %v6986_v33 = vpop.f32.mrf.mxu0 }
0x1e62   :  { %v4258_v12 = vadd.f32 %v4257_v21, %v9207_v31  ;;  %v9245_v31 = vld [vmem:[%s9595_s7 + $0x24] ss:$8 sps:$4 sm:$0xff]   ;;  %v9336_v21 = vrot.slane %v4468_v2, %v8598_v14 }
0x1e63   :  { %v4252_v18 = vpop.f32.mrf.mxu0  ;;  %4517 = vmatprep.subr.bf16.mxu0 %v9245_v31 }
0x1e64   :  { %4518 = vmatpush1.bf16.msra.mxu0 %v9248_v63 }
0x1e65   :  { %v6987_v60 = vpop.f32.mrf.mxu0  ;;  %6586 = vmatprep.subr.bf16.mxu0 %v9267_v42 }
0x1e67   :  { %v4386_v3 = vpop.f32.mrf.mxu0 }
0x1e68   :  { %v4394_v8 = vmul.f32 %v7490_v4, %v4386_v3  ;;  %v9339_v4 = vrot.slane %v4468_v2, %v8601_v15 }
0x1e69   :  { %v7000_v39 = vpop.f32.mrf.mxu0 }
0x1e6a   :  { %v4395_v61 = vadd.f32 %v4394_v8, %v4099_v11  ;;  %v6281_v11 = vld [vmem:[#allocation4 + $0x1] ss:$0 sm:$0xff] }
0x1e6b   :  { %v4389_v44 = vpop.f32.mrf.mxu0 }
0x1e6c   :  { %v4396_v7 = vpack.c.bf16 %v4395_v61, %v4258_v12 }
0x1e6d   :  { %v7001_v16 = vpop.f32.mrf.mxu0 }
0x1e6e   :  { %7007 = vmatmul.mubr.msk.bf16.vlgmr.msra.gmra.mxu1 %vm723_vm3, %v4396_v7 }
0x1e6f   :  { %7011 = vmatpush3.bf16.msra.mxu1 %v4647_v62  ;;  %7012 = vmatprep.mubr.msk.bf16.mxu1 %vm8213_vm0, %v8212_v0 }
0x1e70   :  { %7016 = vmatprep.subr.bf16.mxu1 %v8212_v0 }
0x1eca   :  { %v3807_v1 = vpop.xlane.xlu0 %3806 }
0x1ecb   :  { %7491 = vrcp.f32 %v3807_v1 }
0x1ecf   :  { %v3810_v48 = vpop.xlane.xlu1 %3809 }
0x1ed0   :  { %7493 = vrcp.f32 %v3810_v48 }
0x1ed8   :  { %v7492_v9 = vpop.eup %7491 }
0x1ed9   :  { %v3812_v46 = vmul.f32 %v7492_v9, %v7484_v38  ;;  %v9310_v38 = vld [vmem:[%s9596_s10 + $0x90] sm:$0xff]  }
0x1edb   :  { %4595 = vperm.xlu0 %7204, %v3812_v46  }
0x1edd   :  { %v7494_v50 = vpop.eup %7493 }
0x1ede   :  { %v3814_v40 = vmul.f32 %v7494_v50, %v7486_v36  ;;  %v9318_v36 = vld [vmem:[%s9596_s10 + $0x88] sm:$0xff]  }
0x1edf   :  { %7209 = vset.pattern.permute.xlu0 %v8216_v43 }
0x1ee0   :  { %4599 = vperm.xlu1 %7207, %v3814_v40   ;;  %v4641_v53 = vpack.c.bf16 %v3814_v40, %v3812_v46  ;;  %4589 = vperm.xlu0 %7209, %v3814_v40  }
0x1ee2   :  { %7013 = vmatmul.mubr.msk.bf16.vlgmr.msra.gmra.mxu1 %vm567_vm2, %v4641_v53 }
0x1ee3   :  { %7020 = vmatprep.mubr.msk.bf16.mxu1 %vm8213_vm0, %v8212_v0 }
0x1ee4   :  { %7208 = vset.pattern.permute.xlu1 %v8216_v43 }
0x1ee5   :  { %4584 = vperm.xlu1 %7208, %v3812_v46  }
0x1f2e   :  { %v4452_v20 = vpop.f32.mrf.mxu1 }
0x1f2f   :  { %v4453_v10 = vadd.f32 %v6281_v11, %v4452_v20 }
0x1f30   :  { %v7008_v13 = vpop.f32.mrf.mxu1 }
0x1f31   :  { %v9258_v25 = vadd.f32 %v4453_v10, %v9100_v19  ;;  %v9275_v19 = vld [vmem:[%s9596_s10 + $0xf0] sm:$0xff]  }
0x1f32   :  { %v4455_v55 = vpop.f32.mrf.mxu1 }
0x1f33   :  { %v4456_v34 = vadd.f32 %v6281_v11, %v4455_v55 }
0x1f34   :  { %v7009_v54 = vpop.f32.mrf.mxu1 }
0x1f35   :  { %v9261_v22 = vadd.f32 %v4456_v34, %v9105_v24  ;;  %v9278_v24 = vld [vmem:[%s9596_s10 + $0xb0] sm:$0xff]  }
0x1f37   :  { %v4466_v26 = vpack.c.bf16 %v9261_v22, %v9258_v25 }
0x1f39   :  { %6293 = vmatmul.mubr.msk.bf16.vlgmr.msra.gmra.mxu0 %vm723_vm3, %v4466_v26 }
0x1f3a   :  { %6587 = vmatpush3.bf16.msra.mxu0 %v9270_v56 }
0x1f3b   :  { %6588 = vmatprep.subr.bf16.mxu0 %v9275_v19 }
0x1f3e   :  { %6589 = vmatpush3.bf16.msra.mxu0 %v9278_v24 }
0x1f3f   :  { %6590 = vmatprep.subr.bf16.mxu0 %v9283_v23 }
0x1f42   :  { %6591 = vmatpush3.bf16.msra.mxu0 %v9286_v58 }
0x1f43   :  { %6592 = vmatprep.subr.bf16.mxu0 %v9291_v27 }
0x1f46   :  { %6593 = vmatpush3.bf16.msra.mxu0 %v9294_v30 }
0x1f47   :  { %6594 = vmatprep.subr.bf16.mxu0 %v9299_v32 }
0x1f4a   :  { %6595 = vmatpush3.bf16.msra.mxu0 %v9302_v29 }
0x1f4b   :  { %6596 = vmatprep.subr.bf16.mxu0 %v9307_v35 }
0x1f4e   :  { %6597 = vmatpush3.bf16.msra.mxu0 %v9310_v38 }
0x1f4f   :  { %6598 = vmatprep.subr.bf16.mxu0 %v9315_v52 }
0x1f52   :  { %6599 = vmatpush3.bf16.msra.mxu0 %v9318_v36 }
0x1f53   :  { %6600 = vmatprep.subr.bf16.mxu0 %v9321_v28 }
0x1f56   :  { %6601 = vmatpush3.bf16.msra.mxu0 %v9326_v17 }
0x1f57   :  { %7046 = vmatprep.subr.bf16.mxu0 %v8212_v0 }
0x1fa2   :  { %v9329_v33 = vpop.f32.mrf.mxu1 }
0x1fa4   :  { %v7014_v18 = vpop.f32.mrf.mxu1 }
0x1fa6   :  { %v9333_v49 = vpop.f32.mrf.mxu1 }
0x1fa8   :  { %v7015_v60 = vpop.f32.mrf.mxu1 }
0x1ff9   :  { %v4537_v3 = vpop.f32.mrf.mxu0 }
0x1ffa   :  { %v4538_v8 = vadd.f32 %v4537_v3, %v9336_v21 }
0x1ffb   :  { %v4539_v41 = vpop.f32.mrf.mxu0 }
0x1ffc   :  { %v4546_v39 = vmul.f32 %v4538_v8, %v4538_v8  ;;  %v4540_v12 = vadd.f32 %v4539_v41, %v9339_v4 }
0x1ffd   :  { %v4541_v61 = vpop.f32.mrf.mxu0 }
0x1ffe   :  { %v4550_v44 = vmul.f32 %v4546_v39, %v4538_v8  ;;  %v4547_v7 = vmul.f32 %v4540_v12, %v4540_v12  ;;  %v4542_v62 = vadd.f32 %v4541_v61, %v9336_v21  ;;  %v9345_v61 = vpop.permute.xlu0 %4595 }
0x1fff   :  { %v4543_v16 = vpop.f32.mrf.mxu0 }
0x2000   :  { %v4554_v1 = vmul.f32 0.044715, %v4550_v44  ;;  %v4551_v48 = vmul.f32 %v4547_v7, %v4540_v12  ;;  %v4548_v14 = vmul.f32 %v4542_v62, %v4542_v62  ;;  %v4544_v9 = vadd.f32 %v4543_v16, %v9339_v4 }
0x2002   :  { %v4558_v15 = vadd.f32 %v4554_v1, %v4538_v8  ;;  %v4555_v46 = vmul.f32 0.044715, %v4551_v48  ;;  %v4552_v50 = vmul.f32 %v4548_v14, %v4542_v62  ;;  %v4549_v40 = vmul.f32 %v4544_v9, %v4544_v9  ;;  %v9347_v48 = vpop.permute.xlu1 %4599 }
0x2004   :  { %v4562_v53 = vmul.f32 0.7978846, %v4558_v15  ;;  %v4559_v11 = vadd.f32 %v4555_v46, %v4540_v12  ;;  %v4556_v20 = vmul.f32 0.044715, %v4552_v50  ;;  %v4553_v13 = vmul.f32 %v4549_v40, %v4544_v9 }
0x2006   :  { %7495 = vtanh.f32 %v4562_v53  ;;  %v4563_v10 = vmul.f32 0.7978846, %v4559_v11  ;;  %v4560_v55 = vadd.f32 %v4556_v20, %v4542_v62  ;;  %v4557_v34 = vmul.f32 0.044715, %v4553_v13  ;;  %v9349_v11 = vpop.permute.xlu0 %4589 }
0x2008   :  { %7497 = vtanh.f32 %v4563_v10  ;;  %v4564_v54 = vmul.f32 0.7978846, %v4560_v55  ;;  %v4561_v26 = vadd.f32 %v4557_v34, %v4544_v9  ;;  %v9352_v10 = vpop.permute.xlu1 %4584 }
0x200a   :  { %7499 = vtanh.f32 %v4564_v54  ;;  %v4565_v18 = vmul.f32 0.7978846, %v4561_v26 }
0x200c   :  { %7501 = vtanh.f32 %v4565_v18 }
0x2013   :  { %v7496_v60 = vpop.eup %7495 }
0x2014   :  { %v4570_v3 = vadd.f32 1.0, %v7496_v60 }
0x2015   :  { %v7498_v2 = vpop.eup %7497 }
0x2016   :  { %v4571_v41 = vadd.f32 1.0, %v7498_v2  ;;  %v4574_v1 = vmul.f32 0.5, %v4570_v3 }
0x2017   :  { %v7500_v39 = vpop.eup %7499 }
0x2018   :  { %v4572_v44 = vadd.f32 1.0, %v7500_v39  ;;  %v4575_v7 = vmul.f32 0.5, %v4571_v41  ;;  %v4578_v53 = vmul.f32 %v4574_v1, %v4538_v8 }
0x2019   :  { %v7502_v16 = vpop.eup %7501 }
0x201a   :  { %v4576_v14 = vmul.f32 0.5, %v4572_v44  ;;  %v4573_v15 = vadd.f32 1.0, %v7502_v16  ;;  %v4579_v40 = vmul.f32 %v4575_v7, %v4540_v12  ;;  %v4592_v54 = vmul.f32 %v9352_v10, %v4578_v53 }
0x201c   :  { %v4580_v46 = vmul.f32 %v4576_v14, %v4542_v62  ;;  %v4577_v50 = vmul.f32 0.5, %v4573_v15  ;;  %v4602_v55 = vmul.f32 %v9345_v61, %v4579_v40 }
0x201e   :  { %v4581_v20 = vmul.f32 %v4577_v50, %v4544_v9  ;;  %v4593_v13 = vmul.f32 %v9349_v11, %v4580_v46 }
0x2020   :  { %v4603_v34 = vmul.f32 %v9347_v48, %v4581_v20  ;;  %v4637_v18 = vpack.c.bf16 %v4593_v13, %v4592_v54 }
0x2022   :  { %v4638_v26 = vpack.c.bf16 %v4603_v34, %v4602_v55 }
0x2024   :  { %4818 = vmatprep.mubr.bf16.mxu0 %v4638_v26 }
0x2025   :  { %4819 = vmatmul.mubr.bf16.vlgmr.msra.gmra.mxu0 %v4637_v18 }
0x2026   :  { %7050 = vmatprep.mubr.msk.bf16.mxu0 %vm8213_vm0, %v8212_v0 }
0x20e5   :  { %v6602_v8 = vpop.f32.mrf.mxu0 }
0x20e7   :  { %v6603_v12 = vpop.f32.mrf.mxu0 }
0x20e8   :  { %v6604_v62 = vadd.f32 %v6603_v12, %v6602_v8  ;;  %v4856_v8 = vrot.slane %v9151_v6, %v8957_v57 }
0x20e9   :  { %v6605_v9 = vpop.f32.mrf.mxu0 }
0x20ea   :  { %v4821_v60 = vadd.f32 %v6604_v62, %v9329_v33 }
0x20eb   :  { %v6606_v2 = vpop.f32.mrf.mxu0 }
0x20ec   :  { %v6607_v3 = vadd.f32 %v6606_v2, %v6605_v9  ;;  %v4827_v41 = vsel %vm723_vm3, %v4821_v60, 0.0  ;;  %v4862_v9 = vrot.slane %v9156_v51, %v8957_v57 }
0x20ed   :  { %4828 = vadd.xlane.f32.xlu1 %v4827_v41 }
0x20ee   :  { %v4824_v39 = vadd.f32 %v6607_v3, %v9333_v49 }
0x20f0   :  { %v4830_v44 = vsel %vm723_vm3, %v4824_v39, 0.0 }
0x20f1   :  { %4831 = vadd.xlane.f32.xlu0 %v4830_v44 }
0x2176   :  { %v4829_v7 = vpop.xlane.xlu1 %4828 }
0x2177   :  { %v4833_v16 = vmul.f32 0.03125, %v4829_v7 }
0x2179   :  { %v4835_v1 = vsub.f32 %v4821_v60, %v4833_v16 }
0x217a   :  { %v4832_v14 = vpop.xlane.xlu0 %4831 }
0x217b   :  { %v4834_v15 = vmul.f32 0.03125, %v4832_v14  ;;  %v4837_v46 = vmul.f32 %v4835_v1, %v4835_v1 }
0x217d   :  { %v4836_v50 = vsub.f32 %v4824_v39, %v4834_v15  ;;  %v4839_v40 = vsel %vm723_vm3, %v4837_v46, 0.0 }
0x217e   :  { %4840 = vadd.xlane.f32.xlu1 %v4839_v40 }
0x217f   :  { %v4838_v53 = vmul.f32 %v4836_v50, %v4836_v50 }
0x2181   :  { %v4842_v20 = vsel %vm723_vm3, %v4838_v53, 0.0 }
0x2182   :  { %4843 = vadd.xlane.f32.xlu0 %v4842_v20 }
0x2207   :  { %v4841_v13 = vpop.xlane.xlu1 %4840 }
0x2208   :  { %v4845_v55 = vmul.f32 0.03125, %v4841_v13 }
0x220a   :  { %v4847_v34 = vadd.f32 1e-05, %v4845_v55  ;;  %v7323_v55 = vld [vmem:[%s9597_s14 + $0x18] sm:$0xff]  }
0x220b   :  { %v4844_v54 = vpop.xlane.xlu0 %4843  ;;  %7017 = vmatpush3.bf16.msra.mxu1 %v7323_v55 }
0x220c   :  { %7503 = vrsqrt.f32 %v4847_v34  ;;  %v4846_v26 = vmul.f32 0.03125, %v4844_v54  ;;  %v7324_v34 = vld [vmem:[%s9597_s14 + $0x10] sm:$0xff]   ;;  %7018 = vmatprep.subr.bf16.mxu1 %v8212_v0 }
0x220e   :  { %v4848_v18 = vadd.f32 1e-05, %v4846_v26 }
0x220f   :  { %7019 = vmatpush3.bf16.msra.mxu1 %v7324_v34 }
0x2210   :  { %7505 = vrsqrt.f32 %v4848_v18  ;;  %7024 = vmatprep.subr.bf16.mxu1 %v8212_v0 }
0x2219   :  { %v7504_v12 = vpop.eup %7503 }
0x221a   :  { %v4851_v62 = vmul.f32 %v7504_v12, %v4835_v1 }
0x221c   :  { %v4857_v60 = vmul.f32 %v4856_v8, %v4851_v62 }
0x221d   :  { %v7506_v2 = vpop.eup %7505 }
0x221e   :  { %v4863_v3 = vadd.f32 %v4862_v9, %v4857_v60  ;;  %v4852_v41 = vmul.f32 %v7506_v2, %v4836_v50  ;;  %v4896_v2 = vrot.slane %v9151_v6, %v8982_v5  ;;  %v7327_v6 = vld [vmem:[%s9599_s11 + $0x18] sm:$0xff]  }
0x2220   :  { %v9370_v39 = vadd.f32 %v4863_v3, %v9258_v25  ;;  %v4858_v44 = vmul.f32 %v4856_v8, %v4852_v41 }
0x2222   :  { %v4867_v7 = vsel %vm723_vm3, %v9370_v39, 0.0  ;;  %v4864_v16 = vadd.f32 %v4862_v9, %v4858_v44 }
0x2223   :  { %4868 = vadd.xlane.f32.xlu1 %v4867_v7  ;;  %v4902_v7 = vrot.slane %v9156_v51, %v8982_v5  ;;  %v7328_v5 = vld [vmem:[%s9599_s11 + $0x10] sm:$0xff]  }
0x2224   :  { %v9375_v14 = vadd.f32 %v4864_v16, %v9261_v22 }
0x2226   :  { %v4870_v57 = vsel %vm723_vm3, %v9375_v14, 0.0 }
0x2227   :  { %4871 = vadd.xlane.f32.xlu0 %v4870_v57 }
0x22ac   :  { %v4869_v1 = vpop.xlane.xlu1 %4868 }
0x22ad   :  { %v4873_v15 = vmul.f32 0.03125, %v4869_v1 }
0x22af   :  { %v4875_v25 = vsub.f32 %v9370_v39, %v4873_v15  ;;  %v7325_v15 = vld [vmem:[%s9598_s27 + $0x18] sm:$0xff]  }
0x22b0   :  { %v4872_v46 = vpop.xlane.xlu0 %4871 }
0x22b1   :  { %v4874_v50 = vmul.f32 0.03125, %v4872_v46  ;;  %v4877_v40 = vmul.f32 %v4875_v25, %v4875_v25 }
0x22b3   :  { %v4876_v53 = vsub.f32 %v9375_v14, %v4874_v50  ;;  %v4879_v20 = vsel %vm723_vm3, %v4877_v40, 0.0 }
0x22b4   :  { %4880 = vadd.xlane.f32.xlu1 %v4879_v20  ;;  %v6363_v20 = vld [vmem:[#allocation18 + $0x1] ss:$0 sm:$0xff] }
0x22b5   :  { %v4878_v13 = vmul.f32 %v4876_v53, %v4876_v53 }
0x22b7   :  { %v4882_v22 = vsel %vm723_vm3, %v4878_v13, 0.0 }
0x22b8   :  { %4883 = vadd.xlane.f32.xlu0 %v4882_v22 }
0x233d   :  { %v4881_v54 = vpop.xlane.xlu1 %4880 }
0x233e   :  { %v4885_v26 = vmul.f32 0.03125, %v4881_v54 }
0x2340   :  { %v4887_v18 = vadd.f32 1e-05, %v4885_v26 }
0x2341   :  { %v4884_v8 = vpop.xlane.xlu0 %4883 }
0x2342   :  { %7507 = vrsqrt.f32 %v4887_v18  ;;  %v4886_v12 = vmul.f32 0.03125, %v4884_v8  ;;  %v6367_v8 = vld [vmem:[#allocation22 + $0x1] ss:$0 sm:$0xff] }
0x2344   :  { %v4888_v62 = vadd.f32 1e-05, %v4886_v12 }
0x2346   :  { %7509 = vrsqrt.f32 %v4888_v62 }
0x234f   :  { %v7508_v9 = vpop.eup %7507 }
0x2350   :  { %v4891_v60 = vmul.f32 %v7508_v9, %v4875_v25  ;;  %v7326_v25 = vld [vmem:[%s9598_s27 + $0x10] sm:$0xff]  }
0x2352   :  { %v4897_v44 = vmul.f32 %v4896_v2, %v4891_v60 }
0x2353   :  { %v7510_v3 = vpop.eup %7509 }
0x2354   :  { %v4892_v41 = vmul.f32 %v7510_v3, %v4876_v53  ;;  %v4903_v57 = vadd.f32 %v4902_v7, %v4897_v44 }
0x2356   :  { %v4898_v16 = vmul.f32 %v4896_v2, %v4892_v41 }
0x2358   :  { %v4904_v1 = vadd.f32 %v4902_v7, %v4898_v16 }
0x235a   :  { %v4933_v46 = vpack.c.bf16 %v4904_v1, %v4903_v57 }
0x235c   :  { %7021 = vmatmul.mubr.msk.bf16.vlgmr.msra.gmra.mxu1 %vm723_vm3, %v4933_v46 }
0x235d   :  { %7025 = vmatpush3.bf16.msra.mxu1 %v7325_v15  ;;  %7028 = vmatprep.mubr.msk.bf16.mxu1 %vm8213_vm0, %v8212_v0 }
0x235e   :  { %7026 = vmatprep.subr.bf16.mxu1 %v8212_v0 }
0x2361   :  { %7027 = vmatpush3.bf16.msra.mxu1 %v7326_v25 }
0x2362   :  { %7032 = vmatprep.subr.bf16.mxu1 %v8212_v0 }
0x2364   :  { %7029 = vmatmul.mubr.msk.bf16.vlgmr.msra.gmra.mxu1 %vm723_vm3, %v4933_v46 }
0x2365   :  { %7033 = vmatpush3.bf16.msra.mxu1 %v7327_v6  ;;  %7036 = vmatprep.mubr.msk.bf16.mxu1 %vm8213_vm0, %v8212_v0 }
0x2366   :  { %7034 = vmatprep.subr.bf16.mxu1 %v8212_v0 }
0x2369   :  { %7035 = vmatpush3.bf16.msra.mxu1 %v7328_v5 }
0x236c   :  { %7037 = vmatmul.mubr.msk.bf16.vlgmr.msra.gmra.mxu1 %vm723_vm3, %v4933_v46 }
0x241c   :  { %v4989_v51 = vpop.f32.mrf.mxu1 }
0x241e   :  { %v7022_v50 = vpop.f32.mrf.mxu1 }
0x2420   :  { %v4992_v40 = vpop.f32.mrf.mxu1 }
0x2422   :  { %v7023_v53 = vpop.f32.mrf.mxu1 }
0x2424   :  { %v5048_v13 = vpop.f32.mrf.mxu1 }
0x2425   :  { %v5049_v22 = vadd.f32 %v6363_v20, %v5048_v13 }
0x2426   :  { %v7030_v55 = vpop.f32.mrf.mxu1 }
0x2427   :  { %v5136_v34 = vsel %vm723_vm3, %v5049_v22, -inf }
0x2428   :  { %5137 = vmax.xlane.f32.xlu1 %v5136_v34  ;;  %v5051_v54 = vpop.f32.mrf.mxu1 }
0x2429   :  { %v5052_v26 = vadd.f32 %v6363_v20, %v5051_v54 }
0x242a   :  { %v7031_v18 = vpop.f32.mrf.mxu1 }
0x242b   :  { %v5139_v12 = vsel %vm723_vm3, %v5052_v26, -inf }
0x242c   :  { %5140 = vmax.xlane.f32.xlu0 %v5139_v12  ;;  %v5107_v62 = vpop.f32.mrf.mxu1  ;;  %v6359_v12 = vld [vmem:[#allocation21 + $0x1] ss:$0 sm:$0xff] }
0x242d   :  { %v5108_v9 = vadd.f32 %v6367_v8, %v5107_v62  ;;  %v4990_v62 = vadd.f32 %v6359_v12, %v4989_v51 }
0x242e   :  { %v7038_v60 = vpop.f32.mrf.mxu1 }
0x242f   :  { %v5170_v2 = vpack.c.bf16 %v5108_v9, %v5108_v9  ;;  %v4993_v9 = vadd.f32 %v6359_v12, %v4992_v40  ;;  %v5114_v60 = vsel %vm723_vm3, %v4990_v62, -inf }
0x2430   :  { %v5110_v3 = vpop.f32.mrf.mxu1 }
0x2431   :  { %v5194_v41 = vsel %vm1970_vm6, %v5170_v2, 0  ;;  %v5111_v44 = vadd.f32 %v6367_v8, %v5110_v3  ;;  %7114 = vmatprep.subr.msk.bf16.mxu1 %vm1970_vm6, %v5170_v2  ;;  %v5117_v2 = vsel %vm723_vm3, %v4993_v9, -inf }
0x2432   :  { %v7039_v7 = vpop.f32.mrf.mxu1  ;;  %7041 = vmatpush3.bf16.msra.mxu1 %v5194_v41 }
0x2433   :  { %v5307_v16 = vpack.c.bf16 %v5111_v44, %v5111_v44 }
0x2435   :  { %7115 = vmatprep.subr.msk.bf16.mxu1 %vm1970_vm6, %v5307_v16  ;;  %v5331_v7 = vsel %vm1970_vm6, %v5307_v16, 0 }
0x24b1   :  { %v5138_v57 = vpop.xlane.xlu1 %5137 }
0x24b2   :  { %v5142_v1 = vsub.f32 %v5049_v22, %v5138_v57 }
0x24b4   :  { %v5144_v15 = vmul.f32 1.442695, %v5142_v1 }
0x24b5   :  { %v5141_v46 = vpop.xlane.xlu0 %5140 }
0x24b6   :  { %7511 = vpow2.f32 %v5144_v15  ;;  %v5143_v25 = vsub.f32 %v5052_v26, %v5141_v46 }
0x24b8   :  { %v5146_v6 = vmul.f32 1.442695, %v5143_v25 }
0x24ba   :  { %7513 = vpow2.f32 %v5146_v6 }
0x24c3   :  { %v7512_v5 = vpop.eup %7511 }
0x24c4   :  { %v5148_v50 = vsel %vm723_vm3, %v7512_v5, 0.0 }
0x24c5   :  { %5149 = vadd.xlane.f32.xlu1 %v5148_v50 }
0x24c7   :  { %v7514_v53 = vpop.eup %7513 }
0x24c8   :  { %v5151_v20 = vsel %vm723_vm3, %v7514_v53, 0.0 }
0x24c9   :  { %5152 = vadd.xlane.f32.xlu0 %v5151_v20 }
0x254e   :  { %v5150_v13 = vpop.xlane.xlu1 %5149 }
0x254f   :  { %7515 = vrcp.f32 %v5150_v13 }
0x2552   :  { %v5153_v55 = vpop.xlane.xlu0 %5152 }
0x2553   :  { %7517 = vrcp.f32 %v5153_v55 }
0x255c   :  { %v7516_v34 = vpop.eup %7515 }
0x255d   :  { %v5155_v22 = vmul.f32 %v7516_v34, %v7512_v5 }
0x255f   :  { %v5169_v54 = vpack.c.bf16 %v5155_v22, %v5155_v22 }
0x2560   :  { %v7518_v18 = vpop.eup %7517 }
0x2561   :  { %5171 = vxpose.xlu1.c.b16.start.end [1/1] (short) (narrow) %v5169_v54, 32  ;;  %v5157_v26 = vmul.f32 %v7518_v18, %v7514_v53  ;;  %v5158_v54 = vsel %vm723_vm3, %v5155_v22, 0.0 }
0x2562   :  { %v5159_v18 = vrot.slane %v5158_v54, 4 }
0x2563   :  { %v5306_v8 = vpack.c.bf16 %v5157_v26, %v5157_v26 }
0x2564   :  { %v5160_v12 = vadd.f32 %v5159_v18, %v5158_v54 }
0x2565   :  { %5308 = vxpose.xlu0.c.b16.start.end [1/1] (short) (narrow) %v5306_v8, 32  ;;  %v5295_v8 = vsel %vm723_vm3, %v5157_v26, 0.0 }
0x256e   :  { %7210 = vset.pattern.permute.xlu0 %v8215_v37 }
0x2572   :  { %5115 = vmax.xlane.f32.xlu1 %v5114_v60  ;;  %v5161_v60 = vrot.slane %v5160_v12, 2 }
0x2576   :  { %5118 = vmax.xlane.f32.xlu0 %v5117_v2 }
0x25c3   :  { %v5179_v3 = vpop.trf.xlu1 }
0x25c4   :  { %7042 = vmatprep.mubr.msk.bf16.mxu1 %vm1963_vm7, %v5179_v3 }
0x25c7   :  { %v5180_v41 = vpop.trf.xlu1  ;;  %v5316_v44 = vpop.trf.xlu0 }
0x25c8   :  { %7043 = vmatmul.mubr.msk.bf16.vlgmr.msra.gmra.mxu1 %vm1963_vm7, %v5180_v41 }
0x25c9   :  { %7055 = vmatpush3.bf16.msra.mxu1 %v5331_v7  ;;  %7056 = vmatprep.mubr.msk.bf16.mxu1 %vm1963_vm7, %v5316_v44  ;;  %v5162_v44 = vadd.f32 %v5161_v60, %v5160_v12 }
0x25ca   :  { %7068 = vmatprep.subr.bf16.mxu1 %v8212_v0 }
0x25cb   :  { %v5317_v37 = vpop.trf.xlu0 }
0x25d0   :  { %7057 = vmatmul.mubr.msk.bf16.vlgmr.msra.gmra.mxu1 %vm1963_vm7, %v5317_v37 }
0x25d1   :  { %7072 = vmatprep.mubr.msk.bf16.mxu1 %vm8213_vm0, %v8212_v0 }
0x25fb   :  { %v5116_v51 = vpop.xlane.xlu1 %5115 }
0x25fc   :  { %v5120_v40 = vsub.f32 %v4990_v62, %v5116_v51  ;;  %v5296_v62 = vrot.slane %v5295_v8, 4  ;;  %v5163_v51 = vrot.slane %v5162_v44, 1 }
0x25fe   :  { %v5122_v57 = vmul.f32 1.442695, %v5120_v40  ;;  %v5297_v2 = vadd.f32 %v5296_v62, %v5295_v8  ;;  %v7330_v8 = vld [vmem:[%s9600_s13 + $0x10] sm:$0xff]  }
0x25ff   :  { %v5119_v1 = vpop.xlane.xlu0 %5118 }
0x2600   :  { %7519 = vpow2.f32 %v5122_v57  ;;  %v5121_v15 = vsub.f32 %v4993_v9, %v5119_v1  ;;  %v5298_v7 = vrot.slane %v5297_v2, 2 }
0x2602   :  { %v5124_v16 = vmul.f32 1.442695, %v5121_v15  ;;  %v5299_v22 = vadd.f32 %v5298_v7, %v5297_v2  ;;  %v5164_v15 = vadd.f32 %v5163_v51, %v5162_v44 }
0x2604   :  { %7521 = vpow2.f32 %v5124_v16  ;;  %v5300_v16 = vrot.slane %v5299_v22, 1 }
0x260d   :  { %v7520_v46 = vpop.eup %7519 }
0x260e   :  { %v5126_v25 = vsel %vm723_vm3, %v7520_v46, 0.0 }
0x260f   :  { %5127 = vadd.xlane.f32.xlu1 %v5126_v25 }
0x2611   :  { %v7522_v6 = vpop.eup %7521 }
0x2612   :  { %v5129_v5 = vsel %vm723_vm3, %v7522_v6, 0.0 }
0x2613   :  { %5130 = vadd.xlane.f32.xlu0 %v5129_v5 }
0x2688   :  { %v7044_v50 = vpop.f32.mrf.mxu1 }
0x268a   :  { %v5230_v53 = vpop.f32.mrf.mxu1 }
0x268c   :  { %v7045_v20 = vpop.f32.mrf.mxu1 }
0x268d   :  { %v5247_v13 = vpack.c.bf16 %v7045_v20, %v7044_v50 }
0x268e   :  { %v5233_v55 = vpop.f32.mrf.mxu1 }
0x268f   :  { %7047 = vmatpush3.bf16.msra.mxu0 %v5247_v13  ;;  %v5246_v34 = vpack.c.bf16 %v5233_v55, %v5230_v53  ;;  %v5301_v55 = vadd.f32 %v5300_v16, %v5299_v22 }
0x2690   :  { %7048 = vmatprep.subr.bf16.mxu0 %v8212_v0  ;;  %v7058_v41 = vpop.f32.mrf.mxu1 }
0x2692   :  { %v5367_v37 = vpop.f32.mrf.mxu1 }
0x2693   :  { %7049 = vmatpush3.bf16.msra.mxu0 %v5246_v34 }
0x2694   :  { %7060 = vmatprep.subr.bf16.mxu0 %v8212_v0  ;;  %v7059_v1 = vpop.f32.mrf.mxu1 }
0x2695   :  { %v5384_v50 = vpack.c.bf16 %v7059_v1, %v7058_v41 }
0x2696   :  { %v5370_v53 = vpop.f32.mrf.mxu1 }
0x2697   :  { %v5383_v34 = vpack.c.bf16 %v5370_v53, %v5367_v37 }
0x2698   :  { %v5128_v9 = vpop.xlane.xlu1 %5127 }
0x2699   :  { %7523 = vrcp.f32 %v5128_v9 }
0x269c   :  { %v5131_v3 = vpop.xlane.xlu0 %5130 }
0x269d   :  { %7525 = vrcp.f32 %v5131_v3 }
0x26a6   :  { %v7524_v40 = vpop.eup %7523 }
0x26a7   :  { %v5133_v57 = vmul.f32 %v7524_v40, %v7520_v46 }
0x26a9   :  { %v5245_v26 = vpack.c.bf16 %v5133_v57, %v5133_v57  ;;  %v5165_v25 = vmul.f32 %v5164_v15, %v5133_v57 }
0x26aa   :  { %v7526_v5 = vpop.eup %7525 }
0x26ab   :  { %7051 = vmatmul.mubr.msk.bf16.vlgmr.msra.gmra.mxu0 %vm723_vm3, %v5245_v26  ;;  %v5166_v20 = vsel %vm723_vm3, %v5165_v25, 0.0  ;;  %v5135_v13 = vmul.f32 %v7526_v5, %v7522_v6  ;;  %v7329_v6 = vld [vmem:[%s9600_s13 + $0x18] sm:$0xff]  }
0x26ac   :  { %7061 = vmatpush3.bf16.msra.mxu0 %v5384_v50  ;;  %5167 = vadd.xlane.f32.xlu1 %v5166_v20 }
0x26ad   :  { %7062 = vmatprep.subr.bf16.mxu0 %v8212_v0  ;;  %v5302_v46 = vmul.f32 %v5301_v55, %v5135_v13  ;;  %7064 = vmatprep.mubr.msk.bf16.mxu0 %vm8213_vm0, %v8212_v0  ;;  %v5382_v18 = vpack.c.bf16 %v5135_v13, %v5135_v13 }
0x26ae   :  { %7069 = vmatpush3.bf16.msra.mxu1 %v7329_v6 }
0x26af   :  { %v5303_v54 = vsel %vm723_vm3, %v5302_v46, 0.0  ;;  %7070 = vmatprep.subr.bf16.mxu1 %v8212_v0 }
0x26b0   :  { %7063 = vmatpush3.bf16.msra.mxu0 %v5383_v34  ;;  %5304 = vadd.xlane.f32.xlu0 %v5303_v54 }
0x26b1   :  { %5513 = vmatprep.subr.bf16.mxu0 %v9237_v59 }
0x26b2   :  { %7071 = vmatpush3.bf16.msra.mxu1 %v7330_v8 }
0x26b3   :  { %7065 = vmatmul.mubr.msk.bf16.vlgmr.msra.gmra.mxu0 %vm723_vm3, %v5382_v18  ;;  %6632 = vmatprep.subr.bf16.mxu1 %v9267_v42  ;;  %v6377_v42 = vld [vmem:[#allocation19 + $0x1] ss:$0 sm:$0xff] }
0x26b4   :  { %5514 = vmatpush1.bf16.msra.mxu0 %v9240_v47  ;;  %5533 = vmatprep.mubr.bf16.mxu0 %v8216_v43 }
0x26b5   :  { %5515 = vmatprep.subr.bf16.mxu0 %v9245_v31 }
0x26b8   :  { %5516 = vmatpush1.bf16.msra.mxu0 %v9248_v63 }
0x26b9   :  { %7076 = vmatprep.subr.bf16.mxu0 %v8212_v0 }
0x2735   :  { %v5168_v59 = vpop.xlane.xlu1 %5167 }
0x2736   :  { %7527 = vrcp.f32 %v5168_v59 }
0x2739   :  { %v5305_v12 = vpop.xlane.xlu0 %5304 }
0x273a   :  { %7529 = vrcp.f32 %v5305_v12 }
0x2743   :  { %v7528_v31 = vpop.eup %7527 }
0x2747   :  { %v7530_v60 = vpop.eup %7529 }
0x276b   :  { %v5285_v47 = vpop.f32.mrf.mxu0 }
0x276c   :  { %v5293_v63 = vmul.f32 %v7528_v31, %v5285_v47 }
0x276d   :  { %v7052_v43 = vpop.f32.mrf.mxu0 }
0x276e   :  { %v5294_v44 = vadd.f32 %v5293_v63, %v5133_v57 }
0x276f   :  { %v5288_v62 = vpop.f32.mrf.mxu0 }
0x2771   :  { %v7053_v9 = vpop.f32.mrf.mxu0 }
0x2773   :  { %v5422_v2 = vpop.f32.mrf.mxu0 }
0x2774   :  { %v5430_v3 = vmul.f32 %v7530_v60, %v5422_v2 }
0x2775   :  { %v7066_v41 = vpop.f32.mrf.mxu0 }
0x2776   :  { %v5431_v7 = vadd.f32 %v5430_v3, %v5135_v13 }
0x2777   :  { %v5425_v37 = vpop.f32.mrf.mxu0 }
0x2778   :  { %v5432_v51 = vpack.c.bf16 %v5431_v7, %v5294_v44 }
0x2779   :  { %v7067_v22 = vpop.f32.mrf.mxu0 }
0x277a   :  { %7073 = vmatmul.mubr.msk.bf16.vlgmr.msra.gmra.mxu1 %vm723_vm3, %v5432_v51 }
0x277b   :  { %6633 = vmatpush3.bf16.msra.mxu1 %v9270_v56 }
0x277c   :  { %6634 = vmatprep.subr.bf16.mxu1 %v9275_v19 }
0x277f   :  { %6635 = vmatpush3.bf16.msra.mxu1 %v9278_v24 }
0x2780   :  { %6636 = vmatprep.subr.bf16.mxu1 %v9283_v23 }
0x2783   :  { %6637 = vmatpush3.bf16.msra.mxu1 %v9286_v58 }
0x2784   :  { %6638 = vmatprep.subr.bf16.mxu1 %v9291_v27 }
0x2787   :  { %6639 = vmatpush3.bf16.msra.mxu1 %v9294_v30 }
0x2788   :  { %6640 = vmatprep.subr.bf16.mxu1 %v9299_v32 }
0x278b   :  { %6641 = vmatpush3.bf16.msra.mxu1 %v9302_v29 }
0x278c   :  { %6642 = vmatprep.subr.bf16.mxu1 %v9307_v35 }
0x278f   :  { %6643 = vmatpush3.bf16.msra.mxu1 %v9310_v38 }
0x2790   :  { %6644 = vmatprep.subr.bf16.mxu1 %v9315_v52 }
0x2793   :  { %6645 = vmatpush3.bf16.msra.mxu1 %v9318_v36 }
0x2794   :  { %6646 = vmatprep.subr.bf16.mxu1 %v9321_v28 }
0x2797   :  { %6647 = vmatpush3.bf16.msra.mxu1 %v9326_v17 }
0x283a   :  { %v5488_v56 = vpop.f32.mrf.mxu1 }
0x283b   :  { %v5489_v24 = vadd.f32 %v6377_v42, %v5488_v56 }
0x283c   :  { %v7074_v19 = vpop.f32.mrf.mxu1 }
0x283d   :  { %v9463_v30 = vadd.f32 %v5489_v24, %v9370_v39 }
0x283e   :  { %v5491_v23 = vpop.f32.mrf.mxu1 }
0x283f   :  { %v5492_v58 = vadd.f32 %v6377_v42, %v5491_v23 }
0x2840   :  { %v7075_v27 = vpop.f32.mrf.mxu1 }
0x2841   :  { %v9466_v32 = vadd.f32 %v5492_v58, %v9375_v14 }
0x2843   :  { %v5497_v29 = vpack.c.bf16 %v9466_v32, %v9463_v30 }
0x2845   :  { %6381 = vmatmul.mubr.msk.bf16.vlgmr.msra.gmra.mxu0 %vm723_vm3, %v5497_v29 }
0x2846   :  { %7080 = vmatprep.mubr.msk.bf16.mxu0 %vm8213_vm0, %v8212_v0 }
0x2905   :  { %v5535_v35 = vpop.f32.mrf.mxu0 }
0x2906   :  { %v5536_v38 = vadd.f32 %v5535_v35, %v9336_v21 }
0x2907   :  { %v5537_v52 = vpop.f32.mrf.mxu0 }
0x2908   :  { %v5544_v36 = vmul.f32 %v5536_v38, %v5536_v38  ;;  %v5538_v28 = vadd.f32 %v5537_v52, %v9339_v4 }
0x2909   :  { %v5539_v17 = vpop.f32.mrf.mxu0 }
0x290a   :  { %v5548_v39 = vmul.f32 %v5544_v36, %v5536_v38  ;;  %v5545_v40 = vmul.f32 %v5538_v28, %v5538_v28  ;;  %v5540_v14 = vadd.f32 %v5539_v17, %v9336_v21 }
0x290b   :  { %v5541_v57 = vpop.f32.mrf.mxu0 }
0x290c   :  { %v5552_v1 = vmul.f32 0.044715, %v5548_v39  ;;  %v5549_v15 = vmul.f32 %v5545_v40, %v5538_v28  ;;  %v5546_v16 = vmul.f32 %v5540_v14, %v5540_v14  ;;  %v5542_v26 = vadd.f32 %v5541_v57, %v9339_v4 }
0x290e   :  { %v5556_v25 = vadd.f32 %v5552_v1, %v5536_v38  ;;  %v5553_v5 = vmul.f32 0.044715, %v5549_v15  ;;  %v5550_v50 = vmul.f32 %v5546_v16, %v5540_v14  ;;  %v5547_v53 = vmul.f32 %v5542_v26, %v5542_v26  ;;  %v7331_v15 = vld [vmem:[#allocation37 + $0x8] sm:$0xff]  }
0x290f   :  { %7077 = vmatpush3.bf16.msra.mxu0 %v7331_v15 }
0x2910   :  { %v5560_v20 = vmul.f32 0.7978846, %v5556_v25  ;;  %v5557_v13 = vadd.f32 %v5553_v5, %v5538_v28  ;;  %v5554_v55 = vmul.f32 0.044715, %v5550_v50  ;;  %v5551_v46 = vmul.f32 %v5547_v53, %v5542_v26  ;;  %7078 = vmatprep.subr.bf16.mxu0 %v8212_v0 }
0x2912   :  { %7531 = vtanh.f32 %v5560_v20  ;;  %v5561_v34 = vmul.f32 0.7978846, %v5557_v13  ;;  %v5558_v54 = vadd.f32 %v5554_v55, %v5540_v14  ;;  %v5555_v18 = vmul.f32 0.044715, %v5551_v46  ;;  %v7559_v20 = vld [vmem:[%s9590_s22 + $0x8] sm:$0x1f] }
0x2913   :  { %v5656_v13 = vrot.slane %v7559_v20, %v9093_v45 }
0x2914   :  { %7533 = vtanh.f32 %v5561_v34  ;;  %v5562_v21 = vmul.f32 0.7978846, %v5558_v54  ;;  %v5559_v6 = vadd.f32 %v5555_v18, %v5542_v26  ;;  %v7560_v54 = vld [vmem:[%s9591_s20 + $0x8] sm:$0x1f] }
0x2915   :  { %v5662_v18 = vrot.slane %v7560_v54, %v9093_v45  ;;  %v7334_v45 = vld [vmem:[%s9601_s21] sm:$0xff]  }
0x2916   :  { %7535 = vtanh.f32 %v5562_v21  ;;  %v5563_v8 = vmul.f32 0.7978846, %v5559_v6 }
0x2918   :  { %7537 = vtanh.f32 %v5563_v8 }
0x291f   :  { %v7532_v59 = vpop.eup %7531 }
0x2920   :  { %v5568_v12 = vadd.f32 1.0, %v7532_v59 }
0x2921   :  { %v7534_v4 = vpop.eup %7533 }
0x2922   :  { %v5569_v47 = vadd.f32 1.0, %v7534_v4  ;;  %v5572_v63 = vmul.f32 0.5, %v5568_v12 }
0x2923   :  { %v7536_v43 = vpop.eup %7535 }
0x2924   :  { %v5570_v62 = vadd.f32 1.0, %v7536_v43  ;;  %v5573_v31 = vmul.f32 0.5, %v5569_v47  ;;  %v5576_v7 = vmul.f32 %v5572_v63, %v5536_v38 }
0x2925   :  { %v7538_v9 = vpop.eup %7537 }
0x2926   :  { %v5574_v60 = vmul.f32 0.5, %v5570_v62  ;;  %v5571_v2 = vadd.f32 1.0, %v7538_v9  ;;  %v5577_v44 = vmul.f32 %v5573_v31, %v5538_v28  ;;  %v5580_v56 = vmul.f32 %v5576_v7, %v9352_v10  ;;  %v7333_v62 = vld [vmem:[%s9601_s21 + $0x8] sm:$0xff]  }
0x2927   :  { %v6382_v31 = vld [vmem:[#allocation36] ss:$0 sm:$0xff] }
0x2928   :  { %v5578_v3 = vmul.f32 %v5574_v60, %v5540_v14  ;;  %v5575_v41 = vmul.f32 0.5, %v5571_v2  ;;  %v5582_v22 = vmul.f32 %v5577_v44, %v9345_v61 }
0x292a   :  { %v5579_v37 = vmul.f32 %v5575_v41, %v5542_v26  ;;  %v5581_v51 = vmul.f32 %v5578_v3, %v9349_v11 }
0x292c   :  { %v5583_v42 = vmul.f32 %v5579_v37, %v9347_v48  ;;  %v5584_v24 = vpack.c.bf16 %v5581_v51, %v5580_v56 }
0x292e   :  { %v5585_v19 = vpack.c.bf16 %v5583_v42, %v5582_v22 }
0x2930   :  { %5618 = vmatprep.mubr.bf16.mxu1 %v5585_v19 }
0x2931   :  { %5619 = vmatmul.mubr.bf16.vlgmr.msra.gmra.mxu1 %v5584_v24 }
0x29f1   :  { %v6648_v23 = vpop.f32.mrf.mxu1 }
0x29f3   :  { %v6649_v58 = vpop.f32.mrf.mxu1 }
0x29f4   :  { %v6650_v27 = vadd.f32 %v6649_v58, %v6648_v23 }
0x29f5   :  { %v6651_v29 = vpop.f32.mrf.mxu1 }
0x29f6   :  { %v5621_v35 = vadd.f32 %v6650_v27, %v9329_v33 }
0x29f7   :  { %v6652_v38 = vpop.f32.mrf.mxu1 }
0x29f8   :  { %v6653_v52 = vadd.f32 %v6652_v38, %v6651_v29  ;;  %v5627_v11 = vsel %vm723_vm3, %v5621_v35, 0.0 }
0x29f9   :  { %5628 = vadd.xlane.f32.xlu1 %v5627_v11 }
0x29fa   :  { %v5624_v61 = vadd.f32 %v6653_v52, %v9333_v49  ;;  %v7332_v49 = vld [vmem:[#allocation37] sm:$0xff]  }
0x29fb   :  { %7079 = vmatpush3.bf16.msra.mxu0 %v7332_v49 }
0x29fc   :  { %v5630_v48 = vsel %vm723_vm3, %v5624_v61, 0.0  ;;  %7084 = vmatprep.subr.bf16.mxu0 %v8212_v0 }
0x29fd   :  { %5631 = vadd.xlane.f32.xlu0 %v5630_v48  ;;  %v7336_v48 = vld [vmem:[%s9601_s21 + $0x10] sm:$0xff]  }
0x2a82   :  { %v5629_v10 = vpop.xlane.xlu1 %5628 }
0x2a83   :  { %v5633_v36 = vmul.f32 0.03125, %v5629_v10  ;;  %v6386_v10 = vld [vmem:[#allocation31] ss:$0 sm:$0xff] }
0x2a85   :  { %v5635_v28 = vsub.f32 %v5621_v35, %v5633_v36 }
0x2a86   :  { %v5632_v17 = vpop.xlane.xlu0 %5631 }
0x2a87   :  { %v5634_v39 = vmul.f32 0.03125, %v5632_v17  ;;  %v5637_v40 = vmul.f32 %v5635_v28, %v5635_v28 }
0x2a89   :  { %v5636_v14 = vsub.f32 %v5624_v61, %v5634_v39  ;;  %v5639_v57 = vsel %vm723_vm3, %v5637_v40, 0.0  ;;  %v7335_v61 = vld [vmem:[%s9601_s21 + $0x18] sm:$0xff]  }
0x2a8a   :  { %5640 = vadd.xlane.f32.xlu1 %v5639_v57 }
0x2a8b   :  { %v5638_v33 = vmul.f32 %v5636_v14, %v5636_v14 }
0x2a8d   :  { %v5642_v1 = vsel %vm723_vm3, %v5638_v33, 0.0 }
0x2a8e   :  { %5643 = vadd.xlane.f32.xlu0 %v5642_v1 }
0x2b13   :  { %v5641_v16 = vpop.xlane.xlu1 %5640 }
0x2b14   :  { %v5645_v26 = vmul.f32 0.03125, %v5641_v16 }
0x2b16   :  { %v5647_v25 = vadd.f32 1e-05, %v5645_v26 }
0x2b17   :  { %v5644_v5 = vpop.xlane.xlu0 %5643 }
0x2b18   :  { %7539 = vrsqrt.f32 %v5647_v25  ;;  %v5646_v50 = vmul.f32 0.03125, %v5644_v5 }
0x2b1a   :  { %v5648_v53 = vadd.f32 1e-05, %v5646_v50 }
0x2b1c   :  { %7541 = vrsqrt.f32 %v5648_v53 }
0x2b25   :  { %v7540_v55 = vpop.eup %7539 }
0x2b26   :  { %v5651_v46 = vmul.f32 %v7540_v55, %v5635_v28 }
0x2b28   :  { %v5657_v34 = vmul.f32 %v5656_v13, %v5651_v46 }
0x2b29   :  { %v7542_v21 = vpop.eup %7541 }
0x2b2a   :  { %v5652_v6 = vmul.f32 %v7542_v21, %v5636_v14  ;;  %v5663_v59 = vadd.f32 %v5662_v18, %v5657_v34 }
0x2b2c   :  { %v5658_v8 = vmul.f32 %v5656_v13, %v5652_v6  ;;  %v5665_v12 = vadd.f32 %v5663_v59, %v9463_v30  ;;  %v7337_v59 = vld [vmem:[#allocation34 + $0x8] sm:$0xff]  }
0x2b2e   :  { %v5664_v4 = vadd.f32 %v5662_v18, %v5658_v8 }
0x2b30   :  { %v5666_v47 = vadd.f32 %v5664_v4, %v9466_v32  ;;  %v7338_v4 = vld [vmem:[#allocation34] sm:$0xff]  }
0x2b32   :  { %v5671_v43 = vpack.c.bf16 %v5666_v47, %v5665_v12  ;;  %v6394_v12 = vld [vmem:[#allocation31 + $0x1] ss:$0 sm:$0xff] }
0x2b34   :  { %7081 = vmatmul.mubr.msk.bf16.vlgmr.msra.gmra.mxu0 %vm723_vm3, %v5671_v43 }
0x2b35   :  { %7088 = vmatprep.mubr.msk.bf16.mxu0 %vm8213_vm0, %v8212_v0  ;;  %7085 = vmatpush3.bf16.msra.mxu0 %v7333_v62 }
0x2b36   :  { %7086 = vmatprep.subr.bf16.mxu0 %v8212_v0 }
0x2b39   :  { %7087 = vmatpush3.bf16.msra.mxu0 %v7334_v45 }
0x2b3a   :  { %7092 = vmatprep.subr.bf16.mxu0 %v8212_v0 }
0x2bf4   :  { %v5728_v9 = vpop.f32.mrf.mxu0 }
0x2bf5   :  { %v5729_v63 = vadd.f32 %v6382_v31, %v5728_v9 }
0x2bf6   :  { %v7082_v30 = vpop.f32.mrf.mxu0 }
0x2bf7   :  { %v5735_v60 = vmul.f32 %v5729_v63, %v5729_v63 }
0x2bf8   :  { %v5731_v32 = vpop.f32.mrf.mxu0 }
0x2bf9   :  { %v5737_v2 = vmul.f32 %v5735_v60, %v5729_v63  ;;  %v5732_v3 = vadd.f32 %v6382_v31, %v5731_v32 }
0x2bfa   :  { %v7083_v41 = vpop.f32.mrf.mxu0 }
0x2bfb   :  { %v5739_v44 = vmul.f32 0.044715, %v5737_v2  ;;  %v5736_v7 = vmul.f32 %v5732_v3, %v5732_v3 }
0x2bfd   :  { %v5741_v37 = vadd.f32 %v5739_v44, %v5729_v63  ;;  %v5738_v51 = vmul.f32 %v5736_v7, %v5732_v3 }
0x2bff   :  { %v5743_v22 = vmul.f32 0.7978846, %v5741_v37  ;;  %v5740_v42 = vmul.f32 0.044715, %v5738_v51 }
0x2c01   :  { %7543 = vtanh.f32 %v5743_v22  ;;  %v5742_v56 = vadd.f32 %v5740_v42, %v5732_v3 }
0x2c03   :  { %v5744_v19 = vmul.f32 0.7978846, %v5742_v56 }
0x2c05   :  { %7545 = vtanh.f32 %v5744_v19 }
0x2c0e   :  { %v7544_v24 = vpop.eup %7543 }
0x2c0f   :  { %v5747_v23 = vadd.f32 1.0, %v7544_v24 }
0x2c11   :  { %v5749_v27 = vmul.f32 0.5, %v5747_v23 }
0x2c12   :  { %v7546_v58 = vpop.eup %7545 }
0x2c13   :  { %v5748_v29 = vadd.f32 1.0, %v7546_v58  ;;  %v5751_v38 = vmul.f32 %v5749_v27, %v5729_v63 }
0x2c15   :  { %v5750_v35 = vmul.f32 0.5, %v5748_v29 }
0x2c17   :  { %v5752_v52 = vmul.f32 %v5750_v35, %v5732_v3  ;;  %v6398_v35 = vld [vmem:[#allocation33] ss:$0 sm:$0xff] }
0x2c19   :  { %v5757_v11 = vpack.c.bf16 %v5752_v52, %v5751_v38 }
0x2c1b   :  { %7089 = vmatmul.mubr.msk.bf16.vlgmr.msra.gmra.mxu0 %vm723_vm3, %v5757_v11 }
0x2c1c   :  { %7096 = vmatprep.mubr.msk.bf16.mxu0 %vm8213_vm0, %v8212_v0  ;;  %7093 = vmatpush3.bf16.msra.mxu0 %v7335_v61 }
0x2c1d   :  { %7094 = vmatprep.subr.bf16.mxu0 %v8212_v0 }
0x2c20   :  { %7095 = vmatpush3.bf16.msra.mxu0 %v7336_v48 }
0x2c21   :  { %7100 = vmatprep.subr.bf16.mxu0 %v8212_v0 }
0x2cdb   :  { %v5814_v36 = vpop.f32.mrf.mxu0 }
0x2cdc   :  { %v5815_v28 = vadd.f32 %v6386_v10, %v5814_v36 }
0x2cdd   :  { %v7090_v17 = vpop.f32.mrf.mxu0 }
0x2cde   :  { %v5821_v39 = vmul.f32 %v5815_v28, %v5815_v28 }
0x2cdf   :  { %v5817_v40 = vpop.f32.mrf.mxu0 }
0x2ce0   :  { %v5823_v14 = vmul.f32 %v5821_v39, %v5815_v28  ;;  %v5818_v57 = vadd.f32 %v6386_v10, %v5817_v40 }
0x2ce1   :  { %v7091_v33 = vpop.f32.mrf.mxu0 }
0x2ce2   :  { %v5825_v1 = vmul.f32 0.044715, %v5823_v14  ;;  %v5822_v15 = vmul.f32 %v5818_v57, %v5818_v57 }
0x2ce4   :  { %v5827_v49 = vadd.f32 %v5825_v1, %v5815_v28  ;;  %v5824_v16 = vmul.f32 %v5822_v15, %v5818_v57 }
0x2ce6   :  { %v5829_v26 = vmul.f32 0.7978846, %v5827_v49  ;;  %v5826_v25 = vmul.f32 0.044715, %v5824_v16 }
0x2ce8   :  { %7547 = vtanh.f32 %v5829_v26  ;;  %v5828_v5 = vadd.f32 %v5826_v25, %v5818_v57 }
0x2cea   :  { %v5830_v50 = vmul.f32 0.7978846, %v5828_v5 }
0x2cec   :  { %7549 = vtanh.f32 %v5830_v50 }
0x2cf5   :  { %v7548_v53 = vpop.eup %7547 }
0x2cf6   :  { %v5833_v20 = vadd.f32 1.0, %v7548_v53 }
0x2cf8   :  { %v5835_v13 = vmul.f32 0.5, %v5833_v20 }
0x2cf9   :  { %v7550_v55 = vpop.eup %7549 }
0x2cfa   :  { %v5834_v46 = vadd.f32 1.0, %v7550_v55  ;;  %v5837_v34 = vmul.f32 %v5835_v13, %v5815_v28 }
0x2cfc   :  { %v5836_v54 = vmul.f32 0.5, %v5834_v46  ;;  %v5839_v21 = vadd.f32 %v5837_v34, %v5751_v38 }
0x2cfe   :  { %v5838_v18 = vmul.f32 %v5836_v54, %v5818_v57 }
0x2d00   :  { %v5840_v6 = vadd.f32 %v5838_v18, %v5752_v52 }
0x2d02   :  { %v5846_v8 = vpack.c.bf16 %v5840_v6, %v5839_v21 }
0x2d04   :  { %7097 = vmatmul.mubr.msk.bf16.vlgmr.msra.gmra.mxu0 %vm723_vm3, %v5846_v8 }
0x2d05   :  { %7104 = vmatprep.mubr.msk.bf16.mxu0 %vm8213_vm0, %v8212_v0  ;;  %7101 = vmatpush3.bf16.msra.mxu0 %v7337_v59 }
0x2d06   :  { %7102 = vmatprep.subr.bf16.mxu0 %v8212_v0 }
0x2d09   :  { %7103 = vmatpush3.bf16.msra.mxu0 %v7338_v4 }
0x2dc4   :  { %v5904_v47 = vpop.f32.mrf.mxu0 }
0x2dc5   :  { %v5905_v43 = vadd.f32 %v6394_v12, %v5904_v47 }
0x2dc6   :  { %v7098_v62 = vpop.f32.mrf.mxu0 }
0x2dc7   :  { %v5911_v45 = vmul.f32 %v5905_v43, %v5905_v43 }
0x2dc8   :  { %v5907_v31 = vpop.f32.mrf.mxu0 }
0x2dc9   :  { %v5913_v9 = vmul.f32 %v5911_v45, %v5905_v43  ;;  %v5908_v63 = vadd.f32 %v6394_v12, %v5907_v31 }
0x2dca   :  { %v7099_v30 = vpop.f32.mrf.mxu0 }
0x2dcb   :  { %v5915_v60 = vmul.f32 0.044715, %v5913_v9  ;;  %v5912_v32 = vmul.f32 %v5908_v63, %v5908_v63 }
0x2dcd   :  { %v5917_v2 = vadd.f32 %v5915_v60, %v5905_v43  ;;  %v5914_v3 = vmul.f32 %v5912_v32, %v5908_v63 }
0x2dcf   :  { %v5919_v41 = vmul.f32 0.7978846, %v5917_v2  ;;  %v5916_v44 = vmul.f32 0.044715, %v5914_v3 }
0x2dd1   :  { %7551 = vtanh.f32 %v5919_v41  ;;  %v5918_v7 = vadd.f32 %v5916_v44, %v5908_v63 }
0x2dd3   :  { %v5920_v0 = vmul.f32 0.7978846, %v5918_v7 }
0x2dd5   :  { %7553 = vtanh.f32 %v5920_v0 }
0x2dde   :  { %v7552_v37 = vpop.eup %7551 }
0x2ddf   :  { %v5923_v51 = vadd.f32 1.0, %v7552_v37 }
0x2de1   :  { %v5925_v22 = vmul.f32 0.5, %v5923_v51 }
0x2de2   :  { %v7554_v42 = vpop.eup %7553 }
0x2de3   :  { %v5924_v56 = vadd.f32 1.0, %v7554_v42  ;;  %v5927_v19 = vmul.f32 %v5925_v22, %v5905_v43 }
0x2de5   :  { %v5926_v24 = vmul.f32 0.5, %v5924_v56  ;;  %v5929_v58 = vadd.f32 %v5927_v19, %v5839_v21 }
0x2de7   :  { %v5928_v23 = vmul.f32 %v5926_v24, %v5908_v63 }
0x2de9   :  { %v5930_v27 = vadd.f32 %v5928_v23, %v5840_v6 }
0x2deb   :  { %v5935_v29 = vpack.c.bf16 %v5930_v27, %v5929_v58 }
0x2ded   :  { %7105 = vmatmul.mubr.msk.bf16.vlgmr.msra.gmra.mxu0 %vm723_vm3, %v5935_v29 }
0x2ead   :  { %v5992_v38 = vpop.f32.mrf.mxu0 }
0x2eae   :  { %v5993_v52 = vadd.f32 %v6398_v35, %v5992_v38 }
0x2eaf   :  { %v7106_v11 = vpop.f32.mrf.mxu0 }
0x2eb0   :  { %5999 = vst [vmem:[%s8475_s24] sm:$0xff] %v5993_v52 }
0x2eb1   :  { %v5995_v61 = vpop.f32.mrf.mxu0 }
0x2eb2   :  { %v5996_v48 = vadd.f32 %v6398_v35, %v5995_v61 }
0x2eb3   :  { %v7107_v10 = vpop.f32.mrf.mxu0 }
0x2eb4   :  { %6000 = vst [vmem:[%s8475_s24 + $0x8] sm:$0xff] %v5996_v48 }
0x2eb5   :  { %6005 = vsyncpa [#allocation3], 1 }
0x2eb6   :  { %6006 = vsyncpa [#allocation5], 1 }
0x2eb7   :  { %6007 = vsyncpa [#allocation8], 1 }
0x2eb8   :  { %6008 = vsyncpa [#allocation11], 1 }
0x2eb9   :  { %6009 = vsyncpa [#allocation14], 1 }
0x2eba   :  { %6010 = vsyncpa [#allocation17], 1 }
0x2ebb   :  { %6011 = vsyncpa [#allocation20], 1 }
0x2ebc   :  { %6012 = vsyncpa [#allocation23], 1 }
0x2ebd   :  { %6013 = vsyncpa [#allocation26], 1 }
0x2ebe   :  { %6014 = vsyncpa [#allocation29], 1 }
0x2ebf   :  { %6015 = vsyncpa [#allocation32], 1 }
0x2ec0   :  { %6016 = vsyncpa [#allocation35], 1 }
0x2ec1   :  { %6017 = vsyncpa [#allocation38], 1 }
0x2ec2   :  { %6018 = vsyncpa [#allocation41], 1 }

</bundles_post_ra>
